<compile_context>
chip_gen: v5e
topology: v5e:2x2
jax: 0.10.0
libtpu: 0.0.40
codegen_flags: <defaults>
</compile_context>

<pallas_src>
import math
import jax
import jax.numpy as jnp
from jax.experimental import pallas as pl
from jax.experimental.pallas import tpu as pltpu

EPS = 1e-5
NUM_HEADS = 3
D_K = 256                      # per-head dim == per-branch feature dim
D_MODEL = NUM_HEADS * D_K      # 768
NUM_BRANCH = 7
EMB_DIM = 768
OUT_DIMS = (2, 3, 3, 3, 3, 2, 2)
CLS_PAD = 128                  # classifier logits padded to a lane-dense width
BF16 = jnp.bfloat16


# ---------------- Kernel 1/2: two fused (Linear + folded-BN + ReLU) layers ----------------
def _mlp2_kernel(x_ref, w1_ref, b1_ref, w2_ref, b2_ref, o_ref):
    h = jnp.dot(x_ref[...].astype(BF16), w1_ref[...],
                preferred_element_type=jnp.float32) + b1_ref[...]
    h = jnp.maximum(h, 0.0)
    y = jnp.dot(h.astype(BF16), w2_ref[...],
                preferred_element_type=jnp.float32) + b2_ref[...]
    o_ref[...] = jnp.maximum(y, 0.0)


def fc_stack(x, p):
    """fc1 -> fc2 (both Linear+BN(eval)+ReLU) fused into one pallas_call."""
    B = x.shape[0]
    full = lambda shape: pl.BlockSpec(shape, lambda i: (0,) * len(shape))
    return pl.pallas_call(
        _mlp2_kernel,
        out_shape=jax.ShapeDtypeStruct((B, 512), jnp.float32),
        grid=(1,),
        in_specs=[full((B, EMB_DIM)),
                  full((EMB_DIM, 512)), full((1, 512)),
                  full((512, 512)), full((1, 512))],
        out_specs=full((B, 512)),
    )(x, p["w1"], p["b1"], p["w2"], p["b2"])


def branch_fcs(x, bp):
    """Per-branch fc_out_i -> fc_out_i_2, grid over the 7 classwise branches."""
    B = x.shape[0]
    shared = pl.BlockSpec((B, 512), lambda i: (0, 0))
    per_w1 = pl.BlockSpec((None, 512, 512), lambda i: (i, 0, 0))
    per_b1 = pl.BlockSpec((None, 1, 512), lambda i: (i, 0, 0))
    per_w2 = pl.BlockSpec((None, 512, D_K), lambda i: (i, 0, 0))
    per_b2 = pl.BlockSpec((None, 1, D_K), lambda i: (i, 0, 0))
    return pl.pallas_call(
        _mlp2_kernel,
        out_shape=jax.ShapeDtypeStruct((NUM_BRANCH, B, D_K), jnp.float32),
        grid=(NUM_BRANCH,),
        in_specs=[shared, per_w1, per_b1, per_w2, per_b2],
        out_specs=pl.BlockSpec((None, B, D_K), lambda i: (i, 0, 0)),
        compiler_params=pltpu.CompilerParams(dimension_semantics=("parallel",)),
    )(x, bp["w1"], bp["b1"], bp["w2"], bp["b2"])


# ---------------- Kernel 3: per-branch MHA + out-proj + classifier (grid over 7) ----------------
def _attn_cls_kernel(q_src_ref, y_all_ref, wq_ref, bq_ref, wk_ref, bk_ref,
                     wv_ref, bv_ref, wo_ref, bo_ref, wc_ref, bc_ref, o_ref):
    NB, B, _ = y_all_ref.shape
    scale = 1.0 / math.sqrt(D_K)

    # q_linear on the tiled query [y_i, y_i, y_i]: wq was pre-reduced on the
    # host to the sum of its three 256-row blocks, so one (B,256)@(256,768)
    # matmul is exact.
    q = jnp.dot(q_src_ref[...].astype(BF16), wq_ref[...],
                preferred_element_type=jnp.float32) + bq_ref[...]          # (B, 768)

    # K/V projection for all 7 keys x B batch rows in a single matmul each.
    kv = y_all_ref[...].reshape(NB * B, D_K).astype(BF16)                  # (7B, 256)
    k = jnp.dot(kv, wk_ref[...], preferred_element_type=jnp.float32) + bk_ref[...]
    v = jnp.dot(kv, wv_ref[...], preferred_element_type=jnp.float32) + bv_ref[...]
    k3 = k.reshape(NB, B, D_MODEL)        # tile-aligned when B % 8 == 0
    v3 = v.reshape(NB, B, D_MODEL)

    heads = []
    for h in range(NUM_HEADS):            # 3 static iterations, lane-aligned slices
        lo, hi = h * D_K, (h + 1) * D_K
        qh = q[:, lo:hi]                  # (B, 256)
        kh = k3[:, :, lo:hi]              # (7, B, 256)
        vh = v3[:, :, lo:hi]
        # scores s[j, b] = <q[b], k[j, b]> / sqrt(d_k), vectorized over (j, b)
        s = jnp.sum(qh[None, :, :] * kh, axis=-1, keepdims=True) * scale   # (7, B, 1)
        s = s - jnp.max(s, axis=0, keepdims=True)
        e = jnp.exp(s)
        p = e / jnp.sum(e, axis=0, keepdims=True)                          # (7, B, 1)
        heads.append(jnp.sum(p * vh, axis=0))                              # (B, 256)
    concat = jnp.concatenate(heads, axis=-1)                               # (B, 768)

    attn = jnp.dot(concat.astype(BF16), wo_ref[...],
                   preferred_element_type=jnp.float32) + bo_ref[...]       # (B, 768)
    # fused classifier, lane-padded to 128 for a dense store (real logits are
    # the first OUT_DIMS[i] columns, sliced outside the kernel).
    o_ref[...] = jnp.dot(attn.astype(BF16), wc_ref[...],
                         preferred_element_type=jnp.float32) + bc_ref[...]


def attn_cls(y, ap):
    NB, B, _ = y.shape
    per_q = pl.BlockSpec((None, B, D_K), lambda i: (i, 0, 0))
    shared_y = pl.BlockSpec((NB, B, D_K), lambda i: (0, 0, 0))
    w_qkv = pl.BlockSpec((None, D_K, D_MODEL), lambda i: (i, 0, 0))
    b_dm = pl.BlockSpec((None, 1, D_MODEL), lambda i: (i, 0, 0))
    w_o = pl.BlockSpec((None, D_MODEL, D_MODEL), lambda i: (i, 0, 0))
    w_c = pl.BlockSpec((None, D_MODEL, CLS_PAD), lambda i: (i, 0, 0))
    b_c = pl.BlockSpec((None, 1, CLS_PAD), lambda i: (i, 0, 0))
    return pl.pallas_call(
        _attn_cls_kernel,
        out_shape=jax.ShapeDtypeStruct((NB, B, CLS_PAD), jnp.float32),
        grid=(NB,),
        in_specs=[per_q, shared_y,
                  w_qkv, b_dm, w_qkv, b_dm, w_qkv, b_dm,
                  w_o, b_dm, w_c, b_c],
        out_specs=pl.BlockSpec((None, B, CLS_PAD), lambda i: (i, 0, 0)),
        compiler_params=pltpu.CompilerParams(
            dimension_semantics=("parallel",),
            # per-step working set ~2.5 MiB (bf16 reduced weights), ~5 MiB
            # double-buffered; 32 MiB is safe on v5e/v6e (128 MiB physical)
            # and v7x (64 MiB physical).
            vmem_limit_bytes=32 * 1024 * 1024),
    )(y, y, ap["wq"], ap["bq"], ap["wk"], ap["bk"], ap["wv"], ap["bv"],
      ap["wo"], ap["bo"], ap["wc"], ap["bc"])


# ---------------- full forward ----------------
@jax.jit
def xlmr_attention_classwise_forward(bert_output, kparams):
    # TODO(synk): XLMRobertaModel backbone not implemented; consumes the pooled
    # BERT embedding (B, 768) directly.
    x = fc_stack(bert_output, kparams["fc"])        # (B, 512)
    y = branch_fcs(x, kparams["branch"])            # (7, B, 256)
    logits = attn_cls(y, kparams["attn"])           # (7, B, 128) lane-padded
    return tuple(logits[i, :, :n] for i, n in enumerate(OUT_DIMS))


# ---------------- host-side parameter preparation ----------------
def _fold_bn(w, b, g, beta, m, v):
    """Fold eval-mode BatchNorm1d into the preceding Linear; weights -> bf16."""
    scale = g * jax.lax.rsqrt(v + EPS)
    return (w * scale).astype(BF16), (b - m) * scale + beta


def prepare_kernel_params(params):
    kp = {}
    w1, b1 = _fold_bn(**params["fc1"])
    w2, b2 = _fold_bn(**params["fc2"])
    kp["fc"] = dict(w1=w1, b1=b1, w2=w2, b2=b2)

    bp = params["branch"]
    bw1, bb1 = _fold_bn(bp["w1"], bp["b1"], bp["g1"], bp["beta1"], bp["m1"], bp["v1"])
    bw2, bb2 = _fold_bn(bp["w2"], bp["b2"], bp["g2"], bp["beta2"], bp["m2"], bp["v2"])
    kp["branch"] = dict(w1=bw1, b1=bb1, w2=bw2, b2=bb2)

    ap = params["attn"]
    # q/k/v inputs are [y, y, y] -> fold the 3-way tiling into the weights.
    fold3 = lambda w: (w[:, 0:D_K] + w[:, D_K:2 * D_K] + w[:, 2 * D_K:]).astype(BF16)
    kp["attn"] = dict(
        wq=fold3(ap["wq"]), bq=ap["bq"],
        wk=fold3(ap["wk"]), bk=ap["bk"],
        wv=fold3(ap["wv"]), bv=ap["bv"],
        wo=ap["wo"].astype(BF16), bo=ap["bo"],
        wc=jnp.stack([jnp.pad(p["w"], ((0, 0), (0, CLS_PAD - p["w"].shape[1])))
                      for p in params["out"]]).astype(BF16),
        bc=jnp.stack([jnp.pad(p["b"], ((0, 0), (0, CLS_PAD - p["b"].shape[1])))
                      for p in params["out"]]),
    )
    return kp


# ---------------- deterministic parameter init (reference / PyTorch-like format) ----------------
def init_params(key):
    keys = iter(jax.random.split(key, 256))
    nxt = lambda: next(keys)

    def lbr_params(in_dim, out_dim):
        return dict(
            w=0.05 * jax.random.normal(nxt(), (in_dim, out_dim), jnp.float32),
            b=0.01 * jax.random.normal(nxt(), (1, out_dim), jnp.float32),
            g=1.0 + 0.1 * jax.random.normal(nxt(), (1, out_dim), jnp.float32),
            beta=0.01 * jax.random.normal(nxt(), (1, out_dim), jnp.float32),
            m=0.01 * jax.random.normal(nxt(), (1, out_dim), jnp.float32),
            v=jax.random.uniform(nxt(), (1, out_dim), jnp.float32, 0.5, 1.5),
        )

    params = dict(fc1=lbr_params(EMB_DIM, 512), fc2=lbr_params(512, 512))

    def stack_lbr(in_dim, out_dim):
        ps = [lbr_params(in_dim, out_dim) for _ in range(NUM_BRANCH)]
        return {k: jnp.stack([p[k] for p in ps]) for k in ps[0]}

    s1 = stack_lbr(512, 512)      # fc_out_i
    s2 = stack_lbr(512, 256)      # fc_out_i_2
    params["branch"] = dict(
        w1=s1["w"], b1=s1["b"], g1=s1["g"], beta1=s1["beta"], m1=s1["m"], v1=s1["v"],
        w2=s2["w"], b2=s2["b"], g2=s2["g"], beta2=s2["beta"], m2=s2["m"], v2=s2["v"])

    def stack_lin(in_dim, out_dim):
        ws, bs = [], []
        for _ in range(NUM_BRANCH):
            ws.append(0.05 * jax.random.normal(nxt(), (in_dim, out_dim), jnp.float32))
            bs.append(0.01 * jax.random.normal(nxt(), (1, out_dim), jnp.float32))
        return jnp.stack(ws), jnp.stack(bs)

    wq, bq = stack_lin(D_MODEL, D_MODEL)
    wk, bk = stack_lin(D_MODEL, D_MODEL)
    wv, bv = stack_lin(D_MODEL, D_MODEL)
    wo, bo = stack_lin(D_MODEL, D_MODEL)
    params["attn"] = dict(wq=wq, bq=bq, wk=wk, bk=bk, wv=wv, bv=bv, wo=wo, bo=bo)

    params["out"] = [dict(w=0.05 * jax.random.normal(nxt(), (D_MODEL, n), jnp.float32),
                          b=0.01 * jax.random.normal(nxt(), (1, n), jnp.float32))
                     for n in OUT_DIMS]
    return params


# ---------------- pure-JAX reference (f32, full weights) for verification ----------------
def reference_forward(bert_output, params):
    hp = jax.lax.Precision.HIGHEST

    def lbr(x, p):
        y = jnp.dot(x, p["w"], precision=hp) + p["b"]
        y = (y - p["m"]) / jnp.sqrt(p["v"] + EPS) * p["g"] + p["beta"]
        return jnp.maximum(y, 0.0)

    x = lbr(bert_output, params["fc1"])
    x = lbr(x, params["fc2"])
    B = x.shape[0]
    bp = params["branch"]
    branch_outs = []
    for i in range(NUM_BRANCH):
        p1 = dict(w=bp["w1"][i], b=bp["b1"][i], g=bp["g1"][i], beta=bp["beta1"][i], m=bp["m1"][i], v=bp["v1"][i])
        p2 = dict(w=bp["w2"][i], b=bp["b2"][i], g=bp["g2"][i], beta=bp["beta2"][i], m=bp["m2"][i], v=bp["v2"][i])
        branch_outs.append(lbr(lbr(x, p1), p2))
    q_in = jnp.stack([jnp.tile(y, (1, NUM_HEADS)) for y in branch_outs])     # (7, B, 768)
    kv = jnp.transpose(q_in, (1, 0, 2))                                       # (B, 7, 768)
    ap = params["attn"]
    outs = []
    for i in range(NUM_BRANCH):
        q = jnp.dot(q_in[i], ap["wq"][i], precision=hp) + ap["bq"][i]
        k = jnp.einsum("bsd,de->bse", kv, ap["wk"][i], precision=hp) + ap["bk"][i]
        v = jnp.einsum("bsd,de->bse", kv, ap["wv"][i], precision=hp) + ap["bv"][i]
        qh = q.reshape(B, 1, NUM_HEADS, D_K).transpose(0, 2, 1, 3)
        kh = k.reshape(B, NUM_BRANCH, NUM_HEADS, D_K).transpose(0, 2, 1, 3)
        vh = v.reshape(B, NUM_BRANCH, NUM_HEADS, D_K).transpose(0, 2, 1, 3)
        s = jnp.einsum("bhqd,bhkd->bhqk", qh, kh, precision=hp) / math.sqrt(D_K)
        a = jax.nn.softmax(s, axis=-1)
        o = jnp.einsum("bhqk,bhkd->bhqd", a, vh, precision=hp)
        o = o.transpose(0, 2, 1, 3).reshape(B, D_MODEL)
        o = jnp.dot(o, ap["wo"][i], precision=hp) + ap["bo"][i]
        outs.append(jnp.dot(o, params["out"][i]["w"], precision=hp) + params["out"][i]["b"])
    return outs


if __name__ == "__main__":
    B = 8   # multiple of 8 keeps in-kernel reshapes sublane-tile aligned
    key = jax.random.PRNGKey(0)
    pkey, xkey = jax.random.split(key)
    params = init_params(pkey)
    bert_output = jax.random.normal(xkey, (B, EMB_DIM), jnp.float32)

    kparams = prepare_kernel_params(params)
    outs = xlmr_attention_classwise_forward(bert_output, kparams)
    outs = jax.block_until_ready(outs)

    refs = reference_forward(bert_output, params)
    for o, r, n in zip(outs, refs, OUT_DIMS):
        assert o.shape == (B, n), o.shape
        assert bool(jnp.all(jnp.isfinite(o)))
        err = float(jnp.max(jnp.abs(o - r)))
        # bf16 MXU weights => small, benign deviation from the f32 reference
        assert bool(jnp.allclose(o, r, atol=3e-2, rtol=3e-2)), err

    print("KERNEL_OK")
</pallas_src>

<mosaic_0001>
module attributes {stable_mosaic.version = 11 : i64} {
  func.func @_mlp2_kernel(%arg0: i32, %arg1: memref<8x768xf32, #tpu.memory_space<vmem>>, %arg2: memref<768x512xbf16, #tpu.memory_space<vmem>>, %arg3: memref<1x512xf32, #tpu.memory_space<vmem>>, %arg4: memref<512x512xbf16, #tpu.memory_space<vmem>>, %arg5: memref<1x512xf32, #tpu.memory_space<vmem>>, %arg6: memref<8x512xf32, #tpu.memory_space<vmem>>) attributes {dimension_semantics = [#tpu.dimension_semantics<arbitrary>], iteration_bounds = array<i64: 1>, scalar_prefetch = 0 : i64, scratch_operands = 0 : i64, tpu.core_type = #tpu.core_type<tc>, window_params = [{pipeline_mode = #tpu.pipeline_mode<synchronous>, transform_indices = @transform_0, window_bounds = array<i64: 8, 768>}, {pipeline_mode = #tpu.pipeline_mode<synchronous>, transform_indices = @transform_1, window_bounds = array<i64: 768, 512>}, {pipeline_mode = #tpu.pipeline_mode<synchronous>, transform_indices = @transform_2, window_bounds = array<i64: 1, 512>}, {pipeline_mode = #tpu.pipeline_mode<synchronous>, transform_indices = @transform_3, window_bounds = array<i64: 512, 512>}, {pipeline_mode = #tpu.pipeline_mode<synchronous>, transform_indices = @transform_4, window_bounds = array<i64: 1, 512>}, {pipeline_mode = #tpu.pipeline_mode<synchronous>, transform_indices = @transform_5, window_bounds = array<i64: 8, 512>}]} {
    %c0 = arith.constant 0 : index
    %c0_0 = arith.constant 0 : index
    %0 = vector.load %arg1[%c0, %c0_0] : memref<8x768xf32, #tpu.memory_space<vmem>>, vector<8x768xf32>
    %1 = arith.truncf %0 : vector<8x768xf32> to vector<8x768xbf16>
    %c0_1 = arith.constant 0 : index
    %c0_2 = arith.constant 0 : index
    %2 = vector.load %arg2[%c0_1, %c0_2] : memref<768x512xbf16, #tpu.memory_space<vmem>>, vector<768x512xbf16>
    %cst = arith.constant dense<0.000000e+00> : vector<8x512xf32>
    %3 = tpu.matmul %1, %2, %cst {dimension_numbers = #tpu.dot_dimension_numbers<[1], [0], [0], [1], [0, 0, 1, 1], [], []>} : vector<8x768xbf16>, vector<768x512xbf16>, vector<8x512xf32> -> vector<8x512xf32>
    %c0_3 = arith.constant 0 : index
    %c0_4 = arith.constant 0 : index
    %4 = vector.load %arg3[%c0_3, %c0_4] : memref<1x512xf32, #tpu.memory_space<vmem>>, vector<1x512xf32>
    %5 = vector.broadcast %4 : vector<1x512xf32> to vector<8x512xf32>
    %6 = arith.addf %3, %5 : vector<8x512xf32>
    %cst_5 = arith.constant 0.000000e+00 : f32
    %7 = vector.broadcast %cst_5 : f32 to vector<8x512xf32>
    %8 = arith.maximumf %6, %7 : vector<8x512xf32>
    %9 = arith.truncf %8 : vector<8x512xf32> to vector<8x512xbf16>
    %c0_6 = arith.constant 0 : index
    %c0_7 = arith.constant 0 : index
    %10 = vector.load %arg4[%c0_6, %c0_7] : memref<512x512xbf16, #tpu.memory_space<vmem>>, vector<512x512xbf16>
    %cst_8 = arith.constant dense<0.000000e+00> : vector<8x512xf32>
    %11 = tpu.matmul %9, %10, %cst_8 {dimension_numbers = #tpu.dot_dimension_numbers<[1], [0], [0], [1], [0, 0, 1, 1], [], []>} : vector<8x512xbf16>, vector<512x512xbf16>, vector<8x512xf32> -> vector<8x512xf32>
    %c0_9 = arith.constant 0 : index
    %c0_10 = arith.constant 0 : index
    %12 = vector.load %arg5[%c0_9, %c0_10] : memref<1x512xf32, #tpu.memory_space<vmem>>, vector<1x512xf32>
    %13 = vector.broadcast %12 : vector<1x512xf32> to vector<8x512xf32>
    %14 = arith.addf %11, %13 : vector<8x512xf32>
    %cst_11 = arith.constant 0.000000e+00 : f32
    %15 = vector.broadcast %cst_11 : f32 to vector<8x512xf32>
    %16 = arith.maximumf %14, %15 : vector<8x512xf32>
    %c0_12 = arith.constant 0 : index
    %c0_13 = arith.constant 0 : index
    %17 = vector.load %arg6[%c0_12, %c0_13] : memref<8x512xf32, #tpu.memory_space<vmem>>, vector<8x512xf32>
    tpu.vector_store %arg6[%c0_12, %c0_13], %16 {strides = array<i32>} : memref<8x512xf32, #tpu.memory_space<vmem>>, vector<8x512xf32>,
    return
  }
  func.func @transform_0(%arg0: i32) -> (i32, i32) {
    %c0_i32 = arith.constant 0 : i32
    %c0_i32_0 = arith.constant 0 : i32
    %c0_i32_1 = arith.constant 0 : i32
    return %c0_i32, %c0_i32_0 : i32, i32
  }
  func.func @transform_1(%arg0: i32) -> (i32, i32) {
    %c0_i32 = arith.constant 0 : i32
    %c0_i32_0 = arith.constant 0 : i32
    %c0_i32_1 = arith.constant 0 : i32
    return %c0_i32, %c0_i32_0 : i32, i32
  }
  func.func @transform_2(%arg0: i32) -> (i32, i32) {
    %c0_i32 = arith.constant 0 : i32
    %c0_i32_0 = arith.constant 0 : i32
    %c0_i32_1 = arith.constant 0 : i32
    return %c0_i32, %c0_i32_0 : i32, i32
  }
  func.func @transform_3(%arg0: i32) -> (i32, i32) {
    %c0_i32 = arith.constant 0 : i32
    %c0_i32_0 = arith.constant 0 : i32
    %c0_i32_1 = arith.constant 0 : i32
    return %c0_i32, %c0_i32_0 : i32, i32
  }
  func.func @transform_4(%arg0: i32) -> (i32, i32) {
    %c0_i32 = arith.constant 0 : i32
    %c0_i32_0 = arith.constant 0 : i32
    %c0_i32_1 = arith.constant 0 : i32
    return %c0_i32, %c0_i32_0 : i32, i32
  }
  func.func @transform_5(%arg0: i32) -> (i32, i32) {
    %c0_i32 = arith.constant 0 : i32
    %c0_i32_0 = arith.constant 0 : i32
    %c0_i32_1 = arith.constant 0 : i32
    return %c0_i32, %c0_i32_0 : i32, i32
  }
}

module attributes {stable_mosaic.version = 11 : i64} {
  func.func @_mlp2_kernel(%arg0: i32, %arg1: memref<8x512xf32, #tpu.memory_space<vmem>>, %arg2: memref<1x512x512xbf16, #tpu.memory_space<vmem>>, %arg3: memref<1x1x512xf32, #tpu.memory_space<vmem>>, %arg4: memref<1x512x256xbf16, #tpu.memory_space<vmem>>, %arg5: memref<1x1x256xf32, #tpu.memory_space<vmem>>, %arg6: memref<1x8x256xf32, #tpu.memory_space<vmem>>) attributes {dimension_semantics = [#tpu.dimension_semantics<parallel>], iteration_bounds = array<i64: 7>, scalar_prefetch = 0 : i64, scratch_operands = 0 : i64, tpu.core_type = #tpu.core_type<tc>, window_params = [{pipeline_mode = #tpu.pipeline_mode<synchronous>, transform_indices = @transform_0, window_bounds = array<i64: 8, 512>}, {transform_indices = @transform_1, window_bounds = array<i64: 1, 512, 512>}, {transform_indices = @transform_2, window_bounds = array<i64: 1, 1, 512>}, {transform_indices = @transform_3, window_bounds = array<i64: 1, 512, 256>}, {transform_indices = @transform_4, window_bounds = array<i64: 1, 1, 256>}, {transform_indices = @transform_5, window_bounds = array<i64: 1, 8, 256>}]} {
    %c0 = arith.constant 0 : index
    %c0_0 = arith.constant 0 : index
    %0 = vector.load %arg1[%c0, %c0_0] : memref<8x512xf32, #tpu.memory_space<vmem>>, vector<8x512xf32>
    %1 = arith.truncf %0 : vector<8x512xf32> to vector<8x512xbf16>
    %c0_1 = arith.constant 0 : index
    %c0_2 = arith.constant 0 : index
    %c0_3 = arith.constant 0 : index
    %2 = vector.load %arg2[%c0_1, %c0_2, %c0_3] : memref<1x512x512xbf16, #tpu.memory_space<vmem>>, vector<1x512x512xbf16>
    %3 = vector.shape_cast %2 : vector<1x512x512xbf16> to vector<512x512xbf16>
    %cst = arith.constant dense<0.000000e+00> : vector<8x512xf32>
    %4 = tpu.matmul %1, %3, %cst {dimension_numbers = #tpu.dot_dimension_numbers<[1], [0], [0], [1], [0, 0, 1, 1], [], []>} : vector<8x512xbf16>, vector<512x512xbf16>, vector<8x512xf32> -> vector<8x512xf32>
    %c0_4 = arith.constant 0 : index
    %c0_5 = arith.constant 0 : index
    %c0_6 = arith.constant 0 : index
    %5 = vector.load %arg3[%c0_4, %c0_5, %c0_6] : memref<1x1x512xf32, #tpu.memory_space<vmem>>, vector<1x1x512xf32>
    %6 = vector.shape_cast %5 : vector<1x1x512xf32> to vector<1x512xf32>
    %7 = vector.broadcast %6 : vector<1x512xf32> to vector<8x512xf32>
    %8 = arith.addf %4, %7 : vector<8x512xf32>
    %cst_7 = arith.constant 0.000000e+00 : f32
    %9 = vector.broadcast %cst_7 : f32 to vector<8x512xf32>
    %10 = arith.maximumf %8, %9 : vector<8x512xf32>
    %11 = arith.truncf %10 : vector<8x512xf32> to vector<8x512xbf16>
    %c0_8 = arith.constant 0 : index
    %c0_9 = arith.constant 0 : index
    %c0_10 = arith.constant 0 : index
    %12 = vector.load %arg4[%c0_8, %c0_9, %c0_10] : memref<1x512x256xbf16, #tpu.memory_space<vmem>>, vector<1x512x256xbf16>
    %13 = vector.shape_cast %12 : vector<1x512x256xbf16> to vector<512x256xbf16>
    %cst_11 = arith.constant dense<0.000000e+00> : vector<8x256xf32>
    %14 = tpu.matmul %11, %13, %cst_11 {dimension_numbers = #tpu.dot_dimension_numbers<[1], [0], [0], [1], [0, 0, 1, 1], [], []>} : vector<8x512xbf16>, vector<512x256xbf16>, vector<8x256xf32> -> vector<8x256xf32>
    %c0_12 = arith.constant 0 : index
    %c0_13 = arith.constant 0 : index
    %c0_14 = arith.constant 0 : index
    %15 = vector.load %arg5[%c0_12, %c0_13, %c0_14] : memref<1x1x256xf32, #tpu.memory_space<vmem>>, vector<1x1x256xf32>
    %16 = vector.shape_cast %15 : vector<1x1x256xf32> to vector<1x256xf32>
    %17 = vector.broadcast %16 : vector<1x256xf32> to vector<8x256xf32>
    %18 = arith.addf %14, %17 : vector<8x256xf32>
    %cst_15 = arith.constant 0.000000e+00 : f32
    %19 = vector.broadcast %cst_15 : f32 to vector<8x256xf32>
    %20 = arith.maximumf %18, %19 : vector<8x256xf32>
    %c0_16 = arith.constant 0 : index
    %c0_17 = arith.constant 0 : index
    %c0_18 = arith.constant 0 : index
    %21 = vector.load %arg6[%c0_16, %c0_17, %c0_18] : memref<1x8x256xf32, #tpu.memory_space<vmem>>, vector<1x8x256xf32>
    %22 = vector.shape_cast %21 : vector<1x8x256xf32> to vector<8x256xf32>
    %23 = vector.shape_cast %20 : vector<8x256xf32> to vector<1x8x256xf32>
    tpu.vector_store %arg6[%c0_16, %c0_17, %c0_18], %23 {strides = array<i32>} : memref<1x8x256xf32, #tpu.memory_space<vmem>>, vector<1x8x256xf32>,
    return
  }
  func.func @transform_0(%arg0: i32) -> (i32, i32) {
    %c0_i32 = arith.constant 0 : i32
    %c0_i32_0 = arith.constant 0 : i32
    %c0_i32_1 = arith.constant 0 : i32
    return %c0_i32, %c0_i32_0 : i32, i32
  }
  func.func @transform_1(%arg0: i32) -> (i32, i32, i32) {
    %c0_i32 = arith.constant 0 : i32
    %c0_i32_0 = arith.constant 0 : i32
    %c0_i32_1 = arith.constant 0 : i32
    return %arg0, %c0_i32, %c0_i32_0 : i32, i32, i32
  }
  func.func @transform_2(%arg0: i32) -> (i32, i32, i32) {
    %c0_i32 = arith.constant 0 : i32
    %c0_i32_0 = arith.constant 0 : i32
    %c0_i32_1 = arith.constant 0 : i32
    return %arg0, %c0_i32, %c0_i32_0 : i32, i32, i32
  }
  func.func @transform_3(%arg0: i32) -> (i32, i32, i32) {
    %c0_i32 = arith.constant 0 : i32
    %c0_i32_0 = arith.constant 0 : i32
    %c0_i32_1 = arith.constant 0 : i32
    return %arg0, %c0_i32, %c0_i32_0 : i32, i32, i32
  }
  func.func @transform_4(%arg0: i32) -> (i32, i32, i32) {
    %c0_i32 = arith.constant 0 : i32
    %c0_i32_0 = arith.constant 0 : i32
    %c0_i32_1 = arith.constant 0 : i32
    return %arg0, %c0_i32, %c0_i32_0 : i32, i32, i32
  }
  func.func @transform_5(%arg0: i32) -> (i32, i32, i32) {
    %c0_i32 = arith.constant 0 : i32
    %c0_i32_0 = arith.constant 0 : i32
    %c0_i32_1 = arith.constant 0 : i32
    return %arg0, %c0_i32, %c0_i32_0 : i32, i32, i32
  }
}

module attributes {stable_mosaic.version = 11 : i64} {
  func.func @_attn_cls_kernel(%arg0: i32, %arg1: memref<1x8x256xf32, #tpu.memory_space<vmem>>, %arg2: memref<7x8x256xf32, #tpu.memory_space<vmem>>, %arg3: memref<1x256x768xbf16, #tpu.memory_space<vmem>>, %arg4: memref<1x1x768xf32, #tpu.memory_space<vmem>>, %arg5: memref<1x256x768xbf16, #tpu.memory_space<vmem>>, %arg6: memref<1x1x768xf32, #tpu.memory_space<vmem>>, %arg7: memref<1x256x768xbf16, #tpu.memory_space<vmem>>, %arg8: memref<1x1x768xf32, #tpu.memory_space<vmem>>, %arg9: memref<1x768x768xbf16, #tpu.memory_space<vmem>>, %arg10: memref<1x1x768xf32, #tpu.memory_space<vmem>>, %arg11: memref<1x768x128xbf16, #tpu.memory_space<vmem>>, %arg12: memref<1x1x128xf32, #tpu.memory_space<vmem>>, %arg13: memref<1x8x128xf32, #tpu.memory_space<vmem>>) attributes {dimension_semantics = [#tpu.dimension_semantics<parallel>], iteration_bounds = array<i64: 7>, scalar_prefetch = 0 : i64, scratch_operands = 0 : i64, tpu.core_type = #tpu.core_type<tc>, window_params = [{transform_indices = @transform_0, window_bounds = array<i64: 1, 8, 256>}, {pipeline_mode = #tpu.pipeline_mode<synchronous>, transform_indices = @transform_1, window_bounds = array<i64: 7, 8, 256>}, {transform_indices = @transform_2, window_bounds = array<i64: 1, 256, 768>}, {transform_indices = @transform_3, window_bounds = array<i64: 1, 1, 768>}, {transform_indices = @transform_4, window_bounds = array<i64: 1, 256, 768>}, {transform_indices = @transform_5, window_bounds = array<i64: 1, 1, 768>}, {transform_indices = @transform_6, window_bounds = array<i64: 1, 256, 768>}, {transform_indices = @transform_7, window_bounds = array<i64: 1, 1, 768>}, {transform_indices = @transform_8, window_bounds = array<i64: 1, 768, 768>}, {transform_indices = @transform_9, window_bounds = array<i64: 1, 1, 768>}, {transform_indices = @transform_10, window_bounds = array<i64: 1, 768, 128>}, {transform_indices = @transform_11, window_bounds = array<i64: 1, 1, 128>}, {transform_indices = @transform_12, window_bounds = array<i64: 1, 8, 128>}]} {
    %c0 = arith.constant 0 : index
    %c0_0 = arith.constant 0 : index
    %c0_1 = arith.constant 0 : index
    %0 = vector.load %arg1[%c0, %c0_0, %c0_1] : memref<1x8x256xf32, #tpu.memory_space<vmem>>, vector<1x8x256xf32>
    %1 = vector.shape_cast %0 : vector<1x8x256xf32> to vector<8x256xf32>
    %2 = arith.truncf %1 : vector<8x256xf32> to vector<8x256xbf16>
    %c0_2 = arith.constant 0 : index
    %c0_3 = arith.constant 0 : index
    %c0_4 = arith.constant 0 : index
    %3 = vector.load %arg3[%c0_2, %c0_3, %c0_4] : memref<1x256x768xbf16, #tpu.memory_space<vmem>>, vector<1x256x768xbf16>
    %4 = vector.shape_cast %3 : vector<1x256x768xbf16> to vector<256x768xbf16>
    %cst = arith.constant dense<0.000000e+00> : vector<8x768xf32>
    %5 = tpu.matmul %2, %4, %cst {dimension_numbers = #tpu.dot_dimension_numbers<[1], [0], [0], [1], [0, 0, 1, 1], [], []>} : vector<8x256xbf16>, vector<256x768xbf16>, vector<8x768xf32> -> vector<8x768xf32>
    %c0_5 = arith.constant 0 : index
    %c0_6 = arith.constant 0 : index
    %c0_7 = arith.constant 0 : index
    %6 = vector.load %arg4[%c0_5, %c0_6, %c0_7] : memref<1x1x768xf32, #tpu.memory_space<vmem>>, vector<1x1x768xf32>
    %7 = vector.shape_cast %6 : vector<1x1x768xf32> to vector<1x768xf32>
    %8 = vector.broadcast %7 : vector<1x768xf32> to vector<8x768xf32>
    %9 = arith.addf %5, %8 : vector<8x768xf32>
    %c0_8 = arith.constant 0 : index
    %c0_9 = arith.constant 0 : index
    %c0_10 = arith.constant 0 : index
    %10 = vector.load %arg2[%c0_8, %c0_9, %c0_10] : memref<7x8x256xf32, #tpu.memory_space<vmem>>, vector<7x8x256xf32>
    %11 = vector.shape_cast %10 : vector<7x8x256xf32> to vector<56x256xf32>
    %12 = arith.truncf %11 : vector<56x256xf32> to vector<56x256xbf16>
    %c0_11 = arith.constant 0 : index
    %c0_12 = arith.constant 0 : index
    %c0_13 = arith.constant 0 : index
    %13 = vector.load %arg5[%c0_11, %c0_12, %c0_13] : memref<1x256x768xbf16, #tpu.memory_space<vmem>>, vector<1x256x768xbf16>
    %14 = vector.shape_cast %13 : vector<1x256x768xbf16> to vector<256x768xbf16>
    %cst_14 = arith.constant dense<0.000000e+00> : vector<56x768xf32>
    %15 = tpu.matmul %12, %14, %cst_14 {dimension_numbers = #tpu.dot_dimension_numbers<[1], [0], [0], [1], [0, 0, 1, 1], [], []>} : vector<56x256xbf16>, vector<256x768xbf16>, vector<56x768xf32> -> vector<56x768xf32>
    %c0_15 = arith.constant 0 : index
    %c0_16 = arith.constant 0 : index
    %c0_17 = arith.constant 0 : index
    %16 = vector.load %arg6[%c0_15, %c0_16, %c0_17] : memref<1x1x768xf32, #tpu.memory_space<vmem>>, vector<1x1x768xf32>
    %17 = vector.shape_cast %16 : vector<1x1x768xf32> to vector<1x768xf32>
    %18 = vector.broadcast %17 : vector<1x768xf32> to vector<56x768xf32>
    %19 = arith.addf %15, %18 : vector<56x768xf32>
    %c0_18 = arith.constant 0 : index
    %c0_19 = arith.constant 0 : index
    %c0_20 = arith.constant 0 : index
    %20 = vector.load %arg7[%c0_18, %c0_19, %c0_20] : memref<1x256x768xbf16, #tpu.memory_space<vmem>>, vector<1x256x768xbf16>
    %21 = vector.shape_cast %20 : vector<1x256x768xbf16> to vector<256x768xbf16>
    %cst_21 = arith.constant dense<0.000000e+00> : vector<56x768xf32>
    %22 = tpu.matmul %12, %21, %cst_21 {dimension_numbers = #tpu.dot_dimension_numbers<[1], [0], [0], [1], [0, 0, 1, 1], [], []>} : vector<56x256xbf16>, vector<256x768xbf16>, vector<56x768xf32> -> vector<56x768xf32>
    %c0_22 = arith.constant 0 : index
    %c0_23 = arith.constant 0 : index
    %c0_24 = arith.constant 0 : index
    %23 = vector.load %arg8[%c0_22, %c0_23, %c0_24] : memref<1x1x768xf32, #tpu.memory_space<vmem>>, vector<1x1x768xf32>
    %24 = vector.shape_cast %23 : vector<1x1x768xf32> to vector<1x768xf32>
    %25 = vector.broadcast %24 : vector<1x768xf32> to vector<56x768xf32>
    %26 = arith.addf %22, %25 : vector<56x768xf32>
    %27 = vector.shape_cast %19 : vector<56x768xf32> to vector<7x8x768xf32>
    %28 = vector.shape_cast %26 : vector<56x768xf32> to vector<7x8x768xf32>
    %29 = vector.extract_strided_slice %9 {offsets = [0, 0], sizes = [8, 256], strides = [1, 1]} : vector<8x768xf32> to vector<8x256xf32>
    %30 = vector.extract_strided_slice %27 {offsets = [0, 0, 0], sizes = [7, 8, 256], strides = [1, 1, 1]} : vector<7x8x768xf32> to vector<7x8x256xf32>
    %31 = vector.extract_strided_slice %28 {offsets = [0, 0, 0], sizes = [7, 8, 256], strides = [1, 1, 1]} : vector<7x8x768xf32> to vector<7x8x256xf32>
    %32 = vector.shape_cast %29 : vector<8x256xf32> to vector<1x8x256xf32>
    %33 = vector.broadcast %32 : vector<1x8x256xf32> to vector<7x8x256xf32>
    %34 = arith.mulf %33, %30 : vector<7x8x256xf32>
    %cst_25 = arith.constant dense<0.000000e+00> : vector<7x8xf32>
    %35 = vector.multi_reduction <add>, %34, %cst_25 [2] : vector<7x8x256xf32> to vector<7x8xf32>
    %36 = vector.shape_cast %35 : vector<7x8xf32> to vector<7x8x1xf32>
    %cst_26 = arith.constant 6.250000e-02 : f32
    %37 = vector.broadcast %cst_26 : f32 to vector<7x8x1xf32>
    %38 = arith.mulf %36, %37 : vector<7x8x1xf32>
    %cst_27 = arith.constant dense<0xFF800000> : vector<8x1xf32>
    %39 = vector.multi_reduction <maximumf>, %38, %cst_27 [0] : vector<7x8x1xf32> to vector<8x1xf32>
    %40 = vector.shape_cast %39 : vector<8x1xf32> to vector<1x8x1xf32>
    %41 = vector.broadcast %40 : vector<1x8x1xf32> to vector<7x8x1xf32>
    %42 = arith.subf %38, %41 : vector<7x8x1xf32>
    %43 = math.exp %42 : vector<7x8x1xf32>
    %cst_28 = arith.constant dense<0.000000e+00> : vector<8x1xf32>
    %44 = vector.multi_reduction <add>, %43, %cst_28 [0] : vector<7x8x1xf32> to vector<8x1xf32>
    %45 = vector.shape_cast %44 : vector<8x1xf32> to vector<1x8x1xf32>
    %46 = vector.broadcast %45 : vector<1x8x1xf32> to vector<7x8x1xf32>
    %47 = arith.divf %43, %46 : vector<7x8x1xf32>
    %48 = vector.broadcast %47 : vector<7x8x1xf32> to vector<7x8x256xf32>
    %49 = arith.mulf %48, %31 : vector<7x8x256xf32>
    %cst_29 = arith.constant dense<0.000000e+00> : vector<8x256xf32>
    %50 = vector.multi_reduction <add>, %49, %cst_29 [0] : vector<7x8x256xf32> to vector<8x256xf32>
    %51 = vector.extract_strided_slice %9 {offsets = [0, 256], sizes = [8, 256], strides = [1, 1]} : vector<8x768xf32> to vector<8x256xf32>
    %52 = vector.extract_strided_slice %27 {offsets = [0, 0, 256], sizes = [7, 8, 256], strides = [1, 1, 1]} : vector<7x8x768xf32> to vector<7x8x256xf32>
    %53 = vector.extract_strided_slice %28 {offsets = [0, 0, 256], sizes = [7, 8, 256], strides = [1, 1, 1]} : vector<7x8x768xf32> to vector<7x8x256xf32>
    %54 = vector.shape_cast %51 : vector<8x256xf32> to vector<1x8x256xf32>
    %55 = vector.broadcast %54 : vector<1x8x256xf32> to vector<7x8x256xf32>
    %56 = arith.mulf %55, %52 : vector<7x8x256xf32>
    %cst_30 = arith.constant dense<0.000000e+00> : vector<7x8xf32>
    %57 = vector.multi_reduction <add>, %56, %cst_30 [2] : vector<7x8x256xf32> to vector<7x8xf32>
    %58 = vector.shape_cast %57 : vector<7x8xf32> to vector<7x8x1xf32>
    %cst_31 = arith.constant 6.250000e-02 : f32
    %59 = vector.broadcast %cst_31 : f32 to vector<7x8x1xf32>
    %60 = arith.mulf %58, %59 : vector<7x8x1xf32>
    %cst_32 = arith.constant dense<0xFF800000> : vector<8x1xf32>
    %61 = vector.multi_reduction <maximumf>, %60, %cst_32 [0] : vector<7x8x1xf32> to vector<8x1xf32>
    %62 = vector.shape_cast %61 : vector<8x1xf32> to vector<1x8x1xf32>
    %63 = vector.broadcast %62 : vector<1x8x1xf32> to vector<7x8x1xf32>
    %64 = arith.subf %60, %63 : vector<7x8x1xf32>
    %65 = math.exp %64 : vector<7x8x1xf32>
    %cst_33 = arith.constant dense<0.000000e+00> : vector<8x1xf32>
    %66 = vector.multi_reduction <add>, %65, %cst_33 [0] : vector<7x8x1xf32> to vector<8x1xf32>
    %67 = vector.shape_cast %66 : vector<8x1xf32> to vector<1x8x1xf32>
    %68 = vector.broadcast %67 : vector<1x8x1xf32> to vector<7x8x1xf32>
    %69 = arith.divf %65, %68 : vector<7x8x1xf32>
    %70 = vector.broadcast %69 : vector<7x8x1xf32> to vector<7x8x256xf32>
    %71 = arith.mulf %70, %53 : vector<7x8x256xf32>
    %cst_34 = arith.constant dense<0.000000e+00> : vector<8x256xf32>
    %72 = vector.multi_reduction <add>, %71, %cst_34 [0] : vector<7x8x256xf32> to vector<8x256xf32>
    %73 = vector.extract_strided_slice %9 {offsets = [0, 512], sizes = [8, 256], strides = [1, 1]} : vector<8x768xf32> to vector<8x256xf32>
    %74 = vector.extract_strided_slice %27 {offsets = [0, 0, 512], sizes = [7, 8, 256], strides = [1, 1, 1]} : vector<7x8x768xf32> to vector<7x8x256xf32>
    %75 = vector.extract_strided_slice %28 {offsets = [0, 0, 512], sizes = [7, 8, 256], strides = [1, 1, 1]} : vector<7x8x768xf32> to vector<7x8x256xf32>
    %76 = vector.shape_cast %73 : vector<8x256xf32> to vector<1x8x256xf32>
    %77 = vector.broadcast %76 : vector<1x8x256xf32> to vector<7x8x256xf32>
    %78 = arith.mulf %77, %74 : vector<7x8x256xf32>
    %cst_35 = arith.constant dense<0.000000e+00> : vector<7x8xf32>
    %79 = vector.multi_reduction <add>, %78, %cst_35 [2] : vector<7x8x256xf32> to vector<7x8xf32>
    %80 = vector.shape_cast %79 : vector<7x8xf32> to vector<7x8x1xf32>
    %cst_36 = arith.constant 6.250000e-02 : f32
    %81 = vector.broadcast %cst_36 : f32 to vector<7x8x1xf32>
    %82 = arith.mulf %80, %81 : vector<7x8x1xf32>
    %cst_37 = arith.constant dense<0xFF800000> : vector<8x1xf32>
    %83 = vector.multi_reduction <maximumf>, %82, %cst_37 [0] : vector<7x8x1xf32> to vector<8x1xf32>
    %84 = vector.shape_cast %83 : vector<8x1xf32> to vector<1x8x1xf32>
    %85 = vector.broadcast %84 : vector<1x8x1xf32> to vector<7x8x1xf32>
    %86 = arith.subf %82, %85 : vector<7x8x1xf32>
    %87 = math.exp %86 : vector<7x8x1xf32>
    %cst_38 = arith.constant dense<0.000000e+00> : vector<8x1xf32>
    %88 = vector.multi_reduction <add>, %87, %cst_38 [0] : vector<7x8x1xf32> to vector<8x1xf32>
    %89 = vector.shape_cast %88 : vector<8x1xf32> to vector<1x8x1xf32>
    %90 = vector.broadcast %89 : vector<1x8x1xf32> to vector<7x8x1xf32>
    %91 = arith.divf %87, %90 : vector<7x8x1xf32>
    %92 = vector.broadcast %91 : vector<7x8x1xf32> to vector<7x8x256xf32>
    %93 = arith.mulf %92, %75 : vector<7x8x256xf32>
    %cst_39 = arith.constant dense<0.000000e+00> : vector<8x256xf32>
    %94 = vector.multi_reduction <add>, %93, %cst_39 [0] : vector<7x8x256xf32> to vector<8x256xf32>
    %95 = tpu.concatenate %50, %72, %94 in 1 : vector<8x256xf32>, vector<8x256xf32>, vector<8x256xf32> -> vector<8x768xf32>
    %96 = arith.truncf %95 : vector<8x768xf32> to vector<8x768xbf16>
    %c0_40 = arith.constant 0 : index
    %c0_41 = arith.constant 0 : index
    %c0_42 = arith.constant 0 : index
    %97 = vector.load %arg9[%c0_40, %c0_41, %c0_42] : memref<1x768x768xbf16, #tpu.memory_space<vmem>>, vector<1x768x768xbf16>
    %98 = vector.shape_cast %97 : vector<1x768x768xbf16> to vector<768x768xbf16>
    %cst_43 = arith.constant dense<0.000000e+00> : vector<8x768xf32>
    %99 = tpu.matmul %96, %98, %cst_43 {dimension_numbers = #tpu.dot_dimension_numbers<[1], [0], [0], [1], [0, 0, 1, 1], [], []>} : vector<8x768xbf16>, vector<768x768xbf16>, vector<8x768xf32> -> vector<8x768xf32>
    %c0_44 = arith.constant 0 : index
    %c0_45 = arith.constant 0 : index
    %c0_46 = arith.constant 0 : index
    %100 = vector.load %arg10[%c0_44, %c0_45, %c0_46] : memref<1x1x768xf32, #tpu.memory_space<vmem>>, vector<1x1x768xf32>
    %101 = vector.shape_cast %100 : vector<1x1x768xf32> to vector<1x768xf32>
    %102 = vector.broadcast %101 : vector<1x768xf32> to vector<8x768xf32>
    %103 = arith.addf %99, %102 : vector<8x768xf32>
    %104 = arith.truncf %103 : vector<8x768xf32> to vector<8x768xbf16>
    %c0_47 = arith.constant 0 : index
    %c0_48 = arith.constant 0 : index
    %c0_49 = arith.constant 0 : index
    %105 = vector.load %arg11[%c0_47, %c0_48, %c0_49] : memref<1x768x128xbf16, #tpu.memory_space<vmem>>, vector<1x768x128xbf16>
    %106 = vector.shape_cast %105 : vector<1x768x128xbf16> to vector<768x128xbf16>
    %cst_50 = arith.constant dense<0.000000e+00> : vector<8x128xf32>
    %107 = tpu.matmul %104, %106, %cst_50 {dimension_numbers = #tpu.dot_dimension_numbers<[1], [0], [0], [1], [0, 0, 1, 1], [], []>} : vector<8x768xbf16>, vector<768x128xbf16>, vector<8x128xf32> -> vector<8x128xf32>
    %c0_51 = arith.constant 0 : index
    %c0_52 = arith.constant 0 : index
    %c0_53 = arith.constant 0 : index
    %108 = vector.load %arg12[%c0_51, %c0_52, %c0_53] : memref<1x1x128xf32, #tpu.memory_space<vmem>>, vector<1x1x128xf32>
    %109 = vector.shape_cast %108 : vector<1x1x128xf32> to vector<1x128xf32>
    %110 = vector.broadcast %109 : vector<1x128xf32> to vector<8x128xf32>
    %111 = arith.addf %107, %110 : vector<8x128xf32>
    %c0_54 = arith.constant 0 : index
    %c0_55 = arith.constant 0 : index
    %c0_56 = arith.constant 0 : index
    %112 = vector.load %arg13[%c0_54, %c0_55, %c0_56] : memref<1x8x128xf32, #tpu.memory_space<vmem>>, vector<1x8x128xf32>
    %113 = vector.shape_cast %112 : vector<1x8x128xf32> to vector<8x128xf32>
    %114 = vector.shape_cast %111 : vector<8x128xf32> to vector<1x8x128xf32>
    tpu.vector_store %arg13[%c0_54, %c0_55, %c0_56], %114 {strides = array<i32>} : memref<1x8x128xf32, #tpu.memory_space<vmem>>, vector<1x8x128xf32>,
    return
  }
  func.func @transform_0(%arg0: i32) -> (i32, i32, i32) {
    %c0_i32 = arith.constant 0 : i32
    %c0_i32_0 = arith.constant 0 : i32
    %c0_i32_1 = arith.constant 0 : i32
    return %arg0, %c0_i32, %c0_i32_0 : i32, i32, i32
  }
  func.func @transform_1(%arg0: i32) -> (i32, i32, i32) {
    %c0_i32 = arith.constant 0 : i32
    %c0_i32_0 = arith.constant 0 : i32
    %c0_i32_1 = arith.constant 0 : i32
    %c0_i32_2 = arith.constant 0 : i32
    return %c0_i32, %c0_i32_0, %c0_i32_1 : i32, i32, i32
  }
  func.func @transform_2(%arg0: i32) -> (i32, i32, i32) {
    %c0_i32 = arith.constant 0 : i32
    %c0_i32_0 = arith.constant 0 : i32
    %c0_i32_1 = arith.constant 0 : i32
    return %arg0, %c0_i32, %c0_i32_0 : i32, i32, i32
  }
  func.func @transform_3(%arg0: i32) -> (i32, i32, i32) {
    %c0_i32 = arith.constant 0 : i32
    %c0_i32_0 = arith.constant 0 : i32
    %c0_i32_1 = arith.constant 0 : i32
    return %arg0, %c0_i32, %c0_i32_0 : i32, i32, i32
  }
  func.func @transform_4(%arg0: i32) -> (i32, i32, i32) {
    %c0_i32 = arith.constant 0 : i32
    %c0_i32_0 = arith.constant 0 : i32
    %c0_i32_1 = arith.constant 0 : i32
    return %arg0, %c0_i32, %c0_i32_0 : i32, i32, i32
  }
  func.func @transform_5(%arg0: i32) -> (i32, i32, i32) {
    %c0_i32 = arith.constant 0 : i32
    %c0_i32_0 = arith.constant 0 : i32
    %c0_i32_1 = arith.constant 0 : i32
    return %arg0, %c0_i32, %c0_i32_0 : i32, i32, i32
  }
  func.func @transform_6(%arg0: i32) -> (i32, i32, i32) {
    %c0_i32 = arith.constant 0 : i32
    %c0_i32_0 = arith.constant 0 : i32
    %c0_i32_1 = arith.constant 0 : i32
    return %arg0, %c0_i32, %c0_i32_0 : i32, i32, i32
  }
  func.func @transform_7(%arg0: i32) -> (i32, i32, i32) {
    %c0_i32 = arith.constant 0 : i32
    %c0_i32_0 = arith.constant 0 : i32
    %c0_i32_1 = arith.constant 0 : i32
    return %arg0, %c0_i32, %c0_i32_0 : i32, i32, i32
  }
  func.func @transform_8(%arg0: i32) -> (i32, i32, i32) {
    %c0_i32 = arith.constant 0 : i32
    %c0_i32_0 = arith.constant 0 : i32
    %c0_i32_1 = arith.constant 0 : i32
    return %arg0, %c0_i32, %c0_i32_0 : i32, i32, i32
  }
  func.func @transform_9(%arg0: i32) -> (i32, i32, i32) {
    %c0_i32 = arith.constant 0 : i32
    %c0_i32_0 = arith.constant 0 : i32
    %c0_i32_1 = arith.constant 0 : i32
    return %arg0, %c0_i32, %c0_i32_0 : i32, i32, i32
  }
  func.func @transform_10(%arg0: i32) -> (i32, i32, i32) {
    %c0_i32 = arith.constant 0 : i32
    %c0_i32_0 = arith.constant 0 : i32
    %c0_i32_1 = arith.constant 0 : i32
    return %arg0, %c0_i32, %c0_i32_0 : i32, i32, i32
  }
  func.func @transform_11(%arg0: i32) -> (i32, i32, i32) {
    %c0_i32 = arith.constant 0 : i32
    %c0_i32_0 = arith.constant 0 : i32
    %c0_i32_1 = arith.constant 0 : i32
    return %arg0, %c0_i32, %c0_i32_0 : i32, i32, i32
  }
  func.func @transform_12(%arg0: i32) -> (i32, i32, i32) {
    %c0_i32 = arith.constant 0 : i32
    %c0_i32_0 = arith.constant 0 : i32
    %c0_i32_1 = arith.constant 0 : i32
    return %arg0, %c0_i32, %c0_i32_0 : i32, i32, i32
  }
}

</mosaic_0001>

<bundles_post_ra>
// kernel: xlmr_attention_classwise_forward.3
= control target key start
LH: loop header
LB: loop body
LE: loop exit
PB: predicated region body
PF: predicated region fallthrough
CT: control target
= control target key end

     0   :  { %10 = vsyncpa [#allocation3], 0  ;;  %s4477_s0 = inlined_call_operand.hbm [shape: f32[8,768], index: 0, kind: input, shape index: {}]   ;;  %s4478_s1 = inlined_call_operand.hbm [shape: bf16[768,512], index: 1, kind: input, shape index: {}]   ;;  %s4479_s2 = inlined_call_operand.hbm [shape: f32[1,512], index: 2, kind: input, shape index: {}]   ;;  %s4480_s3 = inlined_call_operand.hbm [shape: bf16[512,512], index: 3, kind: input, shape index: {}]   ;;  %s4481_s4 = inlined_call_operand.hbm [shape: f32[1,512], index: 4, kind: input, shape index: {}]   ;;  %s4482_s5 = inlined_call_operand.vmem [shape: f32[8,512], index: 5, kind: output, shape index: {}]  }
   0x1   :  { %11 = vsyncpa [#allocation5], 0  ;;  %s28_s20 = sshll.u32 %s4478_s1, 4  ;;  %s29_s20 = int_to_ptr.hbm [resolvable:$true] %s28_s20 }
   0x2   :  { %12 = vsyncpa [#allocation8], 0  ;;  %s4320_s21 = smov [#allocation4]   ;;  %s52_s25 = sshll.u32 %s4480_s3, 4  ;;  %s53_s25 = int_to_ptr.hbm [resolvable:$true] %s52_s25 }
   0x3   :  { %s30_s22 = sshll.u32 %s4320_s21, 4  ;;  %s4321_s26 = smov 256   ;;  %s31_s22 = int_to_ptr.vmem [resolvable:$true] %s30_s22 }
   0x4   :  { %s4322_s27 = smov 16   ;;  %s4323_s28 = smov [#allocation7]  }
   0x5   :  { %36 = dma.hbm_to_vmem [thread:$0]  %s29_s20, 24576, %s31_s22, [#allocation5], %s4321_s26, %s4321_s26, %s4322_s27  }
   0x6   :  { %s54_s29 = sshll.u32 %s4323_s28, 4  ;;  %s18_s7 = sshll.u32 %s4477_s0, 4  ;;  %s55_s29 = int_to_ptr.vmem [resolvable:$true] %s54_s29  ;;  %s19_s7 = int_to_ptr.hbm [resolvable:$true] %s18_s7 }
   0x7   :  { %60 = dma.hbm_to_vmem [thread:$0]  %s53_s25, 16384, %s55_s29, [#allocation8], %s4321_s26, %s4321_s26, %s4322_s27  }
   0x8   :  { %s42_s9 = sshll.u32 %s4479_s2, 4  ;;  %s4324_s10 = smov [#allocation2]   ;;  %s43_s9 = int_to_ptr.hbm [resolvable:$true] %s42_s9 }
   0x9   :  { %s20_s11 = sshll.u32 %s4324_s10, 4  ;;  %s4325_s3 = smov [#allocation6]   ;;  %s21_s11 = int_to_ptr.vmem [resolvable:$true] %s20_s11 }
   0xa   :  { %23 = dma.hbm_to_vmem [thread:$0]  %s19_s7, 768, %s21_s11, [#allocation3]  }
   0xb   :  { %s44_s12 = sshll.u32 %s4325_s3, 4  ;;  %s66_s15 = sshll.u32 %s4481_s4, 4  ;;  %s45_s12 = int_to_ptr.vmem [resolvable:$true] %s44_s12  ;;  %s67_s15 = int_to_ptr.hbm [resolvable:$true] %s66_s15 }
   0xc   :  { %47 = dma.hbm_to_vmem [thread:$0]  %s43_s9, 64, %s45_s12, [#allocation5]  }
   0xd   :  { %s4326_s0 = smov [#allocation9]  }
   0xe   :  { %s68_s16 = sshll.u32 %s4326_s0, 4  ;;  %s69_s16 = int_to_ptr.vmem [resolvable:$true] %s68_s16 }
   0xf   :  { %71 = dma.hbm_to_vmem [thread:$0]  %s67_s15, 64, %s69_s16, [#allocation8]  }
  0x10   :  { %4314 = dma.done.wait [#allocation3], 768  }
  0x11   :  { %4315 = vsyncadd [#allocation3], 4294966528 }
  0x12   :  { %4316 = dma.done.wait [#allocation5], 24640  }
  0x13   :  { %4317 = vsyncadd [#allocation5], 4294942656 }
  0x14   :  { %4318 = dma.done.wait [#allocation8], 16448  }
  0x15   :  { %4319 = vsyncadd [#allocation8], 4294950848  ;;  %v2701_v0 = vld [vmem:[#allocation4 + $0xe0] sm:$0xf]  ;;  %v3897_v1 = vld [vmem:[#allocation4 + $0xec] sm:$0xf0] }
  0x16   :  { %v2829_v2 = vld [vmem:[#allocation4 + $0x1e0] sm:$0xf]  ;;  %v2702_v3 = vor.u32 %v3897_v1, %v2701_v0  ;;  %v3929_v4 = vld [vmem:[#allocation4 + $0x1ec] sm:$0xf0] }
  0x17   :  { %v2957_v5 = vld [vmem:[#allocation4 + $0x2e0] sm:$0xf]  ;;  %v3961_v6 = vld [vmem:[#allocation4 + $0x2ec] sm:$0xf0]  ;;  %v2830_v7 = vor.u32 %v3929_v4, %v2829_v2 }
  0x18   :  { %v2958_v8 = vor.u32 %v3961_v6, %v2957_v5  ;;  %v3085_v9 = vld [vmem:[#allocation4 + $0x3e0] sm:$0xf]  ;;  %v3993_v10 = vld [vmem:[#allocation4 + $0x3ec] sm:$0xf0]  ;;  %1266 = vmatpush.bf16.msra.mxu0 %v2702_v3 }
  0x19   :  { %v2685_v11 = vld [vmem:[#allocation4 + $0xc0] sm:$0xf]  ;;  %v3086_v12 = vor.u32 %v3993_v10, %v3085_v9  ;;  %v3893_v13 = vld [vmem:[#allocation4 + $0xcc] sm:$0xf0]  ;;  %1279 = vmatpush.bf16.msra.mxu1 %v2830_v7 }
  0x1a   :  { %v2813_v14 = vld [vmem:[#allocation4 + $0x1c0] sm:$0xf]  ;;  %v3925_v15 = vld [vmem:[#allocation4 + $0x1cc] sm:$0xf0]  ;;  %1292 = vmatpush.bf16.msra.mxu2 %v2958_v8  ;;  %v2686_v16 = vor.u32 %v3893_v13, %v2685_v11 }
  0x1b   :  { %v2814_v17 = vor.u32 %v3925_v15, %v2813_v14  ;;  %v2941_v18 = vld [vmem:[#allocation4 + $0x2c0] sm:$0xf]  ;;  %v3957_v19 = vld [vmem:[#allocation4 + $0x2cc] sm:$0xf0]  ;;  %1305 = vmatpush.bf16.msra.mxu3 %v3086_v12 }
  0x1c   :  { %v3069_v20 = vld [vmem:[#allocation4 + $0x3c0] sm:$0xf]  ;;  %v2942_v21 = vor.u32 %v3957_v19, %v2941_v18  ;;  %v3989_v22 = vld [vmem:[#allocation4 + $0x3cc] sm:$0xf0]  ;;  %1267 = vmatpush.bf16.msra.mxu0 %v2686_v16 }
  0x1d   :  { %v2669_v23 = vld [vmem:[#allocation4 + $0xa0] sm:$0xf]  ;;  %v3889_v24 = vld [vmem:[#allocation4 + $0xac] sm:$0xf0]  ;;  %v3070_v25 = vor.u32 %v3989_v22, %v3069_v20  ;;  %1280 = vmatpush.bf16.msra.mxu1 %v2814_v17 }
  0x1e   :  { %v2797_v26 = vld [vmem:[#allocation4 + $0x1a0] sm:$0xf]  ;;  %v3921_v27 = vld [vmem:[#allocation4 + $0x1ac] sm:$0xf0]  ;;  %v2670_v29 = vor.u32 %v3889_v24, %v2669_v23  ;;  %1293 = vmatpush.bf16.msra.mxu2 %v2942_v21 }
  0x1f   :  { %v2925_v28 = vld [vmem:[#allocation4 + $0x2a0] sm:$0xf]  ;;  %v3953_v30 = vld [vmem:[#allocation4 + $0x2ac] sm:$0xf0]  ;;  %v2798_v33 = vor.u32 %v3921_v27, %v2797_v26  ;;  %1306 = vmatpush.bf16.msra.mxu3 %v3070_v25 }
  0x20   :  { %v3053_v31 = vld [vmem:[#allocation4 + $0x3a0] sm:$0xf]  ;;  %v3985_v32 = vld [vmem:[#allocation4 + $0x3ac] sm:$0xf0]  ;;  %v2926_v34 = vor.u32 %v3953_v30, %v2925_v28  ;;  %1268 = vmatpush.bf16.msra.mxu0 %v2670_v29 }
  0x21   :  { %v2653_v35 = vld [vmem:[#allocation4 + $0x80] sm:$0xf]  ;;  %v3885_v36 = vld [vmem:[#allocation4 + $0x8c] sm:$0xf0]  ;;  %v3054_v38 = vor.u32 %v3985_v32, %v3053_v31  ;;  %1281 = vmatpush.bf16.msra.mxu1 %v2798_v33  ;;  %v3895_v33 = vld [vmem:[#allocation4 + $0xe4] sm:$0xf] }
  0x22   :  { %v2781_v37 = vld [vmem:[#allocation4 + $0x180] sm:$0xf]  ;;  %v3917_v39 = vld [vmem:[#allocation4 + $0x18c] sm:$0xf0]  ;;  %v2654_v44 = vor.u32 %v3885_v36, %v2653_v35  ;;  %1294 = vmatpush.bf16.msra.mxu2 %v2926_v34  ;;  %v2703_v34 = vld [vmem:[#allocation4 + $0xf0] sm:$0xf0] }
  0x23   :  { %v2909_v40 = vld [vmem:[#allocation4 + $0x280] sm:$0xf]  ;;  %v3949_v41 = vld [vmem:[#allocation4 + $0x28c] sm:$0xf0]  ;;  %v2782_v45 = vor.u32 %v3917_v39, %v2781_v37  ;;  %1307 = vmatpush.bf16.msra.mxu3 %v3054_v38  ;;  %v3927_v37 = vld [vmem:[#allocation4 + $0x1e4] sm:$0xf] }
  0x24   :  { %v3037_v42 = vld [vmem:[#allocation4 + $0x380] sm:$0xf]  ;;  %v3981_v43 = vld [vmem:[#allocation4 + $0x38c] sm:$0xf0]  ;;  %v2910_v46 = vor.u32 %v3949_v41, %v2909_v40  ;;  %1269 = vmatpush.bf16.msra.mxu0 %v2654_v44  ;;  %v2831_v38 = vld [vmem:[#allocation4 + $0x1f0] sm:$0xf0] }
  0x25   :  { %v2637_v47 = vld [vmem:[#allocation4 + $0x60] sm:$0xf]  ;;  %v3881_v48 = vld [vmem:[#allocation4 + $0x6c] sm:$0xf0]  ;;  %v3038_v50 = vor.u32 %v3981_v43, %v3037_v42  ;;  %1282 = vmatpush.bf16.msra.mxu1 %v2782_v45  ;;  %v2706_v42 = vor.u32 %v3895_v33, %v2703_v34 }
  0x26   :  { %v2765_v49 = vld [vmem:[#allocation4 + $0x160] sm:$0xf]  ;;  %v3913_v51 = vld [vmem:[#allocation4 + $0x16c] sm:$0xf0]  ;;  %v2638_v56 = vor.u32 %v3881_v48, %v2637_v47  ;;  %1295 = vmatpush.bf16.msra.mxu2 %v2910_v46  ;;  %v2834_v46 = vor.u32 %v3927_v37, %v2831_v38  ;;  %v3891_v48 = vld [vmem:[#allocation4 + $0xc4] sm:$0xf] }
  0x27   :  { %v2893_v52 = vld [vmem:[#allocation4 + $0x260] sm:$0xf]  ;;  %v3945_v53 = vld [vmem:[#allocation4 + $0x26c] sm:$0xf0]  ;;  %v2766_v57 = vor.u32 %v3913_v51, %v2765_v49  ;;  %1308 = vmatpush.bf16.msra.mxu3 %v3038_v50  ;;  %v2687_v49 = vld [vmem:[#allocation4 + $0xd0] sm:$0xf0] }
  0x28   :  { %v3021_v54 = vld [vmem:[#allocation4 + $0x360] sm:$0xf]  ;;  %v3977_v55 = vld [vmem:[#allocation4 + $0x36c] sm:$0xf0]  ;;  %v2894_v58 = vor.u32 %v3945_v53, %v2893_v52  ;;  %1270 = vmatpush.bf16.msra.mxu0 %v2638_v56  ;;  %v3923_v50 = vld [vmem:[#allocation4 + $0x1c4] sm:$0xf] }
  0x29   :  { %v2621_v59 = vld [vmem:[#allocation4 + $0x40] sm:$0xf]  ;;  %v3877_v60 = vld [vmem:[#allocation4 + $0x4c] sm:$0xf0]  ;;  %v3022_v62 = vor.u32 %v3977_v55, %v3021_v54  ;;  %1283 = vmatpush.bf16.msra.mxu1 %v2766_v57  ;;  %v2815_v51 = vld [vmem:[#allocation4 + $0x1d0] sm:$0xf0]  ;;  %v2690_v55 = vor.u32 %v3891_v48, %v2687_v49 }
  0x2a   :  { %v2749_v61 = vld [vmem:[#allocation4 + $0x140] sm:$0xf]  ;;  %v3909_v63 = vld [vmem:[#allocation4 + $0x14c] sm:$0xf0]  ;;  %v2622_v4 = vor.u32 %v3877_v60, %v2621_v59  ;;  %1296 = vmatpush.bf16.msra.mxu2 %v2894_v58  ;;  %v2818_v59 = vor.u32 %v3923_v50, %v2815_v51  ;;  %v3887_v60 = vld [vmem:[#allocation4 + $0xa4] sm:$0xf] }
  0x2b   :  { %v2877_v0 = vld [vmem:[#allocation4 + $0x240] sm:$0xf]  ;;  %v3941_v1 = vld [vmem:[#allocation4 + $0x24c] sm:$0xf0]  ;;  %v2750_v5 = vor.u32 %v3909_v63, %v2749_v61  ;;  %1309 = vmatpush.bf16.msra.mxu3 %v3022_v62  ;;  %v2671_v61 = vld [vmem:[#allocation4 + $0xb0] sm:$0xf0] }
  0x2c   :  { %v3005_v2 = vld [vmem:[#allocation4 + $0x340] sm:$0xf]  ;;  %v3973_v3 = vld [vmem:[#allocation4 + $0x34c] sm:$0xf0]  ;;  %v2878_v6 = vor.u32 %v3941_v1, %v2877_v0  ;;  %1271 = vmatpush.bf16.msra.mxu0 %v2622_v4  ;;  %v3919_v62 = vld [vmem:[#allocation4 + $0x1a4] sm:$0xf] }
  0x2d   :  { %v2605_v7 = vld [vmem:[#allocation4 + $0x20] sm:$0xf]  ;;  %v3873_v8 = vld [vmem:[#allocation4 + $0x2c] sm:$0xf0]  ;;  %v3006_v10 = vor.u32 %v3973_v3, %v3005_v2  ;;  %1284 = vmatpush.bf16.msra.mxu1 %v2750_v5  ;;  %v2799_v63 = vld [vmem:[#allocation4 + $0x1b0] sm:$0xf0]  ;;  %v2674_v5 = vor.u32 %v3887_v60, %v2671_v61 }
  0x2e   :  { %v2733_v9 = vld [vmem:[#allocation4 + $0x120] sm:$0xf]  ;;  %v3905_v11 = vld [vmem:[#allocation4 + $0x12c] sm:$0xf0]  ;;  %v2606_v16 = vor.u32 %v3873_v8, %v2605_v7  ;;  %1297 = vmatpush.bf16.msra.mxu2 %v2878_v6 }
  0x2f   :  { %v2861_v12 = vld [vmem:[#allocation4 + $0x220] sm:$0xf]  ;;  %v3937_v13 = vld [vmem:[#allocation4 + $0x22c] sm:$0xf0]  ;;  %v2734_v19 = vor.u32 %v3905_v11, %v2733_v9  ;;  %1310 = vmatpush.bf16.msra.mxu3 %v3006_v10  ;;  %v95_v10 = vld [vmem:[#allocation2 + $0x18] sm:$0xff]  ;;  %v2802_v11 = vor.u32 %v3919_v62, %v2799_v63 }
  0x30   :  { %v2989_v14 = vld [vmem:[#allocation4 + $0x320] sm:$0xf]  ;;  %v3969_v15 = vld [vmem:[#allocation4 + $0x32c] sm:$0xf0]  ;;  %v2862_v20 = vor.u32 %v3937_v13, %v2861_v12  ;;  %1272 = vmatpush.bf16.msra.mxu0 %v2606_v16  ;;  %v3883_v13 = vld [vmem:[#allocation4 + $0x84] sm:$0xf] }
  0x31   :  { %v2589_v17 = vld [vmem:[#allocation4] sm:$0xf]  ;;  %v3869_v18 = vld [vmem:[#allocation4 + $0xc] sm:$0xf0]  ;;  %v2990_v24 = vor.u32 %v3969_v15, %v2989_v14  ;;  %1285 = vmatpush.bf16.msra.mxu1 %v2734_v19  ;;  %v2655_v14 = vld [vmem:[#allocation4 + $0x90] sm:$0xf0]  ;;  %v4376_v15 = vpack.c.bf16 %v95_v10, %v95_v10 }
  0x32   :  { %v2717_v21 = vld [vmem:[#allocation4 + $0x100] sm:$0xf]  ;;  %v3901_v22 = vld [vmem:[#allocation4 + $0x10c] sm:$0xf0]  ;;  %v2590_v31 = vor.u32 %v3869_v18, %v2589_v17  ;;  %1298 = vmatpush.bf16.msra.mxu2 %v2862_v20  ;;  %v3915_v16 = vld [vmem:[#allocation4 + $0x184] sm:$0xf] }
  0x33   :  { %v2845_v23 = vld [vmem:[#allocation4 + $0x200] sm:$0xf]  ;;  %v3933_v25 = vld [vmem:[#allocation4 + $0x20c] sm:$0xf0]  ;;  %v2718_v35 = vor.u32 %v3901_v22, %v2717_v21  ;;  %1311 = vmatpush.bf16.msra.mxu3 %v2990_v24  ;;  %v2783_v17 = vld [vmem:[#allocation4 + $0x190] sm:$0xf0]  ;;  %v2658_v21 = vor.u32 %v3883_v13, %v2655_v14 }
  0x34   :  { %v2973_v26 = vld [vmem:[#allocation4 + $0x300] sm:$0xf]  ;;  %v3965_v27 = vld [vmem:[#allocation4 + $0x30c] sm:$0xf0]  ;;  %v2846_v36 = vor.u32 %v3933_v25, %v2845_v23  ;;  %1273 = vmatpush.bf16.msra.mxu0 %v2590_v31  ;;  %v93_v19 = vld [vmem:[#allocation2 + $0x8] sm:$0xff] }
  0x35   :  { %v3213_v28 = vld [vmem:[#allocation4 + $0x4e0] sm:$0xf]  ;;  %v4025_v29 = vld [vmem:[#allocation4 + $0x4ec] sm:$0xf0]  ;;  %v2974_v39 = vor.u32 %v3965_v27, %v2973_v26  ;;  %1286 = vmatpush.bf16.msra.mxu1 %v2718_v35  ;;  %v4381_v25 = vpack.c.bf16 %v93_v19, %v93_v19  ;;  %v2786_v26 = vor.u32 %v3915_v16, %v2783_v17  ;;  %v2767_v31 = vld [vmem:[#allocation4 + $0x170] sm:$0xf0] }
  0x36   :  { %v3341_v30 = vld [vmem:[#allocation4 + $0x5e0] sm:$0xf]  ;;  %v4057_v32 = vld [vmem:[#allocation4 + $0x5ec] sm:$0xf0]  ;;  %v3214_v40 = vor.u32 %v4025_v29, %v3213_v28  ;;  %1299 = vmatpush.bf16.msra.mxu2 %v2846_v36  ;;  %v3879_v28 = vld [vmem:[#allocation4 + $0x64] sm:$0xf] }
  0x37   :  { %v3342_v41 = vor.u32 %v4057_v32, %v3341_v30  ;;  %v3197_v43 = vld [vmem:[#allocation4 + $0x4c0] sm:$0xf]  ;;  %v4021_v44 = vld [vmem:[#allocation4 + $0x4cc] sm:$0xf0]  ;;  %1312 = vmatpush.bf16.msra.mxu3 %v2974_v39  ;;  %v2639_v29 = vld [vmem:[#allocation4 + $0x70] sm:$0xf0] }
  0x38   :  { %v3325_v45 = vld [vmem:[#allocation4 + $0x5c0] sm:$0xf]  ;;  %v4053_v47 = vld [vmem:[#allocation4 + $0x5cc] sm:$0xf0]  ;;  %1318 = vmatpush.bf16.msrb.mxu0 %v3214_v40  ;;  %v3198_v52 = vor.u32 %v4021_v44, %v3197_v43  ;;  %v3911_v30 = vld [vmem:[#allocation4 + $0x164] sm:$0xf]  ;;  %1287 = vmatmul.bf16.vlgmr.msra.gmra.mxu1 %v4381_v25  ;;  %v2642_v34 = vor.u32 %v3879_v28, %v2639_v29 }
  0x39   :  { %v3181_v53 = vld [vmem:[#allocation4 + $0x4a0] sm:$0xf]  ;;  %1331 = vmatpush.bf16.msrb.mxu1 %v3342_v41  ;;  %v3326_v54 = vor.u32 %v4053_v47, %v3325_v45  ;;  %v4017_v56 = vld [vmem:[#allocation4 + $0x4ac] sm:$0xf0]  ;;  %v2770_v38 = vor.u32 %v3911_v30, %v2767_v31  ;;  %v3875_v40 = vld [vmem:[#allocation4 + $0x44] sm:$0xf] }
  0x3a   :  { %1344 = vmatpush.bf16.msrb.mxu2 %v2706_v42  ;;  %v3309_v57 = vld [vmem:[#allocation4 + $0x5a0] sm:$0xf]  ;;  %v4049_v58 = vld [vmem:[#allocation4 + $0x5ac] sm:$0xf0]  ;;  %v3182_v0 = vor.u32 %v4017_v56, %v3181_v53  ;;  %1313 = vmatmul.bf16.vlgmr.msra.gmra.mxu3 %v4376_v15  ;;  %v2623_v41 = vld [vmem:[#allocation4 + $0x50] sm:$0xf0] }
  0x3b   :  { %1357 = vmatpush.bf16.msrb.mxu3 %v2834_v46  ;;  %v3310_v1 = vor.u32 %v4049_v58, %v3309_v57  ;;  %v3165_v2 = vld [vmem:[#allocation4 + $0x480] sm:$0xf]  ;;  %v92_v4 = vld [vmem:[#allocation2] sm:$0xff]  ;;  %v3907_v42 = vld [vmem:[#allocation4 + $0x144] sm:$0xf]  ;;  %v2626_v46 = vor.u32 %v3875_v40, %v2623_v41 }
  0x3c   :  { %1319 = vmatpush.bf16.msrb.mxu0 %v3198_v52  ;;  %v94_v3 = vld [vmem:[#allocation2 + $0x10] sm:$0xff]  ;;  %v4013_v6 = vld [vmem:[#allocation4 + $0x48c] sm:$0xf0]  ;;  %v4374_v9 = vpack.c.bf16 %v92_v4, %v92_v4  ;;  %v2751_v43 = vld [vmem:[#allocation4 + $0x150] sm:$0xf0] }
  0x3d   :  { %1332 = vmatpush.bf16.msrb.mxu1 %v3326_v54  ;;  %v3293_v7 = vld [vmem:[#allocation4 + $0x580] sm:$0xf]  ;;  %v4372_v8 = vpack.c.bf16 %v94_v3, %v94_v3  ;;  %v4045_v12 = vld [vmem:[#allocation4 + $0x58c] sm:$0xf0]  ;;  %v3166_v18 = vor.u32 %v4013_v6, %v3165_v2  ;;  %v2754_v50 = vor.u32 %v3907_v42, %v2751_v43  ;;  %v3871_v52 = vld [vmem:[#allocation4 + $0x24] sm:$0xf] }
  0x3e   :  { %1345 = vmatpush.bf16.msrb.mxu2 %v2690_v55  ;;  %1274 = vmatmul.bf16.vlgmr.msra.gmra.mxu0 %v4374_v9  ;;  %v3294_v20 = vor.u32 %v4045_v12, %v3293_v7  ;;  %v3149_v22 = vld [vmem:[#allocation4 + $0x460] sm:$0xf]  ;;  %v4009_v23 = vld [vmem:[#allocation4 + $0x46c] sm:$0xf0]  ;;  %v2607_v53 = vld [vmem:[#allocation4 + $0x30] sm:$0xf0] }
  0x3f   :  { %1358 = vmatpush.bf16.msrb.mxu3 %v2818_v59  ;;  %1300 = vmatmul.bf16.vlgmr.msra.gmra.mxu2 %v4372_v8  ;;  %v3277_v24 = vld [vmem:[#allocation4 + $0x560] sm:$0xf]  ;;  %v4041_v27 = vld [vmem:[#allocation4 + $0x56c] sm:$0xf0]  ;;  %v3150_v32 = vor.u32 %v4009_v23, %v3149_v22  ;;  %v3903_v54 = vld [vmem:[#allocation4 + $0x124] sm:$0xf]  ;;  %v2610_v60 = vor.u32 %v3871_v52, %v2607_v53 }
  0x40   :  { %1320 = vmatpush.bf16.msrb.mxu0 %v3182_v0  ;;  %v3278_v33 = vor.u32 %v4041_v27, %v3277_v24  ;;  %v3133_v35 = vld [vmem:[#allocation4 + $0x440] sm:$0xf]  ;;  %v4005_v36 = vld [vmem:[#allocation4 + $0x44c] sm:$0xf0]  ;;  %v2735_v55 = vld [vmem:[#allocation4 + $0x130] sm:$0xf0] }
  0x41   :  { %1333 = vmatpush.bf16.msrb.mxu1 %v3310_v1  ;;  %v3261_v37 = vld [vmem:[#allocation4 + $0x540] sm:$0xf]  ;;  %v4037_v39 = vld [vmem:[#allocation4 + $0x54c] sm:$0xf0]  ;;  %v3134_v44 = vor.u32 %v4005_v36, %v3133_v35  ;;  %v3867_v63 = vld [vmem:[#allocation4 + $0x4] sm:$0xf]  ;;  %v2738_v0 = vor.u32 %v3903_v54, %v2735_v55 }
  0x42   :  { %1346 = vmatpush.bf16.msrb.mxu2 %v2674_v5  ;;  %v3262_v45 = vor.u32 %v4037_v39, %v3261_v37  ;;  %v3117_v47 = vld [vmem:[#allocation4 + $0x420] sm:$0xf]  ;;  %v4001_v48 = vld [vmem:[#allocation4 + $0x42c] sm:$0xf0]  ;;  %v2591_v1 = vld [vmem:[#allocation4 + $0x10] sm:$0xf0] }
  0x43   :  { %1359 = vmatpush.bf16.msrb.mxu3 %v2802_v11  ;;  %v3245_v49 = vld [vmem:[#allocation4 + $0x520] sm:$0xf]  ;;  %v4033_v51 = vld [vmem:[#allocation4 + $0x52c] sm:$0xf0]  ;;  %v3118_v56 = vor.u32 %v4001_v48, %v3117_v47  ;;  %v3899_v2 = vld [vmem:[#allocation4 + $0x104] sm:$0xf]  ;;  %v2594_v14 = vor.u32 %v3867_v63, %v2591_v1 }
  0x44   :  { %1321 = vmatpush.bf16.msrb.mxu0 %v3166_v18  ;;  %v3101_v57 = vld [vmem:[#allocation4 + $0x400] sm:$0xf]  ;;  %v3997_v58 = vld [vmem:[#allocation4 + $0x40c] sm:$0xf0]  ;;  %v3246_v59 = vor.u32 %v4033_v51, %v3245_v49  ;;  %v2719_v3 = vld [vmem:[#allocation4 + $0x110] sm:$0xf0] }
  0x45   :  { %1334 = vmatpush.bf16.msrb.mxu1 %v3294_v20  ;;  %v3229_v61 = vld [vmem:[#allocation4 + $0x500] sm:$0xf]  ;;  %v4029_v62 = vld [vmem:[#allocation4 + $0x50c] sm:$0xf0]  ;;  %v3959_v4 = vld [vmem:[#allocation4 + $0x2e4] sm:$0xf]  ;;  %v3102_v7 = vor.u32 %v3997_v58, %v3101_v57  ;;  %v2722_v19 = vor.u32 %v3899_v2, %v2719_v3 }
  0x46   :  { %1347 = vmatpush.bf16.msrb.mxu2 %v2658_v21  ;;  %v2959_v5 = vld [vmem:[#allocation4 + $0x2f0] sm:$0xf0]  ;;  %v3991_v6 = vld [vmem:[#allocation4 + $0x3e4] sm:$0xf]  ;;  %v3230_v13 = vor.u32 %v4029_v62, %v3229_v61  ;;  %v97_v21 = vld [vmem:[#allocation2 + $0x28] sm:$0xff] }
  0x47   :  { %1360 = vmatpush.bf16.msrb.mxu3 %v2786_v26  ;;  %v3087_v10 = vld [vmem:[#allocation4 + $0x3f0] sm:$0xf0]  ;;  %v4023_v11 = vld [vmem:[#allocation4 + $0x4e4] sm:$0xf]  ;;  %v2962_v20 = vor.u32 %v3959_v4, %v2959_v5  ;;  %v4386_v35 = vpack.c.bf16 %v97_v21, %v97_v21 }
  0x48   :  { %1322 = vmatpush.bf16.msrb.mxu0 %v3150_v32  ;;  %v3215_v12 = vld [vmem:[#allocation4 + $0x4f0] sm:$0xf0]  ;;  %v4055_v16 = vld [vmem:[#allocation4 + $0x5e4] sm:$0xf]  ;;  %v3090_v22 = vor.u32 %v3991_v6, %v3087_v10 }
  0x49   :  { %1335 = vmatpush.bf16.msrb.mxu1 %v3278_v33  ;;  %v3343_v17 = vld [vmem:[#allocation4 + $0x5f0] sm:$0xf0]  ;;  %v3218_v23 = vor.u32 %v4023_v11, %v3215_v12  ;;  %v3955_v24 = vld [vmem:[#allocation4 + $0x2c4] sm:$0xf] }
  0x4a   :  { %1348 = vmatpush.bf16.msrb.mxu2 %v2642_v34  ;;  %v96_v18 = vld [vmem:[#allocation2 + $0x20] sm:$0xff]  ;;  %v3987_v27 = vld [vmem:[#allocation4 + $0x3c4] sm:$0xf]  ;;  %v3346_v28 = vor.u32 %v4055_v16, %v3343_v17 }
  0x4b   :  { %1361 = vmatpush.bf16.msrb.mxu3 %v2770_v38  ;;  %v2943_v26 = vld [vmem:[#allocation4 + $0x2d0] sm:$0xf0]  ;;  %v4019_v30 = vld [vmem:[#allocation4 + $0x4c4] sm:$0xf]  ;;  %v4384_v32 = vpack.c.bf16 %v96_v18, %v96_v18 }
  0x4c   :  { %1323 = vmatpush.bf16.msrb.mxu0 %v3134_v44  ;;  %v3071_v29 = vld [vmem:[#allocation4 + $0x3d0] sm:$0xf0]  ;;  %v4051_v33 = vld [vmem:[#allocation4 + $0x5c4] sm:$0xf]  ;;  %v2946_v36 = vor.u32 %v3955_v24, %v2943_v26 }
  0x4d   :  { %1336 = vmatpush.bf16.msrb.mxu1 %v3262_v45  ;;  %v3199_v31 = vld [vmem:[#allocation4 + $0x4d0] sm:$0xf0]  ;;  %v3074_v37 = vor.u32 %v3987_v27, %v3071_v29  ;;  %v3951_v39 = vld [vmem:[#allocation4 + $0x2a4] sm:$0xf] }
  0x4e   :  { %1349 = vmatpush.bf16.msrb.mxu2 %v2626_v46  ;;  %v3327_v34 = vld [vmem:[#allocation4 + $0x5d0] sm:$0xf0]  ;;  %v3202_v38 = vor.u32 %v4019_v30, %v3199_v31  ;;  %v3983_v41 = vld [vmem:[#allocation4 + $0x3a4] sm:$0xf] }
  0x4f   :  { %1362 = vmatpush.bf16.msrb.mxu3 %v2754_v50  ;;  %v2927_v40 = vld [vmem:[#allocation4 + $0x2b0] sm:$0xf0]  ;;  %v3330_v42 = vor.u32 %v4051_v33, %v3327_v34  ;;  %v4015_v44 = vld [vmem:[#allocation4 + $0x4a4] sm:$0xf] }
  0x50   :  { %1324 = vmatpush.bf16.msrb.mxu0 %v3118_v56  ;;  %v3055_v43 = vld [vmem:[#allocation4 + $0x3b0] sm:$0xf0]  ;;  %v4047_v46 = vld [vmem:[#allocation4 + $0x5a4] sm:$0xf]  ;;  %v2930_v48 = vor.u32 %v3951_v39, %v2927_v40 }
  0x51   :  { %1337 = vmatpush.bf16.msrb.mxu1 %v3246_v59  ;;  %v3183_v45 = vld [vmem:[#allocation4 + $0x4b0] sm:$0xf0]  ;;  %v3058_v49 = vor.u32 %v3983_v41, %v3055_v43  ;;  %v3947_v51 = vld [vmem:[#allocation4 + $0x284] sm:$0xf] }
  0x52   :  { %1350 = vmatpush.bf16.msrb.mxu2 %v2610_v60  ;;  %v3311_v47 = vld [vmem:[#allocation4 + $0x5b0] sm:$0xf0]  ;;  %v3186_v50 = vor.u32 %v4015_v44, %v3183_v45  ;;  %v3979_v53 = vld [vmem:[#allocation4 + $0x384] sm:$0xf] }
  0x53   :  { %1363 = vmatpush.bf16.msrb.mxu3 %v2738_v0  ;;  %v2911_v52 = vld [vmem:[#allocation4 + $0x290] sm:$0xf0]  ;;  %v3314_v54 = vor.u32 %v4047_v46, %v3311_v47  ;;  %v4011_v56 = vld [vmem:[#allocation4 + $0x484] sm:$0xf] }
  0x54   :  { %1325 = vmatpush.bf16.msrb.mxu0 %v3102_v7  ;;  %v3039_v55 = vld [vmem:[#allocation4 + $0x390] sm:$0xf0]  ;;  %v4043_v58 = vld [vmem:[#allocation4 + $0x584] sm:$0xf]  ;;  %v2914_v60 = vor.u32 %v3947_v51, %v2911_v52  ;;  %v3898_v51 = vld [vmem:[#allocation4 + $0xf4] sm:$0xf0] }
  0x55   :  { %1338 = vmatpush.bf16.msrb.mxu1 %v3230_v13  ;;  %v3167_v57 = vld [vmem:[#allocation4 + $0x490] sm:$0xf0]  ;;  %v3042_v61 = vor.u32 %v3979_v53, %v3039_v55  ;;  %v3943_v63 = vld [vmem:[#allocation4 + $0x264] sm:$0xf]  ;;  %v2837_v52 = vld [vmem:[#allocation4 + $0x1e8] sm:$0xf] }
  0x56   :  { %1351 = vmatpush.bf16.msrb.mxu2 %v2594_v14  ;;  %v3295_v59 = vld [vmem:[#allocation4 + $0x590] sm:$0xf0]  ;;  %v3170_v62 = vor.u32 %v4011_v56, %v3167_v57  ;;  %v3975_v1 = vld [vmem:[#allocation4 + $0x364] sm:$0xf]  ;;  %v2965_v55 = vld [vmem:[#allocation4 + $0x2e8] sm:$0xf] }
  0x57   :  { %1364 = vmatpush.bf16.msrb.mxu3 %v2722_v19  ;;  %1326 = vmatmul.bf16.vlgmr.msrb.gmra.mxu0 %v4384_v32  ;;  %v2895_v0 = vld [vmem:[#allocation4 + $0x270] sm:$0xf0]  ;;  %v3298_v2 = vor.u32 %v4043_v58, %v3295_v59  ;;  %v4007_v4 = vld [vmem:[#allocation4 + $0x464] sm:$0xf]  ;;  %v3962_v56 = vld [vmem:[#allocation4 + $0x2f4] sm:$0xf0] }
  0x58   :  { %1370 = vmatpush.bf16.msra.mxu0 %v2962_v20  ;;  %1339 = vmatmul.bf16.vlgmr.msrb.gmra.mxu1 %v4386_v35  ;;  %v3023_v3 = vld [vmem:[#allocation4 + $0x370] sm:$0xf0]  ;;  %v4039_v6 = vld [vmem:[#allocation4 + $0x564] sm:$0xf]  ;;  %v2898_v10 = vor.u32 %v3943_v63, %v2895_v0  ;;  %v3093_v59 = vld [vmem:[#allocation4 + $0x3e8] sm:$0xf]  ;;  %v2966_v0 = vor.u32 %v3962_v56, %v2965_v55 }
  0x59   :  { %1383 = vmatpush.bf16.msra.mxu1 %v3090_v22  ;;  %1352 = vmatmul.bf16.vlgmr.msrb.gmra.mxu2 %v4374_v9  ;;  %v3151_v5 = vld [vmem:[#allocation4 + $0x470] sm:$0xf0]  ;;  %v3026_v11 = vor.u32 %v3975_v1, %v3023_v3  ;;  %v3939_v13 = vld [vmem:[#allocation4 + $0x244] sm:$0xf]  ;;  %v2693_v1 = vld [vmem:[#allocation4 + $0xc8] sm:$0xf] }
  0x5a   :  { %1396 = vmatpush.bf16.msra.mxu2 %v3218_v23  ;;  %1365 = vmatmul.bf16.vlgmr.msrb.gmra.mxu3 %v4381_v25  ;;  %v3279_v7 = vld [vmem:[#allocation4 + $0x570] sm:$0xf0]  ;;  %v3154_v12 = vor.u32 %v4007_v4, %v3151_v5  ;;  %v3971_v16 = vld [vmem:[#allocation4 + $0x344] sm:$0xf]  ;;  %v2821_v3 = vld [vmem:[#allocation4 + $0x1c8] sm:$0xf] }
  0x5b   :  { %1409 = vmatpush.bf16.msra.mxu3 %v3346_v28  ;;  %v2879_v14 = vld [vmem:[#allocation4 + $0x250] sm:$0xf0]  ;;  %v3282_v17 = vor.u32 %v4039_v6, %v3279_v7  ;;  %v4003_v19 = vld [vmem:[#allocation4 + $0x444] sm:$0xf]  ;;  %v3926_v5 = vld [vmem:[#allocation4 + $0x1d4] sm:$0xf0] }
  0x5c   :  { %1371 = vmatpush.bf16.msra.mxu0 %v2946_v36  ;;  %v3007_v18 = vld [vmem:[#allocation4 + $0x350] sm:$0xf0]  ;;  %v4035_v21 = vld [vmem:[#allocation4 + $0x544] sm:$0xf]  ;;  %v2882_v23 = vor.u32 %v3939_v13, %v2879_v14  ;;  %v2949_v6 = vld [vmem:[#allocation4 + $0x2c8] sm:$0xf]  ;;  %v2822_v13 = vor.u32 %v3926_v5, %v2821_v3 }
  0x5d   :  { %1384 = vmatpush.bf16.msra.mxu1 %v3074_v37  ;;  %v3135_v20 = vld [vmem:[#allocation4 + $0x450] sm:$0xf0]  ;;  %v3010_v24 = vor.u32 %v3971_v16, %v3007_v18  ;;  %v3935_v27 = vld [vmem:[#allocation4 + $0x224] sm:$0xf]  ;;  %v3958_v7 = vld [vmem:[#allocation4 + $0x2d4] sm:$0xf0] }
  0x5e   :  { %1397 = vmatpush.bf16.msra.mxu2 %v3202_v38  ;;  %v3263_v22 = vld [vmem:[#allocation4 + $0x550] sm:$0xf0]  ;;  %v3138_v26 = vor.u32 %v4003_v19, %v3135_v20  ;;  %v3967_v29 = vld [vmem:[#allocation4 + $0x324] sm:$0xf]  ;;  %v2950_v14 = vor.u32 %v3958_v7, %v2949_v6  ;;  %v2677_v16 = vld [vmem:[#allocation4 + $0xa8] sm:$0xf] }
  0x5f   :  { %1410 = vmatpush.bf16.msra.mxu3 %v3330_v42  ;;  %v2863_v28 = vld [vmem:[#allocation4 + $0x230] sm:$0xf0]  ;;  %v3266_v30 = vor.u32 %v4035_v21, %v3263_v22  ;;  %v3999_v33 = vld [vmem:[#allocation4 + $0x424] sm:$0xf]  ;;  %v2805_v18 = vld [vmem:[#allocation4 + $0x1a8] sm:$0xf] }
  0x60   :  { %1372 = vmatpush.bf16.msra.mxu0 %v2930_v48  ;;  %v2991_v31 = vld [vmem:[#allocation4 + $0x330] sm:$0xf0]  ;;  %v4031_v36 = vld [vmem:[#allocation4 + $0x524] sm:$0xf]  ;;  %v2866_v38 = vor.u32 %v3935_v27, %v2863_v28  ;;  %v3922_v20 = vld [vmem:[#allocation4 + $0x1b4] sm:$0xf0] }
  0x61   :  { %1385 = vmatpush.bf16.msra.mxu1 %v3058_v49  ;;  %v3119_v34 = vld [vmem:[#allocation4 + $0x430] sm:$0xf0]  ;;  %v3931_v39 = vld [vmem:[#allocation4 + $0x204] sm:$0xf]  ;;  %v2994_v41 = vor.u32 %v3967_v29, %v2991_v31  ;;  %v2933_v21 = vld [vmem:[#allocation4 + $0x2a8] sm:$0xf]  ;;  %v2806_v27 = vor.u32 %v3922_v20, %v2805_v18 }
  0x62   :  { %1398 = vmatpush.bf16.msra.mxu2 %v3186_v50  ;;  %v3247_v37 = vld [vmem:[#allocation4 + $0x530] sm:$0xf0]  ;;  %v3122_v42 = vor.u32 %v3999_v33, %v3119_v34  ;;  %v3963_v43 = vld [vmem:[#allocation4 + $0x304] sm:$0xf]  ;;  %v2709_v50 = vld [vmem:[#allocation4 + $0xe8] sm:$0xf] }
  0x63   :  { %1411 = vmatpush.bf16.msra.mxu3 %v3314_v54  ;;  %v2847_v40 = vld [vmem:[#allocation4 + $0x210] sm:$0xf0]  ;;  %v3995_v45 = vld [vmem:[#allocation4 + $0x404] sm:$0xf]  ;;  %v3250_v46 = vor.u32 %v4031_v36, %v3247_v37  ;;  %v3930_v54 = vld [vmem:[#allocation4 + $0x1f4] sm:$0xf0] }
  0x64   :  { %1373 = vmatpush.bf16.msra.mxu0 %v2914_v60  ;;  %v2975_v44 = vld [vmem:[#allocation4 + $0x310] sm:$0xf0]  ;;  %v4027_v48 = vld [vmem:[#allocation4 + $0x504] sm:$0xf]  ;;  %v2850_v53 = vor.u32 %v3931_v39, %v2847_v40  ;;  %v3994_v60 = vld [vmem:[#allocation4 + $0x3f4] sm:$0xf0]  ;;  %v2838_v63 = vor.u32 %v3930_v54, %v2837_v52 }
  0x65   :  { %1386 = vmatpush.bf16.msra.mxu1 %v3042_v61  ;;  %v3103_v47 = vld [vmem:[#allocation4 + $0x410] sm:$0xf0]  ;;  %v2978_v57 = vor.u32 %v3963_v43, %v2975_v44  ;;  %v3094_v4 = vor.u32 %v3994_v60, %v3093_v59  ;;  %v3954_v22 = vld [vmem:[#allocation4 + $0x2b4] sm:$0xf0]  ;;  %v2661_v29 = vld [vmem:[#allocation4 + $0x88] sm:$0xf] }
  0x66   :  { %1399 = vmatpush.bf16.msra.mxu2 %v3170_v62  ;;  %v3231_v49 = vld [vmem:[#allocation4 + $0x510] sm:$0xf0]  ;;  %v3106_v58 = vor.u32 %v3995_v45, %v3103_v47  ;;  %v2710_v62 = vor.u32 %v3898_v51, %v2709_v50  ;;  %v2934_v28 = vor.u32 %v3954_v22, %v2933_v21  ;;  %v2789_v31 = vld [vmem:[#allocation4 + $0x188] sm:$0xf]  ;;  %v3918_v34 = vld [vmem:[#allocation4 + $0x194] sm:$0xf0] }
  0x67   :  { %1412 = vmatpush.bf16.msra.mxu3 %v3298_v2  ;;  %v3234_v61 = vor.u32 %v4027_v48, %v3231_v49  ;;  %v3894_v2 = vld [vmem:[#allocation4 + $0xd4] sm:$0xf0]  ;;  %v2917_v36 = vld [vmem:[#allocation4 + $0x288] sm:$0xf] }
  0x68   :  { %1374 = vmatpush.bf16.msra.mxu0 %v2898_v10  ;;  %v3077_v10 = vld [vmem:[#allocation4 + $0x3c8] sm:$0xf]  ;;  %v3950_v37 = vld [vmem:[#allocation4 + $0x294] sm:$0xf0] }
  0x69   :  { %1387 = vmatpush.bf16.msra.mxu1 %v3026_v11  ;;  %v3990_v11 = vld [vmem:[#allocation4 + $0x3d4] sm:$0xf0]  ;;  %v2645_v43 = vld [vmem:[#allocation4 + $0x68] sm:$0xf] }
  0x6a   :  { %1400 = vmatpush.bf16.msra.mxu2 %v3154_v12  ;;  %v2694_v12 = vor.u32 %v3894_v2, %v2693_v1  ;;  %v3078_v19 = vor.u32 %v3990_v11, %v3077_v10  ;;  %v3982_v39 = vld [vmem:[#allocation4 + $0x394] sm:$0xf0]  ;;  %v2773_v45 = vld [vmem:[#allocation4 + $0x168] sm:$0xf] }
  0x6b   :  { %1413 = vmatpush.bf16.msra.mxu3 %v3282_v17  ;;  %v3890_v17 = vld [vmem:[#allocation4 + $0xb4] sm:$0xf0]  ;;  %v2901_v48 = vld [vmem:[#allocation4 + $0x268] sm:$0xf] }
  0x6c   :  { %1375 = vmatpush.bf16.msra.mxu0 %v2882_v23  ;;  %v3061_v23 = vld [vmem:[#allocation4 + $0x3a8] sm:$0xf]  ;;  %v3882_v44 = vld [vmem:[#allocation4 + $0x74] sm:$0xf0] }
  0x6d   :  { %1388 = vmatpush.bf16.msra.mxu1 %v3010_v24  ;;  %v3986_v24 = vld [vmem:[#allocation4 + $0x3b4] sm:$0xf0]  ;;  %v3029_v50 = vld [vmem:[#allocation4 + $0x368] sm:$0xf]  ;;  %v2646_v52 = vor.u32 %v3882_v44, %v2645_v43 }
  0x6e   :  { %1401 = vmatpush.bf16.msra.mxu2 %v3138_v26  ;;  %v2678_v26 = vor.u32 %v3890_v17, %v2677_v16  ;;  %v3062_v33 = vor.u32 %v3986_v24, %v3061_v23  ;;  %v3914_v47 = vld [vmem:[#allocation4 + $0x174] sm:$0xf0]  ;;  %v2629_v55 = vld [vmem:[#allocation4 + $0x48] sm:$0xf] }
  0x6f   :  { %1414 = vmatpush.bf16.msra.mxu3 %v3266_v30  ;;  %v3886_v30 = vld [vmem:[#allocation4 + $0x94] sm:$0xf0]  ;;  %v2885_v60 = vld [vmem:[#allocation4 + $0x248] sm:$0xf] }
  0x70   :  { %1376 = vmatpush.bf16.msra.mxu0 %v2866_v38  ;;  %v3045_v38 = vld [vmem:[#allocation4 + $0x388] sm:$0xf]  ;;  %v2662_v40 = vor.u32 %v3886_v30, %v2661_v29  ;;  %v3946_v49 = vld [vmem:[#allocation4 + $0x274] sm:$0xf0] }
  0x71   :  { %1389 = vmatpush.bf16.msra.mxu1 %v2994_v41  ;;  %v2790_v41 = vor.u32 %v3918_v34, %v2789_v31  ;;  %v3978_v51 = vld [vmem:[#allocation4 + $0x374] sm:$0xf0]  ;;  %v2902_v54 = vor.u32 %v3946_v49, %v2901_v48  ;;  %v2613_v3 = vld [vmem:[#allocation4 + $0x28] sm:$0xf]  ;;  %v3896_v34 = vld [vmem:[#allocation4 + $0xec] sm:$0xf] }
  0x72   :  { %1402 = vmatpush.bf16.msra.mxu2 %v3122_v42  ;;  %v2918_v42 = vor.u32 %v3950_v37, %v2917_v36  ;;  %v3878_v56 = vld [vmem:[#allocation4 + $0x54] sm:$0xf0]  ;;  %v2741_v5 = vld [vmem:[#allocation4 + $0x128] sm:$0xf]  ;;  %v2711_v36 = vld [vmem:[#allocation4 + $0xf8] sm:$0xf0] }
  0x73   :  { %1415 = vmatpush.bf16.msra.mxu3 %v3250_v46  ;;  %v3046_v46 = vor.u32 %v3982_v39, %v3045_v38  ;;  %v3910_v59 = vld [vmem:[#allocation4 + $0x154] sm:$0xf0]  ;;  %v2869_v10 = vld [vmem:[#allocation4 + $0x228] sm:$0xf]  ;;  %v3928_v39 = vld [vmem:[#allocation4 + $0x1ec] sm:$0xf]  ;;  %v2714_v44 = vor.u32 %v3896_v34, %v2711_v36 }
  0x74   :  { %1377 = vmatpush.bf16.msra.mxu0 %v2850_v53  ;;  %v2774_v53 = vor.u32 %v3914_v47, %v2773_v45  ;;  %v3906_v7 = vld [vmem:[#allocation4 + $0x134] sm:$0xf0]  ;;  %v2597_v16 = vld [vmem:[#allocation4 + $0x8] sm:$0xf] }
  0x75   :  { %1390 = vmatpush.bf16.msra.mxu1 %v2978_v57  ;;  %v2757_v57 = vld [vmem:[#allocation4 + $0x148] sm:$0xf]  ;;  %v3938_v11 = vld [vmem:[#allocation4 + $0x234] sm:$0xf0]  ;;  %v2742_v18 = vor.u32 %v3906_v7, %v2741_v5 }
  0x76   :  { %1403 = vmatpush.bf16.msra.mxu2 %v3106_v58  ;;  %v3030_v58 = vor.u32 %v3978_v51, %v3029_v50  ;;  %v2758_v1 = vor.u32 %v3910_v59, %v2757_v57  ;;  %v3870_v17 = vld [vmem:[#allocation4 + $0x14] sm:$0xf0]  ;;  %v2725_v20 = vld [vmem:[#allocation4 + $0x108] sm:$0xf]  ;;  %v3892_v50 = vld [vmem:[#allocation4 + $0xcc] sm:$0xf] }
  0x77   :  { %1416 = vmatpush.bf16.msra.mxu3 %v3234_v61  ;;  %1378 = vmatmul.bf16.vlgmr.msra.gmra.mxu0 %v4372_v8  ;;  %v3942_v61 = vld [vmem:[#allocation4 + $0x254] sm:$0xf0]  ;;  %v2853_v22 = vld [vmem:[#allocation4 + $0x208] sm:$0xf]  ;;  %v2598_v31 = vor.u32 %v3870_v17, %v2597_v16  ;;  %v2695_v51 = vld [vmem:[#allocation4 + $0xd8] sm:$0xf0] }
  0x78   :  { %1422 = vmatpush.bf16.msrb.mxu0 %v2710_v62  ;;  %1391 = vmatmul.bf16.vlgmr.msra.gmra.mxu1 %v4376_v15  ;;  %v3013_v62 = vld [vmem:[#allocation4 + $0x348] sm:$0xf]  ;;  %v2886_v2 = vor.u32 %v3942_v61, %v2885_v60  ;;  %v3902_v21 = vld [vmem:[#allocation4 + $0x114] sm:$0xf0]  ;;  %v2791_v16 = vld [vmem:[#allocation4 + $0x198] sm:$0xf0] }
  0x79   :  { %1435 = vmatpush.bf16.msrb.mxu1 %v2838_v63  ;;  %1404 = vmatmul.bf16.vlgmr.msra.gmra.mxu2 %v4384_v32  ;;  %v3974_v63 = vld [vmem:[#allocation4 + $0x354] sm:$0xf0]  ;;  %v3349_v30 = vld [vmem:[#allocation4 + $0x5e8] sm:$0xf]  ;;  %v2726_v37 = vor.u32 %v3902_v21, %v2725_v20 }
  0x7a   :  { %1448 = vmatpush.bf16.msrb.mxu2 %v2966_v0  ;;  %1417 = vmatmul.bf16.vlgmr.msra.gmra.mxu3 %v4386_v35  ;;  %v2630_v0 = vor.u32 %v3878_v56, %v2629_v55  ;;  %v3014_v6 = vor.u32 %v3974_v63, %v3013_v62  ;;  %v3934_v24 = vld [vmem:[#allocation4 + $0x214] sm:$0xf0]  ;;  %v3205_v45 = vld [vmem:[#allocation4 + $0x4c8] sm:$0xf]  ;;  %v2698_v56 = vor.u32 %v3892_v50, %v2695_v51  ;;  %v3888_v62 = vld [vmem:[#allocation4 + $0xac] sm:$0xf] }
  0x7b   :  { %1461 = vmatpush.bf16.msrb.mxu3 %v3094_v4  ;;  %v3874_v4 = vld [vmem:[#allocation4 + $0x34] sm:$0xf0]  ;;  %v2854_v38 = vor.u32 %v3934_v24, %v2853_v22  ;;  %v3333_v47 = vld [vmem:[#allocation4 + $0x5c8] sm:$0xf]  ;;  %v2679_v63 = vld [vmem:[#allocation4 + $0xb8] sm:$0xf0] }
  0x7c   :  { %1423 = vmatpush.bf16.msrb.mxu0 %v2694_v12  ;;  %v2997_v12 = vld [vmem:[#allocation4 + $0x328] sm:$0xf]  ;;  %v4026_v29 = vld [vmem:[#allocation4 + $0x4f4] sm:$0xf0] }
  0x7d   :  { %1436 = vmatpush.bf16.msrb.mxu1 %v2822_v13  ;;  %v3970_v13 = vld [vmem:[#allocation4 + $0x334] sm:$0xf0]  ;;  %v3189_v57 = vld [vmem:[#allocation4 + $0x4a8] sm:$0xf] }
  0x7e   :  { %1449 = vmatpush.bf16.msrb.mxu2 %v2950_v14  ;;  %v2614_v14 = vor.u32 %v3874_v4, %v2613_v3  ;;  %v2998_v23 = vor.u32 %v3970_v13, %v2997_v12  ;;  %v4054_v49 = vld [vmem:[#allocation4 + $0x5d4] sm:$0xf0]  ;;  %v3317_v59 = vld [vmem:[#allocation4 + $0x5a8] sm:$0xf]  ;;  %v2682_v4 = vor.u32 %v3888_v62, %v2679_v63  ;;  %v3884_v12 = vld [vmem:[#allocation4 + $0x8c] sm:$0xf] }
  0x7f   :  { %1462 = vmatpush.bf16.msrb.mxu3 %v3078_v19  ;;  %v2870_v19 = vor.u32 %v3938_v11, %v2869_v10  ;;  %v3334_v55 = vor.u32 %v4054_v49, %v3333_v47  ;;  %v4050_v61 = vld [vmem:[#allocation4 + $0x5b4] sm:$0xf0]  ;;  %v3173_v5 = vld [vmem:[#allocation4 + $0x488] sm:$0xf]  ;;  %v2663_v13 = vld [vmem:[#allocation4 + $0x98] sm:$0xf0] }
  0x80   :  { %1424 = vmatpush.bf16.msrb.mxu0 %v2678_v26  ;;  %v2981_v26 = vld [vmem:[#allocation4 + $0x308] sm:$0xf]  ;;  %v3318_v3 = vor.u32 %v4050_v61, %v3317_v59  ;;  %v4046_v11 = vld [vmem:[#allocation4 + $0x594] sm:$0xf0]  ;;  %v3868_v63 = vld [vmem:[#allocation4 + $0xc] sm:$0xf] }
  0x81   :  { %1437 = vmatpush.bf16.msrb.mxu1 %v2806_v27  ;;  %v3966_v27 = vld [vmem:[#allocation4 + $0x314] sm:$0xf0]  ;;  %v3301_v7 = vld [vmem:[#allocation4 + $0x588] sm:$0xf] }
  0x82   :  { %1450 = vmatpush.bf16.msrb.mxu2 %v2934_v28  ;;  %v3221_v28 = vld [vmem:[#allocation4 + $0x4e8] sm:$0xf]  ;;  %v4010_v21 = vld [vmem:[#allocation4 + $0x474] sm:$0xf0] }
  0x83   :  { %1463 = vmatpush.bf16.msrb.mxu3 %v3062_v33  ;;  %v4058_v33 = vld [vmem:[#allocation4 + $0x5f4] sm:$0xf0]  ;;  %v3157_v20 = vld [vmem:[#allocation4 + $0x468] sm:$0xf] }
  0x84   :  { %1425 = vmatpush.bf16.msrb.mxu0 %v2662_v40  ;;  %v2839_v40 = vld [vmem:[#allocation4 + $0x1f8] sm:$0xf0]  ;;  %v3350_v43 = vor.u32 %v4058_v33, %v3349_v30  ;;  %v3285_v22 = vld [vmem:[#allocation4 + $0x568] sm:$0xf]  ;;  %v4042_v24 = vld [vmem:[#allocation4 + $0x574] sm:$0xf0]  ;;  %v3158_v30 = vor.u32 %v4010_v21, %v3157_v20 }
  0x85   :  { %1438 = vmatpush.bf16.msrb.mxu1 %v2790_v41  ;;  %v2982_v41 = vor.u32 %v3966_v27, %v2981_v26  ;;  %v2842_v48 = vor.u32 %v3928_v39, %v2839_v40  ;;  %v3880_v26 = vld [vmem:[#allocation4 + $0x6c] sm:$0xf]  ;;  %v2647_v27 = vld [vmem:[#allocation4 + $0x78] sm:$0xf0]  ;;  %v3141_v34 = vld [vmem:[#allocation4 + $0x448] sm:$0xf] }
  0x86   :  { %1451 = vmatpush.bf16.msrb.mxu2 %v2918_v42  ;;  %v3222_v42 = vor.u32 %v4026_v29, %v3221_v28  ;;  %v3912_v28 = vld [vmem:[#allocation4 + $0x16c] sm:$0xf]  ;;  %v2775_v29 = vld [vmem:[#allocation4 + $0x178] sm:$0xf0]  ;;  %v2650_v33 = vor.u32 %v3880_v26, %v2647_v27  ;;  %v4006_v36 = vld [vmem:[#allocation4 + $0x454] sm:$0xf0] }
  0x87   :  { %1464 = vmatpush.bf16.msrb.mxu3 %v3046_v46  ;;  %v4022_v46 = vld [vmem:[#allocation4 + $0x4d4] sm:$0xf0]  ;;  %v3876_v40 = vld [vmem:[#allocation4 + $0x4c] sm:$0xf]  ;;  %v3125_v47 = vld [vmem:[#allocation4 + $0x428] sm:$0xf] }
  0x88   :  { %1426 = vmatpush.bf16.msrb.mxu0 %v2646_v52  ;;  %v3924_v52 = vld [vmem:[#allocation4 + $0x1cc] sm:$0xf]  ;;  %v4038_v39 = vld [vmem:[#allocation4 + $0x554] sm:$0xf0]  ;;  %v3253_v49 = vld [vmem:[#allocation4 + $0x528] sm:$0xf] }
  0x89   :  { %1439 = vmatpush.bf16.msrb.mxu1 %v2774_v53  ;;  %v2823_v53 = vld [vmem:[#allocation4 + $0x1d8] sm:$0xf0]  ;;  %v4034_v51 = vld [vmem:[#allocation4 + $0x534] sm:$0xf0]  ;;  %v3237_v61 = vld [vmem:[#allocation4 + $0x508] sm:$0xf] }
  0x8a   :  { %1452 = vmatpush.bf16.msrb.mxu2 %v2902_v54  ;;  %v3206_v54 = vor.u32 %v4022_v46, %v3205_v45  ;;  %v2826_v60 = vor.u32 %v3924_v52, %v2823_v53  ;;  %v3872_v52 = vld [vmem:[#allocation4 + $0x2c] sm:$0xf]  ;;  %v2615_v53 = vld [vmem:[#allocation4 + $0x38] sm:$0xf0]  ;;  %v3254_v59 = vor.u32 %v4034_v51, %v3253_v49  ;;  %v4030_v62 = vld [vmem:[#allocation4 + $0x514] sm:$0xf0] }
  0x8b   :  { %1465 = vmatpush.bf16.msrb.mxu3 %v3030_v58  ;;  %v4018_v58 = vld [vmem:[#allocation4 + $0x4b4] sm:$0xf0]  ;;  %v3079_v27 = vld [vmem:[#allocation4 + $0x3d8] sm:$0xf0]  ;;  %v3948_v49 = vld [vmem:[#allocation4 + $0x28c] sm:$0xf] }
  0x8c   :  { %1427 = vmatpush.bf16.msrb.mxu0 %v2630_v0  ;;  %v3920_v0 = vld [vmem:[#allocation4 + $0x1ac] sm:$0xf] }
  0x8d   :  { %1440 = vmatpush.bf16.msrb.mxu1 %v2758_v1  ;;  %v2807_v1 = vld [vmem:[#allocation4 + $0x1b8] sm:$0xf0]  ;;  %v3980_v51 = vld [vmem:[#allocation4 + $0x38c] sm:$0xf] }
  0x8e   :  { %1453 = vmatpush.bf16.msrb.mxu2 %v2886_v2  ;;  %v3190_v2 = vor.u32 %v4018_v58, %v3189_v57  ;;  %v2810_v10 = vor.u32 %v3920_v0, %v2807_v1  ;;  %v3109_v57 = vld [vmem:[#allocation4 + $0x408] sm:$0xf]  ;;  %v3998_v58 = vld [vmem:[#allocation4 + $0x414] sm:$0xf0]  ;;  %v2599_v1 = vld [vmem:[#allocation4 + $0x18] sm:$0xf0] }
  0x8f   :  { %1466 = vmatpush.bf16.msrb.mxu3 %v3014_v6  ;;  %v4014_v6 = vld [vmem:[#allocation4 + $0x494] sm:$0xf0] }
  0x90   :  { %1428 = vmatpush.bf16.msrb.mxu0 %v2614_v14  ;;  %v3916_v14 = vld [vmem:[#allocation4 + $0x18c] sm:$0xf]  ;;  %v3174_v17 = vor.u32 %v4014_v6, %v3173_v5  ;;  %v2967_v5 = vld [vmem:[#allocation4 + $0x2f8] sm:$0xf0] }
  0x91   :  { %1441 = vmatpush.bf16.msrb.mxu1 %v2742_v18  ;;  %v3302_v18 = vor.u32 %v4046_v11, %v3301_v7  ;;  %v3992_v6 = vld [vmem:[#allocation4 + $0x3ec] sm:$0xf]  ;;  %v3110_v7 = vor.u32 %v3998_v58, %v3109_v57 }
  0x92   :  { %1454 = vmatpush.bf16.msrb.mxu2 %v2870_v19  ;;  %v2666_v19 = vor.u32 %v3884_v12, %v2663_v13  ;;  %v4024_v11 = vld [vmem:[#allocation4 + $0x4ec] sm:$0xf]  ;;  %v3223_v12 = vld [vmem:[#allocation4 + $0x4f8] sm:$0xf0]  ;;  %v3238_v13 = vor.u32 %v4030_v62, %v3237_v61 }
  0x93   :  { %1467 = vmatpush.bf16.msrb.mxu3 %v2998_v23  ;;  %v2794_v23 = vor.u32 %v3916_v14, %v2791_v16  ;;  %v2602_v14 = vor.u32 %v3868_v63, %v2599_v1  ;;  %v4056_v16 = vld [vmem:[#allocation4 + $0x5ec] sm:$0xf]  ;;  %v3226_v21 = vor.u32 %v4024_v11, %v3223_v12  ;;  %v3031_v63 = vld [vmem:[#allocation4 + $0x378] sm:$0xf0] }
  0x94   :  { %1429 = vmatpush.bf16.msrb.mxu0 %v2598_v31  ;;  %v3286_v31 = vor.u32 %v4042_v24, %v3285_v22  ;;  %v3956_v22 = vld [vmem:[#allocation4 + $0x2cc] sm:$0xf]  ;;  %v3159_v1 = vld [vmem:[#allocation4 + $0x478] sm:$0xf0] }
  0x95   :  { %1442 = vmatpush.bf16.msrb.mxu1 %v2726_v37  ;;  %v3269_v37 = vld [vmem:[#allocation4 + $0x548] sm:$0xf]  ;;  %v3988_v24 = vld [vmem:[#allocation4 + $0x3cc] sm:$0xf]  ;;  %v2887_v11 = vld [vmem:[#allocation4 + $0x258] sm:$0xf0] }
  0x96   :  { %1455 = vmatpush.bf16.msrb.mxu2 %v2854_v38  ;;  %v2778_v38 = vor.u32 %v3912_v28, %v2775_v29  ;;  %v3270_v45 = vor.u32 %v4038_v39, %v3269_v37  ;;  %v4020_v28 = vld [vmem:[#allocation4 + $0x4cc] sm:$0xf]  ;;  %v3207_v29 = vld [vmem:[#allocation4 + $0x4d8] sm:$0xf0] }
  0x97   :  { %1468 = vmatpush.bf16.msrb.mxu3 %v2982_v41  ;;  %1430 = vmatmul.bf16.vlgmr.msrb.gmra.mxu0 %v4374_v9  ;;  %v2631_v41 = vld [vmem:[#allocation4 + $0x58] sm:$0xf0]  ;;  %v3952_v37 = vld [vmem:[#allocation4 + $0x2ac] sm:$0xf] }
  0x98   :  { %1474 = vmatpush.bf16.msra.mxu0 %v3222_v42  ;;  %1443 = vmatmul.bf16.vlgmr.msrb.gmra.mxu1 %v4381_v25  ;;  %v3908_v42 = vld [vmem:[#allocation4 + $0x14c] sm:$0xf]  ;;  %v2634_v46 = vor.u32 %v3876_v40, %v2631_v41  ;;  %v3063_v41 = vld [vmem:[#allocation4 + $0x3b8] sm:$0xf0] }
  0x99   :  { %1487 = vmatpush.bf16.msra.mxu1 %v3350_v43  ;;  %1456 = vmatmul.bf16.vlgmr.msrb.gmra.mxu2 %v4372_v8  ;;  %v2759_v43 = vld [vmem:[#allocation4 + $0x158] sm:$0xf0]  ;;  %v3984_v39 = vld [vmem:[#allocation4 + $0x3ac] sm:$0xf] }
  0x9a   :  { %1500 = vmatpush.bf16.msra.mxu2 %v2714_v44  ;;  %1469 = vmatmul.bf16.vlgmr.msrb.gmra.mxu3 %v4376_v15  ;;  %v3142_v44 = vor.u32 %v4006_v36, %v3141_v34  ;;  %v2762_v50 = vor.u32 %v3908_v42, %v2759_v43  ;;  %v3082_v34 = vor.u32 %v3988_v24, %v3079_v27  ;;  %v4016_v42 = vld [vmem:[#allocation4 + $0x4ac] sm:$0xf]  ;;  %v3191_v43 = vld [vmem:[#allocation4 + $0x4b8] sm:$0xf0] }
  0x9b   :  { %1513 = vmatpush.bf16.msra.mxu3 %v2842_v48  ;;  %v4002_v48 = vld [vmem:[#allocation4 + $0x434] sm:$0xf0]  ;;  %v3210_v36 = vor.u32 %v4020_v28, %v3207_v29  ;;  %v3976_v61 = vld [vmem:[#allocation4 + $0x36c] sm:$0xf]  ;;  %v2999_v29 = vld [vmem:[#allocation4 + $0x338] sm:$0xf0] }
  0x9c   :  { %1475 = vmatpush.bf16.msra.mxu0 %v3206_v54  ;;  %v3904_v54 = vld [vmem:[#allocation4 + $0x12c] sm:$0xf] }
  0x9d   :  { %1488 = vmatpush.bf16.msra.mxu1 %v3334_v55  ;;  %v2743_v55 = vld [vmem:[#allocation4 + $0x138] sm:$0xf0]  ;;  %v3972_v12 = vld [vmem:[#allocation4 + $0x34c] sm:$0xf] }
  0x9e   :  { %1501 = vmatpush.bf16.msra.mxu2 %v2698_v56  ;;  %v3126_v56 = vor.u32 %v4002_v48, %v3125_v47  ;;  %v2746_v0 = vor.u32 %v3904_v54, %v2743_v55  ;;  %v3066_v47 = vor.u32 %v3984_v39, %v3063_v41  ;;  %v3194_v48 = vor.u32 %v4016_v42, %v3191_v43  ;;  %v4012_v54 = vld [vmem:[#allocation4 + $0x48c] sm:$0xf]  ;;  %v3175_v55 = vld [vmem:[#allocation4 + $0x498] sm:$0xf0] }
  0x9f   :  { %1514 = vmatpush.bf16.msra.mxu3 %v2826_v60  ;;  %v2618_v60 = vor.u32 %v3872_v52, %v2615_v53  ;;  %v3047_v53 = vld [vmem:[#allocation4 + $0x398] sm:$0xf0]  ;;  %v3936_v24 = vld [vmem:[#allocation4 + $0x22c] sm:$0xf] }
  0xa0   :  { %1476 = vmatpush.bf16.msra.mxu0 %v3190_v2  ;;  %v3900_v2 = vld [vmem:[#allocation4 + $0x10c] sm:$0xf]  ;;  %v3050_v58 = vor.u32 %v3980_v51, %v3047_v53  ;;  %v2855_v43 = vld [vmem:[#allocation4 + $0x218] sm:$0xf0]  ;;  %v3469_v51 = vld [vmem:[#allocation7 + $0xe0] sm:$0xf] }
  0xa1   :  { %1489 = vmatpush.bf16.msra.mxu1 %v3318_v3  ;;  %v2727_v3 = vld [vmem:[#allocation4 + $0x118] sm:$0xf0]  ;;  %v3968_v27 = vld [vmem:[#allocation4 + $0x32c] sm:$0xf] }
  0xa2   :  { %1502 = vmatpush.bf16.msra.mxu2 %v2682_v4  ;;  %v3960_v4 = vld [vmem:[#allocation4 + $0x2ec] sm:$0xf]  ;;  %v3002_v41 = vor.u32 %v3968_v27, %v2999_v29  ;;  %v4105_v27 = vld [vmem:[#allocation7 + $0x16c] sm:$0xf0] }
  0xa3   :  { %1515 = vmatpush.bf16.msra.mxu3 %v2810_v10  ;;  %v3095_v10 = vld [vmem:[#allocation4 + $0x3f8] sm:$0xf0]  ;;  %v3932_v39 = vld [vmem:[#allocation4 + $0x20c] sm:$0xf] }
  0xa4   :  { %1477 = vmatpush.bf16.msra.mxu0 %v3174_v17  ;;  %v3351_v17 = vld [vmem:[#allocation4 + $0x5f8] sm:$0xf0]  ;;  %v3098_v20 = vor.u32 %v3992_v6, %v3095_v10  ;;  %v3034_v6 = vor.u32 %v3976_v61, %v3031_v63  ;;  %v3940_v10 = vld [vmem:[#allocation4 + $0x24c] sm:$0xf]  ;;  %v2858_v53 = vor.u32 %v3932_v39, %v2855_v43  ;;  %v3453_v63 = vld [vmem:[#allocation7 + $0xc0] sm:$0xf] }
  0xa5   :  { %1490 = vmatpush.bf16.msra.mxu1 %v3302_v18  ;;  %v2730_v18 = vor.u32 %v3900_v2, %v2727_v3  ;;  %v3354_v26 = vor.u32 %v4056_v16, %v3351_v17  ;;  %v4040_v2 = vld [vmem:[#allocation4 + $0x56c] sm:$0xf]  ;;  %v3287_v3 = vld [vmem:[#allocation4 + $0x578] sm:$0xf0] }
  0xa6   :  { %1503 = vmatpush.bf16.msra.mxu2 %v2666_v19  ;;  %v2970_v19 = vor.u32 %v3960_v4, %v2967_v5  ;;  %v4004_v16 = vld [vmem:[#allocation4 + $0x44c] sm:$0xf]  ;;  %v3143_v17 = vld [vmem:[#allocation4 + $0x458] sm:$0xf0] }
  0xa7   :  { %1516 = vmatpush.bf16.msra.mxu3 %v2794_v23  ;;  %v2951_v23 = vld [vmem:[#allocation4 + $0x2d8] sm:$0xf0] }
  0xa8   :  { %1478 = vmatpush.bf16.msra.mxu0 %v3158_v30  ;;  %v4052_v30 = vld [vmem:[#allocation4 + $0x5cc] sm:$0xf] }
  0xa9   :  { %1491 = vmatpush.bf16.msra.mxu1 %v3286_v31  ;;  %v3335_v31 = vld [vmem:[#allocation4 + $0x5d8] sm:$0xf0] }
  0xaa   :  { %1504 = vmatpush.bf16.msra.mxu2 %v2650_v33  ;;  %v2954_v33 = vor.u32 %v3956_v22, %v2951_v23  ;;  %v3338_v40 = vor.u32 %v4052_v30, %v3335_v31  ;;  %v3146_v23 = vor.u32 %v4004_v16, %v3143_v17  ;;  %v4000_v30 = vld [vmem:[#allocation4 + $0x42c] sm:$0xf]  ;;  %v3127_v31 = vld [vmem:[#allocation4 + $0x438] sm:$0xf0] }
  0xab   :  { %1517 = vmatpush.bf16.msra.mxu3 %v2778_v38  ;;  %v2935_v38 = vld [vmem:[#allocation4 + $0x2b8] sm:$0xf0]  ;;  %v3130_v42 = vor.u32 %v4000_v30, %v3127_v31  ;;  %v3389_v30 = vld [vmem:[#allocation7 + $0x40] sm:$0xf]  ;;  %v4069_v31 = vld [vmem:[#allocation7 + $0x4c] sm:$0xf0] }
  0xac   :  { %1479 = vmatpush.bf16.msra.mxu0 %v3142_v44  ;;  %v4048_v44 = vld [vmem:[#allocation4 + $0x5ac] sm:$0xf] }
  0xad   :  { %1492 = vmatpush.bf16.msra.mxu1 %v3270_v45  ;;  %v3319_v45 = vld [vmem:[#allocation4 + $0x5b8] sm:$0xf0] }
  0xae   :  { %1505 = vmatpush.bf16.msra.mxu2 %v2634_v46  ;;  %v2938_v46 = vor.u32 %v3952_v37, %v2935_v38  ;;  %v3322_v52 = vor.u32 %v4048_v44, %v3319_v45  ;;  %v3964_v44 = vld [vmem:[#allocation4 + $0x30c] sm:$0xf]  ;;  %v2983_v45 = vld [vmem:[#allocation4 + $0x318] sm:$0xf0] }
  0xaf   :  { %1518 = vmatpush.bf16.msra.mxu3 %v2762_v50  ;;  %v2919_v50 = vld [vmem:[#allocation4 + $0x298] sm:$0xf0] }
  0xb0   :  { %1480 = vmatpush.bf16.msra.mxu0 %v3126_v56  ;;  %v4044_v56 = vld [vmem:[#allocation4 + $0x58c] sm:$0xf]  ;;  %v2922_v57 = vor.u32 %v3948_v49, %v2919_v50  ;;  %v3239_v50 = vld [vmem:[#allocation4 + $0x518] sm:$0xf0] }
  0xb1   :  { %1493 = vmatpush.bf16.msra.mxu1 %v3254_v59  ;;  %v3944_v59 = vld [vmem:[#allocation4 + $0x26c] sm:$0xf] }
  0xb2   :  { %1506 = vmatpush.bf16.msra.mxu2 %v2618_v60  ;;  %v2903_v60 = vld [vmem:[#allocation4 + $0x278] sm:$0xf0]  ;;  %v4028_v49 = vld [vmem:[#allocation4 + $0x50c] sm:$0xf] }
  0xb3   :  { %1519 = vmatpush.bf16.msra.mxu3 %v2746_v0  ;;  %v4008_v0 = vld [vmem:[#allocation4 + $0x46c] sm:$0xf]  ;;  %v2906_v4 = vor.u32 %v3944_v59, %v2903_v60 }
  0xb4   :  { %1481 = vmatpush.bf16.msra.mxu0 %v3110_v7  ;;  %v3162_v7 = vor.u32 %v4008_v0, %v3159_v1  ;;  %v4085_v0 = vld [vmem:[#allocation7 + $0xcc] sm:$0xf0] }
  0xb5   :  { %1494 = vmatpush.bf16.msra.mxu1 %v3238_v13  ;;  %v3290_v13 = vor.u32 %v4040_v2, %v3287_v3  ;;  %v3581_v2 = vld [vmem:[#allocation7 + $0x1c0] sm:$0xf]  ;;  %v4117_v3 = vld [vmem:[#allocation7 + $0x1cc] sm:$0xf0] }
  0xb6   :  { %1507 = vmatpush.bf16.msra.mxu2 %v2602_v14  ;;  %v3015_v14 = vld [vmem:[#allocation4 + $0x358] sm:$0xf0] }
  0xb7   :  { %1520 = vmatpush.bf16.msra.mxu3 %v2730_v18  ;;  %1482 = vmatmul.bf16.vlgmr.msra.gmra.mxu0 %v4384_v32  ;;  %v4036_v18 = vld [vmem:[#allocation4 + $0x54c] sm:$0xf]  ;;  %v3018_v22 = vor.u32 %v3972_v12, %v3015_v14  ;;  %v3565_v12 = vld [vmem:[#allocation7 + $0x1a0] sm:$0xf] }
  0xb8   :  { %1526 = vmatpush.bf16.msrb.mxu0 %v2970_v19  ;;  %1495 = vmatmul.bf16.vlgmr.msra.gmra.mxu1 %v4386_v35  ;;  %v3271_v19 = vld [vmem:[#allocation4 + $0x558] sm:$0xf0] }
  0xb9   :  { %1539 = vmatpush.bf16.msrb.mxu1 %v3098_v20  ;;  %1508 = vmatmul.bf16.vlgmr.msra.gmra.mxu2 %v4374_v9  ;;  %v3303_v9 = vld [vmem:[#allocation4 + $0x598] sm:$0xf0]  ;;  %v2890_v20 = vor.u32 %v3940_v10, %v2887_v11  ;;  %v3274_v28 = vor.u32 %v4036_v18, %v3271_v19  ;;  %v3437_v10 = vld [vmem:[#allocation7 + $0xa0] sm:$0xf]  ;;  %v4081_v11 = vld [vmem:[#allocation7 + $0xac] sm:$0xf0] }
  0xba   :  { %1552 = vmatpush.bf16.msrb.mxu2 %v3226_v21  ;;  %1521 = vmatmul.bf16.vlgmr.msra.gmra.mxu3 %v4381_v25  ;;  %v3178_v25 = vor.u32 %v4012_v54, %v3175_v55  ;;  %v3306_v62 = vor.u32 %v4044_v56, %v3303_v9  ;;  %v4406_v21 = vpop.f32.mrf.mxu1  ;;  %v3597_v54 = vld [vmem:[#allocation7 + $0x1e0] sm:$0xf]  ;;  %v4121_v55 = vld [vmem:[#allocation7 + $0x1ec] sm:$0xf0]  ;;  %v4412_v56 = vld [vmem:[#allocation6] sm:$0xf]  ;;  %v3438_v14 = vor.u32 %v4081_v11, %v3437_v10 }
  0xbb   :  { %1565 = vmatpush.bf16.msrb.mxu3 %v3354_v26  ;;  %v4404_v5 = vpop.f32.mrf.mxu0  ;;  %v2871_v26 = vld [vmem:[#allocation4 + $0x238] sm:$0xf0]  ;;  %v3598_v61 = vor.u32 %v4121_v55, %v3597_v54  ;;  %v4077_v18 = vld [vmem:[#allocation7 + $0x8c] sm:$0xf0]  ;;  %v3357_v54 = vld [vmem:[#allocation7] sm:$0xf] }
  0xbc   :  { %1527 = vmatpush.bf16.msrb.mxu0 %v2954_v33  ;;  %v2874_v38 = vor.u32 %v3936_v24, %v2871_v26  ;;  %v4109_v19 = vld [vmem:[#allocation7 + $0x18c] sm:$0xf0]  ;;  %v3405_v24 = vld [vmem:[#allocation7 + $0x60] sm:$0xf]  ;;  %v299_v11 = vperm.slane %v4412_v56, 1 }
  0xbd   :  { %1540 = vmatpush.bf16.msrb.mxu1 %v3082_v34  ;;  %v4032_v34 = vld [vmem:[#allocation4 + $0x52c] sm:$0xf]  ;;  %v4410_v37 = vpop.f32.mrf.mxu3  ;;  %v3533_v26 = vld [vmem:[#allocation7 + $0x160] sm:$0xf]  ;;  %v4061_v55 = vld [vmem:[#allocation7 + $0xc] sm:$0xf0] }
  0xbe   :  { %1553 = vmatpush.bf16.msrb.mxu2 %v3210_v36  ;;  %v3255_v36 = vld [vmem:[#allocation4 + $0x538] sm:$0xf0]  ;;  %v3534_v29 = vor.u32 %v4105_v27, %v3533_v26  ;;  %v3661_v26 = vld [vmem:[#allocation7 + $0x260] sm:$0xf]  ;;  %v4137_v27 = vld [vmem:[#allocation7 + $0x26c] sm:$0xf0] }
  0xbf   :  { %1566 = vmatpush.bf16.msrb.mxu3 %v3338_v40 }
  0xc0   :  { %1528 = vmatpush.bf16.msrb.mxu0 %v2938_v46  ;;  %v3258_v46 = vor.u32 %v4032_v34, %v3255_v36  ;;  %v3517_v34 = vld [vmem:[#allocation7 + $0x140] sm:$0xf]  ;;  %v4101_v36 = vld [vmem:[#allocation7 + $0x14c] sm:$0xf0] }
  0xc1   :  { %1541 = vmatpush.bf16.msrb.mxu1 %v3066_v47  ;;  %v3996_v47 = vld [vmem:[#allocation4 + $0x40c] sm:$0xf] }
  0xc2   :  { %1554 = vmatpush.bf16.msrb.mxu2 %v3194_v48  ;;  %v4408_v33 = vpop.f32.mrf.mxu2  ;;  %v3111_v48 = vld [vmem:[#allocation4 + $0x418] sm:$0xf0]  ;;  %v1290_v9 = vpop.f32.mrf.mxu1 }
  0xc3   :  { %1567 = vmatpush.bf16.msrb.mxu3 %v3322_v52  ;;  %v1277_v40 = vpop.f32.mrf.mxu0  ;;  %v4089_v52 = vld [vmem:[#allocation7 + $0xec] sm:$0xf0] }
  0xc4   :  { %1529 = vmatpush.bf16.msrb.mxu0 %v2922_v57  ;;  %v2986_v57 = vor.u32 %v3964_v44, %v2983_v45  ;;  %v3470_v59 = vor.u32 %v4089_v52, %v3469_v51  ;;  %v3725_v40 = vld [vmem:[#allocation7 + $0x2e0] sm:$0xf]  ;;  %v4149_v51 = vld [vmem:[#allocation7 + $0x2cc] sm:$0xf0] }
  0xc5   :  { %1542 = vmatpush.bf16.msrb.mxu1 %v3050_v58  ;;  %v3114_v58 = vor.u32 %v3996_v47, %v3111_v48  ;;  %v1316_v1 = vpop.f32.mrf.mxu3  ;;  %v4065_v47 = vld [vmem:[#allocation7 + $0x2c] sm:$0xf0]  ;;  %v3501_v48 = vld [vmem:[#allocation7 + $0x120] sm:$0xf] }
  0xc6   :  { %1555 = vmatpush.bf16.msrb.mxu2 %v3178_v25  ;;  %v3242_v25 = vor.u32 %v4028_v49, %v3239_v50  ;;  %v4097_v49 = vld [vmem:[#allocation7 + $0x12c] sm:$0xf0]  ;;  %v3709_v50 = vld [vmem:[#allocation7 + $0x2c0] sm:$0xf]  ;;  %v3599_v1 = vld [vmem:[#allocation7 + $0x1f0] sm:$0xf0] }
  0xc7   :  { %1568 = vmatpush.bf16.msrb.mxu3 %v3306_v62  ;;  %v298_v62 = vperm.slane %v4412_v56, 0  ;;  %v3710_v52 = vor.u32 %v4149_v51, %v3709_v50  ;;  %v3629_v50 = vld [vmem:[#allocation7 + $0x220] sm:$0xf]  ;;  %v4129_v51 = vld [vmem:[#allocation7 + $0x22c] sm:$0xf0] }
  0xc8   :  { %1530 = vmatpush.bf16.msrb.mxu0 %v2906_v4  ;;  %v3454_v4 = vor.u32 %v4085_v0, %v3453_v63  ;;  %v4145_v63 = vld [vmem:[#allocation7 + $0x2ac] sm:$0xf0]  ;;  %v4119_v0 = vld [vmem:[#allocation7 + $0x1e4] sm:$0xf] }
  0xc9   :  { %1543 = vmatpush.bf16.msrb.mxu1 %v3034_v6  ;;  %v1276_v6 = vadd.f32 %v4404_v5, %v298_v62  ;;  %v3549_v5 = vld [vmem:[#allocation7 + $0x180] sm:$0xf] }
  0xca   :  { %1556 = vmatpush.bf16.msrb.mxu2 %v3162_v7  ;;  %v1303_v60 = vpop.f32.mrf.mxu2  ;;  %v3582_v7 = vor.u32 %v4117_v3, %v3581_v2  ;;  %v3693_v62 = vld [vmem:[#allocation7 + $0x2a0] sm:$0xf] }
  0xcb   :  { %1569 = vmatpush.bf16.msrb.mxu3 %v3290_v13  ;;  %v4113_v13 = vld [vmem:[#allocation7 + $0x1ac] sm:$0xf0]  ;;  %v1289_v16 = vadd.f32 %v4406_v21, %v1276_v6  ;;  %v3471_v60 = vld [vmem:[#allocation7 + $0xf0] sm:$0xf0]  ;;  %v3694_v3 = vor.u32 %v4145_v63, %v3693_v62 }
  0xcc   :  { %1531 = vmatpush.bf16.msrb.mxu0 %v2890_v20  ;;  %v3566_v17 = vor.u32 %v4113_v13, %v3565_v12  ;;  %v3602_v12 = vor.u32 %v4119_v0, %v3599_v1  ;;  %v4083_v13 = vld [vmem:[#allocation7 + $0xc4] sm:$0xf]  ;;  %v3727_v1 = vld [vmem:[#allocation7 + $0x2f0] sm:$0xf0] }
  0xcd   :  { %1544 = vmatpush.bf16.msrb.mxu1 %v3018_v22 }
  0xce   :  { %1557 = vmatpush.bf16.msrb.mxu2 %v3146_v23  ;;  %v3550_v23 = vor.u32 %v4109_v19, %v3549_v5 }
  0xcf   :  { %1570 = vmatpush.bf16.msrb.mxu3 %v3274_v28 }
  0xd0   :  { %1532 = vmatpush.bf16.msrb.mxu0 %v2874_v38 }
  0xd1   :  { %1545 = vmatpush.bf16.msrb.mxu1 %v3002_v41  ;;  %v4153_v41 = vld [vmem:[#allocation7 + $0x2ec] sm:$0xf0] }
  0xd2   :  { %1558 = vmatpush.bf16.msrb.mxu2 %v3130_v42  ;;  %v3390_v42 = vor.u32 %v4069_v31, %v3389_v30  ;;  %v3726_v44 = vor.u32 %v4153_v41, %v3725_v40  ;;  %v4075_v30 = vld [vmem:[#allocation7 + $0x84] sm:$0xf]  ;;  %v3423_v31 = vld [vmem:[#allocation7 + $0x90] sm:$0xf0]  ;;  %v3645_v40 = vld [vmem:[#allocation7 + $0x240] sm:$0xf] }
  0xd3   :  { %1571 = vmatpush.bf16.msrb.mxu3 %v3258_v46  ;;  %v3373_v46 = vld [vmem:[#allocation7 + $0x20] sm:$0xf]  ;;  %v4133_v41 = vld [vmem:[#allocation7 + $0x24c] sm:$0xf0] }
  0xd4   :  { %1533 = vmatpush.bf16.msrb.mxu0 %v2858_v53  ;;  %v1327_v20 = vpop.f32.mrf.mxu0  ;;  %v3374_v53 = vor.u32 %v4065_v47, %v3373_v46  ;;  %v4103_v46 = vld [vmem:[#allocation7 + $0x164] sm:$0xf] }
  0xd5   :  { %1546 = vmatpush.bf16.msrb.mxu1 %v2986_v57  ;;  %v3502_v57 = vor.u32 %v4097_v49, %v3501_v48  ;;  %v3535_v49 = vld [vmem:[#allocation7 + $0x170] sm:$0xf0] }
  0xd6   :  { %1559 = vmatpush.bf16.msrb.mxu2 %v3114_v58  ;;  %v3485_v58 = vld [vmem:[#allocation7 + $0x100] sm:$0xf] }
  0xd7   :  { %1572 = vmatpush.bf16.msrb.mxu3 %v3242_v25  ;;  %1534 = vmatmul.bf16.vlgmr.msrb.gmra.mxu0 %v4372_v8  ;;  %v3421_v8 = vld [vmem:[#allocation7 + $0x80] sm:$0xf]  ;;  %v4093_v25 = vld [vmem:[#allocation7 + $0x10c] sm:$0xf0] }
  0xd8   :  { %2364 = vmatpush.bf16.msra.mxu0 %v3470_v59  ;;  %1547 = vmatmul.bf16.vlgmr.msrb.gmra.mxu1 %v4376_v15  ;;  %v3422_v22 = vor.u32 %v4077_v18, %v3421_v8  ;;  %v1340_v15 = vpop.f32.mrf.mxu1  ;;  %v4087_v59 = vld [vmem:[#allocation7 + $0xe4] sm:$0xf]  ;;  %v3677_v8 = vld [vmem:[#allocation7 + $0x280] sm:$0xf]  ;;  %v4141_v18 = vld [vmem:[#allocation7 + $0x28c] sm:$0xf0] }
  0xd9   :  { %2377 = vmatpush.bf16.msra.mxu1 %v3598_v61  ;;  %1560 = vmatmul.bf16.vlgmr.msrb.gmra.mxu2 %v4384_v32  ;;  %v1302_v32 = vadd.f32 %v4408_v33, %v1289_v16  ;;  %v3474_v10 = vor.u32 %v4087_v59, %v3471_v60  ;;  %v4115_v16 = vld [vmem:[#allocation7 + $0x1c4] sm:$0xf]  ;;  %v3678_v5 = vor.u32 %v4141_v18, %v3677_v8  ;;  %v3613_v59 = vld [vmem:[#allocation7 + $0x200] sm:$0xf]  ;;  %v4125_v60 = vld [vmem:[#allocation7 + $0x20c] sm:$0xf0] }
  0xda   :  { %1573 = vmatmul.bf16.vlgmr.msrb.gmra.mxu3 %v4386_v35  ;;  %v4073_v35 = vld [vmem:[#allocation7 + $0x6c] sm:$0xf0]  ;;  %2390 = vmatpush.bf16.msra.mxu2 %v3726_v44  ;;  %v3614_v0 = vor.u32 %v4125_v60, %v3613_v59  ;;  %v4059_v18 = vld [vmem:[#allocation7 + $0x4] sm:$0xf]  ;;  %v4114_v59 = vld [vmem:[#allocation7 + $0x1b4] sm:$0xf0] }
  0xdb   :  { %v3406_v28 = vor.u32 %v4073_v35, %v3405_v24  ;;  %v1315_v21 = vadd.f32 %v4410_v37, %v1302_v32  ;;  %v3518_v37 = vor.u32 %v4101_v36, %v3517_v34  ;;  %v3439_v32 = vld [vmem:[#allocation7 + $0xb0] sm:$0xf0]  ;;  %v4107_v34 = vld [vmem:[#allocation7 + $0x184] sm:$0xf] }
  0xdc   :  { %2365 = vmatpush.bf16.msra.mxu0 %v3454_v4  ;;  %v4423_v38 = vpop.f32.mrf.mxu2  ;;  %v1329_v33 = vpop.f32.mrf.mxu0  ;;  %v3358_v4 = vor.u32 %v4061_v55, %v3357_v54  ;;  %v3567_v35 = vld [vmem:[#allocation7 + $0x1b0] sm:$0xf0]  ;;  %v4067_v54 = vld [vmem:[#allocation7 + $0x44] sm:$0xf]  ;;  %v3538_v55 = vor.u32 %v4103_v46, %v3535_v49  ;;  %v4086_v46 = vld [vmem:[#allocation7 + $0xd4] sm:$0xf0] }
  0xdd   :  { %2378 = vmatpush.bf16.msra.mxu1 %v3582_v7  ;;  %v4425_v39 = vpop.f32.mrf.mxu3  ;;  %v1328_v45 = vadd.f32 %v1327_v20, %v1315_v21  ;;  %v3486_v7 = vor.u32 %v4093_v25, %v3485_v58  ;;  %v1354_v24 = vadd.f32 %v4423_v38, %v299_v11  ;;  %v3551_v33 = vld [vmem:[#allocation7 + $0x190] sm:$0xf0]  ;;  %v3646_v38 = vor.u32 %v4133_v41, %v3645_v40  ;;  %v4095_v11 = vld [vmem:[#allocation7 + $0x124] sm:$0xf]  ;;  %v4118_v49 = vld [vmem:[#allocation7 + $0x1d4] sm:$0xf0] }
  0xde   :  { %2391 = vmatpush.bf16.msra.mxu2 %v3710_v52  ;;  %v3630_v52 = vor.u32 %v4129_v51, %v3629_v50  ;;  %v3519_v58 = vld [vmem:[#allocation7 + $0x150] sm:$0xf0]  ;;  %v4139_v50 = vld [vmem:[#allocation7 + $0x284] sm:$0xf] }
  0xdf   :  { %v1341_v9 = vadd.f32 %v1340_v15, %v1328_v45  ;;  %v4079_v15 = vld [vmem:[#allocation7 + $0xa4] sm:$0xf]  ;;  %v1367_v36 = vadd.f32 %v4425_v39, %v1354_v24  ;;  %v3679_v51 = vld [vmem:[#allocation7 + $0x290] sm:$0xf0] }
  0xe0   :  { %2366 = vmatpush.bf16.msra.mxu0 %v3438_v14  ;;  %v1342_v43 = vpop.f32.mrf.mxu1  ;;  %v3455_v14 = vld [vmem:[#allocation7 + $0xd0] sm:$0xf0]  ;;  %v3442_v21 = vor.u32 %v4079_v15, %v3439_v32  ;;  %v4071_v45 = vld [vmem:[#allocation7 + $0x64] sm:$0xf] }
  0xe1   :  { %2379 = vmatpush.bf16.msra.mxu1 %v3566_v17  ;;  %v1578_v6 = vmax.f32 %v1341_v9, 0.0  ;;  %v3583_v17 = vld [vmem:[#allocation7 + $0x1d0] sm:$0xf0]  ;;  %v3458_v20 = vor.u32 %v4083_v13, %v3455_v14  ;;  %v3554_v43 = vor.u32 %v4107_v34, %v3551_v33  ;;  %v4091_v15 = vld [vmem:[#allocation7 + $0x104] sm:$0xf] }
  0xe2   :  { %2392 = vmatpush.bf16.msra.mxu2 %v3694_v3  ;;  %v3391_v9 = vld [vmem:[#allocation7 + $0x50] sm:$0xf0]  ;;  %v3605_v34 = vld [vmem:[#allocation7 + $0x1e8] sm:$0xf]  ;;  %v4135_v60 = vld [vmem:[#allocation7 + $0x264] sm:$0xf] }
  0xe3   :  { %v4428_v19 = vpack.c.bf16 %v1578_v6, %v1578_v6  ;;  %v3503_v13 = vld [vmem:[#allocation7 + $0x130] sm:$0xf0] }
  0xe4   :  { %2367 = vmatpush.bf16.msra.mxu0 %v3422_v22  ;;  %v1355_v61 = vpop.f32.mrf.mxu2  ;;  %v3586_v22 = vor.u32 %v4115_v16, %v3583_v17  ;;  %v4147_v16 = vld [vmem:[#allocation7 + $0x2c4] sm:$0xf]  ;;  %v3711_v17 = vld [vmem:[#allocation7 + $0x2d0] sm:$0xf0]  ;;  %v3506_v24 = vor.u32 %v4095_v11, %v3503_v13 }
  0xe5   :  { %2380 = vmatpush.bf16.msra.mxu1 %v3550_v23  ;;  %v1368_v2 = vpop.f32.mrf.mxu3  ;;  %v4111_v23 = vld [vmem:[#allocation7 + $0x1a4] sm:$0xf]  ;;  %v3487_v32 = vld [vmem:[#allocation7 + $0x110] sm:$0xf0] }
  0xe6   :  { %2393 = vmatpush.bf16.msra.mxu2 %v3678_v5  ;;  %v4151_v61 = vld [vmem:[#allocation7 + $0x2e4] sm:$0xf]  ;;  %v3394_v2 = vor.u32 %v4067_v54, %v3391_v9  ;;  %v3714_v5 = vor.u32 %v4147_v16, %v3711_v17  ;;  %v4177_v54 = vld [vmem:[#allocation7 + $0x3ac] sm:$0xf0]  ;;  %v3445_v9 = vld [vmem:[#allocation7 + $0xa8] sm:$0xf] }
  0xe7   :  { %v3730_v3 = vor.u32 %v4151_v61, %v3727_v1  ;;  %v3663_v61 = vld [vmem:[#allocation7 + $0x270] sm:$0xf0]  ;;  %v4173_v1 = vld [vmem:[#allocation7 + $0x38c] sm:$0xf0]  ;;  %v4131_v11 = vld [vmem:[#allocation7 + $0x244] sm:$0xf] }
  0xe8   :  { %2368 = vmatpush.bf16.msra.mxu0 %v3406_v28  ;;  %v3662_v28 = vor.u32 %v4137_v27, %v3661_v26  ;;  %v3853_v26 = vld [vmem:[#allocation7 + $0x3e0] sm:$0xf]  ;;  %v4185_v27 = vld [vmem:[#allocation7 + $0x3ec] sm:$0xf0] }
  0xe9   :  { %2381 = vmatpush.bf16.msra.mxu1 %v3534_v29  ;;  %v3570_v29 = vor.u32 %v4111_v23, %v3567_v35  ;;  %v3477_v35 = vld [vmem:[#allocation7 + $0xe8] sm:$0xf]  ;;  %v3789_v16 = vld [vmem:[#allocation7 + $0x360] sm:$0xf]  ;;  %v4169_v17 = vld [vmem:[#allocation7 + $0x36c] sm:$0xf0] }
  0xea   :  { %2394 = vmatpush.bf16.msra.mxu2 %v3662_v28  ;;  %v4090_v28 = vld [vmem:[#allocation7 + $0xf4] sm:$0xf0] }
  0xec   :  { %2369 = vmatpush.bf16.msra.mxu0 %v3390_v42  ;;  %v3426_v42 = vor.u32 %v4075_v30, %v3423_v31  ;;  %v4143_v30 = vld [vmem:[#allocation7 + $0x2a4] sm:$0xf]  ;;  %v3695_v31 = vld [vmem:[#allocation7 + $0x2b0] sm:$0xf0] }
  0xed   :  { %2382 = vmatpush.bf16.msra.mxu1 %v3518_v37  ;;  %v3407_v37 = vld [vmem:[#allocation7 + $0x70] sm:$0xf0]  ;;  %v3698_v40 = vor.u32 %v4143_v30, %v3695_v31  ;;  %v3397_v31 = vld [vmem:[#allocation7 + $0x48] sm:$0xf] }
  0xee   :  { %2395 = vmatpush.bf16.msra.mxu2 %v3646_v38  ;;  %v3490_v38 = vor.u32 %v4091_v15, %v3487_v32  ;;  %v3790_v15 = vor.u32 %v4169_v17, %v3789_v16  ;;  %v4106_v32 = vld [vmem:[#allocation7 + $0x174] sm:$0xf0]  ;;  %v4179_v16 = vld [vmem:[#allocation7 + $0x3c4] sm:$0xf]  ;;  %v3839_v17 = vld [vmem:[#allocation7 + $0x3d0] sm:$0xf0] }
  0xf0   :  { %2370 = vmatpush.bf16.msra.mxu0 %v3374_v53  ;;  %v3410_v53 = vor.u32 %v4071_v45, %v3407_v37  ;;  %v3461_v37 = vld [vmem:[#allocation7 + $0xc8] sm:$0xf] }
  0xf1   :  { %2383 = vmatpush.bf16.msra.mxu1 %v3502_v57  ;;  %v4099_v57 = vld [vmem:[#allocation7 + $0x144] sm:$0xf] }
  0xf2   :  { %2396 = vmatpush.bf16.msra.mxu2 %v3630_v52  ;;  %v3522_v6 = vor.u32 %v4099_v57, %v3519_v58  ;;  %v3682_v52 = vor.u32 %v4139_v50, %v3679_v51  ;;  %v4082_v57 = vld [vmem:[#allocation7 + $0xb4] sm:$0xf0]  ;;  %v3573_v58 = vld [vmem:[#allocation7 + $0x1a8] sm:$0xf]  ;;  %v4161_v50 = vld [vmem:[#allocation7 + $0x32c] sm:$0xf0] }
  0xf3   :  { %v3509_v51 = vld [vmem:[#allocation7 + $0x128] sm:$0xf] }
  0xf4   :  { %2371 = vmatpush.bf16.msra.mxu0 %v3358_v4  ;;  %v1379_v44 = vpop.f32.mrf.mxu0 }
  0xf5   :  { %2384 = vmatpush.bf16.msra.mxu1 %v3486_v7  ;;  %v1380_v47 = vadd.f32 %v1379_v44, %v1367_v36  ;;  %v1392_v48 = vpop.f32.mrf.mxu1  ;;  %v4063_v7 = vld [vmem:[#allocation7 + $0x24] sm:$0xf]  ;;  %v4122_v36 = vld [vmem:[#allocation7 + $0x1f4] sm:$0xf0]  ;;  %v4181_v44 = vld [vmem:[#allocation7 + $0x3cc] sm:$0xf0] }
  0xf6   :  { %2397 = vmatpush.bf16.msra.mxu2 %v3614_v0  ;;  %v3606_v45 = vor.u32 %v4122_v36, %v3605_v34  ;;  %v3805_v0 = vld [vmem:[#allocation7 + $0x380] sm:$0xf]  ;;  %v4070_v34 = vld [vmem:[#allocation7 + $0x54] sm:$0xf0]  ;;  %v3525_v36 = vld [vmem:[#allocation7 + $0x148] sm:$0xf] }
  0xf7   :  { %2372 = vmatmul.bf16.vlgmr.msra.gmra.mxu0 %v4428_v19  ;;  %v1393_v39 = vadd.f32 %v1392_v48, %v1380_v47  ;;  %v3589_v47 = vld [vmem:[#allocation7 + $0x1c8] sm:$0xf] }
  0xf8   :  { %2416 = vmatpush.bf16.msrb.mxu0 %v3474_v10  ;;  %v3375_v10 = vld [vmem:[#allocation7 + $0x30] sm:$0xf0] }
  0xf9   :  { %2429 = vmatpush.bf16.msrb.mxu1 %v3602_v12 }
  0xfa   :  { %2442 = vmatpush.bf16.msrb.mxu2 %v3730_v3  ;;  %v3429_v3 = vld [vmem:[#allocation7 + $0x88] sm:$0xf] }
  0xfc   :  { %2417 = vmatpush.bf16.msrb.mxu0 %v3458_v20  ;;  %v1405_v25 = vpop.f32.mrf.mxu2  ;;  %v1381_v12 = vpop.f32.mrf.mxu0  ;;  %v3378_v20 = vor.u32 %v4063_v7, %v3375_v10  ;;  %v3806_v7 = vor.u32 %v4173_v1, %v3805_v0  ;;  %v4110_v10 = vld [vmem:[#allocation7 + $0x194] sm:$0xf0]  ;;  %v4088_v1 = vld [vmem:[#allocation7 + $0xec] sm:$0xf] }
  0xfd   :  { %2430 = vmatpush.bf16.msrb.mxu1 %v3586_v22  ;;  %v1406_v62 = vadd.f32 %v1405_v25, %v1393_v39  ;;  %v1418_v63 = vpop.f32.mrf.mxu3  ;;  %v1394_v14 = vpop.f32.mrf.mxu1  ;;  %v3359_v22 = vld [vmem:[#allocation7 + $0x10] sm:$0xf0]  ;;  %v3462_v39 = vor.u32 %v4086_v46, %v3461_v37  ;;  %v4066_v46 = vld [vmem:[#allocation7 + $0x34] sm:$0xf0] }
  0xfe   :  { %2443 = vmatpush.bf16.msrb.mxu2 %v3714_v5  ;;  %v3362_v41 = vor.u32 %v4059_v18, %v3359_v22  ;;  %v3647_v12 = vld [vmem:[#allocation7 + $0x250] sm:$0xf0]  ;;  %v3413_v18 = vld [vmem:[#allocation7 + $0x68] sm:$0xf]  ;;  %v4074_v5 = vld [vmem:[#allocation7 + $0x74] sm:$0xf0] }
  0xff   :  { %v1419_v4 = vadd.f32 %v1418_v63, %v1406_v62  ;;  %v3666_v62 = vor.u32 %v4135_v60, %v3663_v61  ;;  %v3446_v63 = vor.u32 %v4082_v57, %v3445_v9  ;;  %v3650_v13 = vor.u32 %v4131_v11, %v3647_v12  ;;  %v4062_v57 = vld [vmem:[#allocation7 + $0x14] sm:$0xf0]  ;;  %v3493_v60 = vld [vmem:[#allocation7 + $0x108] sm:$0xf] }
 0x100   :  { %2418 = vmatpush.bf16.msrb.mxu0 %v3442_v21  ;;  %v4094_v0 = vld [vmem:[#allocation7 + $0x114] sm:$0xf0] }
 0x101   :  { %2431 = vmatpush.bf16.msrb.mxu1 %v3570_v29  ;;  %v1579_v8 = vmax.f32 %v1419_v4, 0.0  ;;  %v3854_v29 = vor.u32 %v4185_v27, %v3853_v26  ;;  %v4078_v4 = vld [vmem:[#allocation7 + $0x94] sm:$0xf0]  ;;  %v3631_v26 = vld [vmem:[#allocation7 + $0x230] sm:$0xf0]  ;;  %v3494_v12 = vor.u32 %v4094_v0, %v3493_v60 }
 0x102   :  { %2444 = vmatpush.bf16.msrb.mxu2 %v3698_v40  ;;  %v3430_v14 = vor.u32 %v4078_v4, %v3429_v3  ;;  %v4102_v40 = vld [vmem:[#allocation7 + $0x154] sm:$0xf0]  ;;  %v4120_v4 = vld [vmem:[#allocation7 + $0x1ec] sm:$0xf]  ;;  %v3399_v0 = vld [vmem:[#allocation7 + $0x58] sm:$0xf0] }
 0x103   :  { %v4433_v23 = vpack.c.bf16 %v1579_v8, %v1579_v8  ;;  %2403 = vmatpush.bf16.msra.mxu3 %v3854_v29  ;;  %v4165_v29 = vld [vmem:[#allocation7 + $0x34c] sm:$0xf0]  ;;  %v3526_v37 = vor.u32 %v4102_v40, %v3525_v36  ;;  %v3807_v40 = vld [vmem:[#allocation7 + $0x390] sm:$0xf0] }
 0x104   :  { %2419 = vmatpush.bf16.msrb.mxu0 %v3426_v42  ;;  %v1407_v21 = vpop.f32.mrf.mxu2  ;;  %v3478_v42 = vor.u32 %v4090_v28, %v3477_v35  ;;  %v4127_v35 = vld [vmem:[#allocation7 + $0x224] sm:$0xf]  ;;  %v3414_v28 = vor.u32 %v4074_v5, %v3413_v18  ;;  %v4084_v18 = vld [vmem:[#allocation7 + $0xcc] sm:$0xf]  ;;  %v3463_v5 = vld [vmem:[#allocation7 + $0xd8] sm:$0xf0] }
 0x105   :  { %2432 = vmatpush.bf16.msrb.mxu1 %v3554_v43  ;;  %v1420_v33 = vpop.f32.mrf.mxu3  ;;  %v3837_v43 = vld [vmem:[#allocation7 + $0x3c0] sm:$0xf]  ;;  %v3634_v27 = vor.u32 %v4127_v35, %v3631_v26  ;;  %v4175_v26 = vld [vmem:[#allocation7 + $0x3a4] sm:$0xf] }
 0x106   :  { %2385 = vmatmul.bf16.vlgmr.msra.gmra.mxu1 %v4433_v23  ;;  %v3838_v48 = vor.u32 %v4181_v44, %v3837_v43  ;;  %2445 = vmatpush.bf16.msrb.mxu2 %v3682_v52  ;;  %v3773_v21 = vld [vmem:[#allocation7 + $0x340] sm:$0xf]  ;;  %v3398_v43 = vor.u32 %v4070_v34, %v3397_v31  ;;  %v3381_v44 = vld [vmem:[#allocation7 + $0x28] sm:$0xf]  ;;  %v4098_v52 = vld [vmem:[#allocation7 + $0x134] sm:$0xf0] }
 0x107   :  { %v3774_v33 = vor.u32 %v4165_v29, %v3773_v21  ;;  %v3382_v9 = vor.u32 %v4066_v46, %v3381_v44  ;;  %v4080_v21 = vld [vmem:[#allocation7 + $0xac] sm:$0xf]  ;;  %v3447_v29 = vld [vmem:[#allocation7 + $0xb8] sm:$0xf0] }
 0x108   :  { %2420 = vmatpush.bf16.msrb.mxu0 %v3410_v53  ;;  %2404 = vmatpush.bf16.msra.mxu3 %v3838_v48  ;;  %v3821_v53 = vld [vmem:[#allocation7 + $0x3a0] sm:$0xf]  ;;  %v4112_v31 = vld [vmem:[#allocation7 + $0x1ac] sm:$0xf]  ;;  %v3575_v34 = vld [vmem:[#allocation7 + $0x1b8] sm:$0xf0]  ;;  %v3450_v36 = vor.u32 %v4080_v21, %v3447_v29 }
 0x109   :  { %2433 = vmatpush.bf16.msrb.mxu1 %v3538_v55  ;;  %v3590_v55 = vor.u32 %v4118_v49, %v3589_v47  ;;  %v3822_v25 = vor.u32 %v4177_v54, %v3821_v53  ;;  %v3757_v49 = vld [vmem:[#allocation7 + $0x320] sm:$0xf]  ;;  %v300_v54 = vperm.slane %v4412_v56, 2  ;;  %v4108_v44 = vld [vmem:[#allocation7 + $0x18c] sm:$0xf] }
 0x10a   :  { %2446 = vmatpush.bf16.msrb.mxu2 %v3666_v62  ;;  %v3758_v53 = vor.u32 %v4161_v50, %v3757_v49  ;;  %v4183_v62 = vld [vmem:[#allocation7 + $0x3e4] sm:$0xf]  ;;  %v3791_v50 = vld [vmem:[#allocation7 + $0x370] sm:$0xf0] }
 0x10b   :  { %v4167_v49 = vld [vmem:[#allocation7 + $0x364] sm:$0xf]  ;;  %v3743_v29 = vld [vmem:[#allocation7 + $0x310] sm:$0xf0] }
 0x10c   :  { %2421 = vmatpush.bf16.msrb.mxu0 %v3394_v2  ;;  %2405 = vmatpush.bf16.msra.mxu3 %v3822_v25  ;;  %v3574_v2 = vor.u32 %v4114_v59, %v3573_v58  ;;  %v3741_v58 = vld [vmem:[#allocation7 + $0x300] sm:$0xf]  ;;  %v4157_v25 = vld [vmem:[#allocation7 + $0x30c] sm:$0xf0]  ;;  %v3510_v59 = vor.u32 %v4098_v52, %v3509_v51  ;;  %v4072_v51 = vld [vmem:[#allocation7 + $0x6c] sm:$0xf] }
 0x10d   :  { %2434 = vmatpush.bf16.msrb.mxu1 %v3522_v6  ;;  %v3557_v6 = vld [vmem:[#allocation7 + $0x188] sm:$0xf]  ;;  %v3742_v61 = vor.u32 %v4157_v25, %v3741_v58  ;;  %v3415_v52 = vld [vmem:[#allocation7 + $0x78] sm:$0xf0]  ;;  %v4155_v21 = vld [vmem:[#allocation7 + $0x304] sm:$0xf] }
 0x10e   :  { %v3558_v8 = vor.u32 %v4110_v10, %v3557_v6  ;;  %2447 = vmatpush.bf16.msrb.mxu2 %v3650_v13  ;;  %v3607_v6 = vld [vmem:[#allocation7 + $0x1f8] sm:$0xf0]  ;;  %v3418_v58 = vor.u32 %v4072_v51, %v3415_v52  ;;  %v3733_v25 = vld [vmem:[#allocation7 + $0x2e8] sm:$0xf] }
 0x10f   :  { %v3653_v52 = vld [vmem:[#allocation7 + $0x248] sm:$0xf] }
 0x110   :  { %2422 = vmatpush.bf16.msrb.mxu0 %v3378_v20  ;;  %2406 = vmatpush.bf16.msra.mxu3 %v3806_v7  ;;  %v3541_v20 = vld [vmem:[#allocation7 + $0x168] sm:$0xf] }
 0x111   :  { %2435 = vmatpush.bf16.msrb.mxu1 %v3506_v24  ;;  %v3542_v30 = vor.u32 %v4106_v32, %v3541_v20  ;;  %v3842_v20 = vor.u32 %v4179_v16, %v3839_v17  ;;  %v3591_v32 = vld [vmem:[#allocation7 + $0x1d8] sm:$0xf0]  ;;  %v4150_v17 = vld [vmem:[#allocation7 + $0x2d4] sm:$0xf0] }
 0x112   :  { %2448 = vmatpush.bf16.msrb.mxu2 %v3634_v27  ;;  %v3823_v27 = vld [vmem:[#allocation7 + $0x3b0] sm:$0xf0] }
 0x114   :  { %2423 = vmatpush.bf16.msrb.mxu0 %v3362_v41  ;;  %v1431_v22 = vpop.f32.mrf.mxu0  ;;  %2407 = vmatpush.bf16.msra.mxu3 %v3790_v15  ;;  %v4123_v41 = vld [vmem:[#allocation7 + $0x204] sm:$0xf]  ;;  %v4116_v15 = vld [vmem:[#allocation7 + $0x1cc] sm:$0xf] }
 0x115   :  { %2436 = vmatpush.bf16.msrb.mxu1 %v3490_v38  ;;  %v4438_v24 = vpop.f32.mrf.mxu1  ;;  %v3615_v38 = vld [vmem:[#allocation7 + $0x210] sm:$0xf0]  ;;  %v1432_v7 = vadd.f32 %v1431_v22, %v300_v54  ;;  %v3466_v22 = vor.u32 %v4084_v18, %v3463_v5  ;;  %v4104_v54 = vld [vmem:[#allocation7 + $0x16c] sm:$0xf]  ;;  %v3383_v18 = vld [vmem:[#allocation7 + $0x38] sm:$0xf0] }
 0x117   :  { %2424 = vmatmul.bf16.vlgmr.msrb.gmra.mxu0 %v4428_v19  ;;  %v1445_v35 = vadd.f32 %v4438_v24, %v1432_v7 }
 0x118   :  { %2468 = vmatpush.bf16.msra.mxu0 %v3478_v42  ;;  %2437 = vmatmul.bf16.vlgmr.msrb.gmra.mxu1 %v4433_v23  ;;  %v3618_v42 = vor.u32 %v4123_v41, %v3615_v38  ;;  %v3578_v41 = vor.u32 %v4112_v31, %v3575_v34  ;;  %v4076_v38 = vld [vmem:[#allocation7 + $0x8c] sm:$0xf]  ;;  %v4146_v31 = vld [vmem:[#allocation7 + $0x2b4] sm:$0xf0] }
 0x119   :  { %2481 = vmatpush.bf16.msra.mxu1 %v3606_v45  ;;  %2408 = vmatpush.bf16.msra.mxu3 %v3774_v33  ;;  %v4171_v33 = vld [vmem:[#allocation7 + $0x384] sm:$0xf]  ;;  %v4060_v34 = vld [vmem:[#allocation7 + $0xc] sm:$0xf] }
 0x11a   :  { %2449 = vmatpush.bf16.msrb.mxu2 %v3618_v42  ;;  %v3431_v42 = vld [vmem:[#allocation7 + $0x98] sm:$0xf0] }
 0x11c   :  { %2469 = vmatpush.bf16.msra.mxu0 %v3462_v39  ;;  %v4440_v45 = vpop.f32.mrf.mxu2  ;;  %v1433_v47 = vpop.f32.mrf.mxu0 }
 0x11d   :  { %2482 = vmatpush.bf16.msra.mxu1 %v3590_v55  ;;  %v4442_v48 = vpop.f32.mrf.mxu3  ;;  %v1446_v39 = vpop.f32.mrf.mxu1  ;;  %v3365_v55 = vld [vmem:[#allocation7 + $0x8] sm:$0xf]  ;;  %2409 = vmatpush.bf16.msra.mxu3 %v3758_v53  ;;  %v1458_v24 = vadd.f32 %v4440_v45, %v1445_v35  ;;  %v3434_v47 = vor.u32 %v4076_v38, %v3431_v42 }
 0x11e   :  { %v3366_v10 = vor.u32 %v4062_v57, %v3365_v55  ;;  %v3794_v39 = vor.u32 %v4167_v49, %v3791_v50  ;;  %v3543_v55 = vld [vmem:[#allocation7 + $0x178] sm:$0xf0]  ;;  %v3669_v49 = vld [vmem:[#allocation7 + $0x268] sm:$0xf]  ;;  %v4138_v50 = vld [vmem:[#allocation7 + $0x274] sm:$0xf0] }
 0x11f   :  { %v1471_v46 = vadd.f32 %v4442_v48, %v1458_v24  ;;  %v3775_v48 = vld [vmem:[#allocation7 + $0x350] sm:$0xf0]  ;;  %v3367_v24 = vld [vmem:[#allocation7 + $0x18] sm:$0xf0]  ;;  %v3670_v51 = vor.u32 %v4138_v50, %v3669_v49 }
 0x120   :  { %2470 = vmatpush.bf16.msra.mxu0 %v3446_v63  ;;  %v3855_v63 = vld [vmem:[#allocation7 + $0x3f0] sm:$0xf0]  ;;  %v3370_v38 = vor.u32 %v4060_v34, %v3367_v24  ;;  %v3671_v34 = vld [vmem:[#allocation7 + $0x278] sm:$0xf0] }
 0x121   :  { %2483 = vmatpush.bf16.msra.mxu1 %v3574_v2  ;;  %v3479_v2 = vld [vmem:[#allocation7 + $0xf8] sm:$0xf0]  ;;  %v3858_v3 = vor.u32 %v4183_v62, %v3855_v63  ;;  %2410 = vmatpush.bf16.msra.mxu3 %v3742_v61  ;;  %v3546_v61 = vor.u32 %v4104_v54, %v3543_v55  ;;  %v4154_v62 = vld [vmem:[#allocation7 + $0x2f4] sm:$0xf0]  ;;  %v4068_v63 = vld [vmem:[#allocation7 + $0x4c] sm:$0xf] }
 0x122   :  { %v3482_v13 = vor.u32 %v4088_v1, %v3479_v2  ;;  %v4100_v2 = vld [vmem:[#allocation7 + $0x14c] sm:$0xf]  ;;  %v3402_v7 = vor.u32 %v4068_v63, %v3399_v0  ;;  %v3637_v55 = vld [vmem:[#allocation7 + $0x228] sm:$0xf] }
 0x124   :  { %2471 = vmatpush.bf16.msra.mxu0 %v3430_v14  ;;  %v1459_v11 = vpop.f32.mrf.mxu2 }
 0x125   :  { %2484 = vmatpush.bf16.msra.mxu1 %v3558_v8  ;;  %v1472_v14 = vpop.f32.mrf.mxu3  ;;  %2455 = vmatpush.bf16.msrb.mxu3 %v3858_v3  ;;  %v3610_v8 = vor.u32 %v4120_v4, %v3607_v6  ;;  %v3527_v3 = vld [vmem:[#allocation7 + $0x158] sm:$0xf0]  ;;  %v3734_v6 = vor.u32 %v4154_v62, %v3733_v25  ;;  %v4159_v11 = vld [vmem:[#allocation7 + $0x324] sm:$0xf] }
 0x126   :  { %v3530_v14 = vor.u32 %v4100_v2, %v3527_v3  ;;  %v3719_v2 = vld [vmem:[#allocation7 + $0x2d8] sm:$0xf0] }
 0x128   :  { %2472 = vmatpush.bf16.msra.mxu0 %v3414_v28  ;;  %v3594_v28 = vor.u32 %v4116_v15, %v3591_v32  ;;  %v4096_v15 = vld [vmem:[#allocation7 + $0x12c] sm:$0xf]  ;;  %v3511_v32 = vld [vmem:[#allocation7 + $0x138] sm:$0xf0] }
 0x129   :  { %2485 = vmatpush.bf16.msra.mxu1 %v3542_v30  ;;  %2456 = vmatpush.bf16.msrb.mxu3 %v3842_v20  ;;  %v3826_v30 = vor.u32 %v4175_v26, %v3823_v27 }
 0x12c   :  { %2473 = vmatpush.bf16.msra.mxu0 %v3398_v43  ;;  %v3810_v43 = vor.u32 %v4171_v33, %v3807_v40  ;;  %v4092_v33 = vld [vmem:[#allocation7 + $0x10c] sm:$0xf]  ;;  %v3495_v40 = vld [vmem:[#allocation7 + $0x118] sm:$0xf0] }
 0x12d   :  { %2486 = vmatpush.bf16.msra.mxu1 %v3526_v37  ;;  %2457 = vmatpush.bf16.msrb.mxu3 %v3826_v30  ;;  %v3559_v37 = vld [vmem:[#allocation7 + $0x198] sm:$0xf0]  ;;  %v3514_v30 = vor.u32 %v4096_v15, %v3511_v32  ;;  %v3498_v42 = vor.u32 %v4092_v33, %v3495_v40  ;;  %v3845_v15 = vld [vmem:[#allocation7 + $0x3c8] sm:$0xf]  ;;  %v4182_v32 = vld [vmem:[#allocation7 + $0x3d4] sm:$0xf0] }
 0x12e   :  { %v3562_v45 = vor.u32 %v4108_v44, %v3559_v37  ;;  %v3685_v44 = vld [vmem:[#allocation7 + $0x288] sm:$0xf]  ;;  %v4142_v37 = vld [vmem:[#allocation7 + $0x294] sm:$0xf0] }
 0x12f   :  { %v3813_v33 = vld [vmem:[#allocation7 + $0x388] sm:$0xf]  ;;  %v4174_v40 = vld [vmem:[#allocation7 + $0x394] sm:$0xf0] }
 0x130   :  { %2474 = vmatpush.bf16.msra.mxu0 %v3382_v9 }
 0x131   :  { %2487 = vmatpush.bf16.msra.mxu1 %v3510_v59  ;;  %2458 = vmatpush.bf16.msrb.mxu3 %v3810_v43  ;;  %v4163_v59 = vld [vmem:[#allocation7 + $0x344] sm:$0xf] }
 0x132   :  { %v3778_v1 = vor.u32 %v4163_v59, %v3775_v48  ;;  %v4126_v48 = vld [vmem:[#allocation7 + $0x214] sm:$0xf0] }
 0x134   :  { %2475 = vmatpush.bf16.msra.mxu0 %v3366_v10  ;;  %v1483_v53 = vpop.f32.mrf.mxu0  ;;  %v3717_v10 = vld [vmem:[#allocation7 + $0x2c8] sm:$0xf] }
 0x135   :  { %2488 = vmatpush.bf16.msra.mxu1 %v3494_v12  ;;  %v1484_v9 = vadd.f32 %v1483_v53, %v1471_v46  ;;  %v1496_v57 = vpop.f32.mrf.mxu1  ;;  %2459 = vmatpush.bf16.msrb.mxu3 %v3794_v39  ;;  %v3759_v12 = vld [vmem:[#allocation7 + $0x330] sm:$0xf0]  ;;  %v3718_v26 = vor.u32 %v4150_v17, %v3717_v10  ;;  %v4134_v39 = vld [vmem:[#allocation7 + $0x254] sm:$0xf0]  ;;  %v3703_v17 = vld [vmem:[#allocation7 + $0x2b8] sm:$0xf0] }
 0x136   :  { %v3762_v5 = vor.u32 %v4159_v11, %v3759_v12  ;;  %v3654_v54 = vor.u32 %v4134_v39, %v3653_v52  ;;  %v3861_v12 = vld [vmem:[#allocation7 + $0x3e8] sm:$0xf]  ;;  %v4166_v52 = vld [vmem:[#allocation7 + $0x354] sm:$0xf0]  ;;  %v4124_v39 = vld [vmem:[#allocation7 + $0x20c] sm:$0xf] }
 0x137   :  { %2476 = vmatmul.bf16.vlgmr.msra.gmra.mxu0 %v4428_v19  ;;  %v1497_v60 = vadd.f32 %v1496_v57, %v1484_v9  ;;  %v4130_v9 = vld [vmem:[#allocation7 + $0x234] sm:$0xf0] }
 0x138   :  { %2520 = vmatpush.bf16.msrb.mxu0 %v3482_v13  ;;  %2489 = vmatmul.bf16.vlgmr.msra.gmra.mxu1 %v4433_v23 }
 0x139   :  { %2533 = vmatpush.bf16.msrb.mxu1 %v3610_v8  ;;  %v1580_v4 = vmax.f32 %v1497_v60, 0.0  ;;  %v4064_v8 = vld [vmem:[#allocation7 + $0x2c] sm:$0xf]  ;;  %2460 = vmatpush.bf16.msrb.mxu3 %v3778_v1  ;;  %v3735_v60 = vld [vmem:[#allocation7 + $0x2f8] sm:$0xf0] }
 0x13a   :  { %v3386_v27 = vor.u32 %v4064_v8, %v3383_v18  ;;  %v4148_v1 = vld [vmem:[#allocation7 + $0x2cc] sm:$0xf] }
 0x13b   :  { %v4450_v13 = vpack.c.bf16 %v1580_v4, %v1580_v4  ;;  %v3722_v11 = vor.u32 %v4148_v1, %v3719_v2  ;;  %v4176_v2 = vld [vmem:[#allocation7 + $0x3ac] sm:$0xf] }
 0x13c   :  { %2521 = vmatpush.bf16.msrb.mxu0 %v3466_v22  ;;  %v1509_v16 = vpop.f32.mrf.mxu2  ;;  %v1485_v35 = vpop.f32.mrf.mxu0 }
 0x13d   :  { %2534 = vmatpush.bf16.msrb.mxu1 %v3594_v28  ;;  %v1522_v20 = vpop.f32.mrf.mxu3  ;;  %2398 = vmatmul.bf16.vlgmr.msra.gmra.mxu2 %v4450_v13  ;;  %v1498_v22 = vpop.f32.mrf.mxu1  ;;  %v3701_v28 = vld [vmem:[#allocation7 + $0x2a8] sm:$0xf] }
 0x13e   :  { %2494 = vmatpush.bf16.msra.mxu2 %v3734_v6  ;;  %2461 = vmatpush.bf16.msrb.mxu3 %v3762_v5  ;;  %v4140_v22 = vld [vmem:[#allocation7 + $0x28c] sm:$0xf] }
 0x140   :  { %2522 = vmatpush.bf16.msrb.mxu0 %v3450_v36  ;;  %v3746_v36 = vor.u32 %v4155_v21, %v3743_v29  ;;  %v3829_v29 = vld [vmem:[#allocation7 + $0x3a8] sm:$0xf] }
 0x141   :  { %2535 = vmatpush.bf16.msrb.mxu1 %v3578_v41  ;;  %v3702_v41 = vor.u32 %v4146_v31, %v3701_v28  ;;  %v3846_v28 = vor.u32 %v4182_v32, %v3845_v15  ;;  %v4136_v31 = vld [vmem:[#allocation7 + $0x26c] sm:$0xf]  ;;  %v3783_v15 = vld [vmem:[#allocation7 + $0x358] sm:$0xf0] }
 0x142   :  { %2495 = vmatpush.bf16.msra.mxu2 %v3718_v26  ;;  %2462 = vmatpush.bf16.msrb.mxu3 %v3746_v36  ;;  %v3687_v26 = vld [vmem:[#allocation7 + $0x298] sm:$0xf0]  ;;  %v3674_v36 = vor.u32 %v4136_v31, %v3671_v34 }
 0x143   :  { %v3690_v21 = vor.u32 %v4140_v22, %v3687_v26  ;;  %v4160_v22 = vld [vmem:[#allocation7 + $0x32c] sm:$0xf]  ;;  %v3767_v26 = vld [vmem:[#allocation7 + $0x338] sm:$0xf0] }
 0x144   :  { %2523 = vmatpush.bf16.msrb.mxu0 %v3434_v47  ;;  %v1511_v43 = vpop.f32.mrf.mxu2  ;;  %v3686_v47 = vor.u32 %v4142_v37, %v3685_v44  ;;  %v3797_v44 = vld [vmem:[#allocation7 + $0x368] sm:$0xf]  ;;  %v4170_v37 = vld [vmem:[#allocation7 + $0x374] sm:$0xf0]  ;;  %v3751_v31 = vld [vmem:[#allocation7 + $0x318] sm:$0xf0] }
 0x145   :  { %2536 = vmatpush.bf16.msrb.mxu1 %v3562_v45  ;;  %v1524_v46 = vpop.f32.mrf.mxu3  ;;  %v301_v45 = vperm.slane %v4412_v56, 3  ;;  %v3638_v56 = vor.u32 %v4130_v9, %v3637_v55  ;;  %v3798_v49 = vor.u32 %v4170_v37, %v3797_v44  ;;  %v3765_v9 = vld [vmem:[#allocation7 + $0x328] sm:$0xf] }
 0x146   :  { %2496 = vmatpush.bf16.msra.mxu2 %v3702_v41  ;;  %v4132_v41 = vld [vmem:[#allocation7 + $0x24c] sm:$0xf] }
 0x147   :  { %v1510_v53 = vadd.f32 %v1509_v16, %v301_v45  ;;  %v4144_v16 = vld [vmem:[#allocation7 + $0x2ac] sm:$0xf] }
 0x148   :  { %2524 = vmatpush.bf16.msrb.mxu0 %v3418_v58  ;;  %v4128_v46 = vld [vmem:[#allocation7 + $0x22c] sm:$0xf] }
 0x149   :  { %2537 = vmatpush.bf16.msrb.mxu1 %v3546_v61  ;;  %v1523_v57 = vadd.f32 %v1522_v20, %v1510_v53  ;;  %v3706_v20 = vor.u32 %v4144_v16, %v3703_v17  ;;  %v3623_v53 = vld [vmem:[#allocation7 + $0x218] sm:$0xf0] }
 0x14a   :  { %2497 = vmatpush.bf16.msra.mxu2 %v3686_v47  ;;  %v3639_v47 = vld [vmem:[#allocation7 + $0x238] sm:$0xf0]  ;;  %v3626_v55 = vor.u32 %v4124_v39, %v3623_v53 }
 0x14b   :  { %v3642_v45 = vor.u32 %v4128_v46, %v3639_v47  ;;  %v3799_v16 = vld [vmem:[#allocation7 + $0x378] sm:$0xf0] }
 0x14c   :  { %2525 = vmatpush.bf16.msrb.mxu0 %v3402_v7 }
 0x14d   :  { %2538 = vmatpush.bf16.msrb.mxu1 %v3530_v14  ;;  %2450 = vmatmul.bf16.vlgmr.msrb.gmra.mxu2 %v4450_v13  ;;  %v4186_v14 = vld [vmem:[#allocation7 + $0x3f4] sm:$0xf0] }
 0x14e   :  { %2498 = vmatpush.bf16.msra.mxu2 %v3670_v51  ;;  %v3862_v18 = vor.u32 %v4186_v14, %v3861_v12  ;;  %v3781_v51 = vld [vmem:[#allocation7 + $0x348] sm:$0xf]  ;;  %v4168_v14 = vld [vmem:[#allocation7 + $0x36c] sm:$0xf] }
 0x14f   :  { %v3802_v17 = vor.u32 %v4168_v14, %v3799_v16 }
 0x150   :  { %2526 = vmatpush.bf16.msrb.mxu0 %v3386_v27 }
 0x151   :  { %2539 = vmatpush.bf16.msrb.mxu1 %v3514_v30  ;;  %v4178_v30 = vld [vmem:[#allocation7 + $0x3b4] sm:$0xf0] }
 0x152   :  { %2499 = vmatpush.bf16.msra.mxu2 %v3654_v54  ;;  %v3830_v24 = vor.u32 %v4178_v30, %v3829_v29  ;;  %v3782_v54 = vor.u32 %v4166_v52, %v3781_v51  ;;  %v4156_v30 = vld [vmem:[#allocation7 + $0x30c] sm:$0xf] }
 0x154   :  { %2527 = vmatpush.bf16.msrb.mxu0 %v3370_v38  ;;  %v1535_v58 = vpop.f32.mrf.mxu0  ;;  %v3655_v38 = vld [vmem:[#allocation7 + $0x258] sm:$0xf0] }
 0x155   :  { %2540 = vmatpush.bf16.msrb.mxu1 %v3498_v42  ;;  %v1548_v25 = vpop.f32.mrf.mxu1  ;;  %v1536_v59 = vadd.f32 %v1535_v58, %v1523_v57  ;;  %v3814_v42 = vor.u32 %v4174_v40, %v3813_v33  ;;  %v3658_v43 = vor.u32 %v4132_v41, %v3655_v38  ;;  %v4162_v57 = vld [vmem:[#allocation7 + $0x334] sm:$0xf0] }
 0x156   :  { %2500 = vmatpush.bf16.msra.mxu2 %v3638_v56  ;;  %v3766_v58 = vor.u32 %v4162_v57, %v3765_v9  ;;  %v3749_v56 = vld [vmem:[#allocation7 + $0x308] sm:$0xf] }
 0x157   :  { %2528 = vmatmul.bf16.vlgmr.msrb.gmra.mxu0 %v4428_v19  ;;  %v3621_v19 = vld [vmem:[#allocation7 + $0x208] sm:$0xf]  ;;  %v1549_v62 = vadd.f32 %v1548_v25, %v1536_v59  ;;  %v4158_v59 = vld [vmem:[#allocation7 + $0x314] sm:$0xf0] }
 0x158   :  { %2541 = vmatmul.bf16.vlgmr.msrb.gmra.mxu1 %v4433_v23  ;;  %v4152_v23 = vld [vmem:[#allocation7 + $0x2ec] sm:$0xf]  ;;  %v3622_v61 = vor.u32 %v4126_v48, %v3621_v19  ;;  %v3863_v48 = vld [vmem:[#allocation7 + $0x3f8] sm:$0xf0] }
 0x159   :  { %v3738_v63 = vor.u32 %v4152_v23, %v3735_v60  ;;  %v4184_v19 = vld [vmem:[#allocation7 + $0x3ec] sm:$0xf]  ;;  %v3750_v23 = vor.u32 %v4158_v59, %v3749_v56 }
 0x15a   :  { %2501 = vmatpush.bf16.msra.mxu2 %v3622_v61  ;;  %v3866_v60 = vor.u32 %v4184_v19, %v3863_v48  ;;  %v1714_v61 = vld [vmem:[#allocation9] sm:$0xf] }
 0x15b   :  { %v1717_v32 = vperm.slane %v1714_v61, 1  ;;  %v1718_v33 = vperm.slane %v1714_v61, 2  ;;  %v1719_v46 = vperm.slane %v1714_v61, 3 }
 0x15c   :  { %v1561_v0 = vpop.f32.mrf.mxu2  ;;  %v1537_v6 = vpop.f32.mrf.mxu0 }
 0x15d   :  { %v1562_v3 = vadd.f32 %v1561_v0, %v1549_v62  ;;  %v1574_v4 = vpop.f32.mrf.mxu3  ;;  %v1550_v7 = vpop.f32.mrf.mxu1  ;;  %2502 = vmatmul.bf16.vlgmr.msra.gmra.mxu2 %v4450_v13  ;;  %v4180_v62 = vld [vmem:[#allocation7 + $0x3cc] sm:$0xf]  ;;  %v1716_v0 = vperm.slane %v1714_v61, 0 }
 0x15e   :  { %2546 = vmatpush.bf16.msrb.mxu2 %v3738_v63  ;;  %v3847_v63 = vld [vmem:[#allocation7 + $0x3d8] sm:$0xf0] }
 0x15f   :  { %v1575_v10 = vadd.f32 %v1574_v4, %v1562_v3  ;;  %v3850_v1 = vor.u32 %v4180_v62, %v3847_v63  ;;  %v3831_v3 = vld [vmem:[#allocation7 + $0x3b8] sm:$0xf0] }
 0x160   :  { %v3834_v6 = vor.u32 %v4176_v2, %v3831_v3 }
 0x161   :  { %v1581_v8 = vmax.f32 %v1575_v10, 0.0  ;;  %v4172_v10 = vld [vmem:[#allocation7 + $0x38c] sm:$0xf] }
 0x162   :  { %2547 = vmatpush.bf16.msrb.mxu2 %v3722_v11  ;;  %v3815_v11 = vld [vmem:[#allocation7 + $0x398] sm:$0xf0] }
 0x163   :  { %v4458_v5 = vpack.c.bf16 %v1581_v8, %v1581_v8  ;;  %v3818_v12 = vor.u32 %v4172_v10, %v3815_v11 }
 0x164   :  { %v1563_v35 = vpop.f32.mrf.mxu2 }
 0x165   :  { %v1576_v27 = vpop.f32.mrf.mxu3  ;;  %2411 = vmatmul.bf16.vlgmr.msra.gmra.mxu3 %v4458_v5 }
 0x166   :  { %2507 = vmatpush.bf16.msra.mxu3 %v3862_v18  ;;  %2548 = vmatpush.bf16.msrb.mxu2 %v3706_v20  ;;  %v4164_v20 = vld [vmem:[#allocation7 + $0x34c] sm:$0xf] }
 0x167   :  { %v3786_v35 = vor.u32 %v4164_v20, %v3783_v15 }
 0x16a   :  { %2508 = vmatpush.bf16.msra.mxu3 %v3846_v28  ;;  %2549 = vmatpush.bf16.msrb.mxu2 %v3690_v21  ;;  %v3770_v28 = vor.u32 %v4160_v22, %v3767_v26 }
 0x16e   :  { %2509 = vmatpush.bf16.msra.mxu3 %v3830_v24  ;;  %2550 = vmatpush.bf16.msrb.mxu2 %v3674_v36  ;;  %v3754_v24 = vor.u32 %v4156_v30, %v3751_v31 }
 0x172   :  { %2510 = vmatpush.bf16.msra.mxu3 %v3814_v42  ;;  %2551 = vmatpush.bf16.msrb.mxu2 %v3658_v43 }
 0x174   :  { %v2373_v50 = vpop.f32.mrf.mxu0 }
 0x175   :  { %2463 = vmatmul.bf16.vlgmr.msrb.gmra.mxu3 %v4458_v5  ;;  %v2374_v4 = vadd.f32 %v2373_v50, %v1716_v0 }
 0x176   :  { %2511 = vmatpush.bf16.msra.mxu3 %v3798_v49  ;;  %2552 = vmatpush.bf16.msrb.mxu2 %v3642_v45 }
 0x17a   :  { %2512 = vmatpush.bf16.msra.mxu3 %v3782_v54  ;;  %2553 = vmatpush.bf16.msrb.mxu2 %v3626_v55 }
 0x17c   :  { %v2375_v25 = vpop.f32.mrf.mxu0 }
 0x17d   :  { %2554 = vmatmul.bf16.vlgmr.msrb.gmra.mxu2 %v4450_v13 }
 0x17e   :  { %2513 = vmatpush.bf16.msra.mxu3 %v3766_v58 }
 0x182   :  { %2514 = vmatpush.bf16.msra.mxu3 %v3750_v23 }
 0x183   :  { %v2386_v7 = vpop.f32.mrf.mxu1 }
 0x184   :  { %v2387_v13 = vadd.f32 %v2386_v7, %v2374_v4 }
 0x185   :  { %2515 = vmatmul.bf16.vlgmr.msra.gmra.mxu3 %v4458_v5 }
 0x186   :  { %2559 = vmatpush.bf16.msrb.mxu3 %v3866_v60 }
 0x18a   :  { %2560 = vmatpush.bf16.msrb.mxu3 %v3850_v1 }
 0x18b   :  { %v2388_v18 = vpop.f32.mrf.mxu1 }
 0x18e   :  { %2561 = vmatpush.bf16.msrb.mxu3 %v3834_v6 }
 0x192   :  { %2562 = vmatpush.bf16.msrb.mxu3 %v3818_v12 }
 0x194   :  { %v2425_v8 = vpop.f32.mrf.mxu0 }
 0x195   :  { %v2426_v27 = vadd.f32 %v2425_v8, %v1717_v32  ;;  %v2438_v29 = vpop.f32.mrf.mxu1 }
 0x196   :  { %2563 = vmatpush.bf16.msrb.mxu3 %v3802_v17 }
 0x197   :  { %v2439_v34 = vadd.f32 %v2438_v29, %v2426_v27 }
 0x19a   :  { %2564 = vmatpush.bf16.msrb.mxu3 %v3786_v35 }
 0x19c   :  { %v2427_v21 = vpop.f32.mrf.mxu0 }
 0x19d   :  { %v2440_v36 = vpop.f32.mrf.mxu1 }
 0x19e   :  { %2565 = vmatpush.bf16.msrb.mxu3 %v3770_v28 }
 0x1a2   :  { %2566 = vmatpush.bf16.msrb.mxu3 %v3754_v24 }
 0x1a5   :  { %2567 = vmatmul.bf16.vlgmr.msrb.gmra.mxu3 %v4458_v5 }
 0x1b4   :  { %v2477_v40 = vpop.f32.mrf.mxu0 }
 0x1b5   :  { %v2478_v41 = vadd.f32 %v2477_v40, %v1718_v33  ;;  %v2490_v38 = vpop.f32.mrf.mxu1 }
 0x1b7   :  { %v2491_v42 = vadd.f32 %v2490_v38, %v2478_v41 }
 0x1bc   :  { %v2479_v43 = vpop.f32.mrf.mxu0 }
 0x1bd   :  { %v2492_v44 = vpop.f32.mrf.mxu1 }
 0x1c0   :  { %v2399_v37 = vpop.f32.mrf.mxu2 }
 0x1c1   :  { %v2400_v5 = vadd.f32 %v2399_v37, %v2387_v13 }
 0x1c8   :  { %v2401_v45 = vpop.f32.mrf.mxu2 }
 0x1d0   :  { %v2451_v53 = vpop.f32.mrf.mxu2 }
 0x1d1   :  { %v2452_v59 = vadd.f32 %v2451_v53, %v2439_v34 }
 0x1d4   :  { %v2529_v47 = vpop.f32.mrf.mxu0 }
 0x1d5   :  { %v2530_v49 = vadd.f32 %v2529_v47, %v1719_v46  ;;  %v2542_v50 = vpop.f32.mrf.mxu1 }
 0x1d7   :  { %v2543_v51 = vadd.f32 %v2542_v50, %v2530_v49 }
 0x1d8   :  { %v2453_v54 = vpop.f32.mrf.mxu2 }
 0x1dc   :  { %v2531_v52 = vpop.f32.mrf.mxu0 }
 0x1dd   :  { %v2544_v39 = vpop.f32.mrf.mxu1 }
 0x1e0   :  { %v2503_v55 = vpop.f32.mrf.mxu2 }
 0x1e1   :  { %v2504_v62 = vadd.f32 %v2503_v55, %v2491_v42 }
 0x1e8   :  { %v2412_v9 = vpop.f32.mrf.mxu3  ;;  %v2505_v25 = vpop.f32.mrf.mxu2 }
 0x1e9   :  { %v2413_v57 = vadd.f32 %v2412_v9, %v2400_v5 }
 0x1eb   :  { %v2572_v58 = vmax.f32 %v2413_v57, 0.0 }
 0x1ed   :  { %2576 = vst [vmem:[%s4482_s5] sm:$0xff] %v2572_v58 }
 0x1f0   :  { %v2414_v56 = vpop.f32.mrf.mxu3 }
 0x1f8   :  { %v2464_v19 = vpop.f32.mrf.mxu3 }
 0x1f9   :  { %v2465_v48 = vadd.f32 %v2464_v19, %v2452_v59 }
 0x1fb   :  { %v2573_v23 = vmax.f32 %v2465_v48, 0.0 }
 0x1fd   :  { %2577 = vst [vmem:[%s4482_s5 + $0x8] sm:$0xff] %v2573_v23 }
 0x200   :  { %v2466_v60 = vpop.f32.mrf.mxu3  ;;  %v2555_v61 = vpop.f32.mrf.mxu2 }
 0x201   :  { %v2556_v4 = vadd.f32 %v2555_v61, %v2543_v51 }
 0x208   :  { %v2516_v63 = vpop.f32.mrf.mxu3  ;;  %v2557_v1 = vpop.f32.mrf.mxu2 }
 0x209   :  { %v2517_v0 = vadd.f32 %v2516_v63, %v2504_v62 }
 0x20b   :  { %v2574_v2 = vmax.f32 %v2517_v0, 0.0 }
 0x20d   :  { %2578 = vst [vmem:[%s4482_s5 + $0x10] sm:$0xff] %v2574_v2 }
 0x210   :  { %v2518_v3 = vpop.f32.mrf.mxu3 }
 0x228   :  { %v2568_v6 = vpop.f32.mrf.mxu3 }
 0x229   :  { %v2569_v7 = vadd.f32 %v2568_v6, %v2556_v4 }
 0x22b   :  { %v2575_v10 = vmax.f32 %v2569_v7, 0.0 }
 0x22d   :  { %2579 = vst [vmem:[%s4482_s5 + $0x18] sm:$0xff] %v2575_v10 }
 0x230   :  { %v2570_v11 = vpop.f32.mrf.mxu3 }
 0x231   :  { %2584 = vsyncpa [#allocation3], 1 }
 0x232   :  { %2585 = vsyncpa [#allocation5], 1 }
 0x233   :  { %2586 = vsyncpa [#allocation8], 1 }

// kernel: xlmr_attention_classwise_forward.4
= control target key start
LH: loop header
LB: loop body
LE: loop exit
PB: predicated region body
PF: predicated region fallthrough
CT: control target
= control target key end

     0   :  { %s3838_s0 = inlined_call_operand.vmem [shape: f32[8,512], index: 0, kind: input, shape index: {}]   ;;  %s3839_s1 = inlined_call_operand.hbm [shape: bf16[7,512,512], index: 1, kind: input, shape index: {}]   ;;  %s3840_s2 = inlined_call_operand.hbm [shape: f32[7,1,512], index: 2, kind: input, shape index: {}]   ;;  %s3841_s3 = inlined_call_operand.hbm [shape: bf16[7,512,256], index: 3, kind: input, shape index: {}]   ;;  %s3842_s4 = inlined_call_operand.hbm [shape: f32[7,1,256], index: 4, kind: input, shape index: {}]   ;;  %s3843_s5 = inlined_call_operand.vmem [shape: f32[7,8,256], index: 5, kind: output, shape index: {}]  }
   0x1   :  { %3844 = sst [smem:[#allocation12_spill]] %s3840_s2 }
   0x2   :  { %10 = vsyncpa [#allocation3], 0 }
   0x3   :  { %12 = vsyncpa [#allocation3 + $0x1], 0 }
   0x4   :  { %13 = vsyncpa [#allocation5], 0 }
   0x5   :  { %15 = vsyncpa [#allocation5 + $0x1], 0 }
   0x6   :  { %16 = vsyncpa [#allocation8], 0 }
   0x7   :  { %18 = vsyncpa [#allocation8 + $0x1], 0  ;;  %s3238_s18 = smov 0   ;;  %s3240_s19 = smov 0  }
   0x8   :  { %s3242_s20 = smov 0   ;;  %s3244_s21 = smov 0  }
   0x9 LB: > { %s3257_s22 = sadd.s32 4294967295, %s3202_s21   ;;  %s3260_s23 = sadd.s32 1, %s3202_s21   ;;  %s3202_s21 = sphi %s3244_s21, %s3852_s21   ;;  %s3198_s20 = sphi %s3242_s20, %s3851_s20   ;;  %s3194_s19 = sphi %s3240_s19, %s3850_s19   ;;  %s3190_s18 = sphi %s3238_s18, %s3849_s18  }
   0xa   : > { %s49_s24 = ssub.s32 %s3202_s21, %s3260_s23  ;;  %s52_s25 = sadd.s32 1, %s3198_s20 }
   0xb   : > { %p50_p0 = scmp.eq.s32.totalorder %s49_s24, 0  ;;  %p59_p1 = scmp.ne.s32.totalorder %s3198_s20, %s3194_s19 }
   0xc   : > { %p60_p2 = scmp.eq.s32.totalorder %s3202_s21, 0  ;;  %p65_p3 = scmp.ne.s32.totalorder %s3194_s19, %s3190_s18 }
   0xd   : > { %s3270_s26 = scalar_select %p50_p0, %s3198_s20, %s52_s25  }
   0xe   : > { %p61_p4 = por %p60_p2, %p59_p1  ;;  %p66_p5 = scmp.eq.s32.totalorder %s3257_s22, 0 }
   0xf   : > { %p3003_p6 = scmp.lt.s32.totalorder %s3202_s21, 7  ;;  %s3279_s28 = sand.u32 1, %s3198_s20  }
  0x10   : > { %p3274_p7 = por %p66_p5, %p65_p3  ;;  %s218_s30 = sand.u32 1, %s3202_s21  }
  0x11   : > { %p3281_p8 = pnand %p3003_p6, %p61_p4  ;;  %s2003_s6 = sshll.u32 %s3279_s28, 2 }
  0x12   : > { %s2004_s7 = sshll.u32 %s3202_s21, 2  ;;  %s222_s8 = scalar_lea.vmem [#allocation4], %s2003_s6 }
  0x13   : > { %s230_s9 = sshll.u32 %s222_s8, 4  ;;  %s3847_s2 = sld [smem:[#allocation12_spill]]  ;;  %s231_s9 = int_to_ptr.vmem [resolvable:$true] %s230_s9 }
  0x14   : > { %p2010_p9 = scmp.ge.s32.totalorder %s3202_s21, 1  ;;  %p276_p10 = scmp.lt.s32.totalorder %s3202_s21, 8 }
  0x15   : > { %s3293_s14 = scalar_lea.sflag [#allocation5], %s218_s30  ;;  %p3044_p12 = pneg %p3281_p8 }
  0x19   : > { %s226_s12 = scalar_lea.hbm %s3847_s2, %s2004_s7  ;;  %s3047_s24 = scalar_lea.hbm %s3847_s2, 28 }
  0x1a   : > { %s228_s13 = sshll.u32 %s226_s12, 4  ;;  %s229_s13 = int_to_ptr.hbm [resolvable:$true] %s228_s13 }
  0x1b   : > { %s3040_s15 = sshra.s32 %s229_s13, 4  ;;  %s3041_s15 = int_to_ptr.hbm [resolvable:$true] %s3040_s15 }
  0x1c   : > { %s3042_s16 = scalar_lea.hbm %s3041_s15, 4  ;;  %p3048_p1 = scmp.lt.s32.totalorder %s3041_s15, %s3847_s2 }
  0x1d   : > { %p3043_p11 = scmp.ne.s32.totalorder %s3041_s15, %s3042_s16  ;;  %p3049_p2 = scmp.lt.s32.totalorder %s3047_s24, %s3042_s16 }
  0x1f   : > { %p3045_p13 = pnand %p3044_p12, %p3043_p11  ;;  %p3050_p3 = por %p3049_p2, %p3048_p1 }
  0x21   : > { %p3046_p0 = pneg %p3045_p13 }
  0x23   : > { %p3051_p4 = pnand %p3050_p3, %p3046_p0 }
  0x25   : > { %3054 = shalt.err (!%p3051_p4)
}
  0x26   : > { %2996 = dma.hbm_to_vmem [thread:$0]  (!%p3281_p8), %s229_s13, 64, %s231_s9, %s3293_s14  }
  0x27   : > { %p3313_p5 = pnand %p2010_p9, %p276_p10  ;;  %s2000_s7 = sshll.u32 %s3279_s28, 10 }
  0x28   : > { %s2787_s8 = sshll.u32 %s3202_s21, 10  ;;  %s200_s16 = scalar_lea.vmem [#allocation2], %s2000_s7 }
  0x29   : > { %s205_s12 = scalar_lea.hbm %s3839_s1, %s2787_s8  ;;  %s208_s17 = sshll.u32 %s200_s16, 4  ;;  %s209_s17 = int_to_ptr.vmem [resolvable:$true] %s208_s17 }
  0x2a   : > { %s206_s15 = sshll.u32 %s205_s12, 4  ;;  %s197_s18 = scalar_lea.sflag [#allocation3], %s3279_s28  ;;  %s207_s15 = int_to_ptr.hbm [resolvable:$true] %s206_s15 }
  0x2b   : > { %s3070_s24 = sshra.s32 %s207_s15, 4  ;;  %s3077_s6 = scalar_lea.hbm %s3839_s1, 7168  ;;  %s3071_s24 = int_to_ptr.hbm [resolvable:$true] %s3070_s24 }
  0x2c   : > { %s3072_s9 = scalar_lea.hbm %s3071_s24, 1024  ;;  %p3078_p11 = scmp.lt.s32.totalorder %s3071_s24, %s3839_s1 }
  0x2d   : > { %p3073_p6 = scmp.ne.s32.totalorder %s3071_s24, %s3072_s9  ;;  %p3079_p13 = scmp.lt.s32.totalorder %s3077_s6, %s3072_s9 }
  0x2f   : > { %p3075_p9 = pnand %p3073_p6, %p3044_p12  ;;  %p3080_p0 = por %p3079_p13, %p3078_p11 }
  0x31   : > { %p3076_p10 = pneg %p3075_p9 }
  0x33   : > { %p3081_p1 = pnand %p3080_p0, %p3076_p10 }
  0x35   : > { %3084 = shalt.err (!%p3081_p1)
}
  0x36   : > { %s3204_s7 = smov 256   ;;  %s3205_s11 = smov 16  }
  0x37   : > { %2993 = dma.hbm_to_vmem [thread:$0]  (!%p3281_p8), %s207_s15, 16384, %s209_s17, %s197_s18, %s3204_s7, %s3204_s7, %s3205_s11  }
  0x38   : > { %s2005_s12 = sshll.u32 %s3279_s28, 9  ;;  %s2788_s16 = sshll.u32 %s3202_s21, 9 }
  0x39   : > { %s246_s2 = scalar_lea.hbm %s3841_s3, %s2788_s16  ;;  %s241_s24 = scalar_lea.vmem [#allocation6], %s2005_s12 }
  0x3a   : > { %s247_s10 = sshll.u32 %s246_s2, 4  ;;  %s249_s9 = sshll.u32 %s241_s24, 4  ;;  %s248_s10 = int_to_ptr.hbm [resolvable:$true] %s247_s10  ;;  %s250_s9 = int_to_ptr.vmem [resolvable:$true] %s249_s9 }
  0x3b   : > { %s3100_s6 = sshra.s32 %s248_s10, 4  ;;  %s3107_s18 = scalar_lea.hbm %s3841_s3, 3584  ;;  %s3101_s6 = int_to_ptr.hbm [resolvable:$true] %s3100_s6 }
  0x3c   : > { %s3102_s8 = scalar_lea.hbm %s3101_s6, 512  ;;  %p3108_p6 = scmp.lt.s32.totalorder %s3101_s6, %s3841_s3 }
  0x3d   : > { %p3103_p2 = scmp.ne.s32.totalorder %s3101_s6, %s3102_s8  ;;  %p3109_p9 = scmp.lt.s32.totalorder %s3107_s18, %s3102_s8 }
  0x3f   : > { %p3105_p3 = pnand %p3103_p2, %p3044_p12  ;;  %p3110_p10 = por %p3109_p9, %p3108_p6 }
  0x41   : > { %p3106_p4 = pneg %p3105_p3 }
  0x43   : > { %p3111_p11 = pnand %p3110_p10, %p3106_p4 }
  0x45   : > { %3114 = shalt.err (!%p3111_p11)
}
  0x46   : > { %s3206_s2 = smov 128   ;;  %s3207_s12 = smov 8  }
  0x47   : > { %2999 = dma.hbm_to_vmem [thread:$0]  (!%p3281_p8), %s248_s10, 8192, %s250_s9, %s3293_s14, %s3206_s2, %s3206_s2, %s3207_s12  }
  0x48   : > { %s2008_s16 = sshll.u32 %s3279_s28, 1  ;;  %s2009_s13 = sshll.u32 %s3202_s21, 1 }
  0x49   : > { %s267_s6 = scalar_lea.hbm %s3842_s4, %s2009_s13  ;;  %s263_s8 = scalar_lea.vmem [#allocation7], %s2008_s16 }
  0x4a   : > { %s271_s15 = sshll.u32 %s263_s8, 4  ;;  %s269_s17 = sshll.u32 %s267_s6, 4  ;;  %s272_s15 = int_to_ptr.vmem [resolvable:$true] %s271_s15  ;;  %s270_s17 = int_to_ptr.hbm [resolvable:$true] %s269_s17 }
  0x4b   : > { %s260_s18 = scalar_lea.sflag [#allocation8], %s3279_s28  ;;  %s3130_s7 = sshra.s32 %s270_s17, 4  ;;  %s3131_s7 = int_to_ptr.hbm [resolvable:$true] %s3130_s7 }
  0x4c   : > { %s3132_s11 = scalar_lea.hbm %s3131_s7, 2  ;;  %s3137_s10 = scalar_lea.hbm %s3842_s4, 14 }
  0x4d   : > { %p3133_p13 = scmp.ne.s32.totalorder %s3131_s7, %s3132_s11  ;;  %p3138_p2 = scmp.lt.s32.totalorder %s3131_s7, %s3842_s4 }
  0x4e   : > { %p3139_p3 = scmp.lt.s32.totalorder %s3137_s10, %s3132_s11 }
  0x4f   : > { %p3135_p0 = pnand %p3133_p13, %p3044_p12 }
  0x50   : > { %p3140_p4 = por %p3139_p3, %p3138_p2 }
  0x51   : > { %p3136_p1 = pneg %p3135_p0 }
  0x53   : > { %p3141_p6 = pnand %p3140_p4, %p3136_p1 }
  0x55   : > { %3144 = shalt.err (!%p3141_p6)
}
  0x56   : > { %3002 = dma.hbm_to_vmem [thread:$0]  (!%p3281_p8), %s270_s17, 32, %s272_s15, %s260_s18  }
  0x57   : > { %280 = sbr.rel (%p3313_p5) target bundleno = 528 (0x210), region = 40  ;;  %s282_s28 = sand.u32 (!%p3313_p5), 1, %s3194_s19  }
  0x58   : > { %s2011_s12 = sshll.u32 (!%p3313_p5), %s282_s28, 10  ;;  %s283_s16 = scalar_lea.sflag (!%p3313_p5), [#allocation3], %s282_s28 }
  0x59   : > { %s3371_s13 = scalar_lea.vmem (!%p3313_p5), [#allocation2], %s2011_s12 }
  0x5c   : > { %3177 = dma.done.wait (%p3274_p7), %s283_s16, 16384  }
  0x5d   : > { %3179 = vsyncadd (%p3274_p7), %s283_s16, 4294950912  ;;  %s292_s25 = sand.u32 1, %s3257_s22   ;;  %s2012_s29 = sshll.u32 %s282_s28, 2 }
  0x5e   : > { %s293_s24 = scalar_lea.sflag [#allocation5], %s292_s25  ;;  %s3378_s6 = scalar_lea.vmem [#allocation4], %s2012_s29 }
  0x5f   : > { %3181 = dma.done.wait (%p3274_p7), %s293_s24, 8256  }
  0x60   : > { %3183 = vsyncadd (%p3274_p7), %s293_s24, 4294959040  ;;  %s2013_s30 = sshll.u32 %s282_s28, 9  ;;  %s2014_s8 = sshll.u32 %s282_s28, 1 }
  0x61   : > { %s3384_s15 = scalar_lea.vmem [#allocation6], %s2013_s30  ;;  %s313_s17 = scalar_lea.sflag [#allocation8], %s282_s28 }
  0x62   : > { %s3386_s18 = scalar_lea.vmem [#allocation7], %s2014_s8 }
  0x63   : > { %3185 = dma.done.wait (%p3274_p7), %s313_s17, 32  }
  0x64   : > { %3187 = vsyncadd (%p3274_p7), %s313_s17, 4294967264  ;;  %v2131_v0 = vld [vmem:[%s3371_s13 + $0xe0] sm:$0xf]  ;;  %v2820_v1 = vld [vmem:[%s3371_s13 + $0xec] sm:$0xf0]  ;;  %p359_p7 = scmp.lt.s32.totalorder %s3257_s22, 6 }
  0x65   : > { %v2259_v2 = vld [vmem:[%s3371_s13 + $0x1e0] sm:$0xf]  ;;  %v2132_v3 = vor.u32 %v2820_v1, %v2131_v0  ;;  %v2852_v4 = vld [vmem:[%s3371_s13 + $0x1ec] sm:$0xf0] }
  0x66   : > { %v2387_v5 = vld [vmem:[%s3371_s13 + $0x2e0] sm:$0xf]  ;;  %v2884_v6 = vld [vmem:[%s3371_s13 + $0x2ec] sm:$0xf0]  ;;  %v2260_v7 = vor.u32 %v2852_v4, %v2259_v2  ;;  %s3854_s22 = smov (!%p359_p7, %s3257_s22), 6 }
  0x67   : > { %v2388_v8 = vor.u32 %v2884_v6, %v2387_v5  ;;  %v2515_v9 = vld [vmem:[%s3371_s13 + $0x3e0] sm:$0xf]  ;;  %v2916_v10 = vld [vmem:[%s3371_s13 + $0x3ec] sm:$0xf0]  ;;  %1150 = vmatpush.bf16.msra.mxu0 %v2132_v3  ;;  %s2789_s28 = sshll.u32 %s3854_s22, 4 }
  0x68   : > { %v2115_v11 = vld [vmem:[%s3371_s13 + $0xc0] sm:$0xf]  ;;  %v2516_v12 = vor.u32 %v2916_v10, %v2515_v9  ;;  %v2816_v13 = vld [vmem:[%s3371_s13 + $0xcc] sm:$0xf0]  ;;  %1163 = vmatpush.bf16.msra.mxu1 %v2260_v7 }
  0x69   : > { %v2243_v14 = vld [vmem:[%s3371_s13 + $0x1c0] sm:$0xf]  ;;  %v2848_v15 = vld [vmem:[%s3371_s13 + $0x1cc] sm:$0xf0]  ;;  %1176 = vmatpush.bf16.msra.mxu2 %v2388_v8  ;;  %v2116_v16 = vor.u32 %v2816_v13, %v2115_v11 }
  0x6a   : > { %v2244_v17 = vor.u32 %v2848_v15, %v2243_v14  ;;  %v2371_v18 = vld [vmem:[%s3371_s13 + $0x2c0] sm:$0xf]  ;;  %v2880_v19 = vld [vmem:[%s3371_s13 + $0x2cc] sm:$0xf0]  ;;  %1189 = vmatpush.bf16.msra.mxu3 %v2516_v12 }
  0x6b   : > { %v2499_v20 = vld [vmem:[%s3371_s13 + $0x3c0] sm:$0xf]  ;;  %v2372_v21 = vor.u32 %v2880_v19, %v2371_v18  ;;  %v2912_v22 = vld [vmem:[%s3371_s13 + $0x3cc] sm:$0xf0]  ;;  %1151 = vmatpush.bf16.msra.mxu0 %v2116_v16 }
  0x6c   : > { %v2099_v23 = vld [vmem:[%s3371_s13 + $0xa0] sm:$0xf]  ;;  %v2812_v24 = vld [vmem:[%s3371_s13 + $0xac] sm:$0xf0]  ;;  %v2500_v25 = vor.u32 %v2912_v22, %v2499_v20  ;;  %1164 = vmatpush.bf16.msra.mxu1 %v2244_v17 }
  0x6d   : > { %v2227_v26 = vld [vmem:[%s3371_s13 + $0x1a0] sm:$0xf]  ;;  %v2844_v27 = vld [vmem:[%s3371_s13 + $0x1ac] sm:$0xf0]  ;;  %v2100_v29 = vor.u32 %v2812_v24, %v2099_v23  ;;  %1177 = vmatpush.bf16.msra.mxu2 %v2372_v21 }
  0x6e   : > { %v2355_v28 = vld [vmem:[%s3371_s13 + $0x2a0] sm:$0xf]  ;;  %v2876_v30 = vld [vmem:[%s3371_s13 + $0x2ac] sm:$0xf0]  ;;  %v2228_v33 = vor.u32 %v2844_v27, %v2227_v26  ;;  %1190 = vmatpush.bf16.msra.mxu3 %v2500_v25 }
  0x6f   : > { %v2483_v31 = vld [vmem:[%s3371_s13 + $0x3a0] sm:$0xf]  ;;  %v2908_v32 = vld [vmem:[%s3371_s13 + $0x3ac] sm:$0xf0]  ;;  %v2356_v34 = vor.u32 %v2876_v30, %v2355_v28  ;;  %1152 = vmatpush.bf16.msra.mxu0 %v2100_v29  ;;  %v2818_v28 = vld [vmem:[%s3371_s13 + $0xe4] sm:$0xf] }
  0x70   : > { %v2083_v35 = vld [vmem:[%s3371_s13 + $0x80] sm:$0xf]  ;;  %v2808_v36 = vld [vmem:[%s3371_s13 + $0x8c] sm:$0xf0]  ;;  %v2484_v38 = vor.u32 %v2908_v32, %v2483_v31  ;;  %1165 = vmatpush.bf16.msra.mxu1 %v2228_v33  ;;  %v2133_v29 = vld [vmem:[%s3371_s13 + $0xf0] sm:$0xf0] }
  0x71   : > { %v2211_v37 = vld [vmem:[%s3371_s13 + $0x180] sm:$0xf]  ;;  %v2840_v39 = vld [vmem:[%s3371_s13 + $0x18c] sm:$0xf0]  ;;  %v2084_v44 = vor.u32 %v2808_v36, %v2083_v35  ;;  %1178 = vmatpush.bf16.msra.mxu2 %v2356_v34  ;;  %v2850_v30 = vld [vmem:[%s3371_s13 + $0x1e4] sm:$0xf] }
  0x72   : > { %v2339_v40 = vld [vmem:[%s3371_s13 + $0x280] sm:$0xf]  ;;  %v2872_v41 = vld [vmem:[%s3371_s13 + $0x28c] sm:$0xf0]  ;;  %v2212_v45 = vor.u32 %v2840_v39, %v2211_v37  ;;  %1191 = vmatpush.bf16.msra.mxu3 %v2484_v38  ;;  %v2261_v32 = vld [vmem:[%s3371_s13 + $0x1f0] sm:$0xf0] }
  0x73   : > { %v2467_v42 = vld [vmem:[%s3371_s13 + $0x380] sm:$0xf]  ;;  %v2904_v43 = vld [vmem:[%s3371_s13 + $0x38c] sm:$0xf0]  ;;  %v2340_v46 = vor.u32 %v2872_v41, %v2339_v40  ;;  %1153 = vmatpush.bf16.msra.mxu0 %v2084_v44  ;;  %v2882_v33 = vld [vmem:[%s3371_s13 + $0x2e4] sm:$0xf]  ;;  %v2136_v41 = vor.u32 %v2818_v28, %v2133_v29 }
  0x74   : > { %v2067_v47 = vld [vmem:[%s3371_s13 + $0x60] sm:$0xf]  ;;  %v2804_v48 = vld [vmem:[%s3371_s13 + $0x6c] sm:$0xf0]  ;;  %v2468_v50 = vor.u32 %v2904_v43, %v2467_v42  ;;  %1166 = vmatpush.bf16.msra.mxu1 %v2212_v45  ;;  %v2389_v34 = vld [vmem:[%s3371_s13 + $0x2f0] sm:$0xf0]  ;;  %v2264_v45 = vor.u32 %v2850_v30, %v2261_v32 }
  0x75   : > { %v2195_v49 = vld [vmem:[%s3371_s13 + $0x160] sm:$0xf]  ;;  %v2836_v51 = vld [vmem:[%s3371_s13 + $0x16c] sm:$0xf0]  ;;  %v2068_v56 = vor.u32 %v2804_v48, %v2067_v47  ;;  %1179 = vmatpush.bf16.msra.mxu2 %v2340_v46  ;;  %v2914_v37 = vld [vmem:[%s3371_s13 + $0x3e4] sm:$0xf]  ;;  %v2392_v46 = vor.u32 %v2882_v33, %v2389_v34 }
  0x76   : > { %v2323_v52 = vld [vmem:[%s3371_s13 + $0x260] sm:$0xf]  ;;  %v2868_v53 = vld [vmem:[%s3371_s13 + $0x26c] sm:$0xf0]  ;;  %v2196_v57 = vor.u32 %v2836_v51, %v2195_v49  ;;  %1192 = vmatpush.bf16.msra.mxu3 %v2468_v50  ;;  %v2517_v38 = vld [vmem:[%s3371_s13 + $0x3f0] sm:$0xf0] }
  0x77   : > { %v2451_v54 = vld [vmem:[%s3371_s13 + $0x360] sm:$0xf]  ;;  %v2900_v55 = vld [vmem:[%s3371_s13 + $0x36c] sm:$0xf0]  ;;  %v2324_v58 = vor.u32 %v2868_v53, %v2323_v52  ;;  %1154 = vmatpush.bf16.msra.mxu0 %v2068_v56  ;;  %v2814_v42 = vld [vmem:[%s3371_s13 + $0xc4] sm:$0xf]  ;;  %v2520_v50 = vor.u32 %v2914_v37, %v2517_v38 }
  0x78   : > { %v2051_v59 = vld [vmem:[%s3371_s13 + $0x40] sm:$0xf]  ;;  %v2800_v60 = vld [vmem:[%s3371_s13 + $0x4c] sm:$0xf0]  ;;  %v2452_v62 = vor.u32 %v2900_v55, %v2451_v54  ;;  %1167 = vmatpush.bf16.msra.mxu1 %v2196_v57  ;;  %v367_v44 = vld [vmem:[%s3838_s0 + $0x18] sm:$0xff] }
  0x79   : > { %v2179_v61 = vld [vmem:[%s3371_s13 + $0x140] sm:$0xf]  ;;  %v2832_v63 = vld [vmem:[%s3371_s13 + $0x14c] sm:$0xf0]  ;;  %v2052_v4 = vor.u32 %v2800_v60, %v2051_v59  ;;  %1180 = vmatpush.bf16.msra.mxu2 %v2324_v58  ;;  %v2117_v47 = vld [vmem:[%s3371_s13 + $0xd0] sm:$0xf0]  ;;  %v3488_v58 = vpack.c.bf16 %v367_v44, %v367_v44 }
  0x7a   : > { %v2307_v0 = vld [vmem:[%s3371_s13 + $0x240] sm:$0xf]  ;;  %v2864_v1 = vld [vmem:[%s3371_s13 + $0x24c] sm:$0xf0]  ;;  %v2180_v5 = vor.u32 %v2832_v63, %v2179_v61  ;;  %1193 = vmatpush.bf16.msra.mxu3 %v2452_v62  ;;  %v2846_v48 = vld [vmem:[%s3371_s13 + $0x1c4] sm:$0xf]  ;;  %v2120_v59 = vor.u32 %v2814_v42, %v2117_v47 }
  0x7b   : > { %v2435_v2 = vld [vmem:[%s3371_s13 + $0x340] sm:$0xf]  ;;  %v2896_v3 = vld [vmem:[%s3371_s13 + $0x34c] sm:$0xf0]  ;;  %v2308_v6 = vor.u32 %v2864_v1, %v2307_v0  ;;  %1155 = vmatpush.bf16.msra.mxu0 %v2052_v4  ;;  %v365_v49 = vld [vmem:[%s3838_s0 + $0x8] sm:$0xff] }
  0x7c   : > { %v2035_v7 = vld [vmem:[%s3371_s13 + $0x20] sm:$0xf]  ;;  %v2796_v8 = vld [vmem:[%s3371_s13 + $0x2c] sm:$0xf0]  ;;  %v2436_v10 = vor.u32 %v2896_v3, %v2435_v2  ;;  %1168 = vmatpush.bf16.msra.mxu1 %v2180_v5  ;;  %v2245_v51 = vld [vmem:[%s3371_s13 + $0x1d0] sm:$0xf0]  ;;  %v3490_v60 = vpack.c.bf16 %v365_v49, %v365_v49 }
  0x7d   : > { %v2163_v9 = vld [vmem:[%s3371_s13 + $0x120] sm:$0xf]  ;;  %v2828_v11 = vld [vmem:[%s3371_s13 + $0x12c] sm:$0xf0]  ;;  %v2036_v16 = vor.u32 %v2796_v8, %v2035_v7  ;;  %1181 = vmatpush.bf16.msra.mxu2 %v2308_v6  ;;  %v2878_v52 = vld [vmem:[%s3371_s13 + $0x2c4] sm:$0xf]  ;;  %v2248_v61 = vor.u32 %v2846_v48, %v2245_v51 }
  0x7e   : > { %v2291_v12 = vld [vmem:[%s3371_s13 + $0x220] sm:$0xf]  ;;  %v2860_v13 = vld [vmem:[%s3371_s13 + $0x22c] sm:$0xf0]  ;;  %v2164_v19 = vor.u32 %v2828_v11, %v2163_v9  ;;  %1194 = vmatpush.bf16.msra.mxu3 %v2436_v10  ;;  %v2373_v53 = vld [vmem:[%s3371_s13 + $0x2d0] sm:$0xf0] }
  0x7f   : > { %v2419_v14 = vld [vmem:[%s3371_s13 + $0x320] sm:$0xf]  ;;  %v2892_v15 = vld [vmem:[%s3371_s13 + $0x32c] sm:$0xf0]  ;;  %v2292_v20 = vor.u32 %v2860_v13, %v2291_v12  ;;  %1156 = vmatpush.bf16.msra.mxu0 %v2036_v16  ;;  %v2910_v55 = vld [vmem:[%s3371_s13 + $0x3c4] sm:$0xf]  ;;  %v2376_v62 = vor.u32 %v2878_v52, %v2373_v53 }
  0x80   : > { %v2019_v17 = vld [vmem:[%s3371_s13] sm:$0xf]  ;;  %v2792_v18 = vld [vmem:[%s3371_s13 + $0xc] sm:$0xf0]  ;;  %v2420_v24 = vor.u32 %v2892_v15, %v2419_v14  ;;  %1169 = vmatpush.bf16.msra.mxu1 %v2164_v19  ;;  %v2501_v56 = vld [vmem:[%s3371_s13 + $0x3d0] sm:$0xf0] }
  0x81   : > { %v2147_v21 = vld [vmem:[%s3371_s13 + $0x100] sm:$0xf]  ;;  %v2824_v22 = vld [vmem:[%s3371_s13 + $0x10c] sm:$0xf0]  ;;  %v2020_v31 = vor.u32 %v2792_v18, %v2019_v17  ;;  %1182 = vmatpush.bf16.msra.mxu2 %v2292_v20  ;;  %v2810_v63 = vld [vmem:[%s3371_s13 + $0xa4] sm:$0xf]  ;;  %v2504_v2 = vor.u32 %v2910_v55, %v2501_v56 }
  0x82   : > { %v2275_v23 = vld [vmem:[%s3371_s13 + $0x200] sm:$0xf]  ;;  %v2856_v25 = vld [vmem:[%s3371_s13 + $0x20c] sm:$0xf0]  ;;  %v2148_v35 = vor.u32 %v2824_v22, %v2147_v21  ;;  %1195 = vmatpush.bf16.msra.mxu3 %v2420_v24  ;;  %v2101_v0 = vld [vmem:[%s3371_s13 + $0xb0] sm:$0xf0] }
  0x83   : > { %v2403_v26 = vld [vmem:[%s3371_s13 + $0x300] sm:$0xf]  ;;  %v2888_v27 = vld [vmem:[%s3371_s13 + $0x30c] sm:$0xf0]  ;;  %v2276_v36 = vor.u32 %v2856_v25, %v2275_v23  ;;  %1157 = vmatpush.bf16.msra.mxu0 %v2020_v31  ;;  %v2842_v1 = vld [vmem:[%s3371_s13 + $0x1a4] sm:$0xf]  ;;  %v2104_v8 = vor.u32 %v2810_v63, %v2101_v0 }
  0x84   : > { %v366_v39 = vld [vmem:[%s3838_s0 + $0x10] sm:$0xff]  ;;  %v2404_v40 = vor.u32 %v2888_v27, %v2403_v26  ;;  %v364_v43 = vld [vmem:[%s3838_s0] sm:$0xff]  ;;  %1170 = vmatpush.bf16.msra.mxu1 %v2148_v35 }
  0x85   : > { %v3482_v54 = vpack.c.bf16 %v366_v39, %v366_v39  ;;  %1183 = vmatpush.bf16.msra.mxu2 %v2276_v36  ;;  %v3486_v57 = vpack.c.bf16 %v364_v43, %v364_v43  ;;  %v2229_v3 = vld [vmem:[%s3371_s13 + $0x1b0] sm:$0xf0]  ;;  %v2874_v4 = vld [vmem:[%s3371_s13 + $0x2a4] sm:$0xf] }
  0x86   : > { %1196 = vmatpush.bf16.msra.mxu3 %v2404_v40  ;;  %v2357_v5 = vld [vmem:[%s3371_s13 + $0x2b0] sm:$0xf0]  ;;  %v2906_v6 = vld [vmem:[%s3371_s13 + $0x3a4] sm:$0xf]  ;;  %v2232_v9 = vor.u32 %v2842_v1, %v2229_v3 }
  0x87   : > { %1202 = vmatpush.bf16.msrb.mxu0 %v2136_v41  ;;  %v2485_v7 = vld [vmem:[%s3371_s13 + $0x3b0] sm:$0xf0]  ;;  %1171 = vmatmul.bf16.vlgmr.msra.gmra.mxu1 %v3490_v60  ;;  %v2360_v10 = vor.u32 %v2874_v4, %v2357_v5  ;;  %v2806_v11 = vld [vmem:[%s3371_s13 + $0x84] sm:$0xf] }
  0x88   : > { %1215 = vmatpush.bf16.msrb.mxu1 %v2264_v45  ;;  %1184 = vmatmul.bf16.vlgmr.msra.gmra.mxu2 %v3482_v54  ;;  %v2085_v12 = vld [vmem:[%s3371_s13 + $0x90] sm:$0xf0]  ;;  %v2838_v13 = vld [vmem:[%s3371_s13 + $0x184] sm:$0xf]  ;;  %v2488_v14 = vor.u32 %v2906_v6, %v2485_v7 }
  0x89   : > { %1228 = vmatpush.bf16.msrb.mxu2 %v2392_v46  ;;  %1158 = vmatmul.bf16.vlgmr.msra.gmra.mxu0 %v3486_v57  ;;  %v2213_v15 = vld [vmem:[%s3371_s13 + $0x190] sm:$0xf0]  ;;  %v2870_v16 = vld [vmem:[%s3371_s13 + $0x284] sm:$0xf]  ;;  %v2088_v20 = vor.u32 %v2806_v11, %v2085_v12  ;;  %v2853_v12 = vld [vmem:[%s3371_s13 + $0x1f4] sm:$0xf0] }
  0x8a   : > { %1241 = vmatpush.bf16.msrb.mxu3 %v2520_v50  ;;  %v2341_v17 = vld [vmem:[%s3371_s13 + $0x290] sm:$0xf0]  ;;  %v2902_v18 = vld [vmem:[%s3371_s13 + $0x384] sm:$0xf]  ;;  %v2216_v21 = vor.u32 %v2838_v13, %v2213_v15  ;;  %v2395_v13 = vld [vmem:[%s3371_s13 + $0x2e8] sm:$0xf] }
  0x8b   : > { %1197 = vmatmul.bf16.vlgmr.msra.gmra.mxu3 %v3488_v58  ;;  %1203 = vmatpush.bf16.msrb.mxu0 %v2120_v59  ;;  %v2469_v19 = vld [vmem:[%s3371_s13 + $0x390] sm:$0xf0]  ;;  %v2344_v22 = vor.u32 %v2870_v16, %v2341_v17  ;;  %v2802_v23 = vld [vmem:[%s3371_s13 + $0x64] sm:$0xf]  ;;  %v2523_v17 = vld [vmem:[%s3371_s13 + $0x3e8] sm:$0xf] }
  0x8c   : > { %1216 = vmatpush.bf16.msrb.mxu1 %v2248_v61  ;;  %v2069_v24 = vld [vmem:[%s3371_s13 + $0x70] sm:$0xf0]  ;;  %v2834_v25 = vld [vmem:[%s3371_s13 + $0x164] sm:$0xf]  ;;  %v2472_v26 = vor.u32 %v2902_v18, %v2469_v19  ;;  %v2917_v18 = vld [vmem:[%s3371_s13 + $0x3f4] sm:$0xf0] }
  0x8d   : > { %1229 = vmatpush.bf16.msrb.mxu2 %v2376_v62  ;;  %v2197_v27 = vld [vmem:[%s3371_s13 + $0x170] sm:$0xf0]  ;;  %v2866_v28 = vld [vmem:[%s3371_s13 + $0x264] sm:$0xf]  ;;  %v2072_v32 = vor.u32 %v2802_v23, %v2069_v24  ;;  %v2123_v23 = vld [vmem:[%s3371_s13 + $0xc8] sm:$0xf] }
  0x8e   : > { %1242 = vmatpush.bf16.msrb.mxu3 %v2504_v2  ;;  %v2325_v29 = vld [vmem:[%s3371_s13 + $0x270] sm:$0xf0]  ;;  %v2898_v30 = vld [vmem:[%s3371_s13 + $0x364] sm:$0xf]  ;;  %v2200_v33 = vor.u32 %v2834_v25, %v2197_v27  ;;  %v2817_v24 = vld [vmem:[%s3371_s13 + $0xd4] sm:$0xf0] }
  0x8f   : > { %1204 = vmatpush.bf16.msrb.mxu0 %v2104_v8  ;;  %v2453_v31 = vld [vmem:[%s3371_s13 + $0x370] sm:$0xf0]  ;;  %v2328_v34 = vor.u32 %v2866_v28, %v2325_v29  ;;  %v2798_v35 = vld [vmem:[%s3371_s13 + $0x44] sm:$0xf]  ;;  %v2139_v8 = vld [vmem:[%s3371_s13 + $0xe8] sm:$0xf] }
  0x90   : > { %1217 = vmatpush.bf16.msrb.mxu1 %v2232_v9  ;;  %v2053_v36 = vld [vmem:[%s3371_s13 + $0x50] sm:$0xf0]  ;;  %v2830_v37 = vld [vmem:[%s3371_s13 + $0x144] sm:$0xf]  ;;  %v2456_v38 = vor.u32 %v2898_v30, %v2453_v31  ;;  %v2821_v9 = vld [vmem:[%s3371_s13 + $0xf4] sm:$0xf0] }
  0x91   : > { %1230 = vmatpush.bf16.msrb.mxu2 %v2360_v10  ;;  %v2181_v39 = vld [vmem:[%s3371_s13 + $0x150] sm:$0xf0]  ;;  %v2862_v40 = vld [vmem:[%s3371_s13 + $0x244] sm:$0xf]  ;;  %v2056_v44 = vor.u32 %v2798_v35, %v2053_v36  ;;  %v2267_v10 = vld [vmem:[%s3371_s13 + $0x1e8] sm:$0xf] }
  0x92   : > { %1243 = vmatpush.bf16.msrb.mxu3 %v2488_v14  ;;  %v2309_v41 = vld [vmem:[%s3371_s13 + $0x250] sm:$0xf0]  ;;  %v2894_v42 = vld [vmem:[%s3371_s13 + $0x344] sm:$0xf]  ;;  %v2184_v45 = vor.u32 %v2830_v37, %v2181_v39  ;;  %v2885_v14 = vld [vmem:[%s3371_s13 + $0x2f4] sm:$0xf0] }
  0x93   : > { %1205 = vmatpush.bf16.msrb.mxu0 %v2088_v20  ;;  %v2437_v43 = vld [vmem:[%s3371_s13 + $0x350] sm:$0xf0]  ;;  %v2312_v46 = vor.u32 %v2862_v40, %v2309_v41  ;;  %v2794_v47 = vld [vmem:[%s3371_s13 + $0x24] sm:$0xf]  ;;  %v2140_v20 = vor.u32 %v2821_v9, %v2139_v8  ;;  %v2251_v25 = vld [vmem:[%s3371_s13 + $0x1c8] sm:$0xf] }
  0x94   : > { %1218 = vmatpush.bf16.msrb.mxu1 %v2216_v21  ;;  %v2037_v48 = vld [vmem:[%s3371_s13 + $0x30] sm:$0xf0]  ;;  %v2826_v49 = vld [vmem:[%s3371_s13 + $0x124] sm:$0xf]  ;;  %v2440_v50 = vor.u32 %v2894_v42, %v2437_v43  ;;  %v2268_v21 = vor.u32 %v2853_v12, %v2267_v10  ;;  %v2849_v27 = vld [vmem:[%s3371_s13 + $0x1d4] sm:$0xf0] }
  0x95   : > { %1231 = vmatpush.bf16.msrb.mxu2 %v2344_v22  ;;  %v2165_v51 = vld [vmem:[%s3371_s13 + $0x130] sm:$0xf0]  ;;  %v2858_v52 = vld [vmem:[%s3371_s13 + $0x224] sm:$0xf]  ;;  %v2040_v59 = vor.u32 %v2794_v47, %v2037_v48  ;;  %v2396_v22 = vor.u32 %v2885_v14, %v2395_v13  ;;  %v2379_v28 = vld [vmem:[%s3371_s13 + $0x2c8] sm:$0xf] }
  0x96   : > { %1244 = vmatpush.bf16.msrb.mxu3 %v2472_v26  ;;  %v2293_v53 = vld [vmem:[%s3371_s13 + $0x230] sm:$0xf0]  ;;  %v2890_v55 = vld [vmem:[%s3371_s13 + $0x324] sm:$0xf]  ;;  %v2168_v63 = vor.u32 %v2826_v49, %v2165_v51  ;;  %v2524_v26 = vor.u32 %v2917_v18, %v2523_v17  ;;  %v2881_v29 = vld [vmem:[%s3371_s13 + $0x2d4] sm:$0xf0] }
  0x97   : > { %1206 = vmatpush.bf16.msrb.mxu0 %v2072_v32  ;;  %v2421_v56 = vld [vmem:[%s3371_s13 + $0x330] sm:$0xf0]  ;;  %v2790_v61 = vld [vmem:[%s3371_s13 + $0x4] sm:$0xf]  ;;  %v2296_v0 = vor.u32 %v2858_v52, %v2293_v53  ;;  %v2507_v30 = vld [vmem:[%s3371_s13 + $0x3c8] sm:$0xf]  ;;  %v2124_v32 = vor.u32 %v2817_v24, %v2123_v23 }
  0x98   : > { %1219 = vmatpush.bf16.msrb.mxu1 %v2200_v33  ;;  %v2021_v62 = vld [vmem:[%s3371_s13 + $0x10] sm:$0xf0]  ;;  %v2822_v1 = vld [vmem:[%s3371_s13 + $0x104] sm:$0xf]  ;;  %v2424_v4 = vor.u32 %v2890_v55, %v2421_v56  ;;  %v2913_v31 = vld [vmem:[%s3371_s13 + $0x3d4] sm:$0xf0]  ;;  %v2252_v33 = vor.u32 %v2849_v27, %v2251_v25 }
  0x99   : > { %1232 = vmatpush.bf16.msrb.mxu2 %v2328_v34  ;;  %v2149_v2 = vld [vmem:[%s3371_s13 + $0x110] sm:$0xf0]  ;;  %v2854_v3 = vld [vmem:[%s3371_s13 + $0x204] sm:$0xf]  ;;  %v2024_v11 = vor.u32 %v2790_v61, %v2021_v62  ;;  %v2380_v34 = vor.u32 %v2881_v29, %v2379_v28  ;;  %v2107_v35 = vld [vmem:[%s3371_s13 + $0xa8] sm:$0xf] }
  0x9a   : > { %1245 = vmatpush.bf16.msrb.mxu3 %v2456_v38  ;;  %v2277_v5 = vld [vmem:[%s3371_s13 + $0x210] sm:$0xf0]  ;;  %v2886_v6 = vld [vmem:[%s3371_s13 + $0x304] sm:$0xf]  ;;  %v2152_v15 = vor.u32 %v2822_v1, %v2149_v2  ;;  %v2813_v36 = vld [vmem:[%s3371_s13 + $0xb4] sm:$0xf0]  ;;  %v2508_v38 = vor.u32 %v2913_v31, %v2507_v30 }
  0x9b   : > { %1207 = vmatpush.bf16.msrb.mxu0 %v2056_v44  ;;  %v2405_v7 = vld [vmem:[%s3371_s13 + $0x310] sm:$0xf0]  ;;  %v2280_v16 = vor.u32 %v2854_v3, %v2277_v5  ;;  %v2235_v37 = vld [vmem:[%s3371_s13 + $0x1a8] sm:$0xf]  ;;  %v2845_v39 = vld [vmem:[%s3371_s13 + $0x1b4] sm:$0xf0]  ;;  %v2108_v44 = vor.u32 %v2813_v36, %v2107_v35 }
  0x9c   : > { %1220 = vmatpush.bf16.msrb.mxu1 %v2184_v45  ;;  %v2408_v19 = vor.u32 %v2886_v6, %v2405_v7  ;;  %v2363_v40 = vld [vmem:[%s3371_s13 + $0x2a8] sm:$0xf]  ;;  %v2877_v41 = vld [vmem:[%s3371_s13 + $0x2b4] sm:$0xf0]  ;;  %v2236_v45 = vor.u32 %v2845_v39, %v2235_v37 }
  0x9d   : > { %1233 = vmatpush.bf16.msrb.mxu2 %v2312_v46  ;;  %v2491_v42 = vld [vmem:[%s3371_s13 + $0x3a8] sm:$0xf]  ;;  %v2909_v43 = vld [vmem:[%s3371_s13 + $0x3b4] sm:$0xf0]  ;;  %v2364_v46 = vor.u32 %v2877_v41, %v2363_v40 }
  0x9e   : > { %1246 = vmatpush.bf16.msrb.mxu3 %v2440_v50  ;;  %v2091_v47 = vld [vmem:[%s3371_s13 + $0x88] sm:$0xf]  ;;  %v2809_v48 = vld [vmem:[%s3371_s13 + $0x94] sm:$0xf0]  ;;  %v2492_v50 = vor.u32 %v2909_v43, %v2491_v42 }
  0x9f   : > { %1208 = vmatpush.bf16.msrb.mxu0 %v2040_v59  ;;  %v2219_v49 = vld [vmem:[%s3371_s13 + $0x188] sm:$0xf]  ;;  %v2841_v51 = vld [vmem:[%s3371_s13 + $0x194] sm:$0xf0]  ;;  %v2092_v59 = vor.u32 %v2809_v48, %v2091_v47  ;;  %v2269_v48 = vld [vmem:[%s3371_s13 + $0x1f8] sm:$0xf0] }
  0xa0   : > { %1221 = vmatpush.bf16.msrb.mxu1 %v2168_v63  ;;  %v2347_v52 = vld [vmem:[%s3371_s13 + $0x288] sm:$0xf]  ;;  %v2873_v53 = vld [vmem:[%s3371_s13 + $0x294] sm:$0xf0]  ;;  %v2220_v61 = vor.u32 %v2841_v51, %v2219_v49  ;;  %v2883_v49 = vld [vmem:[%s3371_s13 + $0x2ec] sm:$0xf] }
  0xa1   : > { %1234 = vmatpush.bf16.msrb.mxu2 %v2296_v0  ;;  %v2475_v55 = vld [vmem:[%s3371_s13 + $0x388] sm:$0xf]  ;;  %v2905_v56 = vld [vmem:[%s3371_s13 + $0x394] sm:$0xf0]  ;;  %v2348_v62 = vor.u32 %v2873_v53, %v2347_v52  ;;  %v2915_v53 = vld [vmem:[%s3371_s13 + $0x3ec] sm:$0xf] }
  0xa2   : > { %1247 = vmatpush.bf16.msrb.mxu3 %v2424_v4  ;;  %v2075_v63 = vld [vmem:[%s3371_s13 + $0x68] sm:$0xf]  ;;  %v2805_v0 = vld [vmem:[%s3371_s13 + $0x74] sm:$0xf0]  ;;  %v2476_v2 = vor.u32 %v2905_v56, %v2475_v55  ;;  %v2525_v55 = vld [vmem:[%s3371_s13 + $0x3f8] sm:$0xf0] }
  0xa3   : > { %1209 = vmatpush.bf16.msrb.mxu0 %v2024_v11  ;;  %v2203_v1 = vld [vmem:[%s3371_s13 + $0x168] sm:$0xf]  ;;  %v2837_v3 = vld [vmem:[%s3371_s13 + $0x174] sm:$0xf0]  ;;  %v2076_v8 = vor.u32 %v2805_v0, %v2075_v63  ;;  %v2815_v63 = vld [vmem:[%s3371_s13 + $0xcc] sm:$0xf] }
  0xa4   : > { %1222 = vmatpush.bf16.msrb.mxu1 %v2152_v15  ;;  %v2331_v4 = vld [vmem:[%s3371_s13 + $0x268] sm:$0xf]  ;;  %v2869_v5 = vld [vmem:[%s3371_s13 + $0x274] sm:$0xf0]  ;;  %v2204_v9 = vor.u32 %v2837_v3, %v2203_v1  ;;  %v2125_v0 = vld [vmem:[%s3371_s13 + $0xd8] sm:$0xf0] }
  0xa5   : > { %1235 = vmatpush.bf16.msrb.mxu2 %v2280_v16  ;;  %v2459_v6 = vld [vmem:[%s3371_s13 + $0x368] sm:$0xf]  ;;  %v2901_v7 = vld [vmem:[%s3371_s13 + $0x374] sm:$0xf0]  ;;  %v2332_v10 = vor.u32 %v2869_v5, %v2331_v4  ;;  %v2847_v1 = vld [vmem:[%s3371_s13 + $0x1cc] sm:$0xf] }
  0xa6   : > { %1248 = vmatpush.bf16.msrb.mxu3 %v2408_v19  ;;  %1210 = vmatmul.bf16.vlgmr.msrb.gmra.mxu0 %v3486_v57  ;;  %v2059_v11 = vld [vmem:[%s3371_s13 + $0x48] sm:$0xf]  ;;  %v2801_v12 = vld [vmem:[%s3371_s13 + $0x54] sm:$0xf0]  ;;  %v2460_v14 = vor.u32 %v2901_v7, %v2459_v6  ;;  %v2253_v3 = vld [vmem:[%s3371_s13 + $0x1d8] sm:$0xf0] }
  0xa7   : > { %1254 = vmatpush.bf16.msra.mxu0 %v2140_v20  ;;  %1223 = vmatmul.bf16.vlgmr.msrb.gmra.mxu1 %v3490_v60  ;;  %v2187_v13 = vld [vmem:[%s3371_s13 + $0x148] sm:$0xf]  ;;  %v2833_v15 = vld [vmem:[%s3371_s13 + $0x154] sm:$0xf0]  ;;  %v2060_v20 = vor.u32 %v2801_v12, %v2059_v11  ;;  %v2879_v4 = vld [vmem:[%s3371_s13 + $0x2cc] sm:$0xf] }
  0xa8   : > { %1267 = vmatpush.bf16.msra.mxu1 %v2268_v21  ;;  %1236 = vmatmul.bf16.vlgmr.msrb.gmra.mxu2 %v3482_v54  ;;  %v2315_v16 = vld [vmem:[%s3371_s13 + $0x248] sm:$0xf]  ;;  %v2865_v17 = vld [vmem:[%s3371_s13 + $0x254] sm:$0xf0]  ;;  %v2188_v21 = vor.u32 %v2833_v15, %v2187_v13  ;;  %v2381_v5 = vld [vmem:[%s3371_s13 + $0x2d8] sm:$0xf0] }
  0xa9   : > { %1280 = vmatpush.bf16.msra.mxu2 %v2396_v22  ;;  %1249 = vmatmul.bf16.vlgmr.msrb.gmra.mxu3 %v3488_v58  ;;  %v2443_v18 = vld [vmem:[%s3371_s13 + $0x348] sm:$0xf]  ;;  %v2897_v19 = vld [vmem:[%s3371_s13 + $0x354] sm:$0xf0]  ;;  %v2316_v22 = vor.u32 %v2865_v17, %v2315_v16  ;;  %v2911_v6 = vld [vmem:[%s3371_s13 + $0x3cc] sm:$0xf] }
  0xaa   : > { %1293 = vmatpush.bf16.msra.mxu3 %v2524_v26  ;;  %v2043_v23 = vld [vmem:[%s3371_s13 + $0x28] sm:$0xf]  ;;  %v2797_v24 = vld [vmem:[%s3371_s13 + $0x34] sm:$0xf0]  ;;  %v2444_v26 = vor.u32 %v2897_v19, %v2443_v18  ;;  %v2509_v7 = vld [vmem:[%s3371_s13 + $0x3d8] sm:$0xf0] }
  0xab   : > { %1255 = vmatpush.bf16.msra.mxu0 %v2124_v32  ;;  %v2171_v25 = vld [vmem:[%s3371_s13 + $0x128] sm:$0xf]  ;;  %v2829_v27 = vld [vmem:[%s3371_s13 + $0x134] sm:$0xf0]  ;;  %v2044_v32 = vor.u32 %v2797_v24, %v2043_v23  ;;  %v2811_v11 = vld [vmem:[%s3371_s13 + $0xac] sm:$0xf] }
  0xac   : > { %1268 = vmatpush.bf16.msra.mxu1 %v2252_v33  ;;  %v2299_v28 = vld [vmem:[%s3371_s13 + $0x228] sm:$0xf]  ;;  %v2861_v29 = vld [vmem:[%s3371_s13 + $0x234] sm:$0xf0]  ;;  %v2172_v35 = vor.u32 %v2829_v27, %v2171_v25  ;;  %v2109_v12 = vld [vmem:[%s3371_s13 + $0xb8] sm:$0xf0] }
  0xad   : > { %1281 = vmatpush.bf16.msra.mxu2 %v2380_v34  ;;  %v2427_v30 = vld [vmem:[%s3371_s13 + $0x328] sm:$0xf]  ;;  %v2893_v31 = vld [vmem:[%s3371_s13 + $0x334] sm:$0xf0]  ;;  %v2300_v36 = vor.u32 %v2861_v29, %v2299_v28  ;;  %v2843_v13 = vld [vmem:[%s3371_s13 + $0x1ac] sm:$0xf] }
  0xae   : > { %1294 = vmatpush.bf16.msra.mxu3 %v2508_v38  ;;  %v2027_v33 = vld [vmem:[%s3371_s13 + $0x8] sm:$0xf]  ;;  %v2793_v34 = vld [vmem:[%s3371_s13 + $0x14] sm:$0xf0]  ;;  %v2428_v40 = vor.u32 %v2893_v31, %v2427_v30  ;;  %v2237_v15 = vld [vmem:[%s3371_s13 + $0x1b8] sm:$0xf0] }
  0xaf   : > { %1256 = vmatpush.bf16.msra.mxu0 %v2108_v44  ;;  %v2155_v37 = vld [vmem:[%s3371_s13 + $0x108] sm:$0xf]  ;;  %v2825_v38 = vld [vmem:[%s3371_s13 + $0x114] sm:$0xf0]  ;;  %v2819_v44 = vld [vmem:[%s3371_s13 + $0xec] sm:$0xf]  ;;  %v2028_v47 = vor.u32 %v2793_v34, %v2027_v33 }
  0xb0   : > { %1269 = vmatpush.bf16.msra.mxu1 %v2236_v45  ;;  %v2283_v39 = vld [vmem:[%s3371_s13 + $0x208] sm:$0xf]  ;;  %v2857_v41 = vld [vmem:[%s3371_s13 + $0x214] sm:$0xf0]  ;;  %v2141_v45 = vld [vmem:[%s3371_s13 + $0xf8] sm:$0xf0]  ;;  %v2156_v51 = vor.u32 %v2825_v38, %v2155_v37 }
  0xb1   : > { %1282 = vmatpush.bf16.msra.mxu2 %v2364_v46  ;;  %v2411_v42 = vld [vmem:[%s3371_s13 + $0x308] sm:$0xf]  ;;  %v2889_v43 = vld [vmem:[%s3371_s13 + $0x314] sm:$0xf0]  ;;  %v2851_v46 = vld [vmem:[%s3371_s13 + $0x1ec] sm:$0xf]  ;;  %v2284_v52 = vor.u32 %v2857_v41, %v2283_v39 }
  0xb2   : > { %1295 = vmatpush.bf16.msra.mxu3 %v2492_v50  ;;  %v2397_v50 = vld [vmem:[%s3371_s13 + $0x2f8] sm:$0xf0]  ;;  %v2412_v56 = vor.u32 %v2889_v43, %v2411_v42  ;;  %v2875_v16 = vld [vmem:[%s3371_s13 + $0x2ac] sm:$0xf] }
  0xb3   : > { %1257 = vmatpush.bf16.msra.mxu0 %v2092_v59  ;;  %v2144_v59 = vor.u32 %v2819_v44, %v2141_v45  ;;  %v2365_v17 = vld [vmem:[%s3371_s13 + $0x2b8] sm:$0xf0]  ;;  %v2907_v18 = vld [vmem:[%s3371_s13 + $0x3ac] sm:$0xf] }
  0xb4   : > { %1270 = vmatpush.bf16.msra.mxu1 %v2220_v61  ;;  %v2272_v61 = vor.u32 %v2851_v46, %v2269_v48  ;;  %v2493_v19 = vld [vmem:[%s3371_s13 + $0x3b8] sm:$0xf0]  ;;  %v2807_v23 = vld [vmem:[%s3371_s13 + $0x8c] sm:$0xf] }
  0xb5   : > { %1283 = vmatpush.bf16.msra.mxu2 %v2348_v62  ;;  %v2400_v62 = vor.u32 %v2883_v49, %v2397_v50  ;;  %v2093_v24 = vld [vmem:[%s3371_s13 + $0x98] sm:$0xf0]  ;;  %v2839_v25 = vld [vmem:[%s3371_s13 + $0x18c] sm:$0xf] }
  0xb6   : > { %1296 = vmatpush.bf16.msra.mxu3 %v2476_v2  ;;  %v2528_v2 = vor.u32 %v2915_v53, %v2525_v55  ;;  %v2221_v27 = vld [vmem:[%s3371_s13 + $0x198] sm:$0xf0]  ;;  %v2871_v28 = vld [vmem:[%s3371_s13 + $0x28c] sm:$0xf] }
  0xb7   : > { %1258 = vmatpush.bf16.msra.mxu0 %v2076_v8  ;;  %v2128_v8 = vor.u32 %v2815_v63, %v2125_v0  ;;  %v2349_v29 = vld [vmem:[%s3371_s13 + $0x298] sm:$0xf0]  ;;  %v2903_v30 = vld [vmem:[%s3371_s13 + $0x38c] sm:$0xf]  ;;  %v2224_v33 = vor.u32 %v2839_v25, %v2221_v27 }
  0xb8   : > { %1271 = vmatpush.bf16.msra.mxu1 %v2204_v9  ;;  %v2256_v9 = vor.u32 %v2847_v1, %v2253_v3  ;;  %v2477_v31 = vld [vmem:[%s3371_s13 + $0x398] sm:$0xf0]  ;;  %v2352_v34 = vor.u32 %v2871_v28, %v2349_v29  ;;  %v2835_v37 = vld [vmem:[%s3371_s13 + $0x16c] sm:$0xf]  ;;  %v2579_v29 = vld [vmem:[%s3384_s15 + $0x60] sm:$0xf] }
  0xb9   : > { %1284 = vmatpush.bf16.msra.mxu2 %v2332_v10  ;;  %v2384_v10 = vor.u32 %v2879_v4, %v2381_v5  ;;  %v2480_v38 = vor.u32 %v2903_v30, %v2477_v31  ;;  %v2205_v39 = vld [vmem:[%s3371_s13 + $0x178] sm:$0xf0]  ;;  %v2899_v42 = vld [vmem:[%s3371_s13 + $0x36c] sm:$0xf]  ;;  %v2931_v30 = vld [vmem:[%s3384_s15 + $0x64] sm:$0xf0] }
  0xba   : > { %1297 = vmatpush.bf16.msra.mxu3 %v2460_v14  ;;  %v2512_v14 = vor.u32 %v2911_v6, %v2509_v7  ;;  %v2333_v41 = vld [vmem:[%s3371_s13 + $0x278] sm:$0xf0]  ;;  %v2208_v45 = vor.u32 %v2835_v37, %v2205_v39  ;;  %v2831_v49 = vld [vmem:[%s3371_s13 + $0x14c] sm:$0xf]  ;;  %v2563_v39 = vld [vmem:[%s3384_s15 + $0x40] sm:$0xf] }
  0xbb   : > { %1259 = vmatpush.bf16.msra.mxu0 %v2060_v20  ;;  %v2112_v20 = vor.u32 %v2811_v11, %v2109_v12  ;;  %v2461_v43 = vld [vmem:[%s3371_s13 + $0x378] sm:$0xf0]  ;;  %v2895_v55 = vld [vmem:[%s3371_s13 + $0x34c] sm:$0xf] }
  0xbc   : > { %1272 = vmatpush.bf16.msra.mxu1 %v2188_v21  ;;  %v2240_v21 = vor.u32 %v2843_v13, %v2237_v15  ;;  %v2061_v48 = vld [vmem:[%s3371_s13 + $0x58] sm:$0xf0]  ;;  %v2464_v50 = vor.u32 %v2899_v42, %v2461_v43  ;;  %v2795_v63 = vld [vmem:[%s3371_s13 + $0x2c] sm:$0xf]  ;;  %v2925_v42 = vld [vmem:[%s3384_s15 + $0x34] sm:$0xf0] }
  0xbd   : > { %1285 = vmatpush.bf16.msra.mxu2 %v2316_v22  ;;  %v2368_v22 = vor.u32 %v2875_v16, %v2365_v17  ;;  %v2317_v53 = vld [vmem:[%s3371_s13 + $0x258] sm:$0xf0]  ;;  %v2827_v1 = vld [vmem:[%s3371_s13 + $0x12c] sm:$0xf] }
  0xbe   : > { %1298 = vmatpush.bf16.msra.mxu3 %v2444_v26  ;;  %v2496_v26 = vor.u32 %v2907_v18, %v2493_v19  ;;  %v2045_v0 = vld [vmem:[%s3371_s13 + $0x38] sm:$0xf0]  ;;  %v2859_v4 = vld [vmem:[%s3371_s13 + $0x22c] sm:$0xf] }
  0xbf   : > { %1260 = vmatpush.bf16.msra.mxu0 %v2044_v32  ;;  %v2096_v32 = vor.u32 %v2807_v23, %v2093_v24  ;;  %v2173_v3 = vld [vmem:[%s3371_s13 + $0x138] sm:$0xf0]  ;;  %v2891_v6 = vld [vmem:[%s3371_s13 + $0x32c] sm:$0xf]  ;;  %v2651_v23 = vld [vmem:[%s3384_s15 + $0xf0] sm:$0xf] }
  0xc0   : > { %1273 = vmatpush.bf16.msra.mxu1 %v2172_v35  ;;  %v2803_v35 = vld [vmem:[%s3371_s13 + $0x6c] sm:$0xf]  ;;  %v2301_v5 = vld [vmem:[%s3371_s13 + $0x238] sm:$0xf0]  ;;  %v2949_v24 = vld [vmem:[%s3384_s15 + $0xf4] sm:$0xf0] }
  0xc1   : > { %1286 = vmatpush.bf16.msra.mxu2 %v2300_v36  ;;  %v2077_v36 = vld [vmem:[%s3371_s13 + $0x78] sm:$0xf0]  ;;  %v2304_v11 = vor.u32 %v2859_v4, %v2301_v5  ;;  %v2823_v13 = vld [vmem:[%s3371_s13 + $0x10c] sm:$0xf]  ;;  %v2652_v31 = vor.u32 %v2949_v24, %v2651_v23  ;;  %v2965_v4 = vld [vmem:[%s3384_s15 + $0x174] sm:$0xf0] }
  0xc2   : > { %1299 = vmatpush.bf16.msra.mxu3 %v2428_v40  ;;  %v2867_v40 = vld [vmem:[%s3371_s13 + $0x26c] sm:$0xf]  ;;  %v2080_v44 = vor.u32 %v2803_v35, %v2077_v36  ;;  %v2429_v7 = vld [vmem:[%s3371_s13 + $0x338] sm:$0xf0]  ;;  %v2571_v35 = vld [vmem:[%s3384_s15 + $0x50] sm:$0xf] }
  0xc3   : > { %1261 = vmatpush.bf16.msra.mxu0 %v2028_v47  ;;  %v2336_v46 = vor.u32 %v2867_v40, %v2333_v41  ;;  %v2799_v47 = vld [vmem:[%s3371_s13 + $0x4c] sm:$0xf]  ;;  %v2029_v12 = vld [vmem:[%s3371_s13 + $0x18] sm:$0xf0]  ;;  %v2432_v15 = vor.u32 %v2891_v6, %v2429_v7  ;;  %v2929_v36 = vld [vmem:[%s3384_s15 + $0x54] sm:$0xf0] }
  0xc4   : > { %1274 = vmatpush.bf16.msra.mxu1 %v2156_v51  ;;  %v2189_v51 = vld [vmem:[%s3371_s13 + $0x158] sm:$0xf0]  ;;  %v2855_v16 = vld [vmem:[%s3371_s13 + $0x20c] sm:$0xf]  ;;  %v2927_v40 = vld [vmem:[%s3384_s15 + $0x44] sm:$0xf0] }
  0xc5   : > { %1287 = vmatpush.bf16.msra.mxu2 %v2284_v52  ;;  %v2863_v52 = vld [vmem:[%s3371_s13 + $0x24c] sm:$0xf]  ;;  %v2285_v17 = vld [vmem:[%s3371_s13 + $0x218] sm:$0xf0]  ;;  %v2555_v41 = vld [vmem:[%s3384_s15 + $0x30] sm:$0xf] }
  0xc6   : > { %1300 = vmatpush.bf16.msra.mxu3 %v2412_v56  ;;  %1262 = vmatmul.bf16.vlgmr.msra.gmra.mxu0 %v3486_v57  ;;  %v2445_v56 = vld [vmem:[%s3371_s13 + $0x358] sm:$0xf0]  ;;  %v2887_v18 = vld [vmem:[%s3371_s13 + $0x30c] sm:$0xf]  ;;  %v2565_v24 = vld [vmem:[%s3384_s15 + $0x48] sm:$0xf0] }
  0xc7   : > { %1306 = vmatpush.bf16.msrb.mxu0 %v2144_v59  ;;  %1275 = vmatmul.bf16.vlgmr.msra.gmra.mxu1 %v3490_v60  ;;  %v2064_v59 = vor.u32 %v2799_v47, %v2061_v48  ;;  %v2413_v19 = vld [vmem:[%s3371_s13 + $0x318] sm:$0xf0]  ;;  %v2539_v47 = vld [vmem:[%s3384_s15 + $0x10] sm:$0xf]  ;;  %v2921_v48 = vld [vmem:[%s3384_s15 + $0x14] sm:$0xf0] }
  0xc8   : > { %1319 = vmatpush.bf16.msrb.mxu1 %v2272_v61  ;;  %1288 = vmatmul.bf16.vlgmr.msra.gmra.mxu2 %v3482_v54  ;;  %v2192_v61 = vor.u32 %v2831_v49, %v2189_v51  ;;  %v2416_v27 = vor.u32 %v2887_v18, %v2413_v19  ;;  %v2627_v49 = vld [vmem:[%s3384_s15 + $0xc0] sm:$0xf]  ;;  %v2930_v6 = vld [vmem:[%s3384_s15 + $0x64] sm:$0xf]  ;;  %v2948_v18 = vld [vmem:[%s3384_s15 + $0xf4] sm:$0xf] }
  0xc9   : > { %1332 = vmatpush.bf16.msrb.mxu2 %v2400_v62  ;;  %1301 = vmatmul.bf16.vlgmr.msra.gmra.mxu3 %v3488_v58  ;;  %v2320_v62 = vor.u32 %v2863_v52, %v2317_v53  ;;  %v2619_v52 = vld [vmem:[%s3384_s15 + $0xb0] sm:$0xf]  ;;  %v2941_v53 = vld [vmem:[%s3384_s15 + $0xb4] sm:$0xf0]  ;;  %v2653_v19 = vld [vmem:[%s3384_s15 + $0xf8] sm:$0xf0] }
  0xca   : > { %1345 = vmatpush.bf16.msrb.mxu3 %v2528_v2  ;;  %v2448_v2 = vor.u32 %v2895_v55, %v2445_v56  ;;  %v2540_v55 = vor.u32 %v2921_v48, %v2539_v47  ;;  %v2531_v56 = vld [vmem:[%s3384_s15] sm:$0xf]  ;;  %v2926_v23 = vld [vmem:[%s3384_s15 + $0x44] sm:$0xf] }
  0xcb   : > { %1307 = vmatpush.bf16.msrb.mxu0 %v2128_v8  ;;  %v2048_v8 = vor.u32 %v2795_v63, %v2045_v0  ;;  %v2589_v63 = vld [vmem:[%s3384_s15 + $0x78] sm:$0xf0]  ;;  %v2611_v0 = vld [vmem:[%s3384_s15 + $0xa0] sm:$0xf] }
  0xcc   : > { %1320 = vmatpush.bf16.msrb.mxu1 %v2256_v9  ;;  %v2791_v9 = vld [vmem:[%s3371_s13 + $0xc] sm:$0xf] }
  0xcd   : > { %1333 = vmatpush.bf16.msrb.mxu2 %v2384_v10  ;;  %v2176_v10 = vor.u32 %v2827_v1, %v2173_v3  ;;  %v2939_v1 = vld [vmem:[%s3384_s15 + $0xa4] sm:$0xf0]  ;;  %v2715_v3 = vld [vmem:[%s3384_s15 + $0x170] sm:$0xf] }
  0xce   : > { %1346 = vmatpush.bf16.msrb.mxu3 %v2512_v14  ;;  %v2157_v14 = vld [vmem:[%s3371_s13 + $0x118] sm:$0xf0]  ;;  %v2612_v7 = vor.u32 %v2939_v1, %v2611_v0  ;;  %v2918_v1 = vld [vmem:[%s3384_s15 + $0x4] sm:$0xf]  ;;  %s363_s13 = scalar_lea.vmem %s3843_s5, %s2789_s28 }
  0xcf   : > { %1308 = vmatpush.bf16.msrb.mxu0 %v2112_v20  ;;  %v2587_v20 = vld [vmem:[%s3384_s15 + $0x70] sm:$0xf]  ;;  %v2160_v25 = vor.u32 %v2823_v13, %v2157_v14  ;;  %v2928_v13 = vld [vmem:[%s3384_s15 + $0x54] sm:$0xf] }
  0xd0   : > { %1321 = vmatpush.bf16.msrb.mxu1 %v2240_v21  ;;  %v2933_v21 = vld [vmem:[%s3384_s15 + $0x74] sm:$0xf0] }
  0xd1   : > { %1334 = vmatpush.bf16.msrb.mxu2 %v2368_v22  ;;  %v2032_v22 = vor.u32 %v2791_v9, %v2029_v12  ;;  %v2588_v28 = vor.u32 %v2933_v21, %v2587_v20  ;;  %v2581_v9 = vld [vmem:[%s3384_s15 + $0x68] sm:$0xf0]  ;;  %v3727_v20 = vld [vmem:[%s3378_s6] sm:$0xf] }
  0xd2   : > { %1347 = vmatpush.bf16.msrb.mxu3 %v2496_v26  ;;  %v2288_v26 = vor.u32 %v2855_v16, %v2285_v17  ;;  %v2584_v12 = vor.u32 %v2930_v6, %v2581_v9  ;;  %v2595_v16 = vld [vmem:[%s3384_s15 + $0x80] sm:$0xf]  ;;  %v2935_v17 = vld [vmem:[%s3384_s15 + $0x84] sm:$0xf0]  ;;  %v2957_v6 = vld [vmem:[%s3384_s15 + $0x134] sm:$0xf0] }
  0xd3   : > { %1309 = vmatpush.bf16.msrb.mxu0 %v2096_v32  ;;  %v2643_v32 = vld [vmem:[%s3384_s15 + $0xe0] sm:$0xf] }
  0xd4   : > { %1322 = vmatpush.bf16.msrb.mxu1 %v2224_v33  ;;  %v2947_v33 = vld [vmem:[%s3384_s15 + $0xe4] sm:$0xf0] }
  0xd5   : > { %1335 = vmatpush.bf16.msrb.mxu2 %v2352_v34  ;;  %v2580_v34 = vor.u32 %v2931_v30, %v2579_v29  ;;  %v2644_v37 = vor.u32 %v2947_v33, %v2643_v32  ;;  %v2924_v29 = vld [vmem:[%s3384_s15 + $0x34] sm:$0xf]  ;;  %v2557_v30 = vld [vmem:[%s3384_s15 + $0x38] sm:$0xf0]  ;;  %v2707_v33 = vld [vmem:[%s3384_s15 + $0x160] sm:$0xf] }
  0xd6   : > { %1348 = vmatpush.bf16.msrb.mxu3 %v2480_v38  ;;  %v2572_v38 = vor.u32 %v2929_v36, %v2571_v35  ;;  %v2946_v35 = vld [vmem:[%s3384_s15 + $0xe4] sm:$0xf] }
  0xd7   : > { %1310 = vmatpush.bf16.msrb.mxu0 %v2080_v44  ;;  %v2547_v44 = vld [vmem:[%s3384_s15 + $0x20] sm:$0xf] }
  0xd8   : > { %1323 = vmatpush.bf16.msrb.mxu1 %v2208_v45  ;;  %v2923_v45 = vld [vmem:[%s3384_s15 + $0x24] sm:$0xf0] }
  0xd9   : > { %1336 = vmatpush.bf16.msrb.mxu2 %v2336_v46  ;;  %v2548_v46 = vor.u32 %v2923_v45, %v2547_v44 }
  0xda   : > { %1349 = vmatpush.bf16.msrb.mxu3 %v2464_v50  ;;  %v2943_v50 = vld [vmem:[%s3384_s15 + $0xc4] sm:$0xf0] }
  0xdb   : > { %1311 = vmatpush.bf16.msrb.mxu0 %v2064_v59  ;;  %v2628_v51 = vor.u32 %v2943_v50, %v2627_v49  ;;  %v2919_v59 = vld [vmem:[%s3384_s15 + $0x4] sm:$0xf0] }
  0xdc   : > { %1324 = vmatpush.bf16.msrb.mxu1 %v2192_v61  ;;  %v2932_v61 = vld [vmem:[%s3384_s15 + $0x74] sm:$0xf] }
  0xdd   : > { %1337 = vmatpush.bf16.msrb.mxu2 %v2320_v62  ;;  %v2620_v62 = vor.u32 %v2941_v53, %v2619_v52  ;;  %v2592_v5 = vor.u32 %v2932_v61, %v2589_v63  ;;  %v2541_v52 = vld [vmem:[%s3384_s15 + $0x18] sm:$0xf0]  ;;  %v2629_v63 = vld [vmem:[%s3384_s15 + $0xc8] sm:$0xf0] }
  0xde   : > { %1350 = vmatpush.bf16.msrb.mxu3 %v2448_v2  ;;  %v2532_v2 = vor.u32 %v2919_v59, %v2531_v56  ;;  %v2959_v56 = vld [vmem:[%s3384_s15 + $0x144] sm:$0xf0]  ;;  %v2942_v59 = vld [vmem:[%s3384_s15 + $0xc4] sm:$0xf] }
  0xdf   : > { %1312 = vmatpush.bf16.msrb.mxu0 %v2048_v8  ;;  %v2716_v8 = vor.u32 %v2965_v4, %v2715_v3  ;;  %v2632_v3 = vor.u32 %v2942_v59, %v2629_v63  ;;  %v2958_v63 = vld [vmem:[%s3384_s15 + $0x144] sm:$0xf] }
  0xe0   : > { %1325 = vmatpush.bf16.msrb.mxu1 %v2176_v10  ;;  %v2603_v10 = vld [vmem:[%s3384_s15 + $0x90] sm:$0xf] }
  0xe1   : > { %1338 = vmatpush.bf16.msrb.mxu2 %v2304_v11  ;;  %v2937_v11 = vld [vmem:[%s3384_s15 + $0x94] sm:$0xf0] }
  0xe2   : > { %1351 = vmatpush.bf16.msrb.mxu3 %v2432_v15  ;;  %v2604_v14 = vor.u32 %v2937_v11, %v2603_v10  ;;  %v2573_v15 = vld [vmem:[%s3384_s15 + $0x58] sm:$0xf0]  ;;  %v2675_v11 = vld [vmem:[%s3384_s15 + $0x120] sm:$0xf] }
  0xe3   : > { %1313 = vmatpush.bf16.msrb.mxu0 %v2032_v22  ;;  %v2576_v21 = vor.u32 %v2928_v13, %v2573_v15  ;;  %v2596_v22 = vor.u32 %v2935_v17, %v2595_v16  ;;  %v2621_v10 = vld [vmem:[%s3384_s15 + $0xb8] sm:$0xf0]  ;;  %v2938_v15 = vld [vmem:[%s3384_s15 + $0xa4] sm:$0xf]  ;;  %v2613_v16 = vld [vmem:[%s3384_s15 + $0xa8] sm:$0xf0] }
  0xe4   : > { %1326 = vmatpush.bf16.msrb.mxu1 %v2160_v25  ;;  %v2656_v25 = vor.u32 %v2948_v18, %v2653_v19  ;;  %v2667_v19 = vld [vmem:[%s3384_s15 + $0x110] sm:$0xf] }
  0xe5   : > { %1339 = vmatpush.bf16.msrb.mxu2 %v2288_v26  ;;  %v502_v26 = vperm.slane %v3727_v20, 0 }
  0xe6   : > { %1352 = vmatpush.bf16.msrb.mxu3 %v2416_v27  ;;  %1314 = vmatmul.bf16.vlgmr.msrb.gmra.mxu0 %v3486_v57  ;;  %v2564_v57 = vor.u32 %v2927_v40, %v2563_v39  ;;  %v2568_v27 = vor.u32 %v2926_v23, %v2565_v24  ;;  %v2560_v39 = vor.u32 %v2924_v29, %v2557_v30  ;;  %v2779_v23 = vld [vmem:[%s3384_s15 + $0x1f0] sm:$0xf]  ;;  %v2981_v24 = vld [vmem:[%s3384_s15 + $0x1f4] sm:$0xf0]  ;;  %v2659_v30 = vld [vmem:[%s3384_s15 + $0x100] sm:$0xf] }
  0xe7   : > { %1756 = vmatpush.bf16.msra.mxu0 %v2588_v28  ;;  %1327 = vmatmul.bf16.vlgmr.msrb.gmra.mxu1 %v3490_v60  ;;  %v2635_v60 = vld [vmem:[%s3384_s15 + $0xd0] sm:$0xf] }
  0xe8   : > { %1769 = vmatpush.bf16.msra.mxu1 %v2652_v31  ;;  %1340 = vmatmul.bf16.vlgmr.msrb.gmra.mxu2 %v3482_v54  ;;  %v2945_v54 = vld [vmem:[%s3384_s15 + $0xd4] sm:$0xf0] }
  0xe9   : > { %1353 = vmatmul.bf16.vlgmr.msrb.gmra.mxu3 %v3488_v58  ;;  %v2636_v43 = vor.u32 %v2945_v54, %v2635_v60  ;;  %v2556_v58 = vor.u32 %v2925_v42, %v2555_v41  ;;  %1782 = vmatpush.bf16.msra.mxu2 %v2716_v8  ;;  %v2549_v41 = vld [vmem:[%s3384_s15 + $0x28] sm:$0xf0]  ;;  %v2699_v60 = vld [vmem:[%s3384_s15 + $0x150] sm:$0xf]  ;;  %v2961_v54 = vld [vmem:[%s3384_s15 + $0x154] sm:$0xf0] }
  0xea   : > { %v2700_v45 = vor.u32 %v2961_v54, %v2699_v60 }
  0xeb   : > { %1757 = vmatpush.bf16.msra.mxu0 %v2580_v34  ;;  %v2963_v34 = vld [vmem:[%s3384_s15 + $0x164] sm:$0xf0] }
  0xec   : > { %1770 = vmatpush.bf16.msra.mxu1 %v2644_v37  ;;  %v2708_v36 = vor.u32 %v2963_v34, %v2707_v33  ;;  %v2645_v37 = vld [vmem:[%s3384_s15 + $0xe8] sm:$0xf0]  ;;  %v2964_v34 = vld [vmem:[%s3384_s15 + $0x174] sm:$0xf] }
  0xed   : > { %v2648_v40 = vor.u32 %v2946_v35, %v2645_v37  ;;  %v2597_v33 = vld [vmem:[%s3384_s15 + $0x88] sm:$0xf0]  ;;  %v2717_v35 = vld [vmem:[%s3384_s15 + $0x178] sm:$0xf0] }
  0xee   : > { %1783 = vmatpush.bf16.msra.mxu2 %v2708_v36 }
  0xef   : > { %1758 = vmatpush.bf16.msra.mxu0 %v2572_v38 }
  0xf0   : > { %1771 = vmatpush.bf16.msra.mxu1 %v2636_v43  ;;  %v2944_v43 = vld [vmem:[%s3384_s15 + $0xd4] sm:$0xf] }
  0xf2   : > { %1784 = vmatpush.bf16.msra.mxu2 %v2700_v45 }
  0xf3   : > { %1759 = vmatpush.bf16.msra.mxu0 %v2564_v57  ;;  %v2922_v57 = vld [vmem:[%s3384_s15 + $0x24] sm:$0xf] }
  0xf4   : > { %1772 = vmatpush.bf16.msra.mxu1 %v2628_v51  ;;  %v2552_v47 = vor.u32 %v2922_v57, %v2549_v41  ;;  %v2920_v51 = vld [vmem:[%s3384_s15 + $0x14] sm:$0xf]  ;;  %v2771_v57 = vld [vmem:[%s3384_s15 + $0x1e0] sm:$0xf]  ;;  %v2979_v41 = vld [vmem:[%s3384_s15 + $0x1e4] sm:$0xf0] }
  0xf5   : > { %v2544_v0 = vor.u32 %v2920_v51, %v2541_v52  ;;  %v2701_v51 = vld [vmem:[%s3384_s15 + $0x158] sm:$0xf0] }
  0xf7   : > { %1760 = vmatpush.bf16.msra.mxu0 %v2556_v58 }
  0xf8   : > { %1773 = vmatpush.bf16.msra.mxu1 %v2620_v62 }
  0xfb   : > { %1761 = vmatpush.bf16.msra.mxu0 %v2548_v46  ;;  %v2637_v46 = vld [vmem:[%s3384_s15 + $0xd8] sm:$0xf0] }
  0xfc   : > { %1774 = vmatpush.bf16.msra.mxu1 %v2612_v7  ;;  %v2640_v48 = vor.u32 %v2944_v43, %v2637_v46  ;;  %v2940_v7 = vld [vmem:[%s3384_s15 + $0xb4] sm:$0xf]  ;;  %v2772_v43 = vor.u32 %v2979_v41, %v2771_v57  ;;  %v2763_v46 = vld [vmem:[%s3384_s15 + $0x1d0] sm:$0xf] }
  0xff   : > { %1762 = vmatpush.bf16.msra.mxu0 %v2540_v55  ;;  %v2691_v55 = vld [vmem:[%s3384_s15 + $0x140] sm:$0xf] }
 0x100   : > { %1775 = vmatpush.bf16.msra.mxu1 %v2604_v14  ;;  %v2692_v62 = vor.u32 %v2959_v56, %v2691_v55  ;;  %v2624_v14 = vor.u32 %v2940_v7, %v2621_v10  ;;  %v2973_v7 = vld [vmem:[%s3384_s15 + $0x1b4] sm:$0xf0] }
 0x102   : > { %1785 = vmatpush.bf16.msra.mxu2 %v2692_v62  ;;  %v2975_v62 = vld [vmem:[%s3384_s15 + $0x1c4] sm:$0xf0] }
 0x103   : > { %1763 = vmatpush.bf16.msra.mxu0 %v2532_v2  ;;  %v2533_v2 = vld [vmem:[%s3384_s15 + $0x8] sm:$0xf0] }
 0x104   : > { %1776 = vmatpush.bf16.msra.mxu1 %v2596_v22  ;;  %v1172_v32 = vpop.f32.mrf.mxu1  ;;  %v2536_v17 = vor.u32 %v2918_v1, %v2533_v2  ;;  %v2953_v22 = vld [vmem:[%s3384_s15 + $0x114] sm:$0xf0]  ;;  %v2693_v2 = vld [vmem:[%s3384_s15 + $0x148] sm:$0xf0] }
 0x106   : > { %v1159_v28 = vpop.f32.mrf.mxu0 }
 0x107   : > { %1808 = vmatpush.bf16.msrb.mxu0 %v2592_v5  ;;  %v1160_v31 = vadd.f32 %v1159_v28, %v502_v26  ;;  %v2683_v5 = vld [vmem:[%s3384_s15 + $0x130] sm:$0xf]  ;;  %v2605_v26 = vld [vmem:[%s3384_s15 + $0x98] sm:$0xf0]  ;;  %v2668_v28 = vor.u32 %v2953_v22, %v2667_v19  ;;  %v2969_v22 = vld [vmem:[%s3384_s15 + $0x194] sm:$0xf0] }
 0x108   : > { %1821 = vmatpush.bf16.msrb.mxu1 %v2656_v25  ;;  %v2684_v9 = vor.u32 %v2957_v6, %v2683_v5  ;;  %v2936_v25 = vld [vmem:[%s3384_s15 + $0x94] sm:$0xf]  ;;  %v2747_v6 = vld [vmem:[%s3384_s15 + $0x1b0] sm:$0xf] }
 0x109   : > { %v1173_v38 = vadd.f32 %v1172_v32, %v1160_v31  ;;  %v2608_v29 = vor.u32 %v2936_v25, %v2605_v26  ;;  %v2951_v31 = vld [vmem:[%s3384_s15 + $0x104] sm:$0xf0]  ;;  %v2934_v32 = vld [vmem:[%s3384_s15 + $0x84] sm:$0xf]  ;;  %v2748_v10 = vor.u32 %v2973_v7, %v2747_v6  ;;  %v2725_v6 = vld [vmem:[%s3384_s15 + $0x188] sm:$0xf0] }
 0x10a   : > { %1786 = vmatpush.bf16.msra.mxu2 %v2684_v9  ;;  %v2660_v36 = vor.u32 %v2951_v31, %v2659_v30  ;;  %v2600_v37 = vor.u32 %v2934_v32, %v2597_v33  ;;  %v2661_v30 = vld [vmem:[%s3384_s15 + $0x108] sm:$0xf0]  ;;  %v2980_v33 = vld [vmem:[%s3384_s15 + $0x1f4] sm:$0xf] }
 0x10b   : > { %1809 = vmatpush.bf16.msrb.mxu0 %v2584_v12  ;;  %v1185_v42 = vpop.f32.mrf.mxu2  ;;  %v2955_v12 = vld [vmem:[%s3384_s15 + $0x124] sm:$0xf0] }
 0x10c   : > { %1822 = vmatpush.bf16.msrb.mxu1 %v2648_v40  ;;  %v1186_v58 = vadd.f32 %v1185_v42, %v1173_v38  ;;  %v1174_v53 = vpop.f32.mrf.mxu1  ;;  %v2676_v18 = vor.u32 %v2955_v12, %v2675_v11  ;;  %v2720_v38 = vor.u32 %v2964_v34, %v2717_v35  ;;  %v2962_v42 = vld [vmem:[%s3384_s15 + $0x164] sm:$0xf]  ;;  %v2685_v11 = vld [vmem:[%s3384_s15 + $0x138] sm:$0xf0]  ;;  %v2739_v12 = vld [vmem:[%s3384_s15 + $0x1a0] sm:$0xf] }
 0x10d   : > { %v2781_v34 = vld [vmem:[%s3384_s15 + $0x1f8] sm:$0xf0] }
 0x10e   : > { %v1198_v44 = vpop.f32.mrf.mxu3  ;;  %v1161_v50 = vpop.f32.mrf.mxu0  ;;  %1787 = vmatpush.bf16.msra.mxu2 %v2676_v18  ;;  %v2784_v35 = vor.u32 %v2980_v33, %v2781_v34  ;;  %v1430_v33 = vld [vmem:[%s3386_s18] sm:$0x3] }
 0x10f   : > { %1810 = vmatpush.bf16.msrb.mxu0 %v2576_v21  ;;  %v1199_v49 = vadd.f32 %v1198_v44, %v1186_v58  ;;  %v2616_v21 = vor.u32 %v2938_v15, %v2613_v16  ;;  %v2709_v58 = vld [vmem:[%s3384_s15 + $0x168] sm:$0xf0]  ;;  %v2954_v16 = vld [vmem:[%s3384_s15 + $0x124] sm:$0xf] }
 0x110   : > { %1823 = vmatpush.bf16.msrb.mxu1 %v2640_v48  ;;  %v2712_v44 = vor.u32 %v2962_v42, %v2709_v58  ;;  %v2960_v48 = vld [vmem:[%s3384_s15 + $0x154] sm:$0xf] }
 0x111   : > { %v1358_v61 = vmax.f32 %v1199_v49, 0.0  ;;  %v2704_v55 = vor.u32 %v2960_v48, %v2701_v51 }
 0x112   : > { %1788 = vmatpush.bf16.msra.mxu2 %v2668_v28  ;;  %v2967_v28 = vld [vmem:[%s3384_s15 + $0x184] sm:$0xf0] }
 0x113   : > { %1811 = vmatpush.bf16.msrb.mxu0 %v2568_v27  ;;  %v1362_v4 = vpack.c.bf16 %v1358_v61, %v1358_v61  ;;  %v1187_v8 = vpop.f32.mrf.mxu2  ;;  %v2780_v27 = vor.u32 %v2981_v24, %v2779_v23  ;;  %v2755_v61 = vld [vmem:[%s3384_s15 + $0x1c0] sm:$0xf]  ;;  %v2952_v23 = vld [vmem:[%s3384_s15 + $0x114] sm:$0xf]  ;;  %v2669_v24 = vld [vmem:[%s3384_s15 + $0x118] sm:$0xf0] }
 0x114   : > { %1824 = vmatpush.bf16.msrb.mxu1 %v2632_v3  ;;  %v2756_v1 = vor.u32 %v2975_v62, %v2755_v61  ;;  %v2956_v8 = vld [vmem:[%s3384_s15 + $0x134] sm:$0xf]  ;;  %v2672_v26 = vor.u32 %v2952_v23, %v2669_v24  ;;  %v2970_v61 = vld [vmem:[%s3384_s15 + $0x1a4] sm:$0xf]  ;;  %v2741_v62 = vld [vmem:[%s3384_s15 + $0x1a8] sm:$0xf0] }
 0x115   : > { %1764 = vmatmul.bf16.vlgmr.msra.gmra.mxu0 %v1362_v4  ;;  %1795 = vmatpush.bf16.msra.mxu3 %v2780_v27  ;;  %v2688_v15 = vor.u32 %v2956_v8, %v2685_v11  ;;  %v2723_v27 = vld [vmem:[%s3384_s15 + $0x180] sm:$0xf]  ;;  %v505_v8 = vperm.slane %v3727_v20, 3 }
 0x116   : > { %v1200_v13 = vpop.f32.mrf.mxu3  ;;  %1789 = vmatpush.bf16.msra.mxu2 %v2660_v36  ;;  %v2724_v31 = vor.u32 %v2967_v28, %v2723_v27  ;;  %v504_v36 = vperm.slane %v3727_v20, 2 }
 0x117   : > { %1812 = vmatpush.bf16.msrb.mxu0 %v2560_v39  ;;  %v503_v39 = vperm.slane %v3727_v20, 1  ;;  %v2971_v13 = vld [vmem:[%s3384_s15 + $0x1a4] sm:$0xf0] }
 0x118   : > { %1825 = vmatpush.bf16.msrb.mxu1 %v2624_v14  ;;  %v2740_v18 = vor.u32 %v2971_v13, %v2739_v12 }
 0x119   : > { %1796 = vmatpush.bf16.msra.mxu3 %v2772_v43 }
 0x11a   : > { %1834 = vmatpush.bf16.msrb.mxu2 %v2720_v38  ;;  %v2773_v38 = vld [vmem:[%s3384_s15 + $0x1e8] sm:$0xf0] }
 0x11b   : > { %1813 = vmatpush.bf16.msrb.mxu0 %v2552_v47  ;;  %v2977_v47 = vld [vmem:[%s3384_s15 + $0x1d4] sm:$0xf0] }
 0x11c   : > { %1826 = vmatpush.bf16.msrb.mxu1 %v2616_v21  ;;  %v2764_v50 = vor.u32 %v2977_v47, %v2763_v46  ;;  %v2731_v21 = vld [vmem:[%s3384_s15 + $0x190] sm:$0xf]  ;;  %v2974_v46 = vld [vmem:[%s3384_s15 + $0x1c4] sm:$0xf]  ;;  %v2757_v47 = vld [vmem:[%s3384_s15 + $0x1c8] sm:$0xf0] }
 0x11d   : > { %v2732_v25 = vor.u32 %v2969_v22, %v2731_v21 }
 0x11e   : > { %1835 = vmatpush.bf16.msrb.mxu2 %v2712_v44  ;;  %1797 = vmatpush.bf16.msra.mxu3 %v2764_v50  ;;  %v2760_v50 = vor.u32 %v2974_v46, %v2757_v47 }
 0x11f   : > { %1814 = vmatpush.bf16.msrb.mxu0 %v2544_v0 }
 0x120   : > { %1827 = vmatpush.bf16.msrb.mxu1 %v2608_v29  ;;  %v2950_v29 = vld [vmem:[%s3384_s15 + $0x104] sm:$0xf] }
 0x121   : > { %v2664_v32 = vor.u32 %v2950_v29, %v2661_v30 }
 0x122   : > { %1836 = vmatpush.bf16.msrb.mxu2 %v2704_v55  ;;  %1798 = vmatpush.bf16.msra.mxu3 %v2756_v1  ;;  %v2749_v55 = vld [vmem:[%s3384_s15 + $0x1b8] sm:$0xf0]  ;;  %v2744_v1 = vor.u32 %v2970_v61, %v2741_v62 }
 0x123   : > { %1815 = vmatpush.bf16.msrb.mxu0 %v2536_v17  ;;  %v1211_v40 = vpop.f32.mrf.mxu0  ;;  %v2677_v17 = vld [vmem:[%s3384_s15 + $0x128] sm:$0xf0] }
 0x124   : > { %1828 = vmatpush.bf16.msrb.mxu1 %v2600_v37  ;;  %v1212_v60 = vadd.f32 %v1211_v40, %v503_v39  ;;  %v1224_v54 = vpop.f32.mrf.mxu1  ;;  %v2680_v19 = vor.u32 %v2954_v16, %v2677_v17  ;;  %v2978_v37 = vld [vmem:[%s3384_s15 + $0x1e4] sm:$0xf] }
 0x125   : > { %v2776_v40 = vor.u32 %v2978_v37, %v2773_v38 }
 0x126   : > { %1816 = vmatmul.bf16.vlgmr.msrb.gmra.mxu0 %v1362_v4  ;;  %v1225_v45 = vadd.f32 %v1224_v54, %v1212_v60  ;;  %v2696_v4 = vor.u32 %v2958_v63, %v2693_v2  ;;  %1799 = vmatpush.bf16.msra.mxu3 %v2748_v10  ;;  %v2976_v60 = vld [vmem:[%s3384_s15 + $0x1d4] sm:$0xf]  ;;  %v2765_v54 = vld [vmem:[%s3384_s15 + $0x1d8] sm:$0xf0] }
 0x127   : > { %v2768_v43 = vor.u32 %v2976_v60, %v2765_v54  ;;  %v2968_v2 = vld [vmem:[%s3384_s15 + $0x194] sm:$0xf] }
 0x128   : > { %1837 = vmatpush.bf16.msrb.mxu2 %v2696_v4 }
 0x12a   : > { %1800 = vmatpush.bf16.msra.mxu3 %v2740_v18 }
 0x12b   : > { %v1237_v49 = vpop.f32.mrf.mxu2  ;;  %v1213_v59 = vpop.f32.mrf.mxu0 }
 0x12c   : > { %v1238_v52 = vadd.f32 %v1237_v49, %v1225_v45  ;;  %v1250_v53 = vpop.f32.mrf.mxu3  ;;  %v1226_v0 = vpop.f32.mrf.mxu1  ;;  %1838 = vmatpush.bf16.msrb.mxu2 %v2688_v15 }
 0x12e   : > { %v1251_v56 = vadd.f32 %v1250_v53, %v1238_v52  ;;  %1801 = vmatpush.bf16.msra.mxu3 %v2732_v25  ;;  %v2972_v53 = vld [vmem:[%s3384_s15 + $0x1b4] sm:$0xf] }
 0x12f   : > { %v2752_v59 = vor.u32 %v2972_v53, %v2749_v55 }
 0x130   : > { %v1359_v3 = vmax.f32 %v1251_v56, 0.0  ;;  %1839 = vmatpush.bf16.msrb.mxu2 %v2680_v19 }
 0x132   : > { %v1363_v5 = vpack.c.bf16 %v1359_v3, %v1359_v3  ;;  %1802 = vmatpush.bf16.msra.mxu3 %v2724_v31  ;;  %v2733_v3 = vld [vmem:[%s3384_s15 + $0x198] sm:$0xf0] }
 0x133   : > { %v1239_v9 = vpop.f32.mrf.mxu2  ;;  %v2736_v4 = vor.u32 %v2968_v2, %v2733_v3 }
 0x134   : > { %1777 = vmatmul.bf16.vlgmr.msra.gmra.mxu1 %v1363_v5  ;;  %v1252_v14 = vpop.f32.mrf.mxu3  ;;  %1840 = vmatpush.bf16.msrb.mxu2 %v2672_v26 }
 0x136   : > { %1847 = vmatpush.bf16.msrb.mxu3 %v2784_v35  ;;  %v1432_v35 = vperm.slane %v1430_v33, 0 }
 0x138   : > { %1841 = vmatpush.bf16.msrb.mxu2 %v2664_v32 }
 0x13a   : > { %1848 = vmatpush.bf16.msrb.mxu3 %v2776_v40 }
 0x13e   : > { %1849 = vmatpush.bf16.msrb.mxu3 %v2768_v43 }
 0x142   : > { %1850 = vmatpush.bf16.msrb.mxu3 %v2760_v50 }
 0x143   : > { %v1263_v39 = vpop.f32.mrf.mxu0 }
 0x144   : > { %1829 = vmatmul.bf16.vlgmr.msrb.gmra.mxu1 %v1363_v5  ;;  %v1264_v57 = vadd.f32 %v1263_v39, %v504_v36  ;;  %v1276_v41 = vpop.f32.mrf.mxu1  ;;  %v2966_v5 = vld [vmem:[%s3384_s15 + $0x184] sm:$0xf] }
 0x145   : > { %v2728_v7 = vor.u32 %v2966_v5, %v2725_v6 }
 0x146   : > { %v1277_v42 = vadd.f32 %v1276_v41, %v1264_v57  ;;  %1851 = vmatpush.bf16.msrb.mxu3 %v2752_v59 }
 0x14a   : > { %1852 = vmatpush.bf16.msrb.mxu3 %v2744_v1 }
 0x14b   : > { %v1289_v58 = vpop.f32.mrf.mxu2  ;;  %v1265_v49 = vpop.f32.mrf.mxu0 }
 0x14c   : > { %v1290_v44 = vadd.f32 %v1289_v58, %v1277_v42  ;;  %v1302_v45 = vpop.f32.mrf.mxu3  ;;  %v1278_v51 = vpop.f32.mrf.mxu1  ;;  %v1433_v42 = vperm.slane %v1430_v33, 1 }
 0x14e   : > { %v1303_v48 = vadd.f32 %v1302_v45, %v1290_v44  ;;  %1853 = vmatpush.bf16.msrb.mxu3 %v2736_v4 }
 0x150   : > { %v1360_v52 = vmax.f32 %v1303_v48, 0.0 }
 0x152   : > { %v1364_v56 = vpack.c.bf16 %v1360_v52, %v1360_v52  ;;  %1854 = vmatpush.bf16.msrb.mxu3 %v2728_v7 }
 0x153   : > { %v1291_v63 = vpop.f32.mrf.mxu2 }
 0x154   : > { %1790 = vmatmul.bf16.vlgmr.msra.gmra.mxu2 %v1364_v56  ;;  %v1304_v0 = vpop.f32.mrf.mxu3 }
 0x163   : > { %v1315_v9 = vpop.f32.mrf.mxu0 }
 0x164   : > { %v1316_v10 = vadd.f32 %v1315_v9, %v505_v8  ;;  %v1328_v11 = vpop.f32.mrf.mxu1  ;;  %1842 = vmatmul.bf16.vlgmr.msrb.gmra.mxu2 %v1364_v56 }
 0x166   : > { %v1329_v12 = vadd.f32 %v1328_v11, %v1316_v10 }
 0x16b   : > { %v1341_v13 = vpop.f32.mrf.mxu2  ;;  %v1317_v16 = vpop.f32.mrf.mxu0 }
 0x16c   : > { %v1342_v14 = vadd.f32 %v1341_v13, %v1329_v12  ;;  %v1354_v15 = vpop.f32.mrf.mxu3  ;;  %v1330_v17 = vpop.f32.mrf.mxu1 }
 0x16e   : > { %v1355_v18 = vadd.f32 %v1354_v15, %v1342_v14 }
 0x170   : > { %v1361_v19 = vmax.f32 %v1355_v18, 0.0 }
 0x172   : > { %v1365_v21 = vpack.c.bf16 %v1361_v19, %v1361_v19 }
 0x173   : > { %v1343_v22 = vpop.f32.mrf.mxu2 }
 0x174   : > { %v1356_v23 = vpop.f32.mrf.mxu3  ;;  %1803 = vmatmul.bf16.vlgmr.msra.gmra.mxu3 %v1365_v21 }
 0x184   : > { %1855 = vmatmul.bf16.vlgmr.msrb.gmra.mxu3 %v1365_v21 }
 0x192   : > { %v1765_v20 = vpop.f32.mrf.mxu0 }
 0x193   : > { %v1766_v36 = vadd.f32 %v1765_v20, %v1432_v35 }
 0x19a   : > { %v1767_v24 = vpop.f32.mrf.mxu0 }
 0x1a3   : > { %v1817_v25 = vpop.f32.mrf.mxu0 }
 0x1a4   : > { %v1818_v54 = vadd.f32 %v1817_v25, %v1433_v42 }
 0x1ab   : > { %v1819_v26 = vpop.f32.mrf.mxu0 }
 0x1b1   : > { %v1778_v27 = vpop.f32.mrf.mxu1 }
 0x1b2   : > { %v1779_v38 = vadd.f32 %v1778_v27, %v1766_v36 }
 0x1b9   : > { %v1780_v28 = vpop.f32.mrf.mxu1 }
 0x1c1   : > { %v1830_v29 = vpop.f32.mrf.mxu1 }
 0x1c2   : > { %v1831_v43 = vadd.f32 %v1830_v29, %v1818_v54 }
 0x1c9   : > { %v1832_v30 = vpop.f32.mrf.mxu1 }
 0x1d7   : > { %v1791_v31 = vpop.f32.mrf.mxu2 }
 0x1d8   : > { %v1792_v39 = vadd.f32 %v1791_v31, %v1779_v38 }
 0x1df   : > { %v1793_v32 = vpop.f32.mrf.mxu2 }
 0x1e7   : > { %v1843_v34 = vpop.f32.mrf.mxu2 }
 0x1e8   : > { %v1844_v58 = vadd.f32 %v1843_v34, %v1831_v43 }
 0x1ef   : > { %v1845_v37 = vpop.f32.mrf.mxu2 }
 0x1f7   : > { %v1804_v40 = vpop.f32.mrf.mxu3 }
 0x1f8   : > { %v1805_v57 = vadd.f32 %v1804_v40, %v1792_v39 }
 0x1fa   : > { %v1860_v41 = vmax.f32 %v1805_v57, 0.0 }
 0x1fc   : > { %1862 = vst [vmem:[%s363_s13] sm:$0xff] %v1860_v41 }
 0x1ff   : > { %v1806_v60 = vpop.f32.mrf.mxu3 }
 0x207   : > { %v1856_v44 = vpop.f32.mrf.mxu3 }
 0x208   : > { %v1857_v45 = vadd.f32 %v1856_v44, %v1844_v58 }
 0x20a   : > { %v1861_v46 = vmax.f32 %v1857_v45, 0.0 }
 0x20c   : > { %1863 = vst [vmem:[%s363_s13 + $0x8] sm:$0xff] %v1861_v46 }
 0x20f   : > { %v1858_v47 = vpop.f32.mrf.mxu3 }
 0x210 PF: > { %p21_p8 = scmp.ge.s32.totalorder %s3260_s23, 9   ;;  %s3849_s18 = smov %s3194_s19 }
 0x211   : > { %s3850_s19 = smov %s3198_s20  ;;  %s3851_s20 = smov %s3270_s26 }
 0x212   : > { %s3852_s21 = smov %s3260_s23  ;;  %23 = sbr.rel (!%p21_p8) target bundleno = 9 (0x9), region = 117 }
 0x217   :  { %1885 = vsyncpa [#allocation3], 1 }
 0x218   :  { %1887 = vsyncpa [#allocation3 + $0x1], 1 }
 0x219   :  { %1888 = vsyncpa [#allocation5], 1 }
 0x21a   :  { %1890 = vsyncpa [#allocation5 + $0x1], 1 }
 0x21b   :  { %1891 = vsyncpa [#allocation8], 1 }
 0x21c   :  { %1893 = vsyncpa [#allocation8 + $0x1], 1 }

// kernel: xlmr_attention_classwise_forward.5
= control target key start
LH: loop header
LB: loop body
LE: loop exit
PB: predicated region body
PF: predicated region fallthrough
CT: control target
= control target key end

     0   :  { %s12939_s0 = inlined_call_operand.vmem [shape: f32[7,8,256], index: 0, kind: input, shape index: {}, may-alias: {0,1}]   ;;  %s12940_s1 = inlined_call_operand.vmem [shape: f32[7,8,256], index: 1, kind: input, shape index: {}, may-alias: {0,1}]   ;;  %s12941_s2 = inlined_call_operand.hbm [shape: bf16[7,256,768], index: 2, kind: input, shape index: {}]   ;;  %s12942_s3 = inlined_call_operand.hbm [shape: f32[7,1,768], index: 3, kind: input, shape index: {}]   ;;  %s12943_s4 = inlined_call_operand.hbm [shape: bf16[7,256,768], index: 4, kind: input, shape index: {}]   ;;  %s12944_s5 = inlined_call_operand.hbm [shape: f32[7,1,768], index: 5, kind: input, shape index: {}]   ;;  %s12945_s6 = inlined_call_operand.hbm [shape: bf16[7,256,768], index: 6, kind: input, shape index: {}]   ;;  %s12946_s7 = inlined_call_operand.hbm [shape: f32[7,1,768], index: 7, kind: input, shape index: {}]   ;;  %s12947_s8 = inlined_call_operand.hbm [shape: bf16[7,768,768], index: 8, kind: input, shape index: {}]   ;;  %s12948_s9 = inlined_call_operand.hbm [shape: f32[7,1,768], index: 9, kind: input, shape index: {}]   ;;  %s12949_s10 = inlined_call_operand.hbm [shape: bf16[7,768,128], index: 10, kind: input, shape index: {}]   ;;  %s12950_s11 = inlined_call_operand.hbm [shape: f32[7,1,128], index: 11, kind: input, shape index: {}]   ;;  %s12951_s12 = inlined_call_operand.vmem [shape: f32[7,8,128], index: 12, kind: output, shape index: {}]  }
   0x1   :  { %12966 = sst [smem:[#allocation32_spill]] %s12939_s0 }
   0x2   :  { %12967 = sst [smem:[#allocation33_spill]] %s12940_s1 }
   0x3   :  { %12968 = sst [smem:[#allocation34_spill]] %s12941_s2 }
   0x4   :  { %12969 = sst [smem:[#allocation35_spill]] %s12942_s3 }
   0x5   :  { %12970 = sst [smem:[#allocation36_spill]] %s12943_s4 }
   0x6   :  { %12971 = sst [smem:[#allocation37_spill]] %s12944_s5 }
   0x7   :  { %12972 = sst [smem:[#allocation38_spill]] %s12951_s12 }
   0x8   :  { %17 = vsyncpa [#allocation3], 0 }
   0x9   :  { %19 = vsyncpa [#allocation3 + $0x1], 0 }
   0xa   :  { %20 = vsyncpa [#allocation5], 0 }
   0xb   :  { %22 = vsyncpa [#allocation5 + $0x1], 0 }
   0xc   :  { %23 = vsyncpa [#allocation8], 0 }
   0xd   :  { %25 = vsyncpa [#allocation8 + $0x1], 0 }
   0xe   :  { %26 = vsyncpa [#allocation11], 0 }
   0xf   :  { %28 = vsyncpa [#allocation11 + $0x1], 0 }
  0x10   :  { %29 = vsyncpa [#allocation14], 0 }
  0x11   :  { %31 = vsyncpa [#allocation14 + $0x1], 0 }
  0x12   :  { %32 = vsyncpa [#allocation17], 0 }
  0x13   :  { %34 = vsyncpa [#allocation17 + $0x1], 0  ;;  %s10469_s21 = smov 0   ;;  %s10471_s22 = smov 0  }
  0x14   :  { %s10473_s23 = smov 0   ;;  %s10475_s24 = smov 0  }
  0x15 LB: > { %12973 = sst [smem:[#allocation24_spill]] %s10394_s23  ;;  %s10488_s25 = sadd.s32 4294967295, %s10398_s24   ;;  %s10398_s24 = sphi %s10475_s24, %s13005_s24   ;;  %s10394_s23 = sphi %s10473_s23, %s13007_s23   ;;  %s10390_s22 = sphi %s10471_s22, %s13009_s22   ;;  %s10386_s21 = sphi %s10469_s21, %s13008_s21  }
  0x16   : > { %12974 = sst [smem:[#allocation25_spill]] %s10488_s25  ;;  %s10491_s26 = sadd.s32 1, %s10398_s24  }
  0x17   : > { %12975 = sst [smem:[#allocation26_spill]] %s10491_s26  ;;  %s91_s27 = ssub.s32 %s10398_s24, %s10491_s26 }
  0x18   : > { %s94_s28 = sadd.s32 1, %s10394_s23  ;;  %p92_p0 = scmp.eq.s32.totalorder %s91_s27, 0 }
  0x19   : > { %p101_p1 = scmp.ne.s32.totalorder %s10394_s23, %s10390_s22  ;;  %p102_p2 = scmp.eq.s32.totalorder %s10398_s24, 0 }
  0x1a   : > { %p107_p3 = scmp.ne.s32.totalorder %s10390_s22, %s10386_s21  ;;  %p108_p5 = scmp.eq.s32.totalorder %s10488_s25, 0 }
  0x1b   : > { %s10501_s29 = scalar_select %p92_p0, %s10394_s23, %s94_s28  }
  0x1c   : > { %p103_p4 = por %p102_p2, %p101_p1  ;;  %p9956_p6 = scmp.lt.s32.totalorder %s10398_s24, 7 }
  0x1d   : > { %12976 = sst [smem:[#allocation27_spill]] %s10501_s29  ;;  %p10505_p7 = por %p108_p5, %p107_p3 }
  0x1e   : > { %s10510_s13 = sand.u32 1, %s10394_s23   ;;  %p10512_p8 = pnand %p9956_p6, %p103_p4 }
  0x1f   : > { %s12977_s30 = scalar_select %p10505_p7, 1, 0 }
  0x20   : > { %s10517_s15 = sand.u32 1, %s10398_s24   ;;  %s10520_s16 = smul.u32 6, %s10510_s13 }
  0x21   : > { %12978 = sst [smem:[#allocation28_spill]] %s12977_s30  ;;  %s10523_s17 = smul.u32 6, %s10398_s24 }
  0x22   : > { %p6756_p9 = scmp.ge.s32.totalorder %s10398_s24, 1  ;;  %s12980_s3 = sld [smem:[#allocation35_spill]] }
  0x23   : > { %s428_s21 = scalar_lea.vmem [#allocation4], %s10520_s16  ;;  %p603_p10 = scmp.lt.s32.totalorder %s10398_s24, 8 }
  0x24   : > { %s436_s27 = sshll.u32 %s428_s21, 4  ;;  %s12958_s29 = scalar_lea.sflag [#allocation5], %s10517_s15  ;;  %s437_s27 = int_to_ptr.vmem [resolvable:$true] %s436_s27 }
  0x25   : > { %p10535_p12 = pneg %p10512_p8 }
  0x28   : > { %s432_s20 = scalar_lea.hbm %s12980_s3, %s10523_s17 }
  0x29   : > { %s434_s28 = sshll.u32 %s432_s20, 4  ;;  %s10051_s20 = scalar_lea.hbm %s12980_s3, 42  ;;  %s435_s28 = int_to_ptr.hbm [resolvable:$true] %s434_s28 }
  0x2a   : > { %s10044_s23 = sshra.s32 %s435_s28, 4  ;;  %s10045_s23 = int_to_ptr.hbm [resolvable:$true] %s10044_s23 }
  0x2b   : > { %s10046_s26 = scalar_lea.hbm %s10045_s23, 6  ;;  %p10052_p1 = scmp.lt.s32.totalorder %s10045_s23, %s12980_s3 }
  0x2c   : > { %p10047_p11 = scmp.ne.s32.totalorder %s10045_s23, %s10046_s26  ;;  %p10053_p2 = scmp.lt.s32.totalorder %s10051_s20, %s10046_s26 }
  0x2e   : > { %p10049_p13 = pnand %p10535_p12, %p10047_p11  ;;  %p10054_p3 = por %p10053_p2, %p10052_p1 }
  0x30   : > { %p10050_p0 = pneg %p10049_p13 }
  0x32   : > { %p10055_p4 = pnand %p10054_p3, %p10050_p0 }
  0x34   : > { %10058 = shalt.err (!%p10055_p4)
}
  0x35   : > { %9931 = dma.hbm_to_vmem [thread:$0]  (!%p10512_p8), %s435_s28, 96, %s437_s27, %s12958_s29  }
  0x36   : > { %p10555_p5 = pnand %p6756_p9, %p603_p10  ;;  %s12983_s5 = sld [smem:[#allocation37_spill]] }
  0x37   : > { %s469_s20 = scalar_lea.vmem [#allocation7], %s10520_s16  ;;  %s12961_s3 = scalar_lea.sflag [#allocation8], %s10517_s15 }
  0x38   : > { %s477_s21 = sshll.u32 %s469_s20, 4  ;;  %s478_s21 = int_to_ptr.vmem [resolvable:$true] %s477_s21 }
  0x3c   : > { %s473_s18 = scalar_lea.hbm %s12983_s5, %s10523_s17  ;;  %s10081_s29 = scalar_lea.hbm %s12983_s5, 42 }
  0x3d   : > { %s475_s19 = sshll.u32 %s473_s18, 4  ;;  %s476_s19 = int_to_ptr.hbm [resolvable:$true] %s475_s19 }
  0x3e   : > { %s10074_s0 = sshra.s32 %s476_s19, 4  ;;  %s10075_s0 = int_to_ptr.hbm [resolvable:$true] %s10074_s0 }
  0x3f   : > { %s10076_s25 = scalar_lea.hbm %s10075_s0, 6  ;;  %p10082_p10 = scmp.lt.s32.totalorder %s10075_s0, %s12983_s5 }
  0x40   : > { %p10077_p6 = scmp.ne.s32.totalorder %s10075_s0, %s10076_s25  ;;  %p10083_p13 = scmp.lt.s32.totalorder %s10081_s29, %s10076_s25 }
  0x42   : > { %p10079_p11 = pnand %p10077_p6, %p10535_p12  ;;  %p10084_p0 = por %p10083_p13, %p10082_p10 }
  0x44   : > { %p10080_p9 = pneg %p10079_p11 }
  0x46   : > { %p10085_p1 = pnand %p10084_p0, %p10080_p9 }
  0x48   : > { %10088 = shalt.err (!%p10085_p1)
}
  0x49   : > { %9937 = dma.hbm_to_vmem [thread:$0]  (!%p10512_p8), %s476_s19, 96, %s478_s21, %s12961_s3  }
  0x4a   : > { %s514_s20 = scalar_lea.hbm %s12946_s7, %s10523_s17  ;;  %s510_s27 = scalar_lea.vmem [#allocation10], %s10520_s16 }
  0x4b   : > { %s518_s30 = sshll.u32 %s510_s27, 4  ;;  %s516_s0 = sshll.u32 %s514_s20, 4  ;;  %s519_s30 = int_to_ptr.vmem [resolvable:$true] %s518_s30  ;;  %s517_s0 = int_to_ptr.hbm [resolvable:$true] %s516_s0 }
  0x4c   : > { %s12963_s25 = scalar_lea.sflag [#allocation11], %s10517_s15  ;;  %s10104_s29 = sshra.s32 %s517_s0, 4  ;;  %s10105_s29 = int_to_ptr.hbm [resolvable:$true] %s10104_s29 }
  0x4d   : > { %s10106_s28 = scalar_lea.hbm %s10105_s29, 6  ;;  %s10111_s19 = scalar_lea.hbm %s12946_s7, 42 }
  0x4e   : > { %p10107_p2 = scmp.ne.s32.totalorder %s10105_s29, %s10106_s28  ;;  %p10112_p6 = scmp.lt.s32.totalorder %s10105_s29, %s12946_s7 }
  0x4f   : > { %p10113_p11 = scmp.lt.s32.totalorder %s10111_s19, %s10106_s28 }
  0x50   : > { %p10109_p3 = pnand %p10107_p2, %p10535_p12 }
  0x51   : > { %p10114_p9 = por %p10113_p11, %p10112_p6 }
  0x52   : > { %p10110_p4 = pneg %p10109_p3 }
  0x54   : > { %p10115_p10 = pnand %p10114_p9, %p10110_p4 }
  0x56   : > { %10118 = shalt.err (!%p10115_p10)
}
  0x57   : > { %9943 = dma.hbm_to_vmem [thread:$0]  (!%p10512_p8), %s517_s0, 96, %s519_s30, %s12963_s25  }
  0x58   : > { %s555_s20 = scalar_lea.hbm %s12948_s9, %s10523_s17  ;;  %s551_s23 = scalar_lea.vmem [#allocation13], %s10520_s16 }
  0x59   : > { %s557_s27 = sshll.u32 %s555_s20, 4  ;;  %s559_s29 = sshll.u32 %s551_s23, 4  ;;  %s558_s27 = int_to_ptr.hbm [resolvable:$true] %s557_s27  ;;  %s560_s29 = int_to_ptr.vmem [resolvable:$true] %s559_s29 }
  0x5a   : > { %s12962_s28 = scalar_lea.sflag [#allocation14], %s10517_s15  ;;  %s10134_s19 = sshra.s32 %s558_s27, 4  ;;  %s10135_s19 = int_to_ptr.hbm [resolvable:$true] %s10134_s19 }
  0x5b   : > { %s10136_s21 = scalar_lea.hbm %s10135_s19, 6  ;;  %s10141_s30 = scalar_lea.hbm %s12948_s9, 42 }
  0x5c   : > { %p10137_p13 = scmp.ne.s32.totalorder %s10135_s19, %s10136_s21  ;;  %p10142_p2 = scmp.lt.s32.totalorder %s10135_s19, %s12948_s9 }
  0x5d   : > { %p10143_p3 = scmp.lt.s32.totalorder %s10141_s30, %s10136_s21 }
  0x5e   : > { %p10139_p0 = pnand %p10137_p13, %p10535_p12 }
  0x5f   : > { %p10144_p4 = por %p10143_p3, %p10142_p2 }
  0x60   : > { %p10140_p1 = pneg %p10139_p0 }
  0x62   : > { %p10145_p6 = pnand %p10144_p4, %p10140_p1 }
  0x64   : > { %10148 = shalt.err (!%p10145_p6)
}
  0x65   : > { %9949 = dma.hbm_to_vmem [thread:$0]  (!%p10512_p8), %s558_s27, 96, %s560_s29, %s12962_s28  }
  0x66   : > { %s10614_s16 = smul.u32 768, %s10510_s13  ;;  %s12984_s2 = sld [smem:[#allocation34_spill]] }
  0x67   : > { %s10617_s3 = smul.u32 768, %s10398_s24  ;;  %s403_s26 = scalar_lea.sflag [#allocation3], %s10510_s13 }
  0x68   : > { %s406_s23 = scalar_lea.vmem [#allocation2], %s10614_s16 }
  0x69   : > { %s414_s19 = sshll.u32 %s406_s23, 4  ;;  %s415_s19 = int_to_ptr.vmem [resolvable:$true] %s414_s19 }
  0x6c   : > { %s411_s20 = scalar_lea.hbm %s12984_s2, %s10617_s3  ;;  %s10171_s18 = scalar_lea.hbm %s12984_s2, 5376 }
  0x6d   : > { %s412_s21 = sshll.u32 %s411_s20, 4  ;;  %s413_s21 = int_to_ptr.hbm [resolvable:$true] %s412_s21 }
  0x6e   : > { %s10164_s30 = sshra.s32 %s413_s21, 4  ;;  %s10165_s30 = int_to_ptr.hbm [resolvable:$true] %s10164_s30 }
  0x6f   : > { %s10166_s0 = scalar_lea.hbm %s10165_s30, 768  ;;  %p10172_p13 = scmp.lt.s32.totalorder %s10165_s30, %s12984_s2 }
  0x70   : > { %p10167_p11 = scmp.ne.s32.totalorder %s10165_s30, %s10166_s0  ;;  %p10173_p0 = scmp.lt.s32.totalorder %s10171_s18, %s10166_s0 }
  0x72   : > { %p10169_p9 = pnand %p10167_p11, %p10535_p12  ;;  %p10174_p1 = por %p10173_p0, %p10172_p13 }
  0x74   : > { %p10170_p10 = pneg %p10169_p9 }
  0x76   : > { %p10175_p2 = pnand %p10174_p1, %p10170_p10 }
  0x78   : > { %10178 = shalt.err (!%p10175_p2)
}
  0x79   : > { %s10400_s5 = smov 384   ;;  %s10401_s20 = smov 24  }
  0x7a   : > { %9928 = dma.hbm_to_vmem [thread:$0]  (!%p10512_p8), %s413_s21, 12288, %s415_s19, %s403_s26, %s10400_s5, %s10400_s5, %s10401_s20  }
  0x7b   : > { %s12985_s4 = sld [smem:[#allocation36_spill]]  ;;  %s447_s30 = scalar_lea.vmem [#allocation6], %s10614_s16 }
  0x7c   : > { %s455_s0 = sshll.u32 %s447_s30, 4  ;;  %s456_s0 = int_to_ptr.vmem [resolvable:$true] %s455_s0 }
  0x81   : > { %s452_s28 = scalar_lea.hbm %s12985_s4, %s10617_s3  ;;  %s10201_s19 = scalar_lea.hbm %s12985_s4, 5376 }
  0x82   : > { %s453_s29 = sshll.u32 %s452_s28, 4  ;;  %s454_s29 = int_to_ptr.hbm [resolvable:$true] %s453_s29 }
  0x83   : > { %s10194_s18 = sshra.s32 %s454_s29, 4  ;;  %s10195_s18 = int_to_ptr.hbm [resolvable:$true] %s10194_s18 }
  0x84   : > { %s10196_s17 = scalar_lea.hbm %s10195_s18, 768  ;;  %p10202_p11 = scmp.lt.s32.totalorder %s10195_s18, %s12985_s4 }
  0x85   : > { %p10197_p3 = scmp.ne.s32.totalorder %s10195_s18, %s10196_s17  ;;  %p10203_p9 = scmp.lt.s32.totalorder %s10201_s19, %s10196_s17 }
  0x87   : > { %p10199_p4 = pnand %p10197_p3, %p10535_p12  ;;  %p10204_p10 = por %p10203_p9, %p10202_p11 }
  0x89   : > { %p10200_p6 = pneg %p10199_p4 }
  0x8b   : > { %p10205_p13 = pnand %p10204_p10, %p10200_p6 }
  0x8d   : > { %10208 = shalt.err (!%p10205_p13)
}
  0x8e   : > { %s12986_s23 = scalar_lea.sflag [#allocation5], %s10517_s15  ;;  %s493_s27 = scalar_lea.hbm %s12945_s6, %s10617_s3 }
  0x8f   : > { %9934 = dma.hbm_to_vmem [thread:$0]  (!%p10512_p8), %s454_s29, 12288, %s456_s0, %s12986_s23, %s10400_s5, %s10400_s5, %s10401_s20  }
  0x90   : > { %s488_s28 = scalar_lea.vmem [#allocation9], %s10614_s16  ;;  %s494_s18 = sshll.u32 %s493_s27, 4  ;;  %s495_s18 = int_to_ptr.hbm [resolvable:$true] %s494_s18 }
  0x91   : > { %s496_s30 = sshll.u32 %s488_s28, 4  ;;  %s9895_s17 = smul.u32 2304, %s10510_s13  ;;  %s497_s30 = int_to_ptr.vmem [resolvable:$true] %s496_s30 }
  0x92   : > { %s10224_s19 = sshra.s32 %s495_s18, 4  ;;  %s10231_s0 = scalar_lea.hbm %s12945_s6, 5376  ;;  %s10225_s19 = int_to_ptr.hbm [resolvable:$true] %s10224_s19 }
  0x93   : > { %s10226_s21 = scalar_lea.hbm %s10225_s19, 768  ;;  %p10232_p3 = scmp.lt.s32.totalorder %s10225_s19, %s12945_s6 }
  0x94   : > { %p10227_p0 = scmp.ne.s32.totalorder %s10225_s19, %s10226_s21  ;;  %p10233_p4 = scmp.lt.s32.totalorder %s10231_s0, %s10226_s21 }
  0x96   : > { %p10229_p1 = pnand %p10227_p0, %p10535_p12  ;;  %p10234_p6 = por %p10233_p4, %p10232_p3 }
  0x98   : > { %p10230_p2 = pneg %p10229_p1 }
  0x9a   : > { %p10235_p11 = pnand %p10234_p6, %p10230_p2 }
  0x9c   : > { %10238 = shalt.err (!%p10235_p11)
}
  0x9d   : > { %s12987_s16 = scalar_lea.sflag [#allocation8], %s10517_s15  ;;  %s9896_s4 = smul.u32 2304, %s10398_s24 }
  0x9e   : > { %9940 = dma.hbm_to_vmem [thread:$0]  (!%p10512_p8), %s495_s18, 12288, %s497_s30, %s12987_s16, %s10400_s5, %s10400_s5, %s10401_s20  }
  0x9f   : > { %s529_s3 = scalar_lea.vmem [#allocation12], %s9895_s17  ;;  %s9899_s25 = smul.u32 384, %s10510_s13 }
  0xa0   : > { %s537_s2 = sshll.u32 %s529_s3, 4  ;;  %s534_s19 = scalar_lea.hbm %s12947_s8, %s9896_s4  ;;  %s538_s2 = int_to_ptr.vmem [resolvable:$true] %s537_s2 }
  0xa1   : > { %s535_s21 = sshll.u32 %s534_s19, 4  ;;  %s9900_s26 = smul.u32 384, %s10398_s24  ;;  %s536_s21 = int_to_ptr.hbm [resolvable:$true] %s535_s21 }
  0xa2   : > { %s10254_s0 = sshra.s32 %s536_s21, 4  ;;  %s10261_s17 = scalar_lea.hbm %s12947_s8, 16128  ;;  %s10255_s0 = int_to_ptr.hbm [resolvable:$true] %s10254_s0 }
  0xa3   : > { %s10256_s29 = scalar_lea.hbm %s10255_s0, 2304  ;;  %p10262_p0 = scmp.lt.s32.totalorder %s10255_s0, %s12947_s8 }
  0xa4   : > { %p10257_p9 = scmp.ne.s32.totalorder %s10255_s0, %s10256_s29  ;;  %p10263_p1 = scmp.lt.s32.totalorder %s10261_s17, %s10256_s29 }
  0xa6   : > { %p10259_p10 = pnand %p10257_p9, %p10535_p12  ;;  %p10264_p2 = por %p10263_p1, %p10262_p0 }
  0xa8   : > { %p10260_p13 = pneg %p10259_p10 }
  0xaa   : > { %p10265_p3 = pnand %p10264_p2, %p10260_p13 }
  0xac   : > { %10268 = shalt.err (!%p10265_p3)
}
  0xad   : > { %s12988_s4 = scalar_lea.sflag [#allocation11], %s10517_s15  ;;  %s575_s28 = scalar_lea.hbm %s12949_s10, %s9900_s26 }
  0xae   : > { %9946 = dma.hbm_to_vmem [thread:$0]  (!%p10512_p8), %s536_s21, 36864, %s538_s2, %s12988_s4, %s10400_s5, %s10400_s5, %s10401_s20  }
  0xaf   : > { %s570_s19 = scalar_lea.vmem [#allocation15], %s9899_s25  ;;  %s576_s0 = sshll.u32 %s575_s28, 4  ;;  %s577_s0 = int_to_ptr.hbm [resolvable:$true] %s576_s0 }
  0xb0   : > { %s578_s30 = sshll.u32 %s570_s19, 4  ;;  %s10284_s29 = sshra.s32 %s577_s0, 4  ;;  %s579_s30 = int_to_ptr.vmem [resolvable:$true] %s578_s30  ;;  %s10285_s29 = int_to_ptr.hbm [resolvable:$true] %s10284_s29 }
  0xb1   : > { %s10286_s18 = scalar_lea.hbm %s10285_s29, 384  ;;  %s10291_s5 = scalar_lea.hbm %s12949_s10, 2688 }
  0xb2   : > { %p10287_p4 = scmp.ne.s32.totalorder %s10285_s29, %s10286_s18  ;;  %p10292_p9 = scmp.lt.s32.totalorder %s10285_s29, %s12949_s10 }
  0xb3   : > { %p10293_p10 = scmp.lt.s32.totalorder %s10291_s5, %s10286_s18 }
  0xb4   : > { %p10289_p6 = pnand %p10287_p4, %p10535_p12 }
  0xb5   : > { %p10294_p13 = por %p10293_p10, %p10292_p9 }
  0xb6   : > { %p10290_p11 = pneg %p10289_p6 }
  0xb8   : > { %p10295_p0 = pnand %p10294_p13, %p10290_p11 }
  0xba   : > { %10298 = shalt.err (!%p10295_p0)
}
  0xbb   : > { %s10402_s25 = smov 64   ;;  %s10403_s21 = smov 4  }
  0xbc   : > { %s12989_s26 = scalar_lea.sflag [#allocation14], %s10517_s15  ;;  %s594_s3 = scalar_lea.hbm %s12950_s11, %s10398_s24 }
  0xbd   : > { %9952 = dma.hbm_to_vmem [thread:$0]  (!%p10512_p8), %s577_s0, 6144, %s579_s30, %s12989_s26, %s10402_s25, %s10402_s25, %s10403_s21  }
  0xbe   : > { %s596_s27 = sshll.u32 %s594_s3, 4  ;;  %s591_s28 = scalar_lea.vmem [#allocation16], %s10510_s13  ;;  %s597_s27 = int_to_ptr.hbm [resolvable:$true] %s596_s27 }
  0xbf   : > { %s598_s19 = sshll.u32 %s591_s28, 4  ;;  %s589_s29 = scalar_lea.sflag [#allocation17], %s10510_s13  ;;  %s599_s19 = int_to_ptr.vmem [resolvable:$true] %s598_s19 }
  0xc0   : > { %s10314_s18 = sshra.s32 %s597_s27, 4  ;;  %s10321_s30 = scalar_lea.hbm %s12950_s11, 7  ;;  %s10315_s18 = int_to_ptr.hbm [resolvable:$true] %s10314_s18 }
  0xc1   : > { %s10316_s17 = scalar_lea.hbm %s10315_s18, 1  ;;  %p10322_p4 = scmp.lt.s32.totalorder %s10315_s18, %s12950_s11 }
  0xc2   : > { %p10317_p1 = scmp.ne.s32.totalorder %s10315_s18, %s10316_s17  ;;  %p10323_p6 = scmp.lt.s32.totalorder %s10321_s30, %s10316_s17 }
  0xc4   : > { %p10319_p2 = pnand %p10317_p1, %p10535_p12  ;;  %p10324_p11 = por %p10323_p6, %p10322_p4 }
  0xc6   : > { %p10320_p3 = pneg %p10319_p2 }
  0xc8   : > { %p10325_p9 = pnand %p10324_p11, %p10320_p3 }
  0xca   : > { %10328 = shalt.err (!%p10325_p9)
}
  0xcb   : > { %9955 = dma.hbm_to_vmem [thread:$0]  (!%p10512_p8), %s597_s27, 16, %s599_s19, %s589_s29  }
  0xcc   : > { %607 = sbr.rel (%p10555_p5) target bundleno = 1339 (0x53b), region = 68 }
  0xd1   : > { %s10734_s24 = sand.u32 1, %s10390_s22  }
  0xd2   : > { %s9901_s13 = smul.u32 768, %s10734_s24  ;;  %s610_s20 = scalar_lea.sflag [#allocation3], %s10734_s24 }
  0xd4   : > { %s10738_s2 = scalar_lea.vmem [#allocation2], %s9901_s13 }
  0xd5   : > { %10361 = dma.done.wait (%p10505_p7), %s610_s20, 12288  }
  0xd6   : > { %10363 = vsyncadd (%p10505_p7), %s610_s20, 4294955008  ;;  %s12991_s14 = sld [smem:[#allocation25_spill]]  ;;  %s10746_s25 = smul.u32 6, %s10734_s24 }
  0xd8   : > { %s623_s26 = scalar_lea.vmem [#allocation4], %s10746_s25 }
  0xdc   : > { %s619_s1 = sand.u32 1, %s12991_s14  }
  0xdd   : > { %s620_s21 = scalar_lea.sflag [#allocation5], %s619_s1 }
  0xde   : > { %10365 = dma.done.wait (%p10505_p7), %s620_s21, 12384  }
  0xdf   : > { %10367 = vsyncadd (%p10505_p7), %s620_s21, 4294954912  ;;  %s10753_s16 = scalar_lea.vmem [#allocation6], %s9901_s13  ;;  %s640_s4 = scalar_lea.sflag [#allocation8], %s619_s1 }
  0xe0   : > { %s643_s3 = scalar_lea.vmem [#allocation7], %s10746_s25 }
  0xe1   : > { %10369 = dma.done.wait (%p10505_p7), %s640_s4, 12384  }
  0xe2   : > { %10371 = vsyncadd (%p10505_p7), %s640_s4, 4294954912  ;;  %s10760_s27 = scalar_lea.vmem [#allocation9], %s9901_s13  ;;  %s660_s28 = scalar_lea.sflag [#allocation11], %s619_s1 }
  0xe3   : > { %s663_s19 = scalar_lea.vmem [#allocation10], %s10746_s25 }
  0xe4   : > { %10373 = dma.done.wait (%p10505_p7), %s660_s28, 36960  }
  0xe5   : > { %10375 = vsyncadd (%p10505_p7), %s660_s28, 4294930336  ;;  %s9903_s29 = smul.u32 2304, %s10734_s24  ;;  %s680_s17 = scalar_lea.sflag [#allocation14], %s619_s1 }
  0xe6   : > { %s683_s23 = scalar_lea.vmem [#allocation13], %s10746_s25 }
  0xe7   : > { %s10768_s18 = scalar_lea.vmem [#allocation12], %s9903_s29 }
  0xe8   : > { %10377 = dma.done.wait (%p10505_p7), %s680_s17, 6240  }
  0xe9   : > { %10379 = vsyncadd (%p10505_p7), %s680_s17, 4294961056  ;;  %s9904_s15 = smul.u32 384, %s10734_s24  ;;  %s700_s0 = scalar_lea.sflag [#allocation17], %s10734_s24 }
  0xea   : > { %s702_s5 = scalar_lea.vmem [#allocation16], %s10734_s24 }
  0xeb   : > { %s10776_s30 = scalar_lea.vmem [#allocation15], %s9904_s15 }
  0xec   : > { %10381 = dma.done.wait (%p10505_p7), %s700_s0, 16  }
  0xed   : > { %10383 = vsyncadd (%p10505_p7), %s700_s0, 4294967280  ;;  %v6930_v0 = vld [vmem:[%s10738_s2 + $0x150] sm:$0xf]  ;;  %v9304_v1 = vld [vmem:[%s10738_s2 + $0x164] sm:$0xf0]  ;;  %p792_p7 = scmp.lt.s32.totalorder %s12991_s14, 6 }
  0xee   : > { %v7122_v2 = vld [vmem:[%s10738_s2 + $0x2d0] sm:$0xf]  ;;  %v6931_v3 = vor.u32 %v9304_v1, %v6930_v0  ;;  %v9352_v4 = vld [vmem:[%s10738_s2 + $0x2e4] sm:$0xf0]  ;;  %v9301_v5 = vld [vmem:[%s10738_s2 + $0x154] sm:$0xf] }
  0xef   : > { %v6932_v6 = vld [vmem:[%s10738_s2 + $0x168] sm:$0xf0]  ;;  %v7123_v7 = vor.u32 %v9352_v4, %v7122_v2  ;;  %v9349_v9 = vld [vmem:[%s10738_s2 + $0x2d4] sm:$0xf]  ;;  %v6906_v11 = vld [vmem:[%s10738_s2 + $0x120] sm:$0xf] }
  0xf0   : > { %v6935_v8 = vor.u32 %v9301_v5, %v6932_v6  ;;  %v7124_v10 = vld [vmem:[%s10738_s2 + $0x2e8] sm:$0xf0]  ;;  %1395 = vmatpush.bf16.msra.mxu0 %v6931_v3  ;;  %v9298_v13 = vld [vmem:[%s10738_s2 + $0x134] sm:$0xf0]  ;;  %v7098_v14 = vld [vmem:[%s10738_s2 + $0x2a0] sm:$0xf] }
  0xf1   : > { %v7127_v12 = vor.u32 %v9349_v9, %v7124_v10  ;;  %v9346_v15 = vld [vmem:[%s10738_s2 + $0x2b4] sm:$0xf0]  ;;  %1408 = vmatpush.bf16.msra.mxu1 %v7123_v7  ;;  %v6907_v16 = vor.u32 %v9298_v13, %v6906_v11  ;;  %v9295_v18 = vld [vmem:[%s10738_s2 + $0x124] sm:$0xf]  ;;  %v6908_v19 = vld [vmem:[%s10738_s2 + $0x138] sm:$0xf0] }
  0xf2   : > { %1421 = vmatpush.bf16.msra.mxu2 %v6935_v8  ;;  %v7099_v17 = vor.u32 %v9346_v15, %v7098_v14  ;;  %v9343_v20 = vld [vmem:[%s10738_s2 + $0x2a4] sm:$0xf]  ;;  %v6911_v21 = vor.u32 %v9295_v18, %v6908_v19  ;;  %v7100_v22 = vld [vmem:[%s10738_s2 + $0x2b8] sm:$0xf0]  ;;  %v6882_v23 = vld [vmem:[%s10738_s2 + $0xf0] sm:$0xf] }
  0xf3   : > { %1434 = vmatpush.bf16.msra.mxu3 %v7127_v12  ;;  %v9292_v24 = vld [vmem:[%s10738_s2 + $0x104] sm:$0xf0]  ;;  %v7103_v25 = vor.u32 %v9343_v20, %v7100_v22  ;;  %v7074_v26 = vld [vmem:[%s10738_s2 + $0x270] sm:$0xf]  ;;  %v9289_v28 = vld [vmem:[%s10738_s2 + $0xf4] sm:$0xf] }
  0xf4   : > { %v9340_v27 = vld [vmem:[%s10738_s2 + $0x284] sm:$0xf0]  ;;  %1396 = vmatpush.bf16.msra.mxu0 %v6907_v16  ;;  %v6883_v29 = vor.u32 %v9292_v24, %v6882_v23  ;;  %v6884_v30 = vld [vmem:[%s10738_s2 + $0x108] sm:$0xf0]  ;;  %v9337_v31 = vld [vmem:[%s10738_s2 + $0x274] sm:$0xf] }
  0xf5   : > { %v7076_v32 = vld [vmem:[%s10738_s2 + $0x288] sm:$0xf0]  ;;  %1409 = vmatpush.bf16.msra.mxu1 %v7099_v17  ;;  %v7075_v33 = vor.u32 %v9340_v27, %v7074_v26  ;;  %v6887_v34 = vor.u32 %v9289_v28, %v6884_v30  ;;  %v6858_v35 = vld [vmem:[%s10738_s2 + $0xc0] sm:$0xf]  ;;  %v9286_v36 = vld [vmem:[%s10738_s2 + $0xd4] sm:$0xf0] }
  0xf6   : > { %1422 = vmatpush.bf16.msra.mxu2 %v6911_v21  ;;  %v7050_v37 = vld [vmem:[%s10738_s2 + $0x240] sm:$0xf]  ;;  %v7079_v38 = vor.u32 %v9337_v31, %v7076_v32  ;;  %v9334_v39 = vld [vmem:[%s10738_s2 + $0x254] sm:$0xf0]  ;;  %v9283_v40 = vld [vmem:[%s10738_s2 + $0xc4] sm:$0xf]  ;;  %v6859_v44 = vor.u32 %v9286_v36, %v6858_v35 }
  0xf7   : > { %1435 = vmatpush.bf16.msra.mxu3 %v7103_v25  ;;  %v6860_v41 = vld [vmem:[%s10738_s2 + $0xd8] sm:$0xf0]  ;;  %v9331_v42 = vld [vmem:[%s10738_s2 + $0x244] sm:$0xf]  ;;  %v7051_v45 = vor.u32 %v9334_v39, %v7050_v37  ;;  %v6834_v47 = vld [vmem:[%s10738_s2 + $0x90] sm:$0xf] }
  0xf8   : > { %v7052_v43 = vld [vmem:[%s10738_s2 + $0x258] sm:$0xf0]  ;;  %1397 = vmatpush.bf16.msra.mxu0 %v6883_v29  ;;  %v6863_v46 = vor.u32 %v9283_v40, %v6860_v41  ;;  %v9280_v48 = vld [vmem:[%s10738_s2 + $0xa4] sm:$0xf0]  ;;  %v7026_v49 = vld [vmem:[%s10738_s2 + $0x210] sm:$0xf] }
  0xf9   : > { %1410 = vmatpush.bf16.msra.mxu1 %v7075_v33  ;;  %v7055_v50 = vor.u32 %v9331_v42, %v7052_v43  ;;  %v9328_v51 = vld [vmem:[%s10738_s2 + $0x224] sm:$0xf0]  ;;  %v9277_v52 = vld [vmem:[%s10738_s2 + $0x94] sm:$0xf]  ;;  %v6836_v53 = vld [vmem:[%s10738_s2 + $0xa8] sm:$0xf0]  ;;  %v6835_v56 = vor.u32 %v9280_v48, %v6834_v47 }
  0xfa   : > { %1423 = vmatpush.bf16.msra.mxu2 %v6887_v34  ;;  %v9325_v54 = vld [vmem:[%s10738_s2 + $0x214] sm:$0xf]  ;;  %v7028_v55 = vld [vmem:[%s10738_s2 + $0x228] sm:$0xf0]  ;;  %v7027_v57 = vor.u32 %v9328_v51, %v7026_v49  ;;  %v6839_v58 = vor.u32 %v9277_v52, %v6836_v53  ;;  %v6810_v59 = vld [vmem:[%s10738_s2 + $0x60] sm:$0xf] }
  0xfb   : > { %1436 = vmatpush.bf16.msra.mxu3 %v7079_v38  ;;  %v9274_v60 = vld [vmem:[%s10738_s2 + $0x74] sm:$0xf0]  ;;  %v7002_v61 = vld [vmem:[%s10738_s2 + $0x1e0] sm:$0xf]  ;;  %v7031_v62 = vor.u32 %v9325_v54, %v7028_v55  ;;  %v9271_v0 = vld [vmem:[%s10738_s2 + $0x64] sm:$0xf] }
  0xfc   : > { %1398 = vmatpush.bf16.msra.mxu0 %v6859_v44  ;;  %v9322_v63 = vld [vmem:[%s10738_s2 + $0x1f4] sm:$0xf0]  ;;  %v6812_v1 = vld [vmem:[%s10738_s2 + $0x78] sm:$0xf0]  ;;  %v9319_v2 = vld [vmem:[%s10738_s2 + $0x1e4] sm:$0xf]  ;;  %v6811_v4 = vor.u32 %v9274_v60, %v6810_v59 }
  0xfd   : > { %1411 = vmatpush.bf16.msra.mxu1 %v7051_v45  ;;  %v7004_v3 = vld [vmem:[%s10738_s2 + $0x1f8] sm:$0xf0]  ;;  %v7003_v5 = vor.u32 %v9322_v63, %v7002_v61  ;;  %v6815_v6 = vor.u32 %v9271_v0, %v6812_v1  ;;  %v6786_v7 = vld [vmem:[%s10738_s2 + $0x30] sm:$0xf]  ;;  %v9268_v8 = vld [vmem:[%s10738_s2 + $0x44] sm:$0xf0] }
  0xfe   : > { %1424 = vmatpush.bf16.msra.mxu2 %v6863_v46  ;;  %v6978_v9 = vld [vmem:[%s10738_s2 + $0x1b0] sm:$0xf]  ;;  %v7007_v10 = vor.u32 %v9319_v2, %v7004_v3  ;;  %v9316_v11 = vld [vmem:[%s10738_s2 + $0x1c4] sm:$0xf0]  ;;  %v9265_v12 = vld [vmem:[%s10738_s2 + $0x34] sm:$0xf]  ;;  %v6787_v16 = vor.u32 %v9268_v8, %v6786_v7 }
  0xff   : > { %1437 = vmatpush.bf16.msra.mxu3 %v7055_v50  ;;  %v6788_v13 = vld [vmem:[%s10738_s2 + $0x48] sm:$0xf0]  ;;  %v9313_v14 = vld [vmem:[%s10738_s2 + $0x1b4] sm:$0xf]  ;;  %v6762_v17 = vld [vmem:[%s10738_s2] sm:$0xf]  ;;  %v6979_v19 = vor.u32 %v9316_v11, %v6978_v9 }
 0x100   : > { %1399 = vmatpush.bf16.msra.mxu0 %v6835_v56  ;;  %v6980_v15 = vld [vmem:[%s10738_s2 + $0x1c8] sm:$0xf0]  ;;  %v9262_v18 = vld [vmem:[%s10738_s2 + $0x14] sm:$0xf0]  ;;  %s13011_s14 = smov (!%p792_p7, %s12991_s14), 6  ;;  %v6791_v20 = vor.u32 %v9265_v12, %v6788_v13  ;;  %s12992_s1 = sld [smem:[#allocation32_spill]] }
 0x101   : > { %1412 = vmatpush.bf16.msra.mxu1 %v7027_v57  ;;  %v6954_v21 = vld [vmem:[%s10738_s2 + $0x180] sm:$0xf]  ;;  %v9310_v22 = vld [vmem:[%s10738_s2 + $0x194] sm:$0xf0]  ;;  %v9259_v23 = vld [vmem:[%s10738_s2 + $0x4] sm:$0xf]  ;;  %v6983_v24 = vor.u32 %v9313_v14, %v6980_v15  ;;  %v6763_v31 = vor.u32 %v9262_v18, %v6762_v17 }
 0x102   : > { %1425 = vmatpush.bf16.msra.mxu2 %v6839_v58  ;;  %v6764_v25 = vld [vmem:[%s10738_s2 + $0x18] sm:$0xf0]  ;;  %v9307_v26 = vld [vmem:[%s10738_s2 + $0x184] sm:$0xf]  ;;  %v6938_v28 = vld [vmem:[%s10738_s2 + $0x158] sm:$0xf]  ;;  %v6955_v35 = vor.u32 %v9310_v22, %v6954_v21 }
 0x103   : > { %1438 = vmatpush.bf16.msra.mxu3 %v7031_v62  ;;  %v6956_v27 = vld [vmem:[%s10738_s2 + $0x198] sm:$0xf0]  ;;  %v9305_v29 = vld [vmem:[%s10738_s2 + $0x16c] sm:$0xf0]  ;;  %v7130_v30 = vld [vmem:[%s10738_s2 + $0x2d8] sm:$0xf]  ;;  %v6767_v36 = vor.u32 %v9259_v23, %v6764_v25 }
 0x104   : > { %1400 = vmatpush.bf16.msra.mxu0 %v6811_v4  ;;  %v9353_v32 = vld [vmem:[%s10738_s2 + $0x2ec] sm:$0xf0]  ;;  %v9302_v33 = vld [vmem:[%s10738_s2 + $0x15c] sm:$0xf]  ;;  %v6940_v34 = vld [vmem:[%s10738_s2 + $0x170] sm:$0xf0]  ;;  %v6959_v39 = vor.u32 %v9307_v26, %v6956_v27  ;;  %v6939_v40 = vor.u32 %v9305_v29, %v6938_v28 }
 0x105   : > { %1413 = vmatpush.bf16.msra.mxu1 %v7003_v5  ;;  %v9350_v37 = vld [vmem:[%s10738_s2 + $0x2dc] sm:$0xf]  ;;  %v7132_v38 = vld [vmem:[%s10738_s2 + $0x2f0] sm:$0xf0]  ;;  %s9258_s12 = sshll.u32 %s13011_s14, 4  ;;  %v7131_v41 = vor.u32 %v9353_v32, %v7130_v30  ;;  %v6943_v42 = vor.u32 %v9302_v33, %v6940_v34  ;;  %s12993_s28 = sld [smem:[#allocation33_spill]] }
 0x106   : > { %1426 = vmatpush.bf16.msra.mxu2 %v6815_v6  ;;  %v6914_v43 = vld [vmem:[%s10738_s2 + $0x128] sm:$0xf]  ;;  %v9299_v44 = vld [vmem:[%s10738_s2 + $0x13c] sm:$0xf0]  ;;  %v7135_v46 = vor.u32 %v9350_v37, %v7132_v38  ;;  %v9296_v48 = vld [vmem:[%s10738_s2 + $0x12c] sm:$0xf]  ;;  %s796_s21 = scalar_lea.vmem %s12992_s1, %s9258_s12 }
 0x107   : > { %1439 = vmatpush.bf16.msra.mxu3 %v7007_v10  ;;  %v7106_v45 = vld [vmem:[%s10738_s2 + $0x2a8] sm:$0xf]  ;;  %v9347_v47 = vld [vmem:[%s10738_s2 + $0x2bc] sm:$0xf0]  ;;  %v6916_v49 = vld [vmem:[%s10738_s2 + $0x140] sm:$0xf0]  ;;  %v6915_v52 = vor.u32 %v9299_v44, %v6914_v43 }
 0x108   : > { %1401 = vmatpush.bf16.msra.mxu0 %v6787_v16  ;;  %v9344_v50 = vld [vmem:[%s10738_s2 + $0x2ac] sm:$0xf]  ;;  %v7108_v51 = vld [vmem:[%s10738_s2 + $0x2c0] sm:$0xf0]  ;;  %v6890_v53 = vld [vmem:[%s10738_s2 + $0xf8] sm:$0xf]  ;;  %v7107_v54 = vor.u32 %v9347_v47, %v7106_v45  ;;  %v6919_v55 = vor.u32 %v9296_v48, %v6916_v49 }
 0x109   : > { %1414 = vmatpush.bf16.msra.mxu1 %v6979_v19  ;;  %v9293_v56 = vld [vmem:[%s10738_s2 + $0x10c] sm:$0xf0]  ;;  %v7082_v57 = vld [vmem:[%s10738_s2 + $0x278] sm:$0xf]  ;;  %v7111_v59 = vor.u32 %v9344_v50, %v7108_v51  ;;  %v9290_v60 = vld [vmem:[%s10738_s2 + $0xfc] sm:$0xf] }
 0x10a   : > { %1427 = vmatpush.bf16.msra.mxu2 %v6791_v20  ;;  %v9341_v58 = vld [vmem:[%s10738_s2 + $0x28c] sm:$0xf0]  ;;  %v6892_v61 = vld [vmem:[%s10738_s2 + $0x110] sm:$0xf0]  ;;  %v9338_v62 = vld [vmem:[%s10738_s2 + $0x27c] sm:$0xf]  ;;  %v6891_v0 = vor.u32 %v9293_v56, %v6890_v53 }
 0x10b   : > { %1440 = vmatpush.bf16.msra.mxu3 %v6983_v24  ;;  %v7084_v63 = vld [vmem:[%s10738_s2 + $0x290] sm:$0xf0]  ;;  %v7083_v1 = vor.u32 %v9341_v58, %v7082_v57  ;;  %v801_v2 = vld [vmem:[%s796_s21] sm:$0xff]  ;;  %v802_v3 = vld [vmem:[%s796_s21 + $0x8] sm:$0xff]  ;;  %v6895_v4 = vor.u32 %v9290_v60, %v6892_v61  ;;  %s6759_s25 = sshll.u32 %s13011_s14, 3 }
 0x10c   : > { %1402 = vmatpush.bf16.msra.mxu0 %v6763_v31  ;;  %v6866_v5 = vld [vmem:[%s10738_s2 + $0xc8] sm:$0xf]  ;;  %v9287_v6 = vld [vmem:[%s10738_s2 + $0xdc] sm:$0xf0]  ;;  %v10885_v8 = vpack.c.bf16 %v801_v2, %v801_v2  ;;  %v10887_v9 = vpack.c.bf16 %v802_v3, %v802_v3  ;;  %v7087_v10 = vor.u32 %v9338_v62, %v7084_v63  ;;  %v9284_v12 = vld [vmem:[%s10738_s2 + $0xcc] sm:$0xf] }
 0x10d   : > { %1415 = vmatpush.bf16.msra.mxu1 %v6955_v35  ;;  %v7058_v7 = vld [vmem:[%s10738_s2 + $0x248] sm:$0xf]  ;;  %v9335_v11 = vld [vmem:[%s10738_s2 + $0x25c] sm:$0xf0]  ;;  %v6868_v13 = vld [vmem:[%s10738_s2 + $0xe0] sm:$0xf0]  ;;  %v6867_v16 = vor.u32 %v9287_v6, %v6866_v5 }
 0x10e   : > { %1428 = vmatpush.bf16.msra.mxu2 %v6767_v36  ;;  %v9332_v14 = vld [vmem:[%s10738_s2 + $0x24c] sm:$0xf]  ;;  %v7060_v15 = vld [vmem:[%s10738_s2 + $0x260] sm:$0xf0]  ;;  %v7059_v17 = vor.u32 %v9335_v11, %v7058_v7  ;;  %v6871_v18 = vor.u32 %v9284_v12, %v6868_v13  ;;  %v6842_v19 = vld [vmem:[%s10738_s2 + $0x98] sm:$0xf] }
 0x10f   : > { %1441 = vmatpush.bf16.msra.mxu3 %v6959_v39  ;;  %v9281_v20 = vld [vmem:[%s10738_s2 + $0xac] sm:$0xf0]  ;;  %v7034_v21 = vld [vmem:[%s10738_s2 + $0x218] sm:$0xf]  ;;  %v7063_v22 = vor.u32 %v9332_v14, %v7060_v15  ;;  %v9278_v24 = vld [vmem:[%s10738_s2 + $0x9c] sm:$0xf]  ;;  %1403 = vmatmul.bf16.vlgmr.msra.gmra.mxu0 %v10885_v8 }
 0x110   : > { %1447 = vmatpush.bf16.msrb.mxu0 %v6939_v40  ;;  %1416 = vmatmul.bf16.vlgmr.msra.gmra.mxu1 %v10887_v9  ;;  %v9329_v23 = vld [vmem:[%s10738_s2 + $0x22c] sm:$0xf0]  ;;  %v6844_v25 = vld [vmem:[%s10738_s2 + $0xb0] sm:$0xf0]  ;;  %v9326_v26 = vld [vmem:[%s10738_s2 + $0x21c] sm:$0xf]  ;;  %v6843_v28 = vor.u32 %v9281_v20, %v6842_v19 }
 0x111   : > { %1460 = vmatpush.bf16.msrb.mxu1 %v7131_v41  ;;  %1429 = vmatmul.bf16.vlgmr.msra.gmra.mxu2 %v10885_v8  ;;  %v7036_v27 = vld [vmem:[%s10738_s2 + $0x230] sm:$0xf0]  ;;  %v7035_v29 = vor.u32 %v9329_v23, %v7034_v21  ;;  %v6847_v30 = vor.u32 %v9278_v24, %v6844_v25  ;;  %v6818_v31 = vld [vmem:[%s10738_s2 + $0x68] sm:$0xf]  ;;  %v9275_v32 = vld [vmem:[%s10738_s2 + $0x7c] sm:$0xf0] }
 0x112   : > { %1473 = vmatpush.bf16.msrb.mxu2 %v6943_v42  ;;  %1442 = vmatmul.bf16.vlgmr.msra.gmra.mxu3 %v10887_v9  ;;  %v7010_v33 = vld [vmem:[%s10738_s2 + $0x1e8] sm:$0xf]  ;;  %v7039_v34 = vor.u32 %v9326_v26, %v7036_v27  ;;  %v9323_v35 = vld [vmem:[%s10738_s2 + $0x1fc] sm:$0xf0]  ;;  %v9272_v36 = vld [vmem:[%s10738_s2 + $0x6c] sm:$0xf]  ;;  %v6819_v40 = vor.u32 %v9275_v32, %v6818_v31 }
 0x113   : > { %1486 = vmatpush.bf16.msrb.mxu3 %v7135_v46  ;;  %v6820_v37 = vld [vmem:[%s10738_s2 + $0x80] sm:$0xf0]  ;;  %v9320_v38 = vld [vmem:[%s10738_s2 + $0x1ec] sm:$0xf]  ;;  %v7011_v41 = vor.u32 %v9323_v35, %v7010_v33  ;;  %v6794_v43 = vld [vmem:[%s10738_s2 + $0x38] sm:$0xf] }
 0x114   : > { %1448 = vmatpush.bf16.msrb.mxu0 %v6915_v52  ;;  %v7012_v39 = vld [vmem:[%s10738_s2 + $0x200] sm:$0xf0]  ;;  %v6823_v42 = vor.u32 %v9272_v36, %v6820_v37  ;;  %v9269_v44 = vld [vmem:[%s10738_s2 + $0x4c] sm:$0xf0]  ;;  %v6986_v45 = vld [vmem:[%s10738_s2 + $0x1b8] sm:$0xf] }
 0x115   : > { %1461 = vmatpush.bf16.msrb.mxu1 %v7107_v54  ;;  %v7015_v46 = vor.u32 %v9320_v38, %v7012_v39  ;;  %v9317_v47 = vld [vmem:[%s10738_s2 + $0x1cc] sm:$0xf0]  ;;  %v9266_v48 = vld [vmem:[%s10738_s2 + $0x3c] sm:$0xf]  ;;  %v6796_v49 = vld [vmem:[%s10738_s2 + $0x50] sm:$0xf0]  ;;  %v6795_v52 = vor.u32 %v9269_v44, %v6794_v43 }
 0x116   : > { %1474 = vmatpush.bf16.msrb.mxu2 %v6919_v55  ;;  %v9314_v50 = vld [vmem:[%s10738_s2 + $0x1bc] sm:$0xf]  ;;  %v6988_v51 = vld [vmem:[%s10738_s2 + $0x1d0] sm:$0xf0]  ;;  %v6770_v53 = vld [vmem:[%s10738_s2 + $0x8] sm:$0xf]  ;;  %v6987_v55 = vor.u32 %v9317_v47, %v6986_v45  ;;  %v6799_v56 = vor.u32 %v9266_v48, %v6796_v49 }
 0x117   : > { %1487 = vmatpush.bf16.msrb.mxu3 %v7111_v59  ;;  %v9263_v54 = vld [vmem:[%s10738_s2 + $0x1c] sm:$0xf0]  ;;  %v6962_v57 = vld [vmem:[%s10738_s2 + $0x188] sm:$0xf]  ;;  %v9260_v59 = vld [vmem:[%s10738_s2 + $0xc] sm:$0xf]  ;;  %v6991_v60 = vor.u32 %v9314_v50, %v6988_v51 }
 0x118   : > { %1449 = vmatpush.bf16.msrb.mxu0 %v6891_v0  ;;  %v9311_v58 = vld [vmem:[%s10738_s2 + $0x19c] sm:$0xf0]  ;;  %v6772_v61 = vld [vmem:[%s10738_s2 + $0x20] sm:$0xf0]  ;;  %v9308_v62 = vld [vmem:[%s10738_s2 + $0x18c] sm:$0xf]  ;;  %v6771_v3 = vor.u32 %v9263_v54, %v6770_v53 }
 0x119   : > { %1462 = vmatpush.bf16.msrb.mxu1 %v7083_v1  ;;  %v6964_v63 = vld [vmem:[%s10738_s2 + $0x1a0] sm:$0xf0]  ;;  %v6946_v0 = vld [vmem:[%s10738_s2 + $0x160] sm:$0xf]  ;;  %v9306_v1 = vld [vmem:[%s10738_s2 + $0x174] sm:$0xf0]  ;;  %v6963_v7 = vor.u32 %v9311_v58, %v6962_v57 }
 0x11a   : > { %1475 = vmatpush.bf16.msrb.mxu2 %v6895_v4  ;;  %v7138_v2 = vld [vmem:[%s10738_s2 + $0x2e0] sm:$0xf]  ;;  %v9354_v4 = vld [vmem:[%s10738_s2 + $0x2f4] sm:$0xf0]  ;;  %v9303_v5 = vld [vmem:[%s10738_s2 + $0x164] sm:$0xf]  ;;  %v6967_v13 = vor.u32 %v9308_v62, %v6964_v63  ;;  %v6947_v14 = vor.u32 %v9306_v1, %v6946_v0 }
 0x11b   : > { %1488 = vmatpush.bf16.msrb.mxu3 %v7087_v10  ;;  %v6948_v6 = vld [vmem:[%s10738_s2 + $0x178] sm:$0xf0]  ;;  %v6775_v10 = vor.u32 %v9260_v59, %v6772_v61  ;;  %v9351_v11 = vld [vmem:[%s10738_s2 + $0x2e4] sm:$0xf]  ;;  %v7139_v15 = vor.u32 %v9354_v4, %v7138_v2  ;;  %v7114_v19 = vld [vmem:[%s10738_s2 + $0x2b0] sm:$0xf] }
 0x11c   : > { %1450 = vmatpush.bf16.msrb.mxu0 %v6867_v16  ;;  %v7140_v12 = vld [vmem:[%s10738_s2 + $0x2f8] sm:$0xf0]  ;;  %v6951_v16 = vor.u32 %v9303_v5, %v6948_v6  ;;  %v9348_v21 = vld [vmem:[%s10738_s2 + $0x2c4] sm:$0xf0]  ;;  %v6924_v23 = vld [vmem:[%s10738_s2 + $0x148] sm:$0xf0] }
 0x11d   : > { %1463 = vmatpush.bf16.msrb.mxu1 %v7059_v17  ;;  %v6922_v17 = vld [vmem:[%s10738_s2 + $0x130] sm:$0xf]  ;;  %v7143_v20 = vor.u32 %v9351_v11, %v7140_v12  ;;  %v9345_v24 = vld [vmem:[%s10738_s2 + $0x2b4] sm:$0xf]  ;;  %v7116_v25 = vld [vmem:[%s10738_s2 + $0x2c8] sm:$0xf0]  ;;  %v7115_v27 = vor.u32 %v9348_v21, %v7114_v19 }
 0x11e   : > { %1476 = vmatpush.bf16.msrb.mxu2 %v6871_v18  ;;  %v9300_v18 = vld [vmem:[%s10738_s2 + $0x144] sm:$0xf0]  ;;  %v7090_v31 = vld [vmem:[%s10738_s2 + $0x280] sm:$0xf]  ;;  %v7119_v32 = vor.u32 %v9345_v24, %v7116_v25  ;;  %v9342_v33 = vld [vmem:[%s10738_s2 + $0x294] sm:$0xf0] }
 0x11f   : > { %1489 = vmatpush.bf16.msrb.mxu3 %v7063_v22  ;;  %v9297_v22 = vld [vmem:[%s10738_s2 + $0x134] sm:$0xf]  ;;  %v6923_v26 = vor.u32 %v9300_v18, %v6922_v17  ;;  %v6900_v35 = vld [vmem:[%s10738_s2 + $0x118] sm:$0xf0]  ;;  %v9339_v36 = vld [vmem:[%s10738_s2 + $0x284] sm:$0xf]  ;;  %v7091_v39 = vor.u32 %v9342_v33, %v7090_v31 }
 0x120   : > { %1451 = vmatpush.bf16.msrb.mxu0 %v6843_v28  ;;  %v6927_v28 = vor.u32 %v9297_v22, %v6924_v23  ;;  %v7092_v37 = vld [vmem:[%s10738_s2 + $0x298] sm:$0xf0]  ;;  %v7066_v43 = vld [vmem:[%s10738_s2 + $0x250] sm:$0xf]  ;;  %v9336_v45 = vld [vmem:[%s10738_s2 + $0x264] sm:$0xf0] }
 0x121   : > { %1464 = vmatpush.bf16.msrb.mxu1 %v7035_v29  ;;  %v6898_v29 = vld [vmem:[%s10738_s2 + $0x100] sm:$0xf]  ;;  %v7095_v44 = vor.u32 %v9339_v36, %v7092_v37  ;;  %v6876_v47 = vld [vmem:[%s10738_s2 + $0xe8] sm:$0xf0]  ;;  %v9333_v48 = vld [vmem:[%s10738_s2 + $0x254] sm:$0xf]  ;;  %v7067_v51 = vor.u32 %v9336_v45, %v7066_v43 }
 0x122   : > { %1477 = vmatpush.bf16.msrb.mxu2 %v6847_v30  ;;  %v9294_v30 = vld [vmem:[%s10738_s2 + $0x114] sm:$0xf0]  ;;  %v7068_v49 = vld [vmem:[%s10738_s2 + $0x268] sm:$0xf0]  ;;  %v6850_v53 = vld [vmem:[%s10738_s2 + $0xa0] sm:$0xf] }
 0x123   : > { %1490 = vmatpush.bf16.msrb.mxu3 %v7039_v34  ;;  %v9291_v34 = vld [vmem:[%s10738_s2 + $0x104] sm:$0xf]  ;;  %v6899_v38 = vor.u32 %v9294_v30, %v6898_v29  ;;  %v9282_v54 = vld [vmem:[%s10738_s2 + $0xb4] sm:$0xf0]  ;;  %v6852_v59 = vld [vmem:[%s10738_s2 + $0xb8] sm:$0xf0] }
 0x124   : > { %1452 = vmatpush.bf16.msrb.mxu0 %v6819_v40  ;;  %v6903_v40 = vor.u32 %v9291_v34, %v6900_v35  ;;  %v9330_v57 = vld [vmem:[%s10738_s2 + $0x234] sm:$0xf0]  ;;  %v9279_v58 = vld [vmem:[%s10738_s2 + $0xa4] sm:$0xf]  ;;  %v7044_v61 = vld [vmem:[%s10738_s2 + $0x238] sm:$0xf0]  ;;  %v6851_v62 = vor.u32 %v9282_v54, %v6850_v53 }
 0x125   : > { %1465 = vmatpush.bf16.msrb.mxu1 %v7011_v41  ;;  %v6874_v41 = vld [vmem:[%s10738_s2 + $0xd0] sm:$0xf]  ;;  %v6855_v0 = vor.u32 %v9279_v58, %v6852_v59  ;;  %v9276_v2 = vld [vmem:[%s10738_s2 + $0x84] sm:$0xf0]  ;;  %v9273_v6 = vld [vmem:[%s10738_s2 + $0x74] sm:$0xf] }
 0x126   : > { %1478 = vmatpush.bf16.msrb.mxu2 %v6823_v42  ;;  %v9288_v42 = vld [vmem:[%s10738_s2 + $0xe4] sm:$0xf0]  ;;  %v6826_v1 = vld [vmem:[%s10738_s2 + $0x70] sm:$0xf]  ;;  %v7020_v11 = vld [vmem:[%s10738_s2 + $0x208] sm:$0xf0] }
 0x127   : > { %1491 = vmatpush.bf16.msrb.mxu3 %v7015_v46  ;;  %v9285_v46 = vld [vmem:[%s10738_s2 + $0xd4] sm:$0xf]  ;;  %v6875_v50 = vor.u32 %v9288_v42, %v6874_v41  ;;  %v9324_v5 = vld [vmem:[%s10738_s2 + $0x204] sm:$0xf0]  ;;  %v6827_v12 = vor.u32 %v9276_v2, %v6826_v1  ;;  %v6994_v17 = vld [vmem:[%s10738_s2 + $0x1c0] sm:$0xf] }
 0x128   : > { %1453 = vmatpush.bf16.msrb.mxu0 %v6795_v52  ;;  %v6879_v52 = vor.u32 %v9285_v46, %v6876_v47  ;;  %v9318_v19 = vld [vmem:[%s10738_s2 + $0x1d4] sm:$0xf0]  ;;  %v6804_v21 = vld [vmem:[%s10738_s2 + $0x58] sm:$0xf0]  ;;  %v9315_v22 = vld [vmem:[%s10738_s2 + $0x1c4] sm:$0xf] }
 0x129   : > { %1466 = vmatpush.bf16.msrb.mxu1 %v6987_v55  ;;  %v7042_v55 = vld [vmem:[%s10738_s2 + $0x220] sm:$0xf]  ;;  %v6996_v23 = vld [vmem:[%s10738_s2 + $0x1d8] sm:$0xf0]  ;;  %v6778_v25 = vld [vmem:[%s10738_s2 + $0x10] sm:$0xf] }
 0x12a   : > { %1479 = vmatpush.bf16.msrb.mxu2 %v6799_v56  ;;  %v7071_v56 = vor.u32 %v9333_v48, %v7068_v49  ;;  %v7043_v63 = vor.u32 %v9330_v57, %v7042_v55  ;;  %v6970_v29 = vld [vmem:[%s10738_s2 + $0x190] sm:$0xf]  ;;  %v9312_v30 = vld [vmem:[%s10738_s2 + $0x1a4] sm:$0xf0]  ;;  %v9261_v31 = vld [vmem:[%s10738_s2 + $0x14] sm:$0xf] }
 0x12b   : > { %1492 = vmatpush.bf16.msrb.mxu3 %v6991_v60  ;;  %v9327_v60 = vld [vmem:[%s10738_s2 + $0x224] sm:$0xf]  ;;  %v6780_v33 = vld [vmem:[%s10738_s2 + $0x28] sm:$0xf0]  ;;  %v9309_v34 = vld [vmem:[%s10738_s2 + $0x194] sm:$0xf]  ;;  %v6971_v43 = vor.u32 %v9312_v30, %v6970_v29 }
 0x12c   : > { %1454 = vmatpush.bf16.msrb.mxu0 %v6771_v3  ;;  %v7018_v3 = vld [vmem:[%s10738_s2 + $0x1f0] sm:$0xf]  ;;  %v7047_v4 = vor.u32 %v9327_v60, %v7044_v61  ;;  %v6972_v35 = vld [vmem:[%s10738_s2 + $0x1a8] sm:$0xf0]  ;;  %v7314_v36 = vld [vmem:[%s10753_s16 + $0x150] sm:$0xf] }
 0x12d   : > { %1467 = vmatpush.bf16.msrb.mxu1 %v6963_v7  ;;  %v6828_v7 = vld [vmem:[%s10738_s2 + $0x88] sm:$0xf0]  ;;  %v9400_v37 = vld [vmem:[%s10753_s16 + $0x164] sm:$0xf0]  ;;  %v9397_v41 = vld [vmem:[%s10753_s16 + $0x154] sm:$0xf]  ;;  %v6975_v47 = vor.u32 %v9309_v34, %v6972_v35 }
 0x12e   : > { %1480 = vmatpush.bf16.msrb.mxu2 %v6775_v10  ;;  %v9321_v10 = vld [vmem:[%s10738_s2 + $0x1f4] sm:$0xf]  ;;  %v7316_v42 = vld [vmem:[%s10753_s16 + $0x168] sm:$0xf0]  ;;  %v9445_v45 = vld [vmem:[%s10753_s16 + $0x2d4] sm:$0xf]  ;;  %v7315_v48 = vor.u32 %v9400_v37, %v7314_v36 }
 0x12f   : > { %1493 = vmatpush.bf16.msrb.mxu3 %v6967_v13  ;;  %1455 = vmatmul.bf16.vlgmr.msrb.gmra.mxu0 %v10885_v8  ;;  %v7019_v13 = vor.u32 %v9324_v5, %v7018_v3  ;;  %v7023_v18 = vor.u32 %v9321_v10, %v7020_v11  ;;  %v7508_v46 = vld [vmem:[%s10753_s16 + $0x2e8] sm:$0xf0]  ;;  %v7482_v53 = vld [vmem:[%s10753_s16 + $0x2a0] sm:$0xf]  ;;  %v9442_v55 = vld [vmem:[%s10753_s16 + $0x2b4] sm:$0xf0] }
 0x130   : > { %1499 = vmatpush.bf16.msra.mxu0 %v6947_v14  ;;  %1468 = vmatmul.bf16.vlgmr.msrb.gmra.mxu1 %v10887_v9  ;;  %v6831_v14 = vor.u32 %v9273_v6, %v6828_v7  ;;  %v7511_v54 = vor.u32 %v9445_v45, %v7508_v46  ;;  %v7292_v57 = vld [vmem:[%s10753_s16 + $0x138] sm:$0xf0]  ;;  %v9439_v58 = vld [vmem:[%s10753_s16 + $0x2a4] sm:$0xf]  ;;  %v7483_v61 = vor.u32 %v9442_v55, %v7482_v53  ;;  %v7458_v1 = vld [vmem:[%s10753_s16 + $0x270] sm:$0xf] }
 0x131   : > { %1512 = vmatpush.bf16.msra.mxu1 %v7139_v15  ;;  %1481 = vmatmul.bf16.vlgmr.msrb.gmra.mxu2 %v10885_v8  ;;  %v6802_v15 = vld [vmem:[%s10738_s2 + $0x40] sm:$0xf]  ;;  %v7484_v59 = vld [vmem:[%s10753_s16 + $0x2b8] sm:$0xf0]  ;;  %v9436_v3 = vld [vmem:[%s10753_s16 + $0x284] sm:$0xf0] }
 0x132   : > { %1525 = vmatpush.bf16.msra.mxu2 %v6951_v16  ;;  %1494 = vmatmul.bf16.vlgmr.msrb.gmra.mxu3 %v10887_v9  ;;  %v9270_v16 = vld [vmem:[%s10738_s2 + $0x54] sm:$0xf0]  ;;  %v7487_v2 = vor.u32 %v9439_v58, %v7484_v59  ;;  %v9433_v6 = vld [vmem:[%s10753_s16 + $0x274] sm:$0xf]  ;;  %v7459_v11 = vor.u32 %v9436_v3, %v7458_v1  ;;  %v7194_v35 = vld [vmem:[%s10753_s16 + $0x60] sm:$0xf] }
 0x133   : > { %1538 = vmatpush.bf16.msra.mxu3 %v7143_v20  ;;  %v9267_v20 = vld [vmem:[%s10738_s2 + $0x44] sm:$0xf]  ;;  %v6803_v24 = vor.u32 %v9270_v16, %v6802_v15  ;;  %v7268_v5 = vld [vmem:[%s10753_s16 + $0x108] sm:$0xf0]  ;;  %v7434_v15 = vld [vmem:[%s10753_s16 + $0x240] sm:$0xf] }
 0x134   : > { %1500 = vmatpush.bf16.msra.mxu0 %v6923_v26  ;;  %v9264_v26 = vld [vmem:[%s10738_s2 + $0x24] sm:$0xf0]  ;;  %v7460_v7 = vld [vmem:[%s10753_s16 + $0x288] sm:$0xf0]  ;;  %v9421_v30 = vld [vmem:[%s10753_s16 + $0x214] sm:$0xf] }
 0x135   : > { %1513 = vmatpush.bf16.msra.mxu1 %v7115_v27  ;;  %v6995_v27 = vor.u32 %v9318_v19, %v6994_v17  ;;  %v7463_v16 = vor.u32 %v9433_v6, %v7460_v7  ;;  %v9430_v17 = vld [vmem:[%s10753_s16 + $0x254] sm:$0xf0]  ;;  %v9427_v19 = vld [vmem:[%s10753_s16 + $0x244] sm:$0xf]  ;;  %v7220_v29 = vld [vmem:[%s10753_s16 + $0xa8] sm:$0xf0] }
 0x136   : > { %1526 = vmatpush.bf16.msra.mxu2 %v6927_v28  ;;  %v6807_v28 = vor.u32 %v9267_v20, %v6804_v21  ;;  %v7435_v21 = vor.u32 %v9430_v17, %v7434_v15  ;;  %v9370_v36 = vld [vmem:[%s10753_s16 + $0x74] sm:$0xf0]  ;;  %v7386_v37 = vld [vmem:[%s10753_s16 + $0x1e0] sm:$0xf]  ;;  %v7172_v53 = vld [vmem:[%s10753_s16 + $0x48] sm:$0xf0] }
 0x137   : > { %1539 = vmatpush.bf16.msra.mxu3 %v7119_v32  ;;  %v6999_v32 = vor.u32 %v9315_v22, %v6996_v23  ;;  %v7218_v23 = vld [vmem:[%s10753_s16 + $0x90] sm:$0xf]  ;;  %v7364_v55 = vld [vmem:[%s10753_s16 + $0x1c8] sm:$0xf0]  ;;  %v7146_v59 = vld [vmem:[%s10753_s16] sm:$0xf] }
 0x138   : > { %1501 = vmatpush.bf16.msra.mxu0 %v6899_v38  ;;  %v7506_v38 = vld [vmem:[%s10753_s16 + $0x2d0] sm:$0xf]  ;;  %v7148_v1 = vld [vmem:[%s10753_s16 + $0x18] sm:$0xf0]  ;;  %v1553_v6 = vld [vmem:[%s12993_s28 + $0x10] sm:$0xff] }
 0x139   : > { %1514 = vmatpush.bf16.msra.mxu1 %v7091_v39  ;;  %v6779_v39 = vor.u32 %v9264_v26, %v6778_v25  ;;  %v7410_v25 = vld [vmem:[%s10753_s16 + $0x210] sm:$0xf]  ;;  %v7340_v3 = vld [vmem:[%s10753_s16 + $0x198] sm:$0xf0] }
 0x13a   : > { %1527 = vmatpush.bf16.msra.mxu2 %v6903_v40  ;;  %v9448_v40 = vld [vmem:[%s10753_s16 + $0x2e4] sm:$0xf0]  ;;  %v9401_v17 = vld [vmem:[%s10753_s16 + $0x16c] sm:$0xf0] }
 0x13b   : > { %1540 = vmatpush.bf16.msra.mxu3 %v7095_v44  ;;  %v6783_v44 = vor.u32 %v9261_v31, %v6780_v33  ;;  %v7507_v49 = vor.u32 %v9448_v40, %v7506_v38  ;;  %v7412_v31 = vld [vmem:[%s10753_s16 + $0x228] sm:$0xf0]  ;;  %v9367_v40 = vld [vmem:[%s10753_s16 + $0x64] sm:$0xf] }
 0x13c   : > { %1502 = vmatpush.bf16.msra.mxu0 %v6875_v50  ;;  %v7319_v50 = vor.u32 %v9397_v41, %v7316_v42  ;;  %v7415_v38 = vor.u32 %v9421_v30, %v7412_v31  ;;  %v7196_v41 = vld [vmem:[%s10753_s16 + $0x78] sm:$0xf0]  ;;  %v9415_v42 = vld [vmem:[%s10753_s16 + $0x1e4] sm:$0xf] }
 0x13d   : > { %1515 = vmatpush.bf16.msra.mxu1 %v7067_v51  ;;  %v7290_v51 = vld [vmem:[%s10753_s16 + $0x120] sm:$0xf]  ;;  %v7199_v46 = vor.u32 %v9367_v40, %v7196_v41  ;;  %v7466_v40 = vld [vmem:[%s10753_s16 + $0x278] sm:$0xf]  ;;  %v9437_v41 = vld [vmem:[%s10753_s16 + $0x28c] sm:$0xf0] }
 0x13e   : > { %1528 = vmatpush.bf16.msra.mxu2 %v6879_v52  ;;  %v9394_v52 = vld [vmem:[%s10753_s16 + $0x134] sm:$0xf0] }
 0x13f   : > { %1541 = vmatpush.bf16.msra.mxu3 %v7071_v56  ;;  %v9391_v56 = vld [vmem:[%s10753_s16 + $0x124] sm:$0xf]  ;;  %v7291_v60 = vor.u32 %v9394_v52, %v7290_v51  ;;  %v9412_v51 = vld [vmem:[%s10753_s16 + $0x1c4] sm:$0xf0]  ;;  %v9361_v52 = vld [vmem:[%s10753_s16 + $0x34] sm:$0xf] }
 0x140   : > { %1503 = vmatpush.bf16.msra.mxu0 %v6851_v62  ;;  %v7295_v62 = vor.u32 %v9391_v56, %v7292_v57  ;;  %v7175_v58 = vor.u32 %v9361_v52, %v7172_v53  ;;  %v1557_v52 = vld [vmem:[%s12993_s28 + $0x30] sm:$0xff] }
 0x141   : > { %1516 = vmatpush.bf16.msra.mxu1 %v7043_v63  ;;  %v7266_v63 = vld [vmem:[%s10753_s16 + $0xf0] sm:$0xf] }
 0x142   : > { %1529 = vmatpush.bf16.msra.mxu2 %v6855_v0  ;;  %v9388_v0 = vld [vmem:[%s10753_s16 + $0x104] sm:$0xf0] }
 0x143   : > { %1542 = vmatpush.bf16.msra.mxu3 %v7047_v4  ;;  %v9385_v4 = vld [vmem:[%s10753_s16 + $0xf4] sm:$0xf]  ;;  %v7267_v10 = vor.u32 %v9388_v0, %v7266_v63  ;;  %v9406_v63 = vld [vmem:[%s10753_s16 + $0x194] sm:$0xf0]  ;;  %v9355_v0 = vld [vmem:[%s10753_s16 + $0x4] sm:$0xf] }
 0x144   : > { %1504 = vmatpush.bf16.msra.mxu0 %v6827_v12  ;;  %v7271_v12 = vor.u32 %v9385_v4, %v7268_v5  ;;  %v1551_v5 = vld [vmem:[%s12993_s28] sm:$0xff] }
 0x145   : > { %1517 = vmatpush.bf16.msra.mxu1 %v7019_v13  ;;  %v7242_v13 = vld [vmem:[%s10753_s16 + $0xc0] sm:$0xf] }
 0x146   : > { %1530 = vmatpush.bf16.msra.mxu2 %v6831_v14  ;;  %v9382_v14 = vld [vmem:[%s10753_s16 + $0xd4] sm:$0xf0] }
 0x147   : > { %1543 = vmatpush.bf16.msra.mxu3 %v7023_v18  ;;  %v7244_v18 = vld [vmem:[%s10753_s16 + $0xd8] sm:$0xf0]  ;;  %v7243_v20 = vor.u32 %v9382_v14, %v7242_v13  ;;  %v11078_v14 = vpack.c.bf16 %v1553_v6, %v1551_v5  ;;  %v9377_v5 = vld [vmem:[%s10753_s16 + $0xac] sm:$0xf0]  ;;  %v7418_v6 = vld [vmem:[%s10753_s16 + $0x218] sm:$0xf] }
 0x148   : > { %1505 = vmatpush.bf16.msra.mxu0 %v6803_v24  ;;  %v9376_v24 = vld [vmem:[%s10753_s16 + $0xa4] sm:$0xf0] }
 0x149   : > { %1518 = vmatpush.bf16.msra.mxu1 %v6995_v27  ;;  %v9424_v27 = vld [vmem:[%s10753_s16 + $0x224] sm:$0xf0] }
 0x14a   : > { %1531 = vmatpush.bf16.msra.mxu2 %v6807_v28  ;;  %v9373_v28 = vld [vmem:[%s10753_s16 + $0x94] sm:$0xf]  ;;  %v7411_v33 = vor.u32 %v9424_v27, %v7410_v25  ;;  %v7298_v25 = vld [vmem:[%s10753_s16 + $0x128] sm:$0xf]  ;;  %v9395_v27 = vld [vmem:[%s10753_s16 + $0x13c] sm:$0xf0] }
 0x14b   : > { %1544 = vmatpush.bf16.msra.mxu3 %v6999_v32  ;;  %v7219_v32 = vor.u32 %v9376_v24, %v7218_v23  ;;  %v7223_v34 = vor.u32 %v9373_v28, %v7220_v29  ;;  %v9446_v23 = vld [vmem:[%s10753_s16 + $0x2dc] sm:$0xf]  ;;  %v7516_v24 = vld [vmem:[%s10753_s16 + $0x2f0] sm:$0xf0]  ;;  %v7490_v28 = vld [vmem:[%s10753_s16 + $0x2a8] sm:$0xf]  ;;  %v7299_v30 = vor.u32 %v9395_v27, %v7298_v25 }
 0x14c   : > { %1506 = vmatpush.bf16.msra.mxu0 %v6779_v39  ;;  %v9418_v39 = vld [vmem:[%s10753_s16 + $0x1f4] sm:$0xf0]  ;;  %v9443_v29 = vld [vmem:[%s10753_s16 + $0x2bc] sm:$0xf0]  ;;  %v7204_v25 = vld [vmem:[%s10753_s16 + $0x80] sm:$0xf0] }
 0x14d   : > { %1519 = vmatpush.bf16.msra.mxu1 %v6971_v43  ;;  %v7388_v43 = vld [vmem:[%s10753_s16 + $0x1f8] sm:$0xf0]  ;;  %v7387_v45 = vor.u32 %v9418_v39, %v7386_v37  ;;  %v7491_v31 = vor.u32 %v9443_v29, %v7490_v28  ;;  %v7274_v37 = vld [vmem:[%s10753_s16 + $0xf8] sm:$0xf]  ;;  %v7396_v27 = vld [vmem:[%s10753_s16 + $0x200] sm:$0xf0] }
 0x14e   : > { %1532 = vmatpush.bf16.msra.mxu2 %v6783_v44  ;;  %v7195_v44 = vor.u32 %v9370_v36, %v7194_v35  ;;  %v7492_v36 = vld [vmem:[%s10753_s16 + $0x2c0] sm:$0xf0]  ;;  %v7178_v28 = vld [vmem:[%s10753_s16 + $0x38] sm:$0xf]  ;;  %v9365_v29 = vld [vmem:[%s10753_s16 + $0x4c] sm:$0xf0] }
 0x14f   : > { %1545 = vmatpush.bf16.msra.mxu3 %v6975_v47  ;;  %1507 = vmatmul.bf16.vlgmr.msra.gmra.mxu0 %v10885_v8  ;;  %v7170_v47 = vld [vmem:[%s10753_s16 + $0x30] sm:$0xf] }
 0x150   : > { %2163 = vmatpush.bf16.msrb.mxu0 %v7315_v48  ;;  %1520 = vmatmul.bf16.vlgmr.msra.gmra.mxu1 %v10887_v9  ;;  %v9364_v48 = vld [vmem:[%s10753_s16 + $0x44] sm:$0xf0] }
 0x151   : > { %2191 = vmatpush.bf16.msrb.mxu1 %v7507_v49  ;;  %1533 = vmatmul.bf16.vlgmr.msra.gmra.mxu2 %v10885_v8  ;;  %v9379_v8 = vld [vmem:[%s10753_s16 + $0xc4] sm:$0xf]  ;;  %v7362_v49 = vld [vmem:[%s10753_s16 + $0x1b0] sm:$0xf]  ;;  %v7171_v56 = vor.u32 %v9364_v48, %v7170_v47  ;;  %v1555_v47 = vld [vmem:[%s12993_s28 + $0x20] sm:$0xff]  ;;  %v7467_v48 = vor.u32 %v9437_v41, %v7466_v40 }
 0x152   : > { %2219 = vmatpush.bf16.msrb.mxu2 %v7319_v50  ;;  %1546 = vmatmul.bf16.vlgmr.msra.gmra.mxu3 %v10887_v9  ;;  %v7436_v9 = vld [vmem:[%s10753_s16 + $0x258] sm:$0xf0]  ;;  %v7247_v22 = vor.u32 %v9379_v8, %v7244_v18  ;;  %v7391_v50 = vor.u32 %v9415_v42, %v7388_v43  ;;  %v7363_v57 = vor.u32 %v9412_v51, %v7362_v49  ;;  %v7514_v8 = vld [vmem:[%s10753_s16 + $0x2d8] sm:$0xf]  ;;  %v9383_v51 = vld [vmem:[%s10753_s16 + $0xdc] sm:$0xf0] }
 0x153   : > { %2247 = vmatpush.bf16.msrb.mxu3 %v7511_v54  ;;  %v7439_v26 = vor.u32 %v9427_v19, %v7436_v9  ;;  %v9409_v54 = vld [vmem:[%s10753_s16 + $0x1b4] sm:$0xf]  ;;  %v9449_v19 = vld [vmem:[%s10753_s16 + $0x2ec] sm:$0xf0]  ;;  %v9398_v9 = vld [vmem:[%s10753_s16 + $0x15c] sm:$0xf] }
 0x154   : > { %2164 = vmatpush.bf16.msrb.mxu0 %v7291_v60  ;;  %v9358_v60 = vld [vmem:[%s10753_s16 + $0x14] sm:$0xf0]  ;;  %v9386_v42 = vld [vmem:[%s10753_s16 + $0xfc] sm:$0xf]  ;;  %v7372_v40 = vld [vmem:[%s10753_s16 + $0x1d0] sm:$0xf0] }
 0x155   : > { %2192 = vmatpush.bf16.msrb.mxu1 %v7483_v61  ;;  %v7338_v61 = vld [vmem:[%s10753_s16 + $0x180] sm:$0xf]  ;;  %v7147_v4 = vor.u32 %v9358_v60, %v7146_v59  ;;  %v9380_v59 = vld [vmem:[%s10753_s16 + $0xcc] sm:$0xf]  ;;  %v7252_v60 = vld [vmem:[%s10753_s16 + $0xe0] sm:$0xf0] }
 0x156   : > { %2220 = vmatpush.bf16.msrb.mxu2 %v7295_v62  ;;  %v7367_v62 = vor.u32 %v9409_v54, %v7364_v55  ;;  %v7339_v7 = vor.u32 %v9406_v63, %v7338_v61  ;;  %v7442_v54 = vld [vmem:[%s10753_s16 + $0x248] sm:$0xf]  ;;  %v9431_v55 = vld [vmem:[%s10753_s16 + $0x25c] sm:$0xf0]  ;;  %v11128_v61 = vpack.c.bf16 %v1557_v52, %v1555_v47  ;;  %v9428_v63 = vld [vmem:[%s10753_s16 + $0x24c] sm:$0xf] }
 0x157   : > { %2248 = vmatpush.bf16.msrb.mxu3 %v7487_v2  ;;  %v9403_v2 = vld [vmem:[%s10753_s16 + $0x184] sm:$0xf]  ;;  %v7154_v41 = vld [vmem:[%s10753_s16 + $0x8] sm:$0xf]  ;;  %v1562_v47 = vld [vmem:[%s12993_s28 + $0x58] sm:$0xff] }
 0x158   : > { %2165 = vmatpush.bf16.msrb.mxu0 %v7267_v10  ;;  %v7151_v10 = vor.u32 %v9355_v0, %v7148_v1  ;;  %v7343_v13 = vor.u32 %v9403_v2, %v7340_v3  ;;  %v7444_v0 = vld [vmem:[%s10753_s16 + $0x260] sm:$0xf0]  ;;  %v7255_v2 = vor.u32 %v9380_v59, %v7252_v60  ;;  %v11192_v60 = vld [vmem:[%s623_s26] sm:$0x3f] }
 0x159   : > { %2193 = vmatpush.bf16.msrb.mxu1 %v7459_v11  ;;  %v1552_v11 = vld [vmem:[%s12993_s28 + $0x8] sm:$0xff]  ;;  %v7447_v3 = vor.u32 %v9428_v63, %v7444_v0  ;;  %v7156_v52 = vld [vmem:[%s10753_s16 + $0x20] sm:$0xf0]  ;;  %v903_v63 = vperm.slane %v11192_v60, 0 }
 0x15a   : > { %2221 = vmatpush.bf16.msrb.mxu2 %v7271_v12  ;;  %v1554_v12 = vld [vmem:[%s12993_s28 + $0x18] sm:$0xff]  ;;  %v1564_v0 = vld [vmem:[%s12993_s28 + $0x68] sm:$0xff] }
 0x15b   : > { %2249 = vmatpush.bf16.msrb.mxu3 %v7463_v16  ;;  %v11080_v15 = vpack.c.bf16 %v1554_v12, %v1552_v11  ;;  %v7322_v16 = vld [vmem:[%s10753_s16 + $0x158] sm:$0xf]  ;;  %v9374_v11 = vld [vmem:[%s10753_s16 + $0x9c] sm:$0xf]  ;;  %v7228_v12 = vld [vmem:[%s10753_s16 + $0xb0] sm:$0xf0] }
 0x15c   : > { %2166 = vmatpush.bf16.msrb.mxu0 %v7243_v20  ;;  %v7323_v18 = vor.u32 %v9401_v17, %v7322_v16  ;;  %v7324_v20 = vld [vmem:[%s10753_s16 + $0x170] sm:$0xf0]  ;;  %v7231_v16 = vor.u32 %v9374_v11, %v7228_v12  ;;  %v9422_v17 = vld [vmem:[%s10753_s16 + $0x21c] sm:$0xf] }
 0x15d   : > { %2194 = vmatpush.bf16.msrb.mxu1 %v7435_v21  ;;  %v7515_v21 = vor.u32 %v9449_v19, %v7514_v8  ;;  %v7420_v8 = vld [vmem:[%s10753_s16 + $0x230] sm:$0xf0] }
 0x15e   : > { %2222 = vmatpush.bf16.msrb.mxu2 %v7247_v22  ;;  %v7327_v22 = vor.u32 %v9398_v9, %v7324_v20  ;;  %v7423_v19 = vor.u32 %v9422_v17, %v7420_v8  ;;  %v9371_v9 = vld [vmem:[%s10753_s16 + $0x7c] sm:$0xf0]  ;;  %v7394_v20 = vld [vmem:[%s10753_s16 + $0x1e8] sm:$0xf] }
 0x15f   : > { %2250 = vmatpush.bf16.msrb.mxu3 %v7439_v26  ;;  %v7519_v26 = vor.u32 %v9446_v23, %v7516_v24  ;;  %v9368_v24 = vld [vmem:[%s10753_s16 + $0x6c] sm:$0xf] }
 0x160   : > { %2167 = vmatpush.bf16.msrb.mxu0 %v7219_v32  ;;  %v9392_v32 = vld [vmem:[%s10753_s16 + $0x12c] sm:$0xf] }
 0x161   : > { %2195 = vmatpush.bf16.msrb.mxu1 %v7411_v33  ;;  %v7300_v33 = vld [vmem:[%s10753_s16 + $0x140] sm:$0xf0] }
 0x162   : > { %2223 = vmatpush.bf16.msrb.mxu2 %v7223_v34  ;;  %v9440_v34 = vld [vmem:[%s10753_s16 + $0x2ac] sm:$0xf]  ;;  %v7303_v35 = vor.u32 %v9392_v32, %v7300_v33  ;;  %v9413_v32 = vld [vmem:[%s10753_s16 + $0x1cc] sm:$0xf0]  ;;  %v1559_v33 = vld [vmem:[%s12993_s28 + $0x40] sm:$0xff] }
 0x163   : > { %2251 = vmatpush.bf16.msrb.mxu3 %v7415_v38  ;;  %v9389_v38 = vld [vmem:[%s10753_s16 + $0x10c] sm:$0xf0]  ;;  %v7495_v39 = vor.u32 %v9440_v34, %v7492_v36  ;;  %v9362_v36 = vld [vmem:[%s10753_s16 + $0x3c] sm:$0xf] }
 0x164   : > { %2168 = vmatpush.bf16.msrb.mxu0 %v7195_v44  ;;  %v7275_v43 = vor.u32 %v9389_v38, %v7274_v37  ;;  %v7276_v44 = vld [vmem:[%s10753_s16 + $0x110] sm:$0xf0]  ;;  %v9410_v38 = vld [vmem:[%s10753_s16 + $0x1bc] sm:$0xf] }
 0x165   : > { %2196 = vmatpush.bf16.msrb.mxu1 %v7387_v45  ;;  %v9434_v45 = vld [vmem:[%s10753_s16 + $0x27c] sm:$0xf]  ;;  %v7279_v49 = vor.u32 %v9386_v42, %v7276_v44  ;;  %v7180_v37 = vld [vmem:[%s10753_s16 + $0x50] sm:$0xf0]  ;;  %v9359_v42 = vld [vmem:[%s10753_s16 + $0x1c] sm:$0xf0] }
 0x166   : > { %2224 = vmatpush.bf16.msrb.mxu2 %v7199_v46  ;;  %v7468_v46 = vld [vmem:[%s10753_s16 + $0x290] sm:$0xf0]  ;;  %v7346_v44 = vld [vmem:[%s10753_s16 + $0x188] sm:$0xf] }
 0x167   : > { %2252 = vmatpush.bf16.msrb.mxu3 %v7391_v50  ;;  %v7250_v50 = vld [vmem:[%s10753_s16 + $0xc8] sm:$0xf]  ;;  %v7471_v53 = vor.u32 %v9434_v45, %v7468_v46  ;;  %v9407_v45 = vld [vmem:[%s10753_s16 + $0x19c] sm:$0xf0] }
 0x168   : > { %2169 = vmatpush.bf16.msrb.mxu0 %v7171_v56  ;;  %v1556_v56 = vld [vmem:[%s12993_s28 + $0x28] sm:$0xff] }
 0x169   : > { %2197 = vmatpush.bf16.msrb.mxu1 %v7363_v57  ;;  %v1558_v57 = vld [vmem:[%s12993_s28 + $0x38] sm:$0xff]  ;;  %v1560_v46 = vld [vmem:[%s12993_s28 + $0x48] sm:$0xff] }
 0x16a   : > { %2225 = vmatpush.bf16.msrb.mxu2 %v7175_v58  ;;  %v7251_v58 = vor.u32 %v9383_v51, %v7250_v50  ;;  %v11132_v1 = vpack.c.bf16 %v1558_v57, %v1556_v56  ;;  %v7155_v50 = vor.u32 %v9359_v42, %v7154_v41  ;;  %v9356_v51 = vld [vmem:[%s10753_s16 + $0xc] sm:$0xf]  ;;  %v7348_v56 = vld [vmem:[%s10753_s16 + $0x1a0] sm:$0xf0]  ;;  %v11184_v57 = vpack.c.bf16 %v1562_v47, %v1560_v46  ;;  %v9393_v41 = vld [vmem:[%s10753_s16 + $0x134] sm:$0xf] }
 0x16b   : > { %2253 = vmatpush.bf16.msrb.mxu3 %v7367_v62  ;;  %v7443_v62 = vor.u32 %v9431_v55, %v7442_v54  ;;  %v7347_v54 = vor.u32 %v9407_v45, %v7346_v44  ;;  %v9404_v55 = vld [vmem:[%s10753_s16 + $0x18c] sm:$0xf]  ;;  %v906_v44 = vperm.slane %v11192_v60, 3  ;;  %v7282_v47 = vld [vmem:[%s10753_s16 + $0x100] sm:$0xf] }
 0x16c   : > { %2170 = vmatpush.bf16.msrb.mxu0 %v7147_v4  ;;  %v7226_v4 = vld [vmem:[%s10753_s16 + $0x98] sm:$0xf]  ;;  %v7351_v59 = vor.u32 %v9404_v55, %v7348_v56  ;;  %v7308_v42 = vld [vmem:[%s10753_s16 + $0x148] sm:$0xf0]  ;;  %v9387_v55 = vld [vmem:[%s10753_s16 + $0x104] sm:$0xf] }
 0x16d   : > { %2198 = vmatpush.bf16.msrb.mxu1 %v7339_v7  ;;  %v7227_v7 = vor.u32 %v9377_v5, %v7226_v4  ;;  %v904_v5 = vperm.slane %v11192_v60, 1  ;;  %v7311_v45 = vor.u32 %v9393_v41, %v7308_v42  ;;  %v7500_v46 = vld [vmem:[%s10753_s16 + $0x2c8] sm:$0xf0]  ;;  %v7284_v56 = vld [vmem:[%s10753_s16 + $0x118] sm:$0xf0] }
 0x16e   : > { %2226 = vmatpush.bf16.msrb.mxu2 %v7151_v10  ;;  %v9425_v10 = vld [vmem:[%s10753_s16 + $0x22c] sm:$0xf0]  ;;  %v9372_v41 = vld [vmem:[%s10753_s16 + $0x84] sm:$0xf0] }
 0x16f   : > { %2254 = vmatpush.bf16.msrb.mxu3 %v7343_v13  ;;  %2171 = vmatmul.bf16.vlgmr.msrb.gmra.mxu0 %v11078_v14  ;;  %v7419_v13 = vor.u32 %v9425_v10, %v7418_v6  ;;  %v11204_v6 = vpack.c.bf16 %v1564_v0, %v1564_v0  ;;  %v7476_v0 = vld [vmem:[%s10753_s16 + $0x298] sm:$0xf0]  ;;  %v7402_v42 = vld [vmem:[%s10753_s16 + $0x1f0] sm:$0xf] }
 0x170   : > { %2199 = vmatmul.bf16.vlgmr.msrb.gmra.mxu1 %v11080_v15  ;;  %2275 = vmatpush.bf16.msra.mxu0 %v7323_v18  ;;  %v7202_v18 = vld [vmem:[%s10753_s16 + $0x68] sm:$0xf] }
 0x171   : > { %2227 = vmatmul.bf16.vlgmr.msrb.gmra.mxu2 %v11078_v14  ;;  %2303 = vmatpush.bf16.msra.mxu1 %v7515_v21  ;;  %v9419_v21 = vld [vmem:[%s10753_s16 + $0x1fc] sm:$0xf0] }
 0x172   : > { %2255 = vmatmul.bf16.vlgmr.msrb.gmra.mxu3 %v11080_v15  ;;  %2331 = vmatpush.bf16.msra.mxu2 %v7327_v22  ;;  %v7203_v22 = vor.u32 %v9371_v9, %v7202_v18  ;;  %v7395_v23 = vor.u32 %v9419_v21, %v7394_v20  ;;  %v905_v9 = vperm.slane %v11192_v60, 2  ;;  %v7330_v20 = vld [vmem:[%s10753_s16 + $0x160] sm:$0xf]  ;;  %v9402_v21 = vld [vmem:[%s10753_s16 + $0x174] sm:$0xf0] }
 0x173   : > { %2359 = vmatpush.bf16.msra.mxu3 %v7519_v26  ;;  %v9416_v26 = vld [vmem:[%s10753_s16 + $0x1ec] sm:$0xf] }
 0x174   : > { %2276 = vmatpush.bf16.msra.mxu0 %v7299_v30  ;;  %v7207_v30 = vor.u32 %v9368_v24, %v7204_v25  ;;  %v7399_v34 = vor.u32 %v9416_v26, %v7396_v27  ;;  %v9450_v24 = vld [vmem:[%s10753_s16 + $0x2f4] sm:$0xf0]  ;;  %v9399_v25 = vld [vmem:[%s10753_s16 + $0x164] sm:$0xf]  ;;  %v7332_v26 = vld [vmem:[%s10753_s16 + $0x178] sm:$0xf0] }
 0x175   : > { %2304 = vmatpush.bf16.msra.mxu1 %v7491_v31  ;;  %v7370_v31 = vld [vmem:[%s10753_s16 + $0x1b8] sm:$0xf] }
 0x176   : > { %2332 = vmatpush.bf16.msra.mxu2 %v7303_v35  ;;  %v7179_v35 = vor.u32 %v9365_v29, %v7178_v28  ;;  %v7335_v28 = vor.u32 %v9399_v25, %v7332_v26  ;;  %v9447_v29 = vld [vmem:[%s10753_s16 + $0x2e4] sm:$0xf] }
 0x177   : > { %2360 = vmatpush.bf16.msra.mxu3 %v7495_v39  ;;  %v7371_v39 = vor.u32 %v9413_v32, %v7370_v31  ;;  %v7306_v31 = vld [vmem:[%s10753_s16 + $0x130] sm:$0xf] }
 0x178   : > { %2277 = vmatpush.bf16.msra.mxu0 %v7275_v43  ;;  %v1561_v43 = vld [vmem:[%s12993_s28 + $0x50] sm:$0xff] }
 0x179   : > { %2305 = vmatpush.bf16.msra.mxu1 %v7467_v48  ;;  %v7183_v48 = vor.u32 %v9362_v36, %v7180_v37  ;;  %v9444_v36 = vld [vmem:[%s10753_s16 + $0x2c4] sm:$0xf0] }
 0x17a   : > { %2333 = vmatpush.bf16.msra.mxu2 %v7279_v49  ;;  %v7375_v49 = vor.u32 %v9410_v38, %v7372_v40 }
 0x17b   : > { %2361 = vmatpush.bf16.msra.mxu3 %v7471_v53  ;;  %v11180_v53 = vpack.c.bf16 %v1561_v43, %v1559_v33  ;;  %v9441_v43 = vld [vmem:[%s10753_s16 + $0x2b4] sm:$0xf] }
 0x17c   : > { %2278 = vmatpush.bf16.msra.mxu0 %v7251_v58  ;;  %v7159_v58 = vor.u32 %v9356_v51, %v7156_v52  ;;  %v7474_v51 = vld [vmem:[%s10753_s16 + $0x280] sm:$0xf]  ;;  %v9438_v52 = vld [vmem:[%s10753_s16 + $0x294] sm:$0xf0] }
 0x17d   : > { %2306 = vmatpush.bf16.msra.mxu1 %v7443_v62  ;;  %v1563_v62 = vld [vmem:[%s12993_s28 + $0x60] sm:$0xff] }
 0x17e   : > { %2334 = vmatpush.bf16.msra.mxu2 %v7255_v2 }
 0x17f   : > { %2176 = vmatmul.bf16.gmra.mxu0 %v11128_v61  ;;  %2362 = vmatpush.bf16.msra.mxu3 %v7447_v3  ;;  %v11201_v3 = vpack.c.bf16 %v1563_v62, %v1563_v62  ;;  %v7475_v62 = vor.u32 %v9438_v52, %v7474_v51  ;;  %v7186_v51 = vld [vmem:[%s10753_s16 + $0x40] sm:$0xf]  ;;  %v9366_v52 = vld [vmem:[%s10753_s16 + $0x54] sm:$0xf0] }
 0x180   : > { %2204 = vmatmul.bf16.gmra.mxu1 %v11132_v1  ;;  %2279 = vmatpush.bf16.msra.mxu0 %v7227_v7 }
 0x181   : > { %2232 = vmatmul.bf16.gmra.mxu2 %v11128_v61  ;;  %2307 = vmatpush.bf16.msra.mxu1 %v7419_v13 }
 0x182   : > { %2260 = vmatmul.bf16.gmra.mxu3 %v11132_v1  ;;  %2335 = vmatpush.bf16.msra.mxu2 %v7231_v16 }
 0x183   : > { %2363 = vmatpush.bf16.msra.mxu3 %v7423_v19 }
 0x184   : > { %2280 = vmatpush.bf16.msra.mxu0 %v7203_v22  ;;  %v7522_v22 = vld [vmem:[%s10753_s16 + $0x2e0] sm:$0xf] }
 0x185   : > { %2308 = vmatpush.bf16.msra.mxu1 %v7395_v23  ;;  %v7331_v23 = vor.u32 %v9402_v21, %v7330_v20  ;;  %v7523_v27 = vor.u32 %v9450_v24, %v7522_v22  ;;  %v9429_v22 = vld [vmem:[%s10753_s16 + $0x254] sm:$0xf] }
 0x186   : > { %2336 = vmatpush.bf16.msra.mxu2 %v7207_v30  ;;  %v7524_v30 = vld [vmem:[%s10753_s16 + $0x2f8] sm:$0xf0] }
 0x187   : > { %2364 = vmatpush.bf16.msra.mxu3 %v7399_v34  ;;  %v7527_v33 = vor.u32 %v9447_v29, %v7524_v30  ;;  %v9396_v34 = vld [vmem:[%s10753_s16 + $0x144] sm:$0xf0]  ;;  %v7426_v29 = vld [vmem:[%s10753_s16 + $0x220] sm:$0xf] }
 0x188   : > { %2281 = vmatpush.bf16.msra.mxu0 %v7179_v35  ;;  %v7498_v35 = vld [vmem:[%s10753_s16 + $0x2b0] sm:$0xf] }
 0x189   : > { %2309 = vmatpush.bf16.msra.mxu1 %v7371_v39  ;;  %v7307_v39 = vor.u32 %v9396_v34, %v7306_v31  ;;  %v7499_v40 = vor.u32 %v9444_v36, %v7498_v35  ;;  %v7236_v34 = vld [vmem:[%s10753_s16 + $0xb8] sm:$0xf0] }
 0x18a   : > { %2337 = vmatpush.bf16.msra.mxu2 %v7183_v48 }
 0x18b   : > { %2365 = vmatpush.bf16.msra.mxu3 %v7375_v49  ;;  %v7503_v49 = vor.u32 %v9441_v43, %v7500_v46  ;;  %v9420_v43 = vld [vmem:[%s10753_s16 + $0x204] sm:$0xf0]  ;;  %v9369_v46 = vld [vmem:[%s10753_s16 + $0x74] sm:$0xf] }
 0x18c   : > { %2282 = vmatpush.bf16.msra.mxu0 %v7155_v50  ;;  %v1404_v4 = vpop.f32.mrf.mxu0  ;;  %v9390_v50 = vld [vmem:[%s10753_s16 + $0x114] sm:$0xf0] }
 0x18d   : > { %2310 = vmatpush.bf16.msra.mxu1 %v7347_v54  ;;  %v1417_v2 = vpop.f32.mrf.mxu1  ;;  %v1405_v7 = vadd.f32 %v1404_v4, %v903_v63  ;;  %v7283_v54 = vor.u32 %v9390_v50, %v7282_v47  ;;  %v7287_v63 = vor.u32 %v9387_v55, %v7284_v56  ;;  %v7212_v47 = vld [vmem:[%s10753_s16 + $0x88] sm:$0xf0]  ;;  %v7378_v55 = vld [vmem:[%s10753_s16 + $0x1c0] sm:$0xf]  ;;  %v9414_v56 = vld [vmem:[%s10753_s16 + $0x1d4] sm:$0xf0] }
 0x18e   : > { %2338 = vmatpush.bf16.msra.mxu2 %v7159_v58  ;;  %v9435_v58 = vld [vmem:[%s10753_s16 + $0x284] sm:$0xf]  ;;  %v7404_v50 = vld [vmem:[%s10753_s16 + $0x208] sm:$0xf0] }
 0x18f   : > { %2181 = vmatmul.bf16.gmra.mxu0 %v11180_v53  ;;  %2366 = vmatpush.bf16.msra.mxu3 %v7351_v59  ;;  %v11206_v10 = vadd.f32 %v1417_v2, %v1405_v7  ;;  %v7258_v7 = vld [vmem:[%s10753_s16 + $0xd0] sm:$0xf] }
 0x190   : > { %2209 = vmatmul.bf16.gmra.mxu1 %v11184_v57  ;;  %2387 = vmatpush.bf16.msrb.mxu0 %v7331_v23  ;;  %v7452_v23 = vld [vmem:[%s10753_s16 + $0x268] sm:$0xf0] }
 0x191   : > { %2237 = vmatmul.bf16.gmra.mxu2 %v11180_v53  ;;  %2415 = vmatpush.bf16.msrb.mxu1 %v7523_v27  ;;  %v7455_v25 = vor.u32 %v9429_v22, %v7452_v23  ;;  %v7234_v27 = vld [vmem:[%s10753_s16 + $0xa0] sm:$0xf]  ;;  %v9405_v23 = vld [vmem:[%s10753_s16 + $0x194] sm:$0xf] }
 0x192   : > { %2265 = vmatmul.bf16.gmra.mxu3 %v11184_v57  ;;  %2443 = vmatpush.bf16.msrb.mxu2 %v7335_v28  ;;  %v9378_v28 = vld [vmem:[%s10753_s16 + $0xb4] sm:$0xf0] }
 0x193   : > { %2471 = vmatpush.bf16.msrb.mxu3 %v7527_v33  ;;  %v7235_v31 = vor.u32 %v9378_v28, %v7234_v27  ;;  %v9375_v33 = vld [vmem:[%s10753_s16 + $0xa4] sm:$0xf] }
 0x194   : > { %v1430_v11 = vpop.f32.mrf.mxu2  ;;  %v1406_v8 = vpop.f32.mrf.mxu0  ;;  %2388 = vmatpush.bf16.msrb.mxu0 %v7307_v39  ;;  %v7239_v36 = vor.u32 %v9375_v33, %v7236_v34  ;;  %v7210_v39 = vld [vmem:[%s10753_s16 + $0x70] sm:$0xf] }
 0x195   : > { %v1443_v12 = vpop.f32.mrf.mxu3  ;;  %v1431_v13 = vadd.f32 %v1430_v11, %v904_v5  ;;  %v1419_v17 = vpop.f32.mrf.mxu1  ;;  %2416 = vmatpush.bf16.msrb.mxu1 %v7499_v40  ;;  %v7479_v5 = vor.u32 %v9435_v58, %v7476_v0  ;;  %v9384_v11 = vld [vmem:[%s10753_s16 + $0xe4] sm:$0xf0]  ;;  %v7379_v0 = vor.u32 %v9414_v56, %v7378_v55  ;;  %v9541_v55 = vld [vmem:[%s10760_s27 + $0x2d4] sm:$0xf]  ;;  %v7892_v56 = vld [vmem:[%s10760_s27 + $0x2e8] sm:$0xf0] }
 0x196   : > { %2444 = vmatpush.bf16.msrb.mxu2 %v7311_v45  ;;  %v7403_v45 = vor.u32 %v9420_v43, %v7402_v42  ;;  %v7698_v43 = vld [vmem:[%s10760_s27 + $0x150] sm:$0xf] }
 0x197   : > { %v11212_v16 = vadd.f32 %v1443_v12, %v1431_v13  ;;  %2472 = vmatpush.bf16.msrb.mxu3 %v7503_v49  ;;  %v7450_v12 = vld [vmem:[%s10753_s16 + $0x250] sm:$0xf]  ;;  %v9432_v13 = vld [vmem:[%s10753_s16 + $0x264] sm:$0xf0]  ;;  %v9417_v49 = vld [vmem:[%s10753_s16 + $0x1f4] sm:$0xf] }
 0x198   : > { %2389 = vmatpush.bf16.msrb.mxu0 %v7283_v54  ;;  %v7451_v21 = vor.u32 %v9432_v13, %v7450_v12  ;;  %v7215_v54 = vor.u32 %v9369_v46, %v7212_v47  ;;  %v7407_v58 = vor.u32 %v9417_v49, %v7404_v50  ;;  %v9360_v12 = vld [vmem:[%s10753_s16 + $0x24] sm:$0xf0]  ;;  %v7354_v13 = vld [vmem:[%s10753_s16 + $0x190] sm:$0xf]  ;;  %v9544_v49 = vld [vmem:[%s10760_s27 + $0x2e4] sm:$0xf0] }
 0x199   : > { %2417 = vmatpush.bf16.msrb.mxu1 %v7475_v62  ;;  %v9363_v62 = vld [vmem:[%s10753_s16 + $0x44] sm:$0xf]  ;;  %v9493_v50 = vld [vmem:[%s10760_s27 + $0x154] sm:$0xf] }
 0x19a   : > { %2445 = vmatpush.bf16.msrb.mxu2 %v7287_v63  ;;  %v7188_v63 = vld [vmem:[%s10753_s16 + $0x58] sm:$0xf0] }
 0x19b   : > { %2473 = vmatpush.bf16.msrb.mxu3 %v7479_v5  ;;  %v7191_v5 = vor.u32 %v9363_v62, %v7188_v63  ;;  %v7674_v62 = vld [vmem:[%s10760_s27 + $0x120] sm:$0xf]  ;;  %v9490_v63 = vld [vmem:[%s10760_s27 + $0x134] sm:$0xf0] }
 0x19c   : > { %v1432_v18 = vpop.f32.mrf.mxu2 }
 0x19d   : > { %v1445_v19 = vpop.f32.mrf.mxu3  ;;  %v7259_v18 = vor.u32 %v9384_v11, %v7258_v7  ;;  %2418 = vmatpush.bf16.msrb.mxu1 %v7451_v21  ;;  %v7162_v11 = vld [vmem:[%s10753_s16 + $0x10] sm:$0xf] }
 0x19e   : > { %v9381_v19 = vld [vmem:[%s10753_s16 + $0xd4] sm:$0xf] }
 0x19f   : > { %2186 = vmatmul.bf16.gmra.mxu0 %v11201_v3  ;;  %2474 = vmatpush.bf16.msrb.mxu3 %v7455_v25 }
 0x1a0   : > { %2214 = vmatmul.bf16.gmra.mxu1 %v11204_v6  ;;  %2390 = vmatpush.bf16.msrb.mxu0 %v7259_v18  ;;  %v9408_v18 = vld [vmem:[%s10753_s16 + $0x1a4] sm:$0xf0] }
 0x1a1   : > { %2242 = vmatmul.bf16.gmra.mxu2 %v11201_v3  ;;  %v7355_v21 = vor.u32 %v9408_v18, %v7354_v13  ;;  %v9487_v13 = vld [vmem:[%s10760_s27 + $0x124] sm:$0xf] }
 0x1a2   : > { %2270 = vmatmul.bf16.gmra.mxu3 %v11204_v6 }
 0x1a4   : > { %2391 = vmatpush.bf16.msrb.mxu0 %v7235_v31 }
 0x1ac   : > { %v1456_v32 = vpop.f32.mrf.mxu0 }
 0x1ad   : > { %v1457_v37 = vadd.f32 %v1456_v32, %v905_v9  ;;  %v1469_v38 = vpop.f32.mrf.mxu1  ;;  %v7260_v9 = vld [vmem:[%s10753_s16 + $0xe8] sm:$0xf0]  ;;  %v9426_v32 = vld [vmem:[%s10753_s16 + $0x234] sm:$0xf0] }
 0x1ae   : > { %v7263_v24 = vor.u32 %v9381_v19, %v7260_v9  ;;  %v7427_v35 = vor.u32 %v9426_v32, %v7426_v29  ;;  %v9357_v19 = vld [vmem:[%s10753_s16 + $0x14] sm:$0xf]  ;;  %v7164_v9 = vld [vmem:[%s10753_s16 + $0x28] sm:$0xf0]  ;;  %v908_v29 = vperm.slane %v11192_v60, 5 }
 0x1af   : > { %2283 = vmatmul.bf16.vlgmr.msra.gmra.mxu0 %v11078_v14  ;;  %v11237_v48 = vadd.f32 %v1469_v38, %v1457_v37  ;;  %v9423_v37 = vld [vmem:[%s10753_s16 + $0x224] sm:$0xf]  ;;  %v7428_v38 = vld [vmem:[%s10753_s16 + $0x238] sm:$0xf0]  ;;  %v7167_v22 = vor.u32 %v9357_v19, %v7164_v9 }
 0x1b0   : > { %2311 = vmatmul.bf16.vlgmr.msra.gmra.mxu1 %v11080_v15  ;;  %2446 = vmatpush.bf16.msrb.mxu2 %v7263_v24  ;;  %v7431_v40 = vor.u32 %v9423_v37, %v7428_v38  ;;  %v7356_v24 = vld [vmem:[%s10753_s16 + $0x1a8] sm:$0xf0] }
 0x1b1   : > { %2339 = vmatmul.bf16.vlgmr.msra.gmra.mxu2 %v11078_v14  ;;  %2419 = vmatpush.bf16.msrb.mxu1 %v7427_v35  ;;  %v7359_v25 = vor.u32 %v9405_v23, %v7356_v24 }
 0x1b2   : > { %2367 = vmatmul.bf16.vlgmr.msra.gmra.mxu3 %v11080_v15 }
 0x1b3   : > { %2475 = vmatpush.bf16.msrb.mxu3 %v7431_v40 }
 0x1b4   : > { %v1482_v59 = vpop.f32.mrf.mxu2  ;;  %v1458_v8 = vpop.f32.mrf.mxu0  ;;  %2447 = vmatpush.bf16.msrb.mxu2 %v7239_v36 }
 0x1b5   : > { %v1483_v2 = vadd.f32 %v1482_v59, %v906_v44  ;;  %v1495_v4 = vpop.f32.mrf.mxu3  ;;  %v1471_v20 = vpop.f32.mrf.mxu1  ;;  %v7211_v44 = vor.u32 %v9372_v41, %v7210_v39  ;;  %v7187_v59 = vor.u32 %v9366_v52, %v7186_v51  ;;  %2420 = vmatpush.bf16.msrb.mxu1 %v7403_v45  ;;  %v7163_v8 = vor.u32 %v9360_v12, %v7162_v11  ;;  %v7890_v45 = vld [vmem:[%s10760_s27 + $0x2d0] sm:$0xf]  ;;  %v7700_v51 = vld [vmem:[%s10760_s27 + $0x168] sm:$0xf0]  ;;  %v9538_v12 = vld [vmem:[%s10760_s27 + $0x2b4] sm:$0xf0] }
 0x1b6   : > { %v907_v20 = vperm.slane %v11192_v60, 4  ;;  %v11308_v60 = vld [vmem:[%s643_s3] sm:$0x3f]  ;;  %v7891_v52 = vor.u32 %v9544_v49, %v7890_v45  ;;  %v7675_v11 = vor.u32 %v9490_v63, %v7674_v62  ;;  %v7818_v49 = vld [vmem:[%s10760_s27 + $0x240] sm:$0xf]  ;;  %s13004_s3 = sld [smem:[#allocation38_spill]] }
 0x1b7   : > { %v11250_v17 = vadd.f32 %v1495_v4, %v1483_v2  ;;  %2392 = vmatpush.bf16.msrb.mxu0 %v7211_v44  ;;  %v9411_v2 = vld [vmem:[%s10753_s16 + $0x1c4] sm:$0xf]  ;;  %v7380_v4 = vld [vmem:[%s10753_s16 + $0x1d8] sm:$0xf0]  ;;  %2476 = vmatpush.bf16.msrb.mxu3 %v7407_v58  ;;  %v11311_v39 = vperm.slane %v11308_v60, 0  ;;  %v11314_v42 = vperm.slane %v11308_v60, 1  ;;  %v7895_v58 = vor.u32 %v9541_v55, %v7892_v56 }
 0x1b8   : > { %2448 = vmatpush.bf16.msrb.mxu2 %v7215_v54  ;;  %v7383_v7 = vor.u32 %v9411_v2, %v7380_v4  ;;  %v9496_v44 = vld [vmem:[%s10760_s27 + $0x164] sm:$0xf0]  ;;  %v7703_v54 = vor.u32 %v9493_v50, %v7700_v51  ;;  %v9526_v55 = vld [vmem:[%s10760_s27 + $0x254] sm:$0xf0]  ;;  %v9475_v56 = vld [vmem:[%s10760_s27 + $0xc4] sm:$0xf] }
 0x1b9   : > { %2421 = vmatpush.bf16.msrb.mxu1 %v7379_v0  ;;  %v7699_v47 = vor.u32 %v9496_v44, %v7698_v43  ;;  %v7866_v0 = vld [vmem:[%s10760_s27 + $0x2a0] sm:$0xf]  ;;  %v7819_v62 = vor.u32 %v9526_v55, %v7818_v49  ;;  %v9511_v49 = vld [vmem:[%s10760_s27 + $0x1e4] sm:$0xf]  ;;  %v7554_v55 = vld [vmem:[%s10760_s27 + $0x30] sm:$0xf] }
 0x1ba   : > { %v7867_v19 = vor.u32 %v9538_v12, %v7866_v0  ;;  %v9523_v0 = vld [vmem:[%s10760_s27 + $0x244] sm:$0xf]  ;;  %v9472_v12 = vld [vmem:[%s10760_s27 + $0xa4] sm:$0xf0] }
 0x1bb   : > { %2393 = vmatpush.bf16.msrb.mxu0 %v7187_v59  ;;  %2477 = vmatpush.bf16.msrb.mxu3 %v7383_v7 }
 0x1bc   : > { %v1484_v26 = vpop.f32.mrf.mxu2  ;;  %2449 = vmatpush.bf16.msrb.mxu2 %v7191_v5 }
 0x1bd   : > { %v1497_v30 = vpop.f32.mrf.mxu3  ;;  %2422 = vmatpush.bf16.msrb.mxu1 %v7355_v21  ;;  %v7868_v21 = vld [vmem:[%s10760_s27 + $0x2b8] sm:$0xf0] }
 0x1bf   : > { %2288 = vmatmul.bf16.gmra.mxu0 %v11128_v61  ;;  %2478 = vmatpush.bf16.msrb.mxu3 %v7359_v25  ;;  %v7650_v25 = vld [vmem:[%s10760_s27 + $0xf0] sm:$0xf] }
 0x1c0   : > { %2316 = vmatmul.bf16.gmra.mxu1 %v11132_v1  ;;  %2394 = vmatpush.bf16.msrb.mxu0 %v7163_v8  ;;  %v7676_v8 = vld [vmem:[%s10760_s27 + $0x138] sm:$0xf0] }
 0x1c1   : > { %2344 = vmatmul.bf16.gmra.mxu2 %v11128_v61  ;;  %3117 = vmatpush.bf16.msra.mxu1 %v7891_v52  ;;  %v7679_v9 = vor.u32 %v9487_v13, %v7676_v8  ;;  %v7794_v13 = vld [vmem:[%s10760_s27 + $0x210] sm:$0xf] }
 0x1c2   : > { %2372 = vmatmul.bf16.gmra.mxu3 %v11132_v1  ;;  %2450 = vmatpush.bf16.msrb.mxu2 %v7167_v22 }
 0x1c3   : > { %3173 = vmatpush.bf16.msra.mxu3 %v7895_v58  ;;  %v7628_v58 = vld [vmem:[%s10760_s27 + $0xd8] sm:$0xf0] }
 0x1c4   : > { %3089 = vmatpush.bf16.msra.mxu0 %v7699_v47  ;;  %v9478_v47 = vld [vmem:[%s10760_s27 + $0xd4] sm:$0xf0]  ;;  %v7631_v63 = vor.u32 %v9475_v56, %v7628_v58  ;;  %v9460_v56 = vld [vmem:[%s10760_s27 + $0x44] sm:$0xf0]  ;;  %v7746_v58 = vld [vmem:[%s10760_s27 + $0x1b0] sm:$0xf] }
 0x1c5   : > { %3118 = vmatpush.bf16.msra.mxu1 %v7867_v19 }
 0x1c6   : > { %3145 = vmatpush.bf16.msra.mxu2 %v7703_v54 }
 0x1c8   : > { %3090 = vmatpush.bf16.msra.mxu0 %v7675_v11  ;;  %v7602_v11 = vld [vmem:[%s10760_s27 + $0x90] sm:$0xf] }
 0x1c9   : > { %v7603_v19 = vor.u32 %v9472_v12, %v7602_v11  ;;  %v9505_v11 = vld [vmem:[%s10760_s27 + $0x1b4] sm:$0xf]  ;;  %v7748_v12 = vld [vmem:[%s10760_s27 + $0x1c8] sm:$0xf0] }
 0x1ca   : > { %3146 = vmatpush.bf16.msra.mxu2 %v7679_v9  ;;  %v9520_v9 = vld [vmem:[%s10760_s27 + $0x224] sm:$0xf0] }
 0x1cc   : > { %v1508_v26 = vpop.f32.mrf.mxu0 }
 0x1cd   : > { %v1509_v27 = vadd.f32 %v1508_v26, %v907_v20  ;;  %v1521_v28 = vpop.f32.mrf.mxu1  ;;  %v9535_v20 = vld [vmem:[%s10760_s27 + $0x2a4] sm:$0xf]  ;;  %v9484_v26 = vld [vmem:[%s10760_s27 + $0x104] sm:$0xf0] }
 0x1ce   : > { %v7871_v23 = vor.u32 %v9535_v20, %v7868_v21  ;;  %v9469_v20 = vld [vmem:[%s10760_s27 + $0x94] sm:$0xf]  ;;  %v7604_v21 = vld [vmem:[%s10760_s27 + $0xa8] sm:$0xf0] }
 0x1cf   : > { %2293 = vmatmul.bf16.gmra.mxu0 %v11180_v53  ;;  %v11298_v30 = vadd.f32 %v1521_v28, %v1509_v27  ;;  %v7842_v27 = vld [vmem:[%s10760_s27 + $0x270] sm:$0xf] }
 0x1d0   : > { %2321 = vmatmul.bf16.gmra.mxu1 %v11184_v57  ;;  %3174 = vmatpush.bf16.msra.mxu3 %v7871_v23  ;;  %v7607_v23 = vor.u32 %v9469_v20, %v7604_v21  ;;  %v9454_v20 = vld [vmem:[%s10760_s27 + $0x14] sm:$0xf0]  ;;  %v7722_v21 = vld [vmem:[%s10760_s27 + $0x180] sm:$0xf] }
 0x1d1   : > { %2349 = vmatmul.bf16.gmra.mxu2 %v11180_v53 }
 0x1d2   : > { %2377 = vmatmul.bf16.gmra.mxu3 %v11184_v57 }
 0x1d4   : > { %v1534_v31 = vpop.f32.mrf.mxu2  ;;  %v1510_v35 = vpop.f32.mrf.mxu0 }
 0x1d5   : > { %v1535_v32 = vadd.f32 %v1534_v31, %v908_v29  ;;  %v1547_v33 = vpop.f32.mrf.mxu3  ;;  %v1523_v36 = vpop.f32.mrf.mxu1  ;;  %v7651_v31 = vor.u32 %v9484_v26, %v7650_v25  ;;  %v7652_v35 = vld [vmem:[%s10760_s27 + $0x108] sm:$0xf0] }
 0x1d6   : > { %v7796_v25 = vld [vmem:[%s10760_s27 + $0x228] sm:$0xf0] }
 0x1d7   : > { %v11300_v34 = vadd.f32 %v1547_v33, %v1535_v32  ;;  %v9532_v32 = vld [vmem:[%s10760_s27 + $0x284] sm:$0xf0]  ;;  %v9481_v33 = vld [vmem:[%s10760_s27 + $0xf4] sm:$0xf]  ;;  %3091 = vmatpush.bf16.msra.mxu0 %v7651_v31  ;;  %v9466_v31 = vld [vmem:[%s10760_s27 + $0x74] sm:$0xf0] }
 0x1d8   : > { %v7843_v36 = vor.u32 %v9532_v32, %v7842_v27  ;;  %v7770_v32 = vld [vmem:[%s10760_s27 + $0x1e0] sm:$0xf] }
 0x1da   : > { %3119 = vmatpush.bf16.msra.mxu1 %v7843_v36 }
 0x1dc   : > { %v1536_v37 = vpop.f32.mrf.mxu2 }
 0x1dd   : > { %v1549_v38 = vpop.f32.mrf.mxu3  ;;  %v7655_v37 = vor.u32 %v9481_v33, %v7652_v35 }
 0x1de   : > { %v9529_v38 = vld [vmem:[%s10760_s27 + $0x274] sm:$0xf]  ;;  %3120 = vmatpush.bf16.msra.mxu1 %v7819_v62 }
 0x1df   : > { %2298 = vmatmul.bf16.gmra.mxu0 %v11201_v3  ;;  %3147 = vmatpush.bf16.msra.mxu2 %v7655_v37 }
 0x1e0   : > { %2326 = vmatmul.bf16.gmra.mxu1 %v11204_v6 }
 0x1e1   : > { %2354 = vmatmul.bf16.gmra.mxu2 %v11201_v3 }
 0x1e2   : > { %2382 = vmatmul.bf16.gmra.mxu3 %v11204_v6 }
 0x1e3   : > { %3148 = vmatpush.bf16.msra.mxu2 %v7631_v63  ;;  %v7555_v63 = vor.u32 %v9460_v56, %v7554_v55 }
 0x1e7   : > { %3149 = vmatpush.bf16.msra.mxu2 %v7607_v23 }
 0x1ec   : > { %v2172_v40 = vpop.f32.mrf.mxu0 }
 0x1ed   : > { %v2200_v41 = vpop.f32.mrf.mxu1  ;;  %v2173_v46 = vadd.f32 %v2172_v40, %v11311_v39  ;;  %v7844_v40 = vld [vmem:[%s10760_s27 + $0x288] sm:$0xf0] }
 0x1ee   : > { %v7847_v43 = vor.u32 %v9529_v38, %v7844_v40  ;;  %v9514_v40 = vld [vmem:[%s10760_s27 + $0x1f4] sm:$0xf0] }
 0x1ef   : > { %2395 = vmatmul.bf16.vlgmr.msrb.gmra.mxu0 %v11078_v14  ;;  %v2201_v2 = vadd.f32 %v2200_v41, %v2173_v46  ;;  %v7626_v46 = vld [vmem:[%s10760_s27 + $0xc0] sm:$0xf] }
 0x1f0   : > { %2423 = vmatmul.bf16.vlgmr.msrb.gmra.mxu1 %v11080_v15  ;;  %3175 = vmatpush.bf16.msra.mxu3 %v7847_v43  ;;  %v7627_v54 = vor.u32 %v9478_v47, %v7626_v46  ;;  %v7580_v43 = vld [vmem:[%s10760_s27 + $0x78] sm:$0xf0]  ;;  %v7771_v46 = vor.u32 %v9514_v40, %v7770_v32  ;;  %v9499_v32 = vld [vmem:[%s10760_s27 + $0x184] sm:$0xf] }
 0x1f1   : > { %2451 = vmatmul.bf16.vlgmr.msrb.gmra.mxu2 %v11078_v14  ;;  %v3425_v28 = vmul.f32 %v2201_v2, %v11206_v10  ;;  %v7820_v2 = vld [vmem:[%s10760_s27 + $0x258] sm:$0xf0] }
 0x1f2   : > { %2479 = vmatmul.bf16.vlgmr.msrb.gmra.mxu3 %v11080_v15  ;;  %3092 = vmatpush.bf16.msra.mxu0 %v7627_v54 }
 0x1f4   : > { %v2228_v59 = vpop.f32.mrf.mxu2  ;;  %v2174_v7 = vpop.f32.mrf.mxu0 }
 0x1f5   : > { %v2229_v4 = vadd.f32 %v2228_v59, %v11314_v42  ;;  %v2256_v5 = vpop.f32.mrf.mxu3  ;;  %v2202_v18 = vpop.f32.mrf.mxu1  ;;  %v2175_v24 = vadd.f32 %v2174_v7, %v11311_v39 }
 0x1f6   : > { %3093 = vmatpush.bf16.msra.mxu0 %v7603_v19 }
 0x1f7   : > { %v2257_v22 = vadd.f32 %v2256_v5, %v2229_v4  ;;  %v2203_v44 = vadd.f32 %v2202_v18, %v2175_v24  ;;  %v7823_v5 = vor.u32 %v9523_v0, %v7820_v2  ;;  %v9517_v24 = vld [vmem:[%s10760_s27 + $0x214] sm:$0xf]  ;;  %v9508_v0 = vld [vmem:[%s10760_s27 + $0x1c4] sm:$0xf0] }
 0x1f8   : > { %v7799_v27 = vor.u32 %v9517_v24, %v7796_v25  ;;  %v9457_v2 = vld [vmem:[%s10760_s27 + $0x34] sm:$0xf] }
 0x1f9   : > { %v3426_v29 = vmul.f32 %v2257_v22, %v11212_v16  ;;  %v3427_v7 = vmul.f32 %v2203_v44, %v11206_v10  ;;  %v7795_v22 = vor.u32 %v9520_v9, %v7794_v13  ;;  %3176 = vmatpush.bf16.msra.mxu3 %v7823_v5  ;;  %v7747_v5 = vor.u32 %v9508_v0, %v7746_v58  ;;  %v7530_v9 = vld [vmem:[%s10760_s27] sm:$0xf] }
 0x1fa   : > { %v7531_v25 = vor.u32 %v9454_v20, %v7530_v9 }
 0x1fb   : > { %v3439_v41 = vadd.f32 %v3426_v29, %v3425_v28  ;;  %3121 = vmatpush.bf16.msra.mxu1 %v7795_v22  ;;  %v7578_v29 = vld [vmem:[%s10760_s27 + $0x60] sm:$0xf] }
 0x1fc   : > { %v2230_v45 = vpop.f32.mrf.mxu2  ;;  %v2177_v52 = vpop.f32.mrf.mxu0  ;;  %v7579_v38 = vor.u32 %v9466_v31, %v7578_v29  ;;  %v7532_v31 = vld [vmem:[%s10760_s27 + $0x18] sm:$0xf0] }
 0x1fd   : > { %v2231_v50 = vadd.f32 %v2230_v45, %v11314_v42  ;;  %v2258_v51 = vpop.f32.mrf.mxu3  ;;  %3440 = vadd.xlane.f32.xlu0 %v3439_v41  ;;  %v2205_v59 = vpop.f32.mrf.mxu1  ;;  %v2178_v8 = vadd.f32 %v2177_v52, %v11311_v39  ;;  %v9463_v41 = vld [vmem:[%s10760_s27 + $0x64] sm:$0xf]  ;;  %3177 = vmatpush.bf16.msra.mxu3 %v7799_v27 }
 0x1fe   : > { %v7583_v47 = vor.u32 %v9463_v41, %v7580_v43  ;;  %3094 = vmatpush.bf16.msra.mxu0 %v7579_v38  ;;  %v9451_v27 = vld [vmem:[%s10760_s27 + $0x4] sm:$0xf] }
 0x1ff   : > { %v2259_v4 = vadd.f32 %v2258_v51, %v2231_v50  ;;  %2400 = vmatmul.bf16.gmra.mxu0 %v11128_v61  ;;  %v2206_v33 = vadd.f32 %v2205_v59, %v2178_v8  ;;  %v7772_v50 = vld [vmem:[%s10760_s27 + $0x1f8] sm:$0xf0]  ;;  %3122 = vmatpush.bf16.msra.mxu1 %v7771_v46 }
 0x200   : > { %2428 = vmatmul.bf16.gmra.mxu1 %v11132_v1  ;;  %v7775_v52 = vor.u32 %v9511_v49, %v7772_v50  ;;  %3150 = vmatpush.bf16.msra.mxu2 %v7583_v47 }
 0x201   : > { %2456 = vmatmul.bf16.gmra.mxu2 %v11128_v61  ;;  %v3428_v18 = vmul.f32 %v2259_v4, %v11212_v16  ;;  %v3429_v59 = vmul.f32 %v2206_v33, %v11206_v10  ;;  %v7556_v4 = vld [vmem:[%s10760_s27 + $0x48] sm:$0xf0]  ;;  %v7724_v33 = vld [vmem:[%s10760_s27 + $0x198] sm:$0xf0] }
 0x202   : > { %2484 = vmatmul.bf16.gmra.mxu3 %v11132_v1  ;;  %3095 = vmatpush.bf16.msra.mxu0 %v7555_v63 }
 0x203   : > { %v3442_v26 = vadd.f32 %v3428_v18, %v3427_v7  ;;  %v7559_v7 = vor.u32 %v9457_v2, %v7556_v4  ;;  %3178 = vmatpush.bf16.msra.mxu3 %v7775_v52  ;;  %v7751_v18 = vor.u32 %v9505_v11, %v7748_v12  ;;  %3123 = vmatpush.bf16.msra.mxu1 %v7747_v5 }
 0x204   : > { %v2233_v28 = vpop.f32.mrf.mxu2  ;;  %v2179_v37 = vpop.f32.mrf.mxu0 }
 0x205   : > { %v2234_v35 = vadd.f32 %v2233_v28, %v11314_v42  ;;  %v2261_v36 = vpop.f32.mrf.mxu3  ;;  %3443 = vadd.xlane.f32.xlu1 %v3442_v26  ;;  %v2180_v44 = vadd.f32 %v2179_v37, %v11311_v39  ;;  %v2207_v45 = vpop.f32.mrf.mxu1  ;;  %v9502_v26 = vld [vmem:[%s10760_s27 + $0x194] sm:$0xf0]  ;;  %3151 = vmatpush.bf16.msra.mxu2 %v7559_v7  ;;  %v7727_v37 = vor.u32 %v9499_v32, %v7724_v33  ;;  %v9545_v32 = vld [vmem:[%s10760_s27 + $0x2ec] sm:$0xf0]  ;;  %v9494_v33 = vld [vmem:[%s10760_s27 + $0x15c] sm:$0xf] }
 0x206   : > { %v7723_v29 = vor.u32 %v9502_v26, %v7722_v21  ;;  %3096 = vmatpush.bf16.msra.mxu0 %v7531_v25 }
 0x207   : > { %v2262_v51 = vadd.f32 %v2261_v36, %v2234_v35  ;;  %v2208_v54 = vadd.f32 %v2207_v45, %v2180_v44  ;;  %3179 = vmatpush.bf16.msra.mxu3 %v7751_v18  ;;  %v7535_v36 = vor.u32 %v9451_v27, %v7532_v31  ;;  %v11430_v27 = vperm.slane %v11308_v60, 3 }
 0x208   : > { %3124 = vmatpush.bf16.msra.mxu1 %v7723_v29 }
 0x209   : > { %v3430_v62 = vmul.f32 %v2262_v51, %v11212_v16  ;;  %v3431_v13 = vmul.f32 %v2208_v54, %v11206_v10  ;;  %3152 = vmatpush.bf16.msra.mxu2 %v7535_v36 }
 0x20b   : > { %v3445_v8 = vadd.f32 %v3430_v62, %v3429_v59  ;;  %3180 = vmatpush.bf16.msra.mxu3 %v7727_v37 }
 0x20c   : > { %v2235_v19 = vpop.f32.mrf.mxu2  ;;  %v2182_v24 = vpop.f32.mrf.mxu0 }
 0x20d   : > { %v2236_v22 = vadd.f32 %v2235_v19, %v11314_v42  ;;  %v2263_v23 = vpop.f32.mrf.mxu3  ;;  %3446 = vadd.xlane.f32.xlu2 %v3445_v8  ;;  %v2210_v28 = vpop.f32.mrf.mxu1  ;;  %v2183_v38 = vadd.f32 %v2182_v24, %v11311_v39 }
 0x20f   : > { %v2264_v35 = vadd.f32 %v2263_v23, %v2236_v22  ;;  %2405 = vmatmul.bf16.gmra.mxu0 %v11180_v53  ;;  %v2211_v44 = vadd.f32 %v2210_v28, %v2183_v38  ;;  %v7898_v28 = vld [vmem:[%s10760_s27 + $0x2d8] sm:$0xf]  ;;  %v9542_v38 = vld [vmem:[%s10760_s27 + $0x2dc] sm:$0xf] }
 0x210   : > { %2433 = vmatmul.bf16.gmra.mxu1 %v11184_v57  ;;  %v7899_v36 = vor.u32 %v9545_v32, %v7898_v28  ;;  %v7634_v28 = vld [vmem:[%s10760_s27 + $0xc8] sm:$0xf] }
 0x211   : > { %2461 = vmatmul.bf16.gmra.mxu2 %v11180_v53  ;;  %v3432_v40 = vmul.f32 %v2264_v35, %v11212_v16  ;;  %v3433_v51 = vmul.f32 %v2211_v44, %v11206_v10  ;;  %v7708_v35 = vld [vmem:[%s10760_s27 + $0x170] sm:$0xf0] }
 0x212   : > { %2489 = vmatmul.bf16.gmra.mxu3 %v11184_v57  ;;  %v7711_v37 = vor.u32 %v9494_v33, %v7708_v35  ;;  %3229 = vmatpush.bf16.msrb.mxu1 %v7899_v36 }
 0x213   : > { %v11409_v41 = vadd.f32 %v3432_v40, %v3431_v13  ;;  %v7900_v40 = vld [vmem:[%s10760_s27 + $0x2f0] sm:$0xf0] }
 0x214   : > { %v2238_v43 = vpop.f32.mrf.mxu2  ;;  %v2184_v47 = vpop.f32.mrf.mxu0  ;;  %3257 = vmatpush.bf16.msrb.mxu2 %v7711_v37  ;;  %v9527_v37 = vld [vmem:[%s10760_s27 + $0x25c] sm:$0xf0] }
 0x215   : > { %v2239_v45 = vadd.f32 %v2238_v43, %v11314_v42  ;;  %v2266_v46 = vpop.f32.mrf.mxu3  ;;  %v2212_v49 = vpop.f32.mrf.mxu1  ;;  %v2185_v54 = vadd.f32 %v2184_v47, %v11311_v39  ;;  %v7903_v43 = vor.u32 %v9542_v38, %v7900_v40  ;;  %v7874_v47 = vld [vmem:[%s10760_s27 + $0x2a8] sm:$0xf]  ;;  %v9476_v38 = vld [vmem:[%s10760_s27 + $0xcc] sm:$0xf]  ;;  %v7636_v40 = vld [vmem:[%s10760_s27 + $0xe0] sm:$0xf0] }
 0x217   : > { %v2267_v50 = vadd.f32 %v2266_v46, %v2239_v45  ;;  %v2213_v58 = vadd.f32 %v2212_v49, %v2185_v54  ;;  %v7682_v45 = vld [vmem:[%s10760_s27 + $0x128] sm:$0xf]  ;;  %v9491_v46 = vld [vmem:[%s10760_s27 + $0x13c] sm:$0xf0]  ;;  %3285 = vmatpush.bf16.msrb.mxu3 %v7903_v43 }
 0x218   : > { %v7683_v54 = vor.u32 %v9491_v46, %v7682_v45  ;;  %v7639_v45 = vor.u32 %v9476_v38, %v7636_v40  ;;  %v9524_v46 = vld [vmem:[%s10760_s27 + $0x24c] sm:$0xf] }
 0x219   : > { %v3434_v52 = vmul.f32 %v2267_v50, %v11212_v16  ;;  %v3435_v5 = vmul.f32 %v2213_v58, %v11206_v10  ;;  %v7684_v58 = vld [vmem:[%s10760_s27 + $0x140] sm:$0xf0] }
 0x21b   : > { %v3451_v55 = vadd.f32 %v3434_v52, %v3433_v51 }
 0x21c   : > { %v2240_v56 = vpop.f32.mrf.mxu2  ;;  %v2187_v63 = vpop.f32.mrf.mxu0 }
 0x21d   : > { %v2241_v59 = vadd.f32 %v2240_v56, %v11314_v42  ;;  %v2268_v62 = vpop.f32.mrf.mxu3  ;;  %3452 = vadd.xlane.f32.xlu0 %v3451_v55  ;;  %v2215_v0 = vpop.f32.mrf.mxu1  ;;  %v2188_v4 = vadd.f32 %v2187_v63, %v11311_v39  ;;  %v9539_v55 = vld [vmem:[%s10760_s27 + $0x2bc] sm:$0xf0]  ;;  %v9488_v56 = vld [vmem:[%s10760_s27 + $0x12c] sm:$0xf] }
 0x21e   : > { %v7687_v63 = vor.u32 %v9488_v56, %v7684_v58 }
 0x21f   : > { %v2269_v2 = vadd.f32 %v2268_v62, %v2241_v59  ;;  %2410 = vmatmul.bf16.gmra.mxu0 %v11201_v3  ;;  %v2216_v13 = vadd.f32 %v2215_v0, %v2188_v4  ;;  %v7875_v62 = vor.u32 %v9539_v55, %v7874_v47  ;;  %v9536_v0 = vld [vmem:[%s10760_s27 + $0x2ac] sm:$0xf]  ;;  %v7828_v47 = vld [vmem:[%s10760_s27 + $0x260] sm:$0xf0]  ;;  %v7802_v55 = vld [vmem:[%s10760_s27 + $0x218] sm:$0xf] }
 0x220   : > { %2438 = vmatmul.bf16.gmra.mxu1 %v11204_v6  ;;  %3258 = vmatpush.bf16.msrb.mxu2 %v7687_v63  ;;  %v9470_v63 = vld [vmem:[%s10760_s27 + $0x9c] sm:$0xf] }
 0x221   : > { %2466 = vmatmul.bf16.gmra.mxu2 %v11201_v3  ;;  %v3436_v7 = vmul.f32 %v2269_v2, %v11212_v16  ;;  %v3437_v20 = vmul.f32 %v2216_v13, %v11206_v10  ;;  %v7706_v10 = vld [vmem:[%s10760_s27 + $0x158] sm:$0xf]  ;;  %v7876_v2 = vld [vmem:[%s10760_s27 + $0x2c0] sm:$0xf0]  ;;  %3230 = vmatpush.bf16.msrb.mxu1 %v7875_v62  ;;  %v9521_v62 = vld [vmem:[%s10760_s27 + $0x22c] sm:$0xf0] }
 0x222   : > { %2494 = vmatmul.bf16.gmra.mxu3 %v11204_v6  ;;  %v7850_v13 = vld [vmem:[%s10760_s27 + $0x278] sm:$0xf] }
 0x223   : > { %v3454_v11 = vadd.f32 %v3436_v7, %v3435_v5  ;;  %v7879_v5 = vor.u32 %v9536_v0, %v7876_v2  ;;  %v7612_v0 = vld [vmem:[%s10760_s27 + $0xb0] sm:$0xf0]  ;;  %v7803_v2 = vor.u32 %v9521_v62, %v7802_v55 }
 0x224   : > { %v2243_v12 = vpop.f32.mrf.mxu2  ;;  %v2189_v39 = vpop.f32.mrf.mxu0 }
 0x225   : > { %v2244_v8 = vadd.f32 %v2243_v12, %v11314_v42  ;;  %v2271_v18 = vpop.f32.mrf.mxu3  ;;  %3455 = vadd.xlane.f32.xlu1 %v3454_v11  ;;  %v2217_v19 = vpop.f32.mrf.mxu1  ;;  %v11427_v42 = vperm.slane %v11308_v60, 2  ;;  %v7658_v11 = vld [vmem:[%s10760_s27 + $0xf8] sm:$0xf]  ;;  %v9485_v12 = vld [vmem:[%s10760_s27 + $0x10c] sm:$0xf0]  ;;  %3286 = vmatpush.bf16.msrb.mxu3 %v7879_v5 }
 0x226   : > { %v7659_v39 = vor.u32 %v9485_v12, %v7658_v11  ;;  %v9533_v19 = vld [vmem:[%s10760_s27 + $0x28c] sm:$0xf0]  ;;  %v9518_v5 = vld [vmem:[%s10760_s27 + $0x21c] sm:$0xf] }
 0x227   : > { %v2272_v9 = vadd.f32 %v2271_v18, %v2244_v8 }
 0x229   : > { %v3438_v21 = vmul.f32 %v2272_v9, %v11212_v16  ;;  %v9497_v16 = vld [vmem:[%s10760_s27 + $0x16c] sm:$0xf0]  ;;  %v9482_v9 = vld [vmem:[%s10760_s27 + $0xfc] sm:$0xf] }
 0x22a   : > { %v7707_v31 = vor.u32 %v9497_v16, %v7706_v10 }
 0x22b   : > { %v3457_v22 = vadd.f32 %v3438_v21, %v3437_v20  ;;  %v7660_v20 = vld [vmem:[%s10760_s27 + $0x110] sm:$0xf0]  ;;  %v7851_v21 = vor.u32 %v9533_v19, %v7850_v13 }
 0x22c   : > { %v2245_v23 = vpop.f32.mrf.mxu2  ;;  %v2284_v25 = vpop.f32.mrf.mxu0  ;;  %3201 = vmatpush.bf16.msrb.mxu0 %v7707_v31  ;;  %v7826_v31 = vld [vmem:[%s10760_s27 + $0x248] sm:$0xf] }
 0x22d   : > { %v2273_v24 = vpop.f32.mrf.mxu3  ;;  %3458 = vadd.xlane.f32.xlu2 %v3457_v22  ;;  %v2312_v26 = vpop.f32.mrf.mxu1  ;;  %v2285_v29 = vadd.f32 %v2284_v25, %v11427_v42  ;;  %v7663_v22 = vor.u32 %v9482_v9, %v7660_v20  ;;  %v9530_v23 = vld [vmem:[%s10760_s27 + $0x27c] sm:$0xf]  ;;  %3231 = vmatpush.bf16.msrb.mxu1 %v7851_v21 }
 0x22e   : > { %v7852_v24 = vld [vmem:[%s10760_s27 + $0x290] sm:$0xf0] }
 0x22f   : > { %3097 = vmatmul.bf16.vlgmr.msra.gmra.mxu0 %v11078_v14  ;;  %v2313_v49 = vadd.f32 %v2312_v26, %v2285_v29  ;;  %v7855_v26 = vor.u32 %v9530_v23, %v7852_v24  ;;  %3259 = vmatpush.bf16.msrb.mxu2 %v7663_v22  ;;  %v9479_v29 = vld [vmem:[%s10760_s27 + $0xdc] sm:$0xf0]  ;;  %v9464_v24 = vld [vmem:[%s10760_s27 + $0x6c] sm:$0xf] }
 0x230   : > { %3125 = vmatmul.bf16.vlgmr.msra.gmra.mxu1 %v11080_v15  ;;  %3202 = vmatpush.bf16.msrb.mxu0 %v7683_v54  ;;  %v7635_v36 = vor.u32 %v9479_v29, %v7634_v28  ;;  %v9473_v54 = vld [vmem:[%s10760_s27 + $0xac] sm:$0xf0]  ;;  %v9515_v23 = vld [vmem:[%s10760_s27 + $0x1fc] sm:$0xf0]  ;;  %v9512_v28 = vld [vmem:[%s10760_s27 + $0x1ec] sm:$0xf] }
 0x231   : > { %3153 = vmatmul.bf16.vlgmr.msra.gmra.mxu2 %v11078_v14  ;;  %v3547_v8 = vmul.f32 %v2313_v49, %v11237_v48  ;;  %3287 = vmatpush.bf16.msrb.mxu3 %v7855_v26  ;;  %v7780_v29 = vld [vmem:[%s10760_s27 + $0x200] sm:$0xf0] }
 0x232   : > { %3181 = vmatmul.bf16.vlgmr.msra.gmra.mxu3 %v11080_v15 }
 0x233   : > { %3260 = vmatpush.bf16.msrb.mxu2 %v7639_v45  ;;  %v9458_v45 = vld [vmem:[%s10760_s27 + $0x3c] sm:$0xf] }
 0x234   : > { %v2340_v44 = vpop.f32.mrf.mxu2  ;;  %v2286_v52 = vpop.f32.mrf.mxu0  ;;  %3203 = vmatpush.bf16.msrb.mxu0 %v7659_v39  ;;  %v7778_v39 = vld [vmem:[%s10760_s27 + $0x1e8] sm:$0xf] }
 0x235   : > { %v2341_v50 = vadd.f32 %v2340_v44, %v11430_v27  ;;  %v2368_v51 = vpop.f32.mrf.mxu3  ;;  %v2314_v59 = vpop.f32.mrf.mxu1  ;;  %v2287_v7 = vadd.f32 %v2286_v52, %v11427_v42  ;;  %v7827_v44 = vor.u32 %v9527_v37, %v7826_v31  ;;  %v7610_v52 = vld [vmem:[%s10760_s27 + $0x98] sm:$0xf] }
 0x237   : > { %v2369_v4 = vadd.f32 %v2368_v51, %v2341_v50  ;;  %v2315_v10 = vadd.f32 %v2314_v59, %v2287_v7  ;;  %v7831_v50 = vor.u32 %v9524_v46, %v7828_v47  ;;  %3232 = vmatpush.bf16.msrb.mxu1 %v7827_v44  ;;  %v7611_v59 = vor.u32 %v9473_v54, %v7610_v52  ;;  %v7804_v7 = vld [vmem:[%s10760_s27 + $0x230] sm:$0xf0]  ;;  %v9509_v44 = vld [vmem:[%s10760_s27 + $0x1cc] sm:$0xf0] }
 0x238   : > { %3204 = vmatpush.bf16.msrb.mxu0 %v7635_v36  ;;  %v7807_v12 = vor.u32 %v9518_v5, %v7804_v7  ;;  %v7754_v36 = vld [vmem:[%s10760_s27 + $0x1b8] sm:$0xf]  ;;  %v7564_v46 = vld [vmem:[%s10760_s27 + $0x50] sm:$0xf0]  ;;  %v9503_v5 = vld [vmem:[%s10760_s27 + $0x19c] sm:$0xf0] }
 0x239   : > { %v3548_v18 = vmul.f32 %v2369_v4, %v11250_v17  ;;  %v3549_v51 = vmul.f32 %v2315_v10, %v11237_v48  ;;  %v7615_v4 = vor.u32 %v9470_v63, %v7612_v0  ;;  %3288 = vmatpush.bf16.msrb.mxu3 %v7831_v50  ;;  %v7779_v10 = vor.u32 %v9515_v23, %v7778_v39  ;;  %v9506_v50 = vld [vmem:[%s10760_s27 + $0x1bc] sm:$0xf]  ;;  %v9452_v7 = vld [vmem:[%s10760_s27 + $0xc] sm:$0xf] }
 0x23a   : > { %v7755_v47 = vor.u32 %v9509_v44, %v7754_v36 }
 0x23b   : > { %v3561_v25 = vadd.f32 %v3548_v18, %v3547_v8  ;;  %3233 = vmatpush.bf16.msrb.mxu1 %v7803_v2  ;;  %v7586_v8 = vld [vmem:[%s10760_s27 + $0x68] sm:$0xf]  ;;  %v9467_v18 = vld [vmem:[%s10760_s27 + $0x7c] sm:$0xf0]  ;;  %3261 = vmatpush.bf16.msrb.mxu2 %v7615_v4 }
 0x23c   : > { %v2342_v16 = vpop.f32.mrf.mxu2  ;;  %v2289_v35 = vpop.f32.mrf.mxu0  ;;  %3205 = vmatpush.bf16.msrb.mxu0 %v7611_v59  ;;  %v7587_v22 = vor.u32 %v9467_v18, %v7586_v8  ;;  %v7730_v59 = vld [vmem:[%s10760_s27 + $0x188] sm:$0xf]  ;;  %v9500_v8 = vld [vmem:[%s10760_s27 + $0x18c] sm:$0xf]  ;;  %v7732_v18 = vld [vmem:[%s10760_s27 + $0x1a0] sm:$0xf0] }
 0x23d   : > { %v2343_v32 = vadd.f32 %v2342_v16, %v11430_v27  ;;  %v2370_v33 = vpop.f32.mrf.mxu3  ;;  %3562 = vadd.xlane.f32.xlu0 %v3561_v25  ;;  %v2317_v43 = vpop.f32.mrf.mxu1  ;;  %v2290_v56 = vadd.f32 %v2289_v35, %v11427_v42  ;;  %v7588_v25 = vld [vmem:[%s10760_s27 + $0x80] sm:$0xf0]  ;;  %3289 = vmatpush.bf16.msrb.mxu3 %v7807_v12  ;;  %v9461_v35 = vld [vmem:[%s10760_s27 + $0x4c] sm:$0xf0]  ;;  %v7731_v12 = vor.u32 %v9503_v5, %v7730_v59  ;;  %v7714_v5 = vld [vmem:[%s10760_s27 + $0x160] sm:$0xf] }
 0x23e   : > { %v7591_v16 = vor.u32 %v9464_v24, %v7588_v25 }
 0x23f   : > { %v2371_v49 = vadd.f32 %v2370_v33, %v2343_v32  ;;  %3102 = vmatmul.bf16.gmra.mxu0 %v11128_v61  ;;  %v2318_v19 = vadd.f32 %v2317_v43, %v2290_v56  ;;  %v7783_v32 = vor.u32 %v9512_v28, %v7780_v29  ;;  %3234 = vmatpush.bf16.msrb.mxu1 %v7779_v10  ;;  %v7562_v33 = vld [vmem:[%s10760_s27 + $0x38] sm:$0xf]  ;;  %v7538_v56 = vld [vmem:[%s10760_s27 + $0x8] sm:$0xf] }
 0x240   : > { %3130 = vmatmul.bf16.gmra.mxu1 %v11132_v1  ;;  %3206 = vmatpush.bf16.msrb.mxu0 %v7587_v22  ;;  %v7563_v43 = vor.u32 %v9461_v35, %v7562_v33 }
 0x241   : > { %3158 = vmatmul.bf16.gmra.mxu2 %v11128_v61  ;;  %v3550_v58 = vmul.f32 %v2371_v49, %v11250_v17  ;;  %v3551_v37 = vmul.f32 %v2318_v19, %v11237_v48  ;;  %v7567_v49 = vor.u32 %v9458_v45, %v7564_v46  ;;  %3290 = vmatpush.bf16.msrb.mxu3 %v7783_v32 }
 0x242   : > { %3186 = vmatmul.bf16.gmra.mxu3 %v11132_v1  ;;  %3262 = vmatpush.bf16.msrb.mxu2 %v7591_v16 }
 0x243   : > { %v3564_v11 = vadd.f32 %v3550_v58, %v3549_v51  ;;  %v7756_v51 = vld [vmem:[%s10760_s27 + $0x1d0] sm:$0xf0]  ;;  %3235 = vmatpush.bf16.msrb.mxu1 %v7755_v47  ;;  %v9455_v58 = vld [vmem:[%s10760_s27 + $0x1c] sm:$0xf0] }
 0x244   : > { %v2345_v13 = vpop.f32.mrf.mxu2  ;;  %v2291_v21 = vpop.f32.mrf.mxu0  ;;  %3207 = vmatpush.bf16.msrb.mxu0 %v7563_v43  ;;  %v7759_v54 = vor.u32 %v9506_v50, %v7756_v51  ;;  %v7539_v4 = vor.u32 %v9455_v58, %v7538_v56 }
 0x245   : > { %v2346_v9 = vadd.f32 %v2345_v13, %v11430_v27  ;;  %v2373_v20 = vpop.f32.mrf.mxu3  ;;  %3565 = vadd.xlane.f32.xlu0 %v3564_v11  ;;  %v2319_v26 = vpop.f32.mrf.mxu1  ;;  %v2292_v40 = vadd.f32 %v2291_v21, %v11427_v42  ;;  %v7540_v13 = vld [vmem:[%s10760_s27 + $0x20] sm:$0xf0] }
 0x246   : > { %3263 = vmatpush.bf16.msrb.mxu2 %v7567_v49  ;;  %3291 = vmatpush.bf16.msrb.mxu3 %v7759_v54  ;;  %v7543_v19 = vor.u32 %v9452_v7, %v7540_v13  ;;  %v7906_v7 = vld [vmem:[%s10760_s27 + $0x2e0] sm:$0xf]  ;;  %v9546_v13 = vld [vmem:[%s10760_s27 + $0x2f4] sm:$0xf0] }
 0x247   : > { %v2374_v31 = vadd.f32 %v2373_v20, %v2346_v9  ;;  %v2320_v62 = vadd.f32 %v2319_v26, %v2292_v40  ;;  %v7735_v9 = vor.u32 %v9500_v8, %v7732_v18  ;;  %3236 = vmatpush.bf16.msrb.mxu1 %v7731_v12  ;;  %v9495_v8 = vld [vmem:[%s10760_s27 + $0x164] sm:$0xf]  ;;  %v7907_v18 = vor.u32 %v9546_v13, %v7906_v7  ;;  %v9528_v13 = vld [vmem:[%s10760_s27 + $0x264] sm:$0xf0] }
 0x248   : > { %3208 = vmatpush.bf16.msrb.mxu0 %v7539_v4 }
 0x249   : > { %v3552_v38 = vmul.f32 %v2374_v31, %v11250_v17  ;;  %v3553_v21 = vmul.f32 %v2320_v62, %v11237_v48 }
 0x24a   : > { %3264 = vmatpush.bf16.msrb.mxu2 %v7543_v19  ;;  %3292 = vmatpush.bf16.msrb.mxu3 %v7735_v9  ;;  %v9543_v19 = vld [vmem:[%s10760_s27 + $0x2e4] sm:$0xf]  ;;  %v7908_v9 = vld [vmem:[%s10760_s27 + $0x2f8] sm:$0xf0] }
 0x24b   : > { %v3567_v52 = vadd.f32 %v3552_v38, %v3551_v37  ;;  %3341 = vmatpush.bf16.msra.mxu1 %v7907_v18  ;;  %v7644_v18 = vld [vmem:[%s10760_s27 + $0xe8] sm:$0xf0] }
 0x24c   : > { %v2347_v55 = vpop.f32.mrf.mxu2  ;;  %v2294_v2 = vpop.f32.mrf.mxu0 }
 0x24d   : > { %v2348_v63 = vadd.f32 %v2347_v55, %v11430_v27  ;;  %v2375_v0 = vpop.f32.mrf.mxu3  ;;  %3568 = vadd.xlane.f32.xlu1 %v3567_v52  ;;  %v2322_v11 = vpop.f32.mrf.mxu1  ;;  %v2295_v20 = vadd.f32 %v2294_v2, %v11427_v42 }
 0x24f   : > { %v2376_v39 = vadd.f32 %v2375_v0, %v2348_v63  ;;  %3107 = vmatmul.bf16.gmra.mxu0 %v11180_v53  ;;  %v2323_v25 = vadd.f32 %v2322_v11, %v2295_v20  ;;  %v11552_v11 = vperm.slane %v11308_v60, 5 }
 0x250   : > { %3135 = vmatmul.bf16.gmra.mxu1 %v11184_v57 }
 0x251   : > { %3163 = vmatmul.bf16.gmra.mxu2 %v11180_v53  ;;  %v3554_v22 = vmul.f32 %v2376_v39, %v11250_v17  ;;  %v3555_v31 = vmul.f32 %v2323_v25, %v11237_v48  ;;  %v7716_v39 = vld [vmem:[%s10760_s27 + $0x178] sm:$0xf0] }
 0x252   : > { %3191 = vmatmul.bf16.gmra.mxu3 %v11184_v57  ;;  %v7719_v20 = vor.u32 %v9495_v8, %v7716_v39  ;;  %v9477_v8 = vld [vmem:[%s10760_s27 + $0xd4] sm:$0xf] }
 0x253   : > { %v3570_v23 = vadd.f32 %v3554_v22, %v3553_v21  ;;  %v7911_v21 = vor.u32 %v9543_v19, %v7908_v9  ;;  %v7647_v9 = vor.u32 %v9477_v8, %v7644_v18  ;;  %v9459_v8 = vld [vmem:[%s10760_s27 + $0x44] sm:$0xf]  ;;  %v7572_v18 = vld [vmem:[%s10760_s27 + $0x58] sm:$0xf0] }
 0x254   : > { %v2350_v24 = vpop.f32.mrf.mxu2  ;;  %v2296_v16 = vpop.f32.mrf.mxu0  ;;  %3369 = vmatpush.bf16.msra.mxu2 %v7719_v20  ;;  %v9525_v20 = vld [vmem:[%s10760_s27 + $0x254] sm:$0xf] }
 0x255   : > { %v2351_v26 = vadd.f32 %v2350_v24, %v11430_v27  ;;  %v2378_v10 = vpop.f32.mrf.mxu3  ;;  %3571 = vadd.xlane.f32.xlu0 %v3570_v23  ;;  %v2324_v28 = vpop.f32.mrf.mxu1  ;;  %v2297_v33 = vadd.f32 %v2296_v16, %v11427_v42  ;;  %v9492_v23 = vld [vmem:[%s10760_s27 + $0x144] sm:$0xf0]  ;;  %v7882_v24 = vld [vmem:[%s10760_s27 + $0x2b0] sm:$0xf]  ;;  %3397 = vmatpush.bf16.msra.mxu3 %v7911_v21  ;;  %v7836_v21 = vld [vmem:[%s10760_s27 + $0x268] sm:$0xf0] }
 0x257   : > { %v2379_v29 = vadd.f32 %v2378_v10, %v2351_v26  ;;  %v2325_v37 = vadd.f32 %v2324_v28, %v2297_v33 }
 0x259   : > { %v3556_v32 = vmul.f32 %v2379_v29, %v11250_v17  ;;  %v3557_v47 = vmul.f32 %v2325_v37, %v11237_v48  ;;  %v9540_v29 = vld [vmem:[%s10760_s27 + $0x2c4] sm:$0xf0]  ;;  %v9537_v37 = vld [vmem:[%s10760_s27 + $0x2b4] sm:$0xf] }
 0x25b   : > { %v3573_v35 = vadd.f32 %v3556_v32, %v3555_v31  ;;  %v9489_v31 = vld [vmem:[%s10760_s27 + $0x134] sm:$0xf]  ;;  %v7692_v32 = vld [vmem:[%s10760_s27 + $0x148] sm:$0xf0] }
 0x25c   : > { %v2352_v36 = vpop.f32.mrf.mxu2  ;;  %v2299_v43 = vpop.f32.mrf.mxu0 }
 0x25d   : > { %v2353_v38 = vadd.f32 %v2352_v36, %v11430_v27  ;;  %v2380_v40 = vpop.f32.mrf.mxu3  ;;  %3574 = vadd.xlane.f32.xlu1 %v3573_v35  ;;  %v2327_v44 = vpop.f32.mrf.mxu1  ;;  %v2300_v46 = vadd.f32 %v2299_v43, %v11427_v42  ;;  %v7883_v35 = vor.u32 %v9540_v29, %v7882_v24  ;;  %v7695_v36 = vor.u32 %v9489_v31, %v7692_v32  ;;  %v7618_v24 = vld [vmem:[%s10760_s27 + $0xa0] sm:$0xf]  ;;  %v9522_v29 = vld [vmem:[%s10760_s27 + $0x234] sm:$0xf0]  ;;  %v9471_v31 = vld [vmem:[%s10760_s27 + $0xa4] sm:$0xf] }
 0x25f   : > { %v2381_v45 = vadd.f32 %v2380_v40, %v2353_v38  ;;  %3112 = vmatmul.bf16.gmra.mxu0 %v11201_v3  ;;  %v2328_v52 = vadd.f32 %v2327_v44, %v2300_v46  ;;  %v7884_v38 = vld [vmem:[%s10760_s27 + $0x2c8] sm:$0xf0]  ;;  %3342 = vmatpush.bf16.msra.mxu1 %v7883_v35  ;;  %v9486_v46 = vld [vmem:[%s10760_s27 + $0x114] sm:$0xf0]  ;;  %v9519_v35 = vld [vmem:[%s10760_s27 + $0x224] sm:$0xf] }
 0x260   : > { %3140 = vmatmul.bf16.gmra.mxu1 %v11204_v6  ;;  %v7887_v43 = vor.u32 %v9537_v37, %v7884_v38  ;;  %3370 = vmatpush.bf16.msra.mxu2 %v7695_v36  ;;  %v7812_v36 = vld [vmem:[%s10760_s27 + $0x238] sm:$0xf0] }
 0x261   : > { %3168 = vmatmul.bf16.gmra.mxu2 %v11201_v3  ;;  %v3558_v49 = vmul.f32 %v2381_v45, %v11250_v17  ;;  %v3559_v59 = vmul.f32 %v2328_v52, %v11237_v48  ;;  %v9498_v48 = vld [vmem:[%s10760_s27 + $0x174] sm:$0xf0]  ;;  %v7666_v45 = vld [vmem:[%s10760_s27 + $0x100] sm:$0xf] }
 0x262   : > { %3196 = vmatmul.bf16.gmra.mxu3 %v11204_v6  ;;  %v7715_v12 = vor.u32 %v9498_v48, %v7714_v5  ;;  %v9534_v52 = vld [vmem:[%s10760_s27 + $0x294] sm:$0xf0]  ;;  %v7834_v5 = vld [vmem:[%s10760_s27 + $0x250] sm:$0xf] }
 0x263   : > { %v3576_v50 = vadd.f32 %v3558_v49, %v3557_v47  ;;  %v7858_v47 = vld [vmem:[%s10760_s27 + $0x280] sm:$0xf]  ;;  %3398 = vmatpush.bf16.msra.mxu3 %v7887_v43  ;;  %v7835_v19 = vor.u32 %v9528_v13, %v7834_v5  ;;  %v9510_v13 = vld [vmem:[%s10760_s27 + $0x1d4] sm:$0xf0] }
 0x264   : > { %v2355_v51 = vpop.f32.mrf.mxu2  ;;  %v2301_v42 = vpop.f32.mrf.mxu0  ;;  %3313 = vmatpush.bf16.msra.mxu0 %v7715_v12  ;;  %v7762_v5 = vld [vmem:[%s10760_s27 + $0x1c0] sm:$0xf] }
 0x265   : > { %v2356_v54 = vadd.f32 %v2355_v51, %v11430_v27  ;;  %v2383_v55 = vpop.f32.mrf.mxu3  ;;  %3577 = vadd.xlane.f32.xlu2 %v3576_v50  ;;  %3449 = vadd.xlane.f32.xlu1 %v11409_v41  ;;  %v2329_v56 = vpop.f32.mrf.mxu1  ;;  %v11542_v27 = vperm.slane %v11308_v60, 4  ;;  %v7690_v60 = vld [vmem:[%s10760_s27 + $0x130] sm:$0xf]  ;;  %v7667_v51 = vor.u32 %v9486_v46, %v7666_v45  ;;  %v7668_v42 = vld [vmem:[%s10760_s27 + $0x118] sm:$0xf0] }
 0x266   : > { %v7691_v28 = vor.u32 %v9492_v23, %v7690_v60  ;;  %v9531_v56 = vld [vmem:[%s10760_s27 + $0x284] sm:$0xf]  ;;  %v7839_v60 = vor.u32 %v9525_v20, %v7836_v21  ;;  %v9468_v45 = vld [vmem:[%s10760_s27 + $0x84] sm:$0xf0]  ;;  %v7786_v46 = vld [vmem:[%s10760_s27 + $0x1f0] sm:$0xf] }
 0x267   : > { %v2384_v58 = vadd.f32 %v2383_v55, %v2356_v54  ;;  %v9483_v54 = vld [vmem:[%s10760_s27 + $0x104] sm:$0xf]  ;;  %v7859_v55 = vor.u32 %v9534_v52, %v7858_v47  ;;  %v7764_v20 = vld [vmem:[%s10760_s27 + $0x1d8] sm:$0xf0] }
 0x268   : > { %3314 = vmatpush.bf16.msra.mxu0 %v7691_v28 }
 0x269   : > { %v3560_v62 = vmul.f32 %v2384_v58, %v11250_v17  ;;  %v7860_v58 = vld [vmem:[%s10760_s27 + $0x298] sm:$0xf0]  ;;  %3343 = vmatpush.bf16.msra.mxu1 %v7859_v55  ;;  %v9465_v55 = vld [vmem:[%s10760_s27 + $0x74] sm:$0xf] }
 0x26b   : > { %v3579_v63 = vadd.f32 %v3560_v62, %v3559_v59  ;;  %v7671_v62 = vor.u32 %v9483_v54, %v7668_v42  ;;  %v9516_v54 = vld [vmem:[%s10760_s27 + $0x204] sm:$0xf0]  ;;  %v7596_v42 = vld [vmem:[%s10760_s27 + $0x88] sm:$0xf0] }
 0x26c   : > { %v2357_v0 = vpop.f32.mrf.mxu2  ;;  %v2396_v4 = vpop.f32.mrf.mxu0  ;;  %3315 = vmatpush.bf16.msra.mxu0 %v7667_v51 }
 0x26d   : > { %v2385_v2 = vpop.f32.mrf.mxu3  ;;  %3580 = vadd.xlane.f32.xlu2 %v3579_v63  ;;  %v2424_v41 = vpop.f32.mrf.mxu1  ;;  %v2397_v17 = vadd.f32 %v2396_v4, %v11542_v27  ;;  %v7863_v63 = vor.u32 %v9531_v56, %v7860_v58  ;;  %v7642_v4 = vld [vmem:[%s10760_s27 + $0xd0] sm:$0xf]  ;;  %3371 = vmatpush.bf16.msra.mxu2 %v7671_v62  ;;  %v7787_v58 = vor.u32 %v9516_v54, %v7786_v46  ;;  %v9513_v62 = vld [vmem:[%s10760_s27 + $0x1f4] sm:$0xf] }
 0x26e   : > { %3344 = vmatpush.bf16.msra.mxu1 %v7835_v19  ;;  %v7575_v19 = vor.u32 %v9459_v8, %v7572_v18 }
 0x26f   : > { %3209 = vmatmul.bf16.vlgmr.msrb.gmra.mxu0 %v11078_v14  ;;  %v2425_v25 = vadd.f32 %v2424_v41, %v2397_v17  ;;  %v9480_v41 = vld [vmem:[%s10760_s27 + $0xe4] sm:$0xf0]  ;;  %3399 = vmatpush.bf16.msra.mxu3 %v7863_v63  ;;  %v7788_v63 = vld [vmem:[%s10760_s27 + $0x208] sm:$0xf0] }
 0x270   : > { %3237 = vmatmul.bf16.vlgmr.msrb.gmra.mxu1 %v11080_v15  ;;  %v7643_v12 = vor.u32 %v9480_v41, %v7642_v4  ;;  %v7570_v4 = vld [vmem:[%s10760_s27 + $0x40] sm:$0xf]  ;;  %v9462_v41 = vld [vmem:[%s10760_s27 + $0x54] sm:$0xf0] }
 0x271   : > { %3265 = vmatmul.bf16.vlgmr.msrb.gmra.mxu2 %v11078_v14  ;;  %v3669_v49 = vmul.f32 %v2425_v25, %v11298_v30  ;;  %v9474_v25 = vld [vmem:[%s10760_s27 + $0xb4] sm:$0xf0] }
 0x272   : > { %3293 = vmatmul.bf16.vlgmr.msrb.gmra.mxu3 %v11080_v15  ;;  %3316 = vmatpush.bf16.msra.mxu0 %v7643_v12  ;;  %v7619_v28 = vor.u32 %v9474_v25, %v7618_v24  ;;  %v7571_v12 = vor.u32 %v9462_v41, %v7570_v4  ;;  %v9456_v24 = vld [vmem:[%s10760_s27 + $0x24] sm:$0xf0]  ;;  %v7738_v25 = vld [vmem:[%s10760_s27 + $0x190] sm:$0xf] }
 0x273   : > { %3372 = vmatpush.bf16.msra.mxu2 %v7647_v9  ;;  %3400 = vmatpush.bf16.msra.mxu3 %v7839_v60  ;;  %v9507_v9 = vld [vmem:[%s10760_s27 + $0x1c4] sm:$0xf] }
 0x274   : > { %v2452_v22 = vpop.f32.mrf.mxu2  ;;  %v2398_v16 = vpop.f32.mrf.mxu0 }
 0x275   : > { %v2453_v26 = vadd.f32 %v2452_v22, %v11552_v11  ;;  %v2480_v10 = vpop.f32.mrf.mxu3  ;;  %v2426_v33 = vpop.f32.mrf.mxu1  ;;  %v2399_v44 = vadd.f32 %v2398_v16, %v11542_v27 }
 0x276   : > { %3317 = vmatpush.bf16.msra.mxu0 %v7619_v28 }
 0x277   : > { %v2481_v40 = vadd.f32 %v2480_v10, %v2453_v26  ;;  %v2427_v0 = vadd.f32 %v2426_v33, %v2399_v44  ;;  %v7810_v26 = vld [vmem:[%s10760_s27 + $0x220] sm:$0xf]  ;;  %v7620_v33 = vld [vmem:[%s10760_s27 + $0xb8] sm:$0xf0]  ;;  %v7594_v44 = vld [vmem:[%s10760_s27 + $0x70] sm:$0xf] }
 0x278   : > { %v7811_v32 = vor.u32 %v9522_v29, %v7810_v26  ;;  %v7623_v38 = vor.u32 %v9471_v31, %v7620_v33  ;;  %v7595_v52 = vor.u32 %v9468_v45, %v7594_v44  ;;  %v9504_v31 = vld [vmem:[%s10760_s27 + $0x1a4] sm:$0xf0] }
 0x279   : > { %v3670_v50 = vmul.f32 %v2481_v40, %v11300_v34  ;;  %v3671_v23 = vmul.f32 %v2427_v0, %v11298_v30  ;;  %v7815_v40 = vor.u32 %v9519_v35, %v7812_v36  ;;  %v7739_v35 = vor.u32 %v9504_v31, %v7738_v25  ;;  %v7548_v36 = vld [vmem:[%s10760_s27 + $0x28] sm:$0xf0] }
 0x27a   : > { %3345 = vmatpush.bf16.msra.mxu1 %v7811_v32  ;;  %3373 = vmatpush.bf16.msra.mxu2 %v7623_v38  ;;  %v9453_v32 = vld [vmem:[%s10760_s27 + $0x14] sm:$0xf] }
 0x27b   : > { %v3683_v59 = vadd.f32 %v3670_v50, %v3669_v49  ;;  %3401 = vmatpush.bf16.msra.mxu3 %v7815_v40  ;;  %3318 = vmatpush.bf16.msra.mxu0 %v7595_v52  ;;  %v7551_v40 = vor.u32 %v9453_v32, %v7548_v36 }
 0x27c   : > { %v2454_v2 = vpop.f32.mrf.mxu2  ;;  %v2401_v17 = vpop.f32.mrf.mxu0 }
 0x27d   : > { %v2455_v48 = vadd.f32 %v2454_v2, %v11552_v11  ;;  %v2482_v7 = vpop.f32.mrf.mxu3  ;;  %3684 = vadd.xlane.f32.xlu2 %v3683_v59  ;;  %v2429_v39 = vpop.f32.mrf.mxu1  ;;  %v2402_v10 = vadd.f32 %v2401_v17, %v11542_v27  ;;  %v7599_v59 = vor.u32 %v9465_v55, %v7596_v42  ;;  %v7791_v2 = vor.u32 %v9513_v62, %v7788_v63 }
 0x27e   : > { %3346 = vmatpush.bf16.msra.mxu1 %v7787_v58 }
 0x27f   : > { %v2483_v22 = vadd.f32 %v2482_v7, %v2455_v48  ;;  %3214 = vmatmul.bf16.gmra.mxu0 %v11128_v61  ;;  %v2430_v47 = vadd.f32 %v2429_v39, %v2402_v10  ;;  %3374 = vmatpush.bf16.msra.mxu2 %v7599_v59  ;;  %v7763_v39 = vor.u32 %v9510_v13, %v7762_v5 }
 0x280   : > { %3242 = vmatmul.bf16.gmra.mxu1 %v11132_v1  ;;  %3402 = vmatpush.bf16.msra.mxu3 %v7791_v2 }
 0x281   : > { %3270 = vmatmul.bf16.gmra.mxu2 %v11128_v61  ;;  %v3672_v16 = vmul.f32 %v2483_v22, %v11300_v34  ;;  %v3673_v48 = vmul.f32 %v2430_v47, %v11298_v30  ;;  %3319 = vmatpush.bf16.msra.mxu0 %v7571_v12  ;;  %v7767_v22 = vor.u32 %v9507_v9, %v7764_v20 }
 0x282   : > { %3298 = vmatmul.bf16.gmra.mxu3 %v11132_v1  ;;  %3347 = vmatpush.bf16.msra.mxu1 %v7763_v39 }
 0x283   : > { %v3686_v37 = vadd.f32 %v3672_v16, %v3671_v23  ;;  %v7546_v23 = vld [vmem:[%s10760_s27 + $0x10] sm:$0xf]  ;;  %3375 = vmatpush.bf16.msra.mxu2 %v7575_v19 }
 0x284   : > { %v2457_v43 = vpop.f32.mrf.mxu2  ;;  %v2403_v51 = vpop.f32.mrf.mxu0  ;;  %v7547_v29 = vor.u32 %v9456_v24, %v7546_v23  ;;  %3403 = vmatpush.bf16.msra.mxu3 %v7767_v22  ;;  %v11655_v22 = vld [vmem:[%s663_s19] sm:$0x3f] }
 0x285   : > { %v2458_v49 = vadd.f32 %v2457_v43, %v11552_v11  ;;  %v2485_v50 = vpop.f32.mrf.mxu3  ;;  %3687 = vadd.xlane.f32.xlu0 %v3686_v37  ;;  %v2431_v56 = vpop.f32.mrf.mxu1  ;;  %v2404_v17 = vadd.f32 %v2403_v51, %v11542_v27  ;;  %v9501_v37 = vld [vmem:[%s10760_s27 + $0x194] sm:$0xf]  ;;  %v7740_v43 = vld [vmem:[%s10760_s27 + $0x1a8] sm:$0xf0]  ;;  %v11660_v24 = vperm.slane %v11655_v22, 0  ;;  %s800_s27 = scalar_lea.vmem %s13004_s3, %s6759_s25 }
 0x286   : > { %3320 = vmatpush.bf16.msra.mxu0 %v7547_v29  ;;  %3348 = vmatpush.bf16.msra.mxu1 %v7739_v35  ;;  %v7743_v44 = vor.u32 %v9501_v37, %v7740_v43  ;;  %v3444_v37 = vpop.xlane.xlu1 %3443 }
 0x287   : > { %v2486_v0 = vadd.f32 %v2485_v50, %v2458_v49  ;;  %v2432_v26 = vadd.f32 %v2431_v56, %v2404_v17  ;;  %3376 = vmatpush.bf16.msra.mxu2 %v7551_v40 }
 0x288   : > { %3404 = vmatpush.bf16.msra.mxu3 %v7743_v44 }
 0x289   : > { %v3674_v7 = vmul.f32 %v2486_v0, %v11300_v34  ;;  %v3675_v46 = vmul.f32 %v2432_v26, %v11298_v30 }
 0x28b   : > { %v3689_v21 = vadd.f32 %v3674_v7, %v3673_v48 }
 0x28c   : > { %v2459_v60 = vpop.f32.mrf.mxu2  ;;  %v2406_v28 = vpop.f32.mrf.mxu0 }
 0x28d   : > { %v2460_v10 = vadd.f32 %v2459_v60, %v11552_v11  ;;  %v2487_v16 = vpop.f32.mrf.mxu3  ;;  %3690 = vadd.xlane.f32.xlu1 %v3689_v21  ;;  %v2434_v33 = vpop.f32.mrf.mxu1  ;;  %v2407_v45 = vadd.f32 %v2406_v28, %v11542_v27 }
 0x28f   : > { %v2488_v38 = vadd.f32 %v2487_v16, %v2460_v10  ;;  %3219 = vmatmul.bf16.gmra.mxu0 %v11180_v53  ;;  %v2435_v51 = vadd.f32 %v2434_v33, %v2407_v45 }
 0x290   : > { %3247 = vmatmul.bf16.gmra.mxu1 %v11184_v57 }
 0x291   : > { %3275 = vmatmul.bf16.gmra.mxu2 %v11180_v53  ;;  %v3676_v47 = vmul.f32 %v2488_v38, %v11300_v34  ;;  %v3677_v58 = vmul.f32 %v2435_v51, %v11298_v30  ;;  %v3441_v38 = vpop.xlane.xlu0 %3440 }
 0x292   : > { %3303 = vmatmul.bf16.gmra.mxu3 %v11184_v57 }
 0x293   : > { %v3692_v49 = vadd.f32 %v3676_v47, %v3675_v46 }
 0x294   : > { %v2462_v50 = vpop.f32.mrf.mxu2  ;;  %v2408_v55 = vpop.f32.mrf.mxu0 }
 0x295   : > { %v2463_v52 = vadd.f32 %v2462_v50, %v11552_v11  ;;  %v2490_v54 = vpop.f32.mrf.mxu3  ;;  %v2436_v42 = vpop.f32.mrf.mxu1  ;;  %v2409_v62 = vadd.f32 %v2408_v55, %v11542_v27 }
 0x297   : > { %v2491_v56 = vadd.f32 %v2490_v54, %v2463_v52  ;;  %v2437_v2 = vadd.f32 %v2436_v42, %v2409_v62  ;;  %v3447_v42 = vpop.xlane.xlu2 %3446 }
 0x298   : > { %v3456_v45 = vpop.xlane.xlu1 %3455 }
 0x299   : > { %v3678_v59 = vmul.f32 %v2491_v56, %v11300_v34  ;;  %v3679_v12 = vmul.f32 %v2437_v2, %v11298_v30  ;;  %v3453_v47 = vpop.xlane.xlu0 %3452 }
 0x29b   : > { %v3695_v63 = vadd.f32 %v3678_v59, %v3677_v58 }
 0x29c   : > { %v2464_v0 = vpop.f32.mrf.mxu2  ;;  %v2411_v5 = vpop.f32.mrf.mxu0 }
 0x29d   : > { %v2465_v4 = vadd.f32 %v2464_v0, %v11552_v11  ;;  %v2492_v41 = vpop.f32.mrf.mxu3  ;;  %3696 = vadd.xlane.f32.xlu2 %v3695_v63  ;;  %v2439_v48 = vpop.f32.mrf.mxu1  ;;  %v2412_v17 = vadd.f32 %v2411_v5, %v11542_v27 }
 0x29f   : > { %v2493_v7 = vadd.f32 %v2492_v41, %v2465_v4  ;;  %3224 = vmatmul.bf16.gmra.mxu0 %v11201_v3  ;;  %v2440_v39 = vadd.f32 %v2439_v48, %v2412_v17  ;;  %v3465_v41 = vmul.f32 0.0625, %v3456_v45  ;;  %v3464_v17 = vmul.f32 0.0625, %v3453_v47  ;;  %v8442_v47 = vld [vmem:[%s10768_s18 + $0x420] sm:$0xf] }
 0x2a0   : > { %3252 = vmatmul.bf16.gmra.mxu1 %v11204_v6  ;;  %v3459_v0 = vpop.xlane.xlu2 %3458 }
 0x2a1   : > { %3280 = vmatmul.bf16.gmra.mxu2 %v11201_v3  ;;  %v3680_v13 = vmul.f32 %v2493_v7, %v11300_v34  ;;  %v3681_v60 = vmul.f32 %v2440_v39, %v11298_v30  ;;  %v11669_v30 = vperm.slane %v11655_v22, 1  ;;  %v3461_v7 = vmul.f32 0.0625, %v3444_v37 }
 0x2a2   : > { %3308 = vmatmul.bf16.gmra.mxu3 %v11204_v6  ;;  %v3460_v39 = vmul.f32 0.0625, %v3441_v38 }
 0x2a3   : > { %v3698_v8 = vadd.f32 %v3680_v13, %v3679_v12  ;;  %v11710_v12 = vmul.f32 0.0625, %v3459_v0 }
 0x2a4   : > { %v2467_v18 = vpop.f32.mrf.mxu2  ;;  %v2413_v27 = vpop.f32.mrf.mxu0 }
 0x2a5   : > { %v2468_v19 = vadd.f32 %v2467_v18, %v11552_v11  ;;  %v2495_v9 = vpop.f32.mrf.mxu3  ;;  %3693 = vadd.xlane.f32.xlu2 %v3692_v49  ;;  %3699 = vadd.xlane.f32.xlu0 %v3698_v8  ;;  %v2441_v20 = vpop.f32.mrf.mxu1  ;;  %v3467_v27 = vmax.f32 %v3460_v39, %v3464_v17 }
 0x2a7   : > { %v2496_v21 = vadd.f32 %v2495_v9, %v2468_v19  ;;  %v3468_v19 = vmax.f32 %v3461_v7, %v3465_v41 }
 0x2a9   : > { %v3682_v23 = vmul.f32 %v2496_v21, %v11300_v34 }
 0x2ab   : > { %v3701_v25 = vadd.f32 %v3682_v23, %v3681_v60  ;;  %v8466_v60 = vld [vmem:[%s10768_s18 + $0x450] sm:$0xf]  ;;  %v9688_v23 = vld [vmem:[%s10768_s18 + $0x464] sm:$0xf0] }
 0x2ac   : > { %v2469_v26 = vpop.f32.mrf.mxu2  ;;  %v3098_v11 = vpop.f32.mrf.mxu0 }
 0x2ad   : > { %v2497_v10 = vpop.f32.mrf.mxu3  ;;  %3702 = vadd.xlane.f32.xlu1 %v3701_v25  ;;  %v3099_v16 = vadd.f32 %v3098_v11, %v11660_v24  ;;  %v3126_v28 = vpop.f32.mrf.mxu1  ;;  %v3470_v25 = vmax.f32 %v3467_v27, %v3468_v19  ;;  %v8467_v11 = vor.u32 %v9688_v23, %v8466_v60  ;;  %v8418_v23 = vld [vmem:[%s10768_s18 + $0x3f0] sm:$0xf] }
 0x2af   : > { %v11663_v29 = vadd.f32 %v3126_v28, %v3099_v16  ;;  %3321 = vmatmul.bf16.vlgmr.msra.gmra.mxu0 %v11078_v14  ;;  %5565 = vmatpush.bf16.msrb.mxu2 %v8467_v11  ;;  %v8058_v11 = vld [vmem:[%s10768_s18 + $0x120] sm:$0xf] }
 0x2b0   : > { %3349 = vmatmul.bf16.vlgmr.msra.gmra.mxu1 %v11080_v15  ;;  %v3563_v58 = vpop.xlane.xlu0 %3562 }
 0x2b1   : > { %3377 = vmatmul.bf16.vlgmr.msra.gmra.mxu2 %v11078_v14  ;;  %v11723_v28 = vmul.f32 0.0625, %v3563_v58  ;;  %v8082_v58 = vld [vmem:[%s10768_s18 + $0x150] sm:$0xf] }
 0x2b2   : > { %3405 = vmatmul.bf16.vlgmr.msra.gmra.mxu3 %v11080_v15 }
 0x2b4   : > { %v3154_v34 = vpop.f32.mrf.mxu2  ;;  %v11673_v33 = vpop.f32.mrf.mxu0 }
 0x2b5   : > { %v3155_v31 = vadd.f32 %v3154_v34, %v11669_v30  ;;  %v3182_v32 = vpop.f32.mrf.mxu3  ;;  %v11675_v35 = vpop.f32.mrf.mxu1 }
 0x2b7   : > { %v11677_v36 = vadd.f32 %v3182_v32, %v3155_v31 }
 0x2b8   : > { %v3566_v5 = vpop.xlane.xlu0 %3565 }
 0x2b9   : > { %v11733_v38 = vmul.f32 0.0625, %v3566_v5  ;;  %v9640_v5 = vld [vmem:[%s10768_s18 + $0x2e4] sm:$0xf0] }
 0x2bc   : > { %v11679_v40 = vpop.f32.mrf.mxu2  ;;  %v3103_v43 = vpop.f32.mrf.mxu0 }
 0x2bd   : > { %v11681_v14 = vpop.f32.mrf.mxu3  ;;  %v3104_v44 = vadd.f32 %v3103_v43, %v11660_v24  ;;  %v3131_v15 = vpop.f32.mrf.mxu1 }
 0x2bf   : > { %v11684_v46 = vadd.f32 %v3131_v15, %v3104_v44  ;;  %3326 = vmatmul.bf16.gmra.mxu0 %v11128_v61 }
 0x2c0   : > { %3354 = vmatmul.bf16.gmra.mxu1 %v11132_v1  ;;  %v3569_v56 = vpop.xlane.xlu1 %3568 }
 0x2c1   : > { %3382 = vmatmul.bf16.gmra.mxu2 %v11128_v61  ;;  %v11735_v43 = vmul.f32 0.0625, %v3569_v56  ;;  %v9682_v56 = vld [vmem:[%s10768_s18 + $0x434] sm:$0xf0] }
 0x2c2   : > { %3410 = vmatmul.bf16.gmra.mxu3 %v11132_v1  ;;  %v8443_v27 = vor.u32 %v9682_v56, %v8442_v47  ;;  %v8250_v56 = vld [vmem:[%s10768_s18 + $0x2a0] sm:$0xf] }
 0x2c4   : > { %v3159_v49 = vpop.f32.mrf.mxu2  ;;  %v11691_v52 = vpop.f32.mrf.mxu0  ;;  %5566 = vmatpush.bf16.msrb.mxu2 %v8443_v27 }
 0x2c5   : > { %v3160_v50 = vadd.f32 %v3159_v49, %v11669_v30  ;;  %v3187_v51 = vpop.f32.mrf.mxu3  ;;  %v11693_v54 = vpop.f32.mrf.mxu1 }
 0x2c7   : > { %v11695_v55 = vadd.f32 %v3187_v51, %v3160_v50 }
 0x2c8   : > { %v3572_v26 = vpop.xlane.xlu0 %3571 }
 0x2c9   : > { %v11737_v44 = vmul.f32 0.0625, %v3572_v26 }
 0x2cc   : > { %v11697_v59 = vpop.f32.mrf.mxu2  ;;  %v3108_v61 = vpop.f32.mrf.mxu0 }
 0x2cd   : > { %v11699_v62 = vpop.f32.mrf.mxu3  ;;  %v3109_v1 = vadd.f32 %v3108_v61, %v11660_v24  ;;  %v3136_v63 = vpop.f32.mrf.mxu1  ;;  %v9592_v61 = vld [vmem:[%s10768_s18 + $0x164] sm:$0xf0] }
 0x2ce   : > { %v8083_v60 = vor.u32 %v9592_v61, %v8082_v58  ;;  %v9634_v58 = vld [vmem:[%s10768_s18 + $0x2b4] sm:$0xf0]  ;;  %v8634_v61 = vld [vmem:[%s10768_s18 + $0x5a0] sm:$0xf] }
 0x2cf   : > { %v11702_v2 = vadd.f32 %v3136_v63, %v3109_v1  ;;  %3331 = vmatmul.bf16.gmra.mxu0 %v11180_v53 }
 0x2d0   : > { %v3575_v4 = vpop.xlane.xlu1 %3574  ;;  %3359 = vmatmul.bf16.gmra.mxu1 %v11184_v57  ;;  %5539 = vmatpush.bf16.msrb.mxu0 %v8083_v60  ;;  %v8034_v60 = vld [vmem:[%s10768_s18 + $0xf0] sm:$0xf] }
 0x2d1   : > { %12994 = vst [vmem:[#allocation29_spill] sm:$0xff] %v11702_v2  ;;  %3387 = vmatmul.bf16.gmra.mxu2 %v11180_v53  ;;  %v3462_v53 = vmul.f32 0.0625, %v3447_v42  ;;  %v11739_v15 = vmul.f32 0.0625, %v3575_v4  ;;  %v8274_v4 = vld [vmem:[%s10768_s18 + $0x2d0] sm:$0xf] }
 0x2d2   : > { %3415 = vmatmul.bf16.gmra.mxu3 %v11184_v57 }
 0x2d3   : > { %v3469_v20 = vmax.f32 %v3462_v53, %v11710_v12 }
 0x2d4   : > { %v11708_v48 = vpop.f32.mrf.mxu2  ;;  %v11714_v8 = vpop.f32.mrf.mxu0 }
 0x2d5   : > { %v11712_v13 = vpop.f32.mrf.mxu3  ;;  %v11716_v18 = vpop.f32.mrf.mxu1 }
 0x2d8   : > { %v3578_v57 = vpop.xlane.xlu2 %3577  ;;  %v3450_v9 = vpop.xlane.xlu1 %3449 }
 0x2d9   : > { %v3463_v21 = vmul.f32 0.0625, %v3450_v9  ;;  %v11725_v34 = vmul.f32 0.0625, %v3578_v57  ;;  %v9736_v57 = vld [vmem:[%s10768_s18 + $0x5e4] sm:$0xf0] }
 0x2db   : > { %v3471_v10 = vmax.f32 %v3469_v20, %v3463_v21 }
 0x2dc   : > { %v11721_v16 = vpop.f32.mrf.mxu2  ;;  %v11731_v37 = vpop.f32.mrf.mxu0 }
 0x2dd   : > { %v11727_v31 = vmax.f32 %v3470_v25, %v3471_v10  ;;  %v11729_v32 = vpop.f32.mrf.mxu3  ;;  %v11741_v45 = vpop.f32.mrf.mxu1  ;;  %v8275_v25 = vor.u32 %v9640_v5, %v8274_v4  ;;  %v9676_v10 = vld [vmem:[%s10768_s18 + $0x404] sm:$0xf0]  ;;  %v8251_v4 = vor.u32 %v9634_v58, %v8250_v56  ;;  %v9730_v5 = vld [vmem:[%s10768_s18 + $0x5b4] sm:$0xf0]  ;;  %v8370_v58 = vld [vmem:[%s10768_s18 + $0x390] sm:$0xf] }
 0x2de   : > { %v8635_v27 = vor.u32 %v9730_v5, %v8634_v61  ;;  %v9664_v61 = vld [vmem:[%s10768_s18 + $0x3a4] sm:$0xf0]  ;;  %v9574_v5 = vld [vmem:[%s10768_s18 + $0xd4] sm:$0xf0] }
 0x2df   : > { %v3473_v49 = vsub.f32 %v3460_v39, %v11727_v31  ;;  %v3474_v50 = vsub.f32 %v3461_v7, %v11727_v31  ;;  %v3475_v51 = vsub.f32 %v3462_v53, %v11727_v31  ;;  %v3476_v42 = vsub.f32 %v3463_v21, %v11727_v31  ;;  %3336 = vmatmul.bf16.gmra.mxu0 %v11201_v3  ;;  %v8658_v39 = vld [vmem:[%s10768_s18 + $0x5d0] sm:$0xf] }
 0x2e0   : > { %v3477_v1 = vsub.f32 %v3464_v17, %v11727_v31  ;;  %v3478_v63 = vsub.f32 %v3465_v41, %v11727_v31  ;;  %v3581_v0 = vpop.xlane.xlu2 %3580  ;;  %v3590_v7 = vmax.f32 %v11733_v38, %v11725_v34  ;;  %3364 = vmatmul.bf16.gmra.mxu1 %v11204_v6  ;;  %v8659_v26 = vor.u32 %v9736_v57, %v8658_v39  ;;  %v8394_v39 = vld [vmem:[%s10768_s18 + $0x3c0] sm:$0xf] }
 0x2e1   : > { %v3480_v53 = vmul.f32 1.442695, %v3473_v49  ;;  %v3482_v19 = vmul.f32 1.442695, %v3474_v50  ;;  %3392 = vmatmul.bf16.gmra.mxu2 %v11201_v3  ;;  %v3484_v17 = vmul.f32 1.442695, %v3475_v51  ;;  %5552 = vmatpush.bf16.msrb.mxu1 %v8275_v25 }
 0x2e2   : > { %v3486_v41 = vmul.f32 1.442695, %v3476_v42  ;;  %v3488_v9 = vmul.f32 1.442695, %v3477_v1  ;;  %3420 = vmatmul.bf16.gmra.mxu3 %v11204_v6  ;;  %v3490_v20 = vmul.f32 1.442695, %v3478_v63  ;;  %v3589_v6 = vmax.f32 %v11723_v28, %v11739_v15 }
 0x2e3   : > { %9994 = vpow2.f32 %v3480_v53  ;;  %v11763_v21 = vmul.f32 0.0625, %v3581_v0  ;;  %v9586_v49 = vld [vmem:[%s10768_s18 + $0x134] sm:$0xf0]  ;;  %v8419_v42 = vor.u32 %v9676_v10, %v8418_v23  ;;  %v3479_v1 = vsub.f32 %v11710_v12, %v11727_v31  ;;  %5578 = vmatpush.bf16.msrb.mxu3 %v8659_v26  ;;  %v9580_v23 = vld [vmem:[%s10768_s18 + $0x104] sm:$0xf0] }
 0x2e4   : > { %9996 = vpow2.f32 %v3482_v19  ;;  %v11766_v3 = vpop.f32.mrf.mxu2  ;;  %v3115_v51 = vpop.f32.mrf.mxu0  ;;  %v8059_v0 = vor.u32 %v9586_v49, %v8058_v11  ;;  %v9670_v53 = vld [vmem:[%s10768_s18 + $0x3d4] sm:$0xf0]  ;;  %v3592_v19 = vmax.f32 %v3589_v6, %v3590_v7  ;;  %v8226_v10 = vld [vmem:[%s10768_s18 + $0x270] sm:$0xf]  ;;  %v9628_v31 = vld [vmem:[%s10768_s18 + $0x284] sm:$0xf0]  ;;  %v8035_v7 = vor.u32 %v9580_v23, %v8034_v60 }
 0x2e5   : > { %v3591_v47 = vmax.f32 %v11735_v43, %v11763_v21  ;;  %v11775_v50 = vpop.f32.mrf.mxu3  ;;  %9998 = vpow2.f32 %v3484_v17  ;;  %v3143_v63 = vpop.f32.mrf.mxu1  ;;  %5567 = vmatpush.bf16.msrb.mxu2 %v8419_v42  ;;  %v8395_v12 = vor.u32 %v9670_v53, %v8394_v39  ;;  %v8610_v17 = vld [vmem:[%s10768_s18 + $0x570] sm:$0xf]  ;;  %v9724_v25 = vld [vmem:[%s10768_s18 + $0x584] sm:$0xf0]  ;;  %v3492_v6 = vmul.f32 1.442695, %v3479_v1  ;;  %5553 = vmatpush.bf16.msrb.mxu1 %v8251_v4 }
 0x2e6   : > { %10000 = vpow2.f32 %v3486_v41  ;;  %5540 = vmatpush.bf16.msrb.mxu0 %v8059_v0  ;;  %v8227_v41 = vor.u32 %v9628_v31, %v8226_v10  ;;  %v8010_v4 = vld [vmem:[%s10768_s18 + $0xc0] sm:$0xf]  ;;  %v9718_v23 = vld [vmem:[%s10768_s18 + $0x554] sm:$0xf0]  ;;  %v8371_v31 = vor.u32 %v9664_v61, %v8370_v58 }
 0x2e7   : > { %v3593_v57 = vmax.f32 %v3591_v47, %v11737_v44  ;;  %10002 = vpow2.f32 %v3488_v9  ;;  %5579 = vmatpush.bf16.msrb.mxu3 %v8635_v27  ;;  %v8611_v47 = vor.u32 %v9724_v25, %v8610_v17  ;;  %v8346_v17 = vld [vmem:[%s10768_s18 + $0x360] sm:$0xf]  ;;  %v9658_v25 = vld [vmem:[%s10768_s18 + $0x374] sm:$0xf0] }
 0x2e8   : > { %10004 = vpow2.f32 %v3490_v20 }
 0x2e9   : > { %v11792_v26 = vpop.eup %9994  ;;  %v11794_v11 = vmax.f32 %v3592_v19, %v3593_v57  ;;  %5568 = vmatpush.bf16.msrb.mxu2 %v8395_v12  ;;  %10006 = vpow2.f32 %v3492_v6  ;;  %5554 = vmatpush.bf16.msrb.mxu1 %v8227_v41  ;;  %v8011_v6 = vor.u32 %v9574_v5, %v8010_v4  ;;  %v9568_v41 = vld [vmem:[%s10768_s18 + $0xa4] sm:$0xf0]  ;;  %v8347_v5 = vor.u32 %v9658_v25, %v8346_v17  ;;  %v9610_v25 = vld [vmem:[%s10768_s18 + $0x1f4] sm:$0xf0] }
 0x2ea   : > { %v11796_v49 = vpop.eup %9996  ;;  %5541 = vmatpush.bf16.msrb.mxu0 %v8035_v7 }
 0x2eb   : > { %v3494_v51 = vadd.f32 %v11796_v49, %v11792_v26  ;;  %v3595_v42 = vsub.f32 %v11723_v28, %v11794_v11  ;;  %v3596_v56 = vsub.f32 %v11733_v38, %v11794_v11  ;;  %v3597_v9 = vsub.f32 %v11735_v43, %v11794_v11  ;;  %v11808_v1 = vpop.eup %9998  ;;  %v8202_v28 = vld [vmem:[%s10768_s18 + $0x240] sm:$0xf]  ;;  %5580 = vmatpush.bf16.msrb.mxu3 %v8611_v47  ;;  %v8178_v47 = vld [vmem:[%s10768_s18 + $0x210] sm:$0xf] }
 0x2ec   : > { %v3598_v63 = vsub.f32 %v11737_v44, %v11794_v11  ;;  %v3171_v0 = vpop.f32.mrf.mxu2  ;;  %v3599_v43 = vsub.f32 %v11739_v15, %v11794_v11  ;;  %v11818_v20 = vpop.f32.mrf.mxu0  ;;  %v9622_v44 = vld [vmem:[%s10768_s18 + $0x254] sm:$0xf0]  ;;  %v8586_v15 = vld [vmem:[%s10768_s18 + $0x540] sm:$0xf] }
 0x2ed   : > { %v3495_v38 = vadd.f32 %v11808_v1, %v3494_v51  ;;  %v3602_v39 = vmul.f32 1.442695, %v3595_v42  ;;  %v3604_v53 = vmul.f32 1.442695, %v3596_v56  ;;  %v3199_v19 = vpop.f32.mrf.mxu3  ;;  %v11821_v57 = vpop.eup %10000  ;;  %v3606_v27 = vmul.f32 1.442695, %v3597_v9  ;;  %5569 = vmatpush.bf16.msrb.mxu2 %v8371_v31 }
 0x2ee   : > { %v11823_v60 = vpop.f32.mrf.mxu1  ;;  %v3608_v12 = vmul.f32 1.442695, %v3598_v63  ;;  %v11830_v7 = vpop.eup %10002  ;;  %v8203_v51 = vor.u32 %v9622_v44, %v8202_v28  ;;  %v7986_v42 = vld [vmem:[%s10768_s18 + $0x90] sm:$0xf]  ;;  %v3600_v9 = vsub.f32 %v11725_v34, %v11794_v11  ;;  %v3610_v58 = vmul.f32 1.442695, %v3599_v43  ;;  %5542 = vmatpush.bf16.msrb.mxu0 %v8011_v6 }
 0x2ef   : > { %v3496_v10 = vadd.f32 %v11821_v57, %v3495_v38  ;;  %10008 = vpow2.f32 %v3602_v39  ;;  %v8587_v61 = vor.u32 %v9718_v23, %v8586_v15  ;;  %v9616_v63 = vld [vmem:[%s10768_s18 + $0x224] sm:$0xf0]  ;;  %v8562_v0 = vld [vmem:[%s10768_s18 + $0x510] sm:$0xf]  ;;  %v11840_v4 = vpop.eup %10004  ;;  %v7987_v28 = vor.u32 %v9568_v41, %v7986_v42  ;;  %v7962_v15 = vld [vmem:[%s10768_s18 + $0x60] sm:$0xf] }
 0x2f0   : > { %10010 = vpow2.f32 %v3604_v53  ;;  %5555 = vmatpush.bf16.msrb.mxu1 %v8203_v51  ;;  %v8179_v38 = vor.u32 %v9616_v63, %v8178_v47  ;;  %v9712_v39 = vld [vmem:[%s10768_s18 + $0x524] sm:$0xf0]  ;;  %v8322_v34 = vld [vmem:[%s10768_s18 + $0x330] sm:$0xf]  ;;  %v3601_v19 = vsub.f32 %v11763_v21, %v11794_v11  ;;  %v9562_v23 = vld [vmem:[%s10768_s18 + $0x74] sm:$0xf0]  ;;  %v11851_v31 = vpop.eup %10006 }
 0x2f1   : > { %v3497_v56 = vadd.f32 %v11830_v7, %v3496_v10  ;;  %v9652_v43 = vld [vmem:[%s10768_s18 + $0x344] sm:$0xf0]  ;;  %10012 = vpow2.f32 %v3606_v27  ;;  %5581 = vmatpush.bf16.msrb.mxu3 %v8587_v61  ;;  %v8563_v44 = vor.u32 %v9712_v39, %v8562_v0  ;;  %v8154_v10 = vld [vmem:[%s10768_s18 + $0x1e0] sm:$0xf]  ;;  %v9706_v51 = vld [vmem:[%s10768_s18 + $0x4f4] sm:$0xf0]  ;;  %5570 = vmatpush.bf16.msrb.mxu2 %v8347_v5  ;;  %v7963_v63 = vor.u32 %v9562_v23, %v7962_v15 }
 0x2f2   : > { %v8538_v6 = vld [vmem:[%s10768_s18 + $0x4e0] sm:$0xf]  ;;  %10014 = vpow2.f32 %v3608_v12  ;;  %v3612_v21 = vmul.f32 1.442695, %v3600_v9  ;;  %v8323_v47 = vor.u32 %v9652_v43, %v8322_v34  ;;  %5543 = vmatpush.bf16.msrb.mxu0 %v7987_v28  ;;  %v8155_v12 = vor.u32 %v9610_v25, %v8154_v10  ;;  %v9646_v0 = vld [vmem:[%s10768_s18 + $0x314] sm:$0xf0] }
 0x2f3   : > { %v3498_v53 = vadd.f32 %v11840_v4, %v3497_v56  ;;  %10016 = vpow2.f32 %v3610_v58  ;;  %v8298_v9 = vld [vmem:[%s10768_s18 + $0x300] sm:$0xf]  ;;  %v3614_v39 = vmul.f32 1.442695, %v3601_v19  ;;  %v8539_v5 = vor.u32 %v9706_v51, %v8538_v6  ;;  %v7938_v34 = vld [vmem:[%s10768_s18 + $0x30] sm:$0xf] }
 0x2f4   : > { %v11853_v17 = vpop.f32.mrf.mxu2  ;;  %v11865_v27 = vpop.f32.mrf.mxu0  ;;  %5556 = vmatpush.bf16.msrb.mxu1 %v8179_v38  ;;  %v3101_v58 = vadd.f32 %v11673_v33, %v11660_v24  ;;  %v3157_v28 = vadd.f32 %v11679_v40, %v11669_v30  ;;  %v3106_v38 = vadd.f32 %v11691_v52, %v11660_v24  ;;  %v8130_v19 = vld [vmem:[%s10768_s18 + $0x1b0] sm:$0xf]  ;;  %v3162_v33 = vadd.f32 %v11697_v59, %v11669_v30  ;;  %v9589_v23 = vld [vmem:[%s10768_s18 + $0x154] sm:$0xf]  ;;  %v8084_v51 = vld [vmem:[%s10768_s18 + $0x168] sm:$0xf0] }
 0x2f5   : > { %v11858_v42 = vpop.eup %10008  ;;  %v11861_v41 = vadd.f32 %v11851_v31, %v3498_v53  ;;  %v11863_v11 = vpop.f32.mrf.mxu3  ;;  %5582 = vmatpush.bf16.msrb.mxu3 %v8563_v44  ;;  %v9556_v53 = vld [vmem:[%s10768_s18 + $0x44] sm:$0xf0]  ;;  %v3165_v40 = vadd.f32 %v11708_v48, %v11669_v30  ;;  %5571 = vmatpush.bf16.msrb.mxu2 %v8323_v47  ;;  %v8299_v52 = vor.u32 %v9646_v0, %v8298_v9 }
 0x2f6   : > { %12995 = vst [vmem:[#allocation30_spill] sm:$0xff] %v11858_v42  ;;  %v11867_v56 = vpop.eup %10010  ;;  %v11869_v61 = vpop.f32.mrf.mxu1  ;;  %v9604_v44 = vld [vmem:[%s10768_s18 + $0x1c4] sm:$0xf0]  ;;  %5544 = vmatpush.bf16.msrb.mxu0 %v7963_v63  ;;  %v7939_v25 = vor.u32 %v9556_v53, %v7938_v34  ;;  %v3111_v59 = vadd.f32 %v11714_v8, %v11660_v24  ;;  %v8087_v48 = vor.u32 %v9589_v23, %v8084_v51 }
 0x2f7   : > { %12996 = vst [vmem:[#allocation31_spill] sm:$0xff] %v11867_v56  ;;  %10018 = vrcp.f32 %v11861_v41  ;;  %v3616_v43 = vadd.f32 %v11867_v56, %v11858_v42  ;;  %v11886_v15 = vpop.eup %10012  ;;  %v8131_v6 = vor.u32 %v9604_v44, %v8130_v19  ;;  %v8514_v56 = vld [vmem:[%s10768_s18 + $0x4b0] sm:$0xf]  ;;  %v9700_v42 = vld [vmem:[%s10768_s18 + $0x4c4] sm:$0xf0]  ;;  %v11904_v9 = vadd.f32 %v11675_v35, %v3101_v58 }
 0x2f8   : > { %10020 = vpow2.f32 %v3612_v21  ;;  %5557 = vmatpush.bf16.msrb.mxu1 %v8155_v12  ;;  %v11897_v2 = vpop.eup %10014  ;;  %v8515_v21 = vor.u32 %v9700_v42, %v8514_v56  ;;  %v11907_v63 = vadd.f32 %v11681_v14, %v3157_v28  ;;  %v11915_v8 = vadd.f32 %v11693_v54, %v3106_v38  ;;  %v9550_v28 = vld [vmem:[%s10768_s18 + $0x14] sm:$0xf0]  ;;  %v8106_v38 = vld [vmem:[%s10768_s18 + $0x180] sm:$0xf] }
 0x2f9   : > { %v3617_v10 = vadd.f32 %v11886_v15, %v3616_v43  ;;  %10022 = vpow2.f32 %v3614_v39  ;;  %5583 = vmatpush.bf16.msrb.mxu3 %v8539_v5  ;;  %v11901_v47 = vpop.eup %10016  ;;  %v3167_v42 = vadd.f32 %v11721_v16, %v11669_v30  ;;  %v11920_v35 = vperm.slane %v11655_v22, 2  ;;  %5572 = vmatpush.bf16.msrb.mxu2 %v8299_v52  ;;  %v9583_v52 = vld [vmem:[%s10768_s18 + $0x124] sm:$0xf] }
 0x2fa   : > { %v11923_v14 = vperm.slane %v11655_v22, 3  ;;  %v11928_v5 = vadd.f32 %v11699_v62, %v3162_v33  ;;  %5545 = vmatpush.bf16.msrb.mxu0 %v7939_v25  ;;  %v7914_v22 = vld [vmem:[%s10768_s18] sm:$0xf]  ;;  %v11941_v62 = vadd.f32 %v11712_v13, %v3165_v40  ;;  %v11944_v53 = vadd.f32 %v11716_v18, %v3111_v59  ;;  %v9598_v33 = vld [vmem:[%s10768_s18 + $0x194] sm:$0xf0] }
 0x2fb   : > { %v3618_v12 = vadd.f32 %v11897_v2, %v3617_v10  ;;  %v3509_v19 = vand.u32 2147483647, %v11861_v41  ;;  %v7915_v44 = vor.u32 %v9550_v28, %v7914_v22  ;;  %v3114_v10 = vadd.f32 %v11731_v37, %v11660_v24  ;;  %v8060_v40 = vld [vmem:[%s10768_s18 + $0x138] sm:$0xf0]  ;;  %v8490_v18 = vld [vmem:[%s10768_s18 + $0x480] sm:$0xf] }
 0x2fc   : > { %v11910_v0 = vpop.f32.mrf.mxu2  ;;  %v3215_v39 = vpop.f32.mrf.mxu0  ;;  %5558 = vmatpush.bf16.msrb.mxu1 %v8131_v6  ;;  %v8107_v13 = vor.u32 %v9598_v33, %v8106_v38  ;;  %v3511_v51 = vand.u32 2147483648, %v11861_v41  ;;  %v11958_v59 = vadd.f32 %v11729_v32, %v3167_v42  ;;  %v9694_v24 = vld [vmem:[%s10768_s18 + $0x494] sm:$0xf0]  ;;  %v9637_v37 = vld [vmem:[%s10768_s18 + $0x2d4] sm:$0xf]  ;;  %vm3505_vm1 = vweird.f32 %v11861_v41 }
 0x2fd   : > { %v11912_v34 = vpop.eup %10018  ;;  %v11925_v56 = vpop.f32.mrf.mxu3  ;;  %v3619_v16 = vadd.f32 %v11901_v47, %v3618_v12  ;;  %5617 = vmatpush.bf16.msra.mxu2 %v8087_v48  ;;  %5584 = vmatpush.bf16.msrb.mxu3 %v8515_v21  ;;  %v3170_v48 = vadd.f32 %v11766_v3, %v11669_v30  ;;  %v8063_v21 = vor.u32 %v9583_v52, %v8060_v40  ;;  %v8276_v32 = vld [vmem:[%s10768_s18 + $0x2e8] sm:$0xf0]  ;;  %v9577_v42 = vld [vmem:[%s10768_s18 + $0xf4] sm:$0xf]  ;;  %v9631_v33 = vld [vmem:[%s10768_s18 + $0x2a4] sm:$0xf] }
 0x2fe   : > { %v3501_v54 = vmul.f32 %v11912_v34, %v11861_v41  ;;  %v11933_v58 = vpop.f32.mrf.mxu1  ;;  %v11938_v43 = vpop.eup %10020  ;;  %vm3506_vm0 = vweird.f32 %v11912_v34  ;;  %5546 = vmatpush.bf16.msrb.mxu0 %v7915_v44  ;;  %v8036_v22 = vld [vmem:[%s10768_s18 + $0x108] sm:$0xf0]  ;;  %v3211_v30 = vadd.f32 %v11818_v20, %v11920_v35  ;;  %v3267_v3 = vadd.f32 %v11853_v17, %v11923_v14  ;;  %v8252_v52 = vld [vmem:[%s10768_s18 + $0x2b8] sm:$0xf0] }
 0x2ff   : > { %v3620_v25 = vadd.f32 %v11938_v43, %v3619_v16  ;;  %v11954_v6 = vpop.eup %10022  ;;  %v8491_v16 = vor.u32 %v9694_v24, %v8490_v18  ;;  %v8279_v28 = vor.u32 %v9637_v37, %v8276_v32  ;;  %v8039_v38 = vor.u32 %v9577_v42, %v8036_v22  ;;  %v3685_v44 = vpop.xlane.xlu2 %3684  ;;  %vm3507_vm2 = vmor %vm3505_vm1, %vm3506_vm0 }
 0x300   : > { %v3502_v23 = vsub.f32 1.0, %v3501_v54  ;;  %5559 = vmatpush.bf16.msrb.mxu1 %v8107_v13  ;;  %v3512_v20 = vor.u32 1.1754944e-38, %v3511_v51  ;;  %v3269_v17 = vadd.f32 %v11910_v0, %v11923_v14  ;;  %v3216_v40 = vadd.f32 %v3215_v39, %v11920_v35  ;;  %v3688_v51 = vpop.xlane.xlu0 %3687 }
 0x301   : > { %v11967_v54 = vadd.f32 %v11954_v6, %v3620_v25  ;;  %5618 = vmatpush.bf16.msra.mxu2 %v8063_v21  ;;  %v3213_v25 = vadd.f32 %v11865_v27, %v11920_v35  ;;  %5585 = vmatpush.bf16.msrb.mxu3 %v8491_v16  ;;  %v8255_v21 = vor.u32 %v9631_v33, %v8252_v52  ;;  %vm3510_vm3 = vcmp.eq.f32.partialorder %v3509_v19, 8.507059e+37  ;;  %v8012_v33 = vld [vmem:[%s10768_s18 + $0xd8] sm:$0xf0]  ;;  %v8228_v52 = vld [vmem:[%s10768_s18 + $0x288] sm:$0xf0] }
 0x302   : > { %v3503_v12 = vmul.f32 %v11912_v34, %v3502_v23  ;;  %v11992_v27 = vadd.f32 %v11741_v45, %v3114_v10  ;;  %v11995_v37 = vadd.f32 %v11775_v50, %v3170_v48  ;;  %v12000_v39 = vadd.f32 %v11823_v60, %v3211_v30 }
 0x303   : > { %10024 = vrcp.f32 %v11967_v54  ;;  %v12002_v16 = vmul.f32 0.0625, %v3685_v44  ;;  %v12005_v32 = vadd.f32 %v11863_v11, %v3267_v3  ;;  %v12011_v10 = vadd.f32 %v11869_v61, %v3213_v25  ;;  %v9571_v3 = vld [vmem:[%s10768_s18 + $0xc4] sm:$0xf] }
 0x304   : > { %v3504_v23 = vadd.f32 %v11912_v34, %v3503_v12  ;;  %v3271_v13 = vpop.f32.mrf.mxu2  ;;  %v3217_v41 = vpop.f32.mrf.mxu0  ;;  %v3633_v60 = vand.u32 2147483648, %v11967_v54  ;;  %v12014_v48 = vmul.f32 0.0625, %v3688_v51  ;;  %v12017_v42 = vadd.f32 %v11925_v56, %v3269_v17  ;;  %v9619_v51 = vld [vmem:[%s10768_s18 + $0x244] sm:$0xf] }
 0x305   : > { %v11988_v18 = vpop.f32.mrf.mxu3  ;;  %5630 = vmatpush.bf16.msra.mxu3 %v8279_v28  ;;  %5619 = vmatpush.bf16.msra.mxu2 %v8039_v38  ;;  %v12020_v11 = vadd.f32 %v11933_v58, %v3216_v40  ;;  %vm3627_vm4 = vweird.f32 %v11967_v54  ;;  %v3631_v58 = vand.u32 2147483647, %v11967_v54  ;;  %v3272_v30 = vadd.f32 %v3271_v13, %v11923_v14 }
 0x306   : > { %v3508_v24 = vsel %vm3507_vm2, %v11912_v34, %v3504_v23  ;;  %v11997_v12 = vpop.f32.mrf.mxu1  ;;  %v3691_v34 = vpop.xlane.xlu1 %3690  ;;  %v3634_v25 = vor.u32 1.1754944e-38, %v3633_v60 }
 0x307   : > { %v3513_v0 = vsel %vm3510_vm3, %v3512_v20, %v3508_v24  ;;  %v12027_v22 = vmul.f32 0.0625, %v3691_v34  ;;  %v8204_v34 = vld [vmem:[%s10768_s18 + $0x258] sm:$0xf0]  ;;  %vm3632_vm7 = vcmp.eq.f32.partialorder %v3631_v58, 8.507059e+37 }
 0x308   : > { %v3514_v45 = vmul.f32 %v11792_v26, %v3513_v0  ;;  %v3515_v19 = vmul.f32 %v11796_v49, %v3513_v0  ;;  %v3516_v50 = vmul.f32 %v11808_v1, %v3513_v0  ;;  %v3517_v49 = vmul.f32 %v11821_v57, %v3513_v0 }
 0x309   : > { %5631 = vmatpush.bf16.msra.mxu3 %v8255_v21  ;;  %v12022_v26 = vpop.eup %10024  ;;  %v3518_v28 = vmul.f32 %v11830_v7, %v3513_v0  ;;  %v3519_v23 = vmul.f32 %v11840_v4, %v3513_v0  ;;  %v12044_v7 = vadd.f32 %v3217_v41, %v11920_v35  ;;  %v7988_v4 = vld [vmem:[%s10768_s18 + $0xa8] sm:$0xf0]  ;;  %v8015_v41 = vor.u32 %v9571_v3, %v8012_v33 }
 0x30a   : > { %v3522_v1 = vmul.f32 %v3514_v45, %v11677_v36  ;;  %v3524_v61 = vmul.f32 %v3515_v19, %v11907_v63  ;;  %v3521_v56 = vmul.f32 %v3514_v45, %v11663_v29  ;;  %v3526_v57 = vmul.f32 %v3516_v50, %v11695_v55  ;;  %v9625_v29 = vld [vmem:[%s10768_s18 + $0x274] sm:$0xf] }
 0x30b   : > { %v3523_v36 = vmul.f32 %v3515_v19, %v11904_v9  ;;  %v3623_v44 = vmul.f32 %v12022_v26, %v11967_v54  ;;  %v9565_v9 = vld [vmem:[%s10768_s18 + $0x94] sm:$0xf]  ;;  %v3528_v20 = vmul.f32 %v3517_v49, %v11928_v5  ;;  %v3525_v40 = vmul.f32 %v3516_v50, %v11684_v46  ;;  %5620 = vmatpush.bf16.msra.mxu2 %v8015_v41 }
 0x30c   : > { %v3541_v38 = vadd.f32 %v3524_v61, %v3522_v1  ;;  %v3273_v63 = vpop.f32.mrf.mxu2  ;;  %v3220_v13 = vpop.f32.mrf.mxu0  ;;  %v3520_v45 = vmul.f32 %v11851_v31, %v3513_v0  ;;  %v8231_v60 = vor.u32 %v9625_v29, %v8228_v52  ;;  %v3530_v1 = vmul.f32 %v3518_v28, %v11941_v62  ;;  %v12997_v3 = vld [vmem:[#allocation29_spill] sm:$0xff] }
 0x30d   : > { %v12046_v55 = vpop.f32.mrf.mxu3  ;;  %v3535_v21 = vadd.f32 %v3523_v36, %v3521_v56  ;;  %v3624_v19 = vsub.f32 1.0, %v3623_v44  ;;  %v3527_v5 = vmul.f32 %v3517_v49, %v11915_v8  ;;  %vm3628_vm5 = vweird.f32 %v12022_v26  ;;  %v9559_v8 = vld [vmem:[%s10768_s18 + $0x64] sm:$0xf]  ;;  %v7964_v49 = vld [vmem:[%s10768_s18 + $0x78] sm:$0xf0] }
 0x30e   : > { %v3542_v17 = vadd.f32 %v3541_v38, %v3526_v57  ;;  %v12051_v24 = vpop.f32.mrf.mxu1  ;;  %5632 = vmatpush.bf16.msra.mxu3 %v8231_v60  ;;  %v7991_v31 = vor.u32 %v9565_v9, %v7988_v4  ;;  %v8207_v0 = vor.u32 %v9619_v51, %v8204_v34  ;;  %v3532_v50 = vmul.f32 %v3519_v23, %v11958_v59  ;;  %v9613_v44 = vld [vmem:[%s10768_s18 + $0x214] sm:$0xf]  ;;  %v8180_v9 = vld [vmem:[%s10768_s18 + $0x228] sm:$0xf0]  ;;  %vm12076_vm6 = vmor %vm3627_vm4, %vm3628_vm5 }
 0x30f   : > { %v3536_v57 = vadd.f32 %v3535_v21, %v3525_v40  ;;  %v3625_v46 = vmul.f32 %v12022_v26, %v3624_v19  ;;  %v3529_v38 = vmul.f32 %v3518_v28, %v12997_v3  ;;  %v3531_v36 = vmul.f32 %v3519_v23, %v11944_v53  ;;  %v9553_v23 = vld [vmem:[%s10768_s18 + $0x34] sm:$0xf]  ;;  %v7940_v40 = vld [vmem:[%s10768_s18 + $0x48] sm:$0xf0]  ;;  %v13001_v60 = vld [vmem:[#allocation31_spill] sm:$0xff] }
 0x310   : > { %v3543_v61 = vadd.f32 %v3542_v17, %v3528_v20  ;;  %v3533_v33 = vmul.f32 %v3520_v45, %v11992_v27  ;;  %v3300_v52 = vadd.f32 %v11988_v18, %v3272_v30  ;;  %v3534_v17 = vmul.f32 %v3520_v45, %v11995_v37  ;;  %5621 = vmatpush.bf16.msra.mxu2 %v7991_v31  ;;  %v13000_v19 = vld [vmem:[#allocation30_spill] sm:$0xff] }
 0x311   : > { %v3537_v62 = vadd.f32 %v3536_v57, %v3527_v5  ;;  %v3626_v29 = vadd.f32 %v12022_v26, %v3625_v46  ;;  %v3274_v53 = vadd.f32 %v3273_v63, %v11923_v14  ;;  %v3221_v37 = vadd.f32 %v3220_v13, %v11920_v35 }
 0x312   : > { %v3544_v56 = vadd.f32 %v3543_v61, %v3530_v1  ;;  %5633 = vmatpush.bf16.msra.mxu3 %v8207_v0  ;;  %v7967_v54 = vor.u32 %v9559_v8, %v7964_v49  ;;  %v8183_v63 = vor.u32 %v9613_v44, %v8180_v9  ;;  %v7943_v58 = vor.u32 %v9553_v23, %v7940_v40  ;;  %v8156_v8 = vld [vmem:[%s10768_s18 + $0x1f8] sm:$0xf0] }
 0x313   : > { %v3538_v59 = vadd.f32 %v3537_v62, %v3529_v38  ;;  %v3630_v18 = vsel %vm12076_vm6, %v12022_v26, %v3626_v29  ;;  %v3697_v26 = vpop.xlane.xlu2 %3696  ;;  %v9607_v62 = vld [vmem:[%s10768_s18 + $0x1e4] sm:$0xf] }
 0x314   : > { %v3545_v20 = vadd.f32 %v3544_v56, %v3532_v50  ;;  %v3276_v27 = vpop.f32.mrf.mxu2  ;;  %v3222_v21 = vpop.f32.mrf.mxu0  ;;  %v3635_v34 = vsel %vm3632_vm7, %v3634_v25, %v3630_v18  ;;  %5622 = vmatpush.bf16.msra.mxu2 %v7967_v54  ;;  %v3246_v56 = vadd.f32 %v11997_v12, %v12044_v7  ;;  %v3302_v7 = vadd.f32 %v12046_v55, %v3274_v53  ;;  %v8850_v55 = vld [vmem:[%s10768_s18 + $0x750] sm:$0xf]  ;;  %v8132_v54 = vld [vmem:[%s10768_s18 + $0x1c8] sm:$0xf0] }
 0x315   : > { %v3304_v30 = vpop.f32.mrf.mxu3  ;;  %v3539_v4 = vadd.f32 %v3538_v59, %v3531_v36  ;;  %v3636_v41 = vmul.f32 %v13000_v19, %v3635_v34  ;;  %v3637_v1 = vmul.f32 %v13001_v60, %v3635_v34  ;;  %v3638_v61 = vmul.f32 %v11886_v15, %v3635_v34  ;;  %v9784_v59 = vld [vmem:[%s10768_s18 + $0x764] sm:$0xf0]  ;;  %v9778_v19 = vld [vmem:[%s10768_s18 + $0x734] sm:$0xf0] }
 0x316   : > { %v3546_v51 = vadd.f32 %v3545_v20, %v3534_v17  ;;  %v3250_v45 = vpop.f32.mrf.mxu1  ;;  %v3639_v57 = vmul.f32 %v11897_v2, %v3635_v34  ;;  %v3223_v46 = vadd.f32 %v3222_v21, %v11920_v35  ;;  %v3249_v2 = vadd.f32 %v12051_v24, %v3221_v37  ;;  %5634 = vmatpush.bf16.msra.mxu3 %v8183_v63  ;;  %v7916_v20 = vld [vmem:[%s10768_s18 + $0x18] sm:$0xf0]  ;;  %v9601_v21 = vld [vmem:[%s10768_s18 + $0x1b4] sm:$0xf]  ;;  %v8826_v63 = vld [vmem:[%s10768_s18 + $0x720] sm:$0xf] }
 0x317   : > { %v3540_v5 = vadd.f32 %v3539_v4, %v3533_v33  ;;  %v3643_v31 = vmul.f32 %v3636_v41, %v12000_v39  ;;  %v3644_v25 = vmul.f32 %v3636_v41, %v12005_v32  ;;  %v3645_v0 = vmul.f32 %v3637_v1, %v12011_v10  ;;  %v9547_v33 = vld [vmem:[%s10768_s18 + $0x4] sm:$0xf] }
 0x318   : > { %v12090_v13 = vpack.c.bf16 %v3546_v51, %v3546_v51  ;;  %v3646_v50 = vmul.f32 %v3637_v1, %v12017_v42  ;;  %v3277_v3 = vadd.f32 %v3276_v27, %v11923_v14  ;;  %v3647_v38 = vmul.f32 %v3638_v61, %v12020_v11  ;;  %v3700_v42 = vpop.xlane.xlu0 %3699  ;;  %5623 = vmatpush.bf16.msra.mxu2 %v7943_v58  ;;  %v9595_v41 = vld [vmem:[%s10768_s18 + $0x184] sm:$0xf] }
 0x319   : > { %v12098_v15 = vpack.c.bf16 %v3540_v5, %v3540_v5  ;;  %v3657_v39 = vadd.f32 %v3645_v0, %v3643_v31  ;;  %v3640_v10 = vmul.f32 %v11901_v47, %v3635_v34  ;;  %v3648_v12 = vmul.f32 %v3638_v61, %v3300_v52  ;;  %v8108_v5 = vld [vmem:[%s10768_s18 + $0x198] sm:$0xf0]  ;;  %v9832_v31 = vld [vmem:[%s10768_s18 + $0x8e4] sm:$0xf0] }
 0x31a   : > { %5560 = vmatmul.bf16.vlgmr.msrb.gmra.mxu1 %v12090_v13  ;;  %v3663_v32 = vadd.f32 %v3646_v50, %v3644_v25  ;;  %v12110_v24 = vmul.f32 0.0625, %v3697_v26  ;;  %v3251_v49 = vadd.f32 %v3250_v45, %v3223_v46  ;;  %v3649_v29 = vmul.f32 %v3639_v57, %v3246_v56  ;;  %v9042_v46 = vld [vmem:[%s10768_s18 + $0x8d0] sm:$0xf] }
 0x31b   : > { %5547 = vmatmul.bf16.vlgmr.msrb.gmra.mxu0 %v12098_v15  ;;  %v3658_v11 = vadd.f32 %v3657_v39, %v3647_v38  ;;  %v3641_v47 = vmul.f32 %v11938_v43, %v3635_v34  ;;  %v3305_v17 = vadd.f32 %v3304_v30, %v3277_v3  ;;  %v12119_v28 = vmul.f32 0.0625, %v3700_v42  ;;  %v3694_v26 = vpop.xlane.xlu2 %3693  ;;  %v8852_v3 = vld [vmem:[%s10768_s18 + $0x768] sm:$0xf0] }
 0x31c   : > { %v3278_v36 = vpop.f32.mrf.mxu2  ;;  %v3225_v52 = vpop.f32.mrf.mxu0  ;;  %v8159_v43 = vor.u32 %v9607_v62, %v8156_v8  ;;  %v3664_v23 = vadd.f32 %v3663_v32, %v3648_v12  ;;  %v3651_v18 = vmul.f32 %v3640_v10, %v3249_v2  ;;  %v3642_v30 = vmul.f32 %v11954_v6, %v3635_v34  ;;  %v9781_v2 = vld [vmem:[%s10768_s18 + $0x754] sm:$0xf]  ;;  %v8802_v12 = vld [vmem:[%s10768_s18 + $0x6f0] sm:$0xf] }
 0x31d   : > { %v3279_v44 = vadd.f32 %v3278_v36, %v11923_v14  ;;  %v3306_v9 = vpop.f32.mrf.mxu3  ;;  %v3226_v53 = vadd.f32 %v3225_v52, %v11920_v35  ;;  %v3659_v40 = vadd.f32 %v3658_v11, %v3649_v29  ;;  %v3653_v37 = vmul.f32 %v3641_v47, %v3251_v49  ;;  %v9018_v29 = vld [vmem:[%s10768_s18 + $0x8a0] sm:$0xf] }
 0x31e   : > { %v3253_v27 = vpop.f32.mrf.mxu1  ;;  %5635 = vmatpush.bf16.msra.mxu3 %v8159_v43  ;;  %v7919_v45 = vor.u32 %v9547_v33, %v7916_v20  ;;  %v8851_v35 = vor.u32 %v9784_v59, %v8850_v55  ;;  %v3650_v60 = vmul.f32 %v3639_v57, %v3302_v7  ;;  %v3711_v61 = vmax.f32 %v12002_v16, %v12110_v24  ;;  %v9772_v7 = vld [vmem:[%s10768_s18 + $0x704] sm:$0xf0] }
 0x31f   : > { %v3254_v4 = vadd.f32 %v3253_v27, %v3226_v53  ;;  %v3660_v1 = vadd.f32 %v3659_v40, %v3651_v18  ;;  %v3307_v58 = vadd.f32 %v3306_v9, %v3279_v44  ;;  %v3712_v6 = vmax.f32 %v12014_v48, %v12119_v28  ;;  %v9826_v44 = vld [vmem:[%s10768_s18 + $0x8b4] sm:$0xf0]  ;;  %v8828_v53 = vld [vmem:[%s10768_s18 + $0x738] sm:$0xf0]  ;;  %v8778_v18 = vld [vmem:[%s10768_s18 + $0x6c0] sm:$0xf] }
 0x320   : > { %v3703_v51 = vpop.xlane.xlu1 %3702  ;;  %5624 = vmatpush.bf16.msra.mxu2 %v7919_v45  ;;  %5591 = vmatpush.bf16.msra.mxu0 %v8851_v35  ;;  %v8135_v57 = vor.u32 %v9601_v21, %v8132_v54  ;;  %v3665_v0 = vadd.f32 %v3664_v23, %v3650_v60  ;;  %v3652_v50 = vmul.f32 %v3640_v10, %v3305_v17  ;;  %v12139_v32 = vmul.f32 0.0625, %v3694_v26  ;;  %v9775_v17 = vld [vmem:[%s10768_s18 + $0x724] sm:$0xf]  ;;  %v9829_v23 = vld [vmem:[%s10768_s18 + $0x8d4] sm:$0xf] }
 0x321   : > { %v3655_v34 = vmul.f32 %v3642_v30, %v3254_v4  ;;  %v12135_v25 = vmul.f32 0.0625, %v3703_v51  ;;  %v3661_v56 = vadd.f32 %v3660_v1, %v3653_v37  ;;  %v8827_v39 = vor.u32 %v9778_v19, %v8826_v63  ;;  %v9766_v37 = vld [vmem:[%s10768_s18 + $0x6d4] sm:$0xf0]  ;;  %v9044_v4 = vld [vmem:[%s10768_s18 + $0x8e8] sm:$0xf0] }
 0x322   : > { %5636 = vmatpush.bf16.msra.mxu3 %v8135_v57  ;;  %v8111_v62 = vor.u32 %v9595_v41, %v8108_v5  ;;  %v9043_v8 = vor.u32 %v9832_v31, %v9042_v46  ;;  %v3654_v49 = vmul.f32 %v3641_v47, %v3307_v58  ;;  %v3714_v9 = vmax.f32 %v3711_v61, %v3712_v6  ;;  %v8994_v51 = vld [vmem:[%s10768_s18 + $0x870] sm:$0xf]  ;;  %v9820_v45 = vld [vmem:[%s10768_s18 + $0x884] sm:$0xf0]  ;;  %v8804_v60 = vld [vmem:[%s10768_s18 + $0x708] sm:$0xf0] }
 0x323   : > { %v3713_v38 = vmax.f32 %v12027_v22, %v12135_v25  ;;  %v3662_v10 = vadd.f32 %v3661_v56, %v3655_v34  ;;  %v8855_v55 = vor.u32 %v9781_v2, %v8852_v3  ;;  %v3666_v47 = vadd.f32 %v3665_v0, %v3652_v50  ;;  %v9823_v26 = vld [vmem:[%s10768_s18 + $0x8a4] sm:$0xf]  ;;  %v9020_v58 = vld [vmem:[%s10768_s18 + $0x8b8] sm:$0xf0]  ;;  %v8754_v5 = vld [vmem:[%s10768_s18 + $0x690] sm:$0xf] }
 0x324   : > { %v3281_v42 = vpop.f32.mrf.mxu2  ;;  %v3227_v11 = vpop.f32.mrf.mxu0  ;;  %5592 = vmatpush.bf16.msra.mxu0 %v8827_v39  ;;  %5604 = vmatpush.bf16.msra.mxu1 %v9043_v8  ;;  %v8803_v27 = vor.u32 %v9772_v7, %v8802_v12  ;;  %v9019_v40 = vor.u32 %v9826_v44, %v9018_v29  ;;  %v8831_v41 = vor.u32 %v9775_v17, %v8828_v53  ;;  %v9760_v34 = vld [vmem:[%s10768_s18 + $0x6a4] sm:$0xf0]  ;;  %v8970_v3 = vld [vmem:[%s10768_s18 + $0x840] sm:$0xf]  ;;  %v9814_v39 = vld [vmem:[%s10768_s18 + $0x854] sm:$0xf0] }
 0x325   : > { %v3282_v36 = vadd.f32 %v3281_v42, %v11923_v14  ;;  %v3309_v33 = vpop.f32.mrf.mxu3  ;;  %v3715_v52 = vmax.f32 %v3713_v38, %v12139_v32  ;;  %v12149_v59 = vpack.c.bf16 %v3662_v10, %v3662_v10  ;;  %v3667_v21 = vadd.f32 %v3666_v47, %v3654_v49  ;;  %v9763_v42 = vld [vmem:[%s10768_s18 + $0x6c4] sm:$0xf]  ;;  %v8780_v8 = vld [vmem:[%s10768_s18 + $0x6d8] sm:$0xf0]  ;;  %v9817_v12 = vld [vmem:[%s10768_s18 + $0x874] sm:$0xf] }
 0x326   : > { %v3255_v20 = vpop.f32.mrf.mxu1  ;;  %5637 = vmatpush.bf16.msra.mxu3 %v8111_v62  ;;  %v8995_v6 = vor.u32 %v9820_v45, %v8994_v51  ;;  %v8755_v7 = vor.u32 %v9760_v34, %v8754_v5  ;;  %v9023_v10 = vor.u32 %v9823_v26, %v9020_v58  ;;  %v9754_v11 = vld [vmem:[%s10768_s18 + $0x674] sm:$0xf0]  ;;  %v8946_v44 = vld [vmem:[%s10768_s18 + $0x810] sm:$0xf]  ;;  %v9811_v47 = vld [vmem:[%s10768_s18 + $0x844] sm:$0xf] }
 0x327   : > { %v3310_v14 = vadd.f32 %v3309_v33, %v3282_v36  ;;  %v12153_v43 = vmax.f32 %v3714_v9, %v3715_v52  ;;  %5573 = vmatmul.bf16.vlgmr.msrb.gmra.mxu2 %v12149_v59  ;;  %v8971_v36 = vor.u32 %v9814_v39, %v8970_v3  ;;  %v8730_v33 = vld [vmem:[%s10768_s18 + $0x660] sm:$0xf]  ;;  %v9808_v9 = vld [vmem:[%s10768_s18 + $0x824] sm:$0xf0]  ;;  %v8783_v52 = vor.u32 %v9763_v42, %v8780_v8  ;;  %v9757_v20 = vld [vmem:[%s10768_s18 + $0x694] sm:$0xf] }
 0x328   : > { %5669 = vmatpush.bf16.msrb.mxu2 %v8855_v55  ;;  %5593 = vmatpush.bf16.msra.mxu0 %v8803_v27  ;;  %v8756_v55 = vld [vmem:[%s10768_s18 + $0x6a8] sm:$0xf0]  ;;  %v8922_v51 = vld [vmem:[%s10768_s18 + $0x7e0] sm:$0xf]  ;;  %v9802_v45 = vld [vmem:[%s10768_s18 + $0x7f4] sm:$0xf0] }
 0x329   : > { %v3656_v54 = vmul.f32 %v3642_v30, %v3310_v14  ;;  %v3717_v35 = vsub.f32 %v12002_v16, %v12153_v43  ;;  %v3718_v63 = vsub.f32 %v12014_v48, %v12153_v43  ;;  %v3719_v19 = vsub.f32 %v12027_v22, %v12153_v43  ;;  %v9769_v30 = vld [vmem:[%s10768_s18 + $0x6f4] sm:$0xf]  ;;  %5605 = vmatpush.bf16.msra.mxu1 %v9019_v40  ;;  %v8706_v40 = vld [vmem:[%s10768_s18 + $0x630] sm:$0xf]  ;;  %v8682_v5 = vld [vmem:[%s10768_s18 + $0x600] sm:$0xf] }
 0x32a   : > { %v3720_v1 = vsub.f32 %v12139_v32, %v12153_v43  ;;  %v8779_v16 = vor.u32 %v9766_v37, %v8778_v18  ;;  %v9047_v22 = vor.u32 %v9829_v23, %v9044_v4  ;;  %v3721_v57 = vsub.f32 %v12110_v24, %v12153_v43  ;;  %v9748_v18 = vld [vmem:[%s10768_s18 + $0x644] sm:$0xf0]  ;;  %v8972_v4 = vld [vmem:[%s10768_s18 + $0x858] sm:$0xf0]  ;;  %v9805_v58 = vld [vmem:[%s10768_s18 + $0x814] sm:$0xf] }
 0x32b   : > { %v3668_v61 = vadd.f32 %v3667_v21, %v3656_v54  ;;  %v3724_v48 = vmul.f32 1.442695, %v3717_v35  ;;  %v3726_v46 = vmul.f32 1.442695, %v3718_v63  ;;  %v3728_v0 = vmul.f32 1.442695, %v3719_v19 }
 0x32c   : > { %v3283_v31 = vpop.f32.mrf.mxu2  ;;  %v12180_v2 = vpop.f32.mrf.mxu0  ;;  %5670 = vmatpush.bf16.msrb.mxu2 %v8831_v41  ;;  %v8807_v38 = vor.u32 %v9769_v30, %v8804_v60  ;;  %v3722_v24 = vsub.f32 %v12119_v28, %v12153_v43  ;;  %v3730_v62 = vmul.f32 1.442695, %v3720_v1  ;;  %5594 = vmatpush.bf16.msra.mxu0 %v8779_v16  ;;  %v3723_v49 = vsub.f32 %v12135_v25, %v12153_v43  ;;  %v8996_v28 = vld [vmem:[%s10768_s18 + $0x888] sm:$0xf0]  ;;  %v9751_v30 = vld [vmem:[%s10768_s18 + $0x664] sm:$0xf] }
 0x32d   : > { %v12178_v50 = vpack.c.bf16 %v3668_v61, %v3668_v61  ;;  %v3311_v56 = vpop.f32.mrf.mxu3  ;;  %10026 = vpow2.f32 %v3724_v48  ;;  %5606 = vmatpush.bf16.msra.mxu1 %v8995_v6  ;;  %v3732_v29 = vmul.f32 1.442695, %v3721_v57  ;;  %v8731_v14 = vor.u32 %v9754_v11, %v8730_v33  ;;  %v8732_v60 = vld [vmem:[%s10768_s18 + $0x678] sm:$0xf0]  ;;  %v9742_v48 = vld [vmem:[%s10768_s18 + $0x614] sm:$0xf0] }
 0x32e   : > { %v12184_v32 = vpop.f32.mrf.mxu1  ;;  %10028 = vpow2.f32 %v3726_v46  ;;  %v3734_v25 = vmul.f32 1.442695, %v3722_v24  ;;  %v3736_v53 = vmul.f32 1.442695, %v3723_v49  ;;  %v8999_v43 = vor.u32 %v9817_v12, %v8996_v28  ;;  %v8948_v31 = vld [vmem:[%s10768_s18 + $0x828] sm:$0xf0] }
 0x32f   : > { %5586 = vmatmul.bf16.vlgmr.msrb.gmra.mxu3 %v12178_v50  ;;  %10030 = vpow2.f32 %v3728_v0  ;;  %v8947_v23 = vor.u32 %v9808_v9, %v8946_v44  ;;  %v8759_v19 = vor.u32 %v9757_v20, %v8756_v55  ;;  %v8707_v1 = vor.u32 %v9748_v18, %v8706_v40  ;;  %v8468_v6 = vld [vmem:[%s10768_s18 + $0x468] sm:$0xf0]  ;;  %v8898_v0 = vld [vmem:[%s10768_s18 + $0x7b0] sm:$0xf]  ;;  %v9796_v56 = vld [vmem:[%s10768_s18 + $0x7c4] sm:$0xf0] }
 0x330   : > { %5682 = vmatpush.bf16.msrb.mxu3 %v9047_v22  ;;  %5671 = vmatpush.bf16.msrb.mxu2 %v8807_v38  ;;  %10032 = vpow2.f32 %v3730_v62  ;;  %v8975_v26 = vor.u32 %v9811_v47, %v8972_v4  ;;  %v8923_v16 = vor.u32 %v9802_v45, %v8922_v51  ;;  %v9685_v22 = vld [vmem:[%s10768_s18 + $0x454] sm:$0xf]  ;;  %v8735_v57 = vor.u32 %v9751_v30, %v8732_v60  ;;  %v8708_v38 = vld [vmem:[%s10768_s18 + $0x648] sm:$0xf0]  ;;  %v9799_v12 = vld [vmem:[%s10768_s18 + $0x7e4] sm:$0xf] }
 0x331   : > { %5595 = vmatpush.bf16.msra.mxu0 %v8755_v7  ;;  %5607 = vmatpush.bf16.msra.mxu1 %v8971_v36  ;;  %10034 = vpow2.f32 %v3732_v29  ;;  %v9745_v39 = vld [vmem:[%s10768_s18 + $0x634] sm:$0xf]  ;;  %v8683_v42 = vor.u32 %v9742_v48, %v8682_v5  ;;  %v8951_v8 = vor.u32 %v9805_v58, %v8948_v31  ;;  %v8471_v7 = vor.u32 %v9685_v22, %v8468_v6  ;;  %v8924_v36 = vld [vmem:[%s10768_s18 + $0x7f8] sm:$0xf0]  ;;  %v9679_v11 = vld [vmem:[%s10768_s18 + $0x424] sm:$0xf] }
 0x332   : > { %10036 = vpow2.f32 %v3734_v25  ;;  %v8899_v33 = vor.u32 %v9796_v56, %v8898_v0  ;;  %v8444_v29 = vld [vmem:[%s10768_s18 + $0x438] sm:$0xf0]  ;;  %v9739_v20 = vld [vmem:[%s10768_s18 + $0x604] sm:$0xf]  ;;  %v8874_v25 = vld [vmem:[%s10768_s18 + $0x780] sm:$0xf]  ;;  %v8927_v40 = vor.u32 %v9799_v12, %v8924_v36 }
 0x333   : > { %v12202_v17 = vpop.eup %10026  ;;  %10038 = vpow2.f32 %v3736_v53  ;;  %v9790_v55 = vld [vmem:[%s10768_s18 + $0x794] sm:$0xf0]  ;;  %v9733_v53 = vld [vmem:[%s10768_s18 + $0x5d4] sm:$0xf]  ;;  %v9689_v4 = vld [vmem:[%s10768_s18 + $0x46c] sm:$0xf0]  ;;  %v8447_v45 = vor.u32 %v9679_v11, %v8444_v29 }
 0x334   : > { %v12204_v27 = vpop.f32.mrf.mxu2  ;;  %5683 = vmatpush.bf16.msrb.mxu3 %v9023_v10  ;;  %v12208_v37 = vpop.eup %10028  ;;  %5672 = vmatpush.bf16.msrb.mxu2 %v8783_v52  ;;  %v8711_v52 = vor.u32 %v9745_v39, %v8708_v38  ;;  %v8474_v18 = vld [vmem:[%s10768_s18 + $0x458] sm:$0xf]  ;;  %v9793_v51 = vld [vmem:[%s10768_s18 + $0x7b4] sm:$0xf]  ;;  %v8420_v60 = vld [vmem:[%s10768_s18 + $0x408] sm:$0xf0] }
 0x335   : > { %v12210_v21 = vpop.f32.mrf.mxu3  ;;  %v12212_v54 = vpop.f32.mrf.mxu0  ;;  %v3738_v35 = vadd.f32 %v12208_v37, %v12202_v17  ;;  %5596 = vmatpush.bf16.msra.mxu0 %v8731_v14  ;;  %5608 = vmatpush.bf16.msra.mxu1 %v8947_v23  ;;  %v8684_v14 = vld [vmem:[%s10768_s18 + $0x618] sm:$0xf0]  ;;  %v9673_v30 = vld [vmem:[%s10768_s18 + $0x3f4] sm:$0xf]  ;;  %v9727_v58 = vld [vmem:[%s10768_s18 + $0x5a4] sm:$0xf] }
 0x336   : > { %v12219_v63 = vpop.f32.mrf.mxu1  ;;  %v12221_v41 = vpop.eup %10030  ;;  %v8450_v31 = vld [vmem:[%s10768_s18 + $0x428] sm:$0xf]  ;;  %v9683_v22 = vld [vmem:[%s10768_s18 + $0x43c] sm:$0xf0]  ;;  %v9787_v6 = vld [vmem:[%s10768_s18 + $0x784] sm:$0xf] }
 0x337   : > { %v3739_v61 = vadd.f32 %v12221_v41, %v3738_v35  ;;  %v12229_v46 = vpop.eup %10032  ;;  %5625 = vmatmul.bf16.vlgmr.msra.gmra.mxu2 %v12098_v15  ;;  %v8900_v35 = vld [vmem:[%s10768_s18 + $0x7c8] sm:$0xf0]  ;;  %v8876_v56 = vld [vmem:[%s10768_s18 + $0x798] sm:$0xf0]  ;;  %v9667_v39 = vld [vmem:[%s10768_s18 + $0x3c4] sm:$0xf] }
 0x338   : > { %5684 = vmatpush.bf16.msrb.mxu3 %v8999_v43  ;;  %5673 = vmatpush.bf16.msrb.mxu2 %v8759_v19  ;;  %v12238_v3 = vpop.eup %10034  ;;  %v8660_v43 = vld [vmem:[%s10768_s18 + $0x5e8] sm:$0xf0]  ;;  %v8875_v19 = vor.u32 %v9790_v55, %v8874_v25  ;;  %v8903_v48 = vor.u32 %v9793_v51, %v8900_v35  ;;  %v8396_v38 = vld [vmem:[%s10768_s18 + $0x3d8] sm:$0xf0]  ;;  %v9721_v11 = vld [vmem:[%s10768_s18 + $0x574] sm:$0xf] }
 0x339   : > { %v3740_v34 = vadd.f32 %v12229_v46, %v3739_v61  ;;  %5597 = vmatpush.bf16.msra.mxu0 %v8707_v1  ;;  %5609 = vmatpush.bf16.msra.mxu1 %v8923_v16  ;;  %v12246_v49 = vpop.eup %10036  ;;  %v8687_v1 = vor.u32 %v9739_v20, %v8684_v14  ;;  %v8663_v61 = vor.u32 %v9733_v53, %v8660_v43  ;;  %v8636_v16 = vld [vmem:[%s10768_s18 + $0x5b8] sm:$0xf0]  ;;  %v8612_v29 = vld [vmem:[%s10768_s18 + $0x588] sm:$0xf0]  ;;  %v8426_v25 = vld [vmem:[%s10768_s18 + $0x3f8] sm:$0xf] }
 0x33a   : > { %v12261_v47 = vpop.eup %10038  ;;  %v8639_v12 = vor.u32 %v9727_v58, %v8636_v16  ;;  %v8879_v20 = vor.u32 %v9787_v6, %v8876_v56  ;;  %v9677_v55 = vld [vmem:[%s10768_s18 + $0x40c] sm:$0xf0]  ;;  %v8399_v14 = vor.u32 %v9667_v39, %v8396_v38  ;;  %v9731_v51 = vld [vmem:[%s10768_s18 + $0x5bc] sm:$0xf0]  ;;  %v8402_v16 = vld [vmem:[%s10768_s18 + $0x3c8] sm:$0xf] }
 0x33b   : > { %v3741_v24 = vadd.f32 %v12238_v3, %v3740_v34  ;;  %v8423_v34 = vor.u32 %v9673_v30, %v8420_v60  ;;  %v8427_v30 = vor.u32 %v9677_v55, %v8426_v25  ;;  %v9715_v60 = vld [vmem:[%s10768_s18 + $0x544] sm:$0xf]  ;;  %v8348_v39 = vld [vmem:[%s10768_s18 + $0x378] sm:$0xf0] }
 0x33c   : > { %v12243_v62 = vpop.f32.mrf.mxu2  ;;  %5685 = vmatpush.bf16.msrb.mxu3 %v8975_v26  ;;  %5674 = vmatpush.bf16.msrb.mxu2 %v8735_v57  ;;  %v8475_v26 = vor.u32 %v9689_v4, %v8474_v18  ;;  %v8372_v18 = vld [vmem:[%s10768_s18 + $0x3a8] sm:$0xf0]  ;;  %v8642_v4 = vld [vmem:[%s10768_s18 + $0x5a8] sm:$0xf]  ;;  %v9655_v56 = vld [vmem:[%s10768_s18 + $0x364] sm:$0xf] }
 0x33d   : > { %v12248_v10 = vpop.f32.mrf.mxu3  ;;  %v12250_v28 = vpop.f32.mrf.mxu0  ;;  %v3742_v44 = vadd.f32 %v12246_v49, %v3741_v24  ;;  %5598 = vmatpush.bf16.msra.mxu0 %v8683_v42  ;;  %5610 = vmatpush.bf16.msra.mxu1 %v8899_v33  ;;  %v8666_v24 = vld [vmem:[%s10768_s18 + $0x5d8] sm:$0xf]  ;;  %v8451_v33 = vor.u32 %v9683_v22, %v8450_v31 }
 0x33e   : > { %v12256_v9 = vpop.f32.mrf.mxu1 }
 0x33f   : > { %5638 = vmatmul.bf16.vlgmr.msra.gmra.mxu3 %v12090_v13  ;;  %v12268_v23 = vadd.f32 %v12261_v47, %v3742_v44 }
 0x340   : > { %5686 = vmatpush.bf16.msrb.mxu3 %v8951_v8  ;;  %5675 = vmatpush.bf16.msrb.mxu2 %v8711_v52  ;;  %v9737_v8 = vld [vmem:[%s10768_s18 + $0x5ec] sm:$0xf0] }
 0x341   : > { %5643 = vmatpush.bf16.msrb.mxu0 %v8471_v7  ;;  %10040 = vrcp.f32 %v12268_v23  ;;  %5611 = vmatpush.bf16.msra.mxu1 %v8875_v19  ;;  %v10042_v7 = vld [vmem:[%s663_s19] sm:$0x3f]  ;;  %v8667_v43 = vor.u32 %v9737_v8, %v8666_v24  ;;  %v3753_v22 = vand.u32 2147483647, %v12268_v23  ;;  %vm3749_vm9 = vweird.f32 %v12268_v23 }
 0x342   : > { %v12297_v36 = vperm.slane %v10042_v7, 4  ;;  %v12303_v52 = vperm.slane %v10042_v7, 5  ;;  %v8618_v8 = vld [vmem:[%s10768_s18 + $0x578] sm:$0xf] }
 0x343   : > { %vm3754_vm11 = vcmp.eq.f32.partialorder %v3753_v22, 8.507059e+37 }
 0x344   : > { %v12279_v5 = vpop.f32.mrf.mxu2  ;;  %5687 = vmatpush.bf16.msrb.mxu3 %v8927_v40  ;;  %5676 = vmatpush.bf16.msrb.mxu2 %v8687_v1  ;;  %v9661_v40 = vld [vmem:[%s10768_s18 + $0x394] sm:$0xf]  ;;  %v3323_v19 = vadd.f32 %v12180_v2, %v12297_v36  ;;  %v8588_v1 = vld [vmem:[%s10768_s18 + $0x558] sm:$0xf0]  ;;  %v3325_v38 = vadd.f32 %v12212_v54, %v12297_v36  ;;  %v8564_v54 = vld [vmem:[%s10768_s18 + $0x528] sm:$0xf0] }
 0x345   : > { %5644 = vmatpush.bf16.msrb.mxu0 %v8447_v45  ;;  %v12284_v57 = vpop.f32.mrf.mxu3  ;;  %v12286_v0 = vpop.f32.mrf.mxu0  ;;  %5656 = vmatpush.bf16.msrb.mxu1 %v8663_v61  ;;  %v8615_v45 = vor.u32 %v9721_v11, %v8612_v29  ;;  %v3755_v61 = vand.u32 2147483648, %v12268_v23  ;;  %v8375_v2 = vor.u32 %v9661_v40, %v8372_v18  ;;  %v8591_v7 = vor.u32 %v9715_v60, %v8588_v1 }
 0x346   : > { %v12291_v42 = vpop.f32.mrf.mxu1 }
 0x347   : > { %v12301_v44 = vpop.eup %10040  ;;  %v3756_v55 = vor.u32 1.1754944e-38, %v3755_v61 }
 0x348   : > { %5721 = vmatpush.bf16.msra.mxu2 %v8475_v26  ;;  %5688 = vmatpush.bf16.msrb.mxu3 %v8903_v48  ;;  %v3745_v53 = vmul.f32 %v12301_v44, %v12268_v23  ;;  %v3379_v26 = vadd.f32 %v12204_v27, %v12303_v52  ;;  %v9671_v48 = vld [vmem:[%s10768_s18 + $0x3dc] sm:$0xf0]  ;;  %vm3750_vm8 = vweird.f32 %v12301_v44  ;;  %v8643_v27 = vor.u32 %v9731_v51, %v8642_v4  ;;  %v8378_v23 = vld [vmem:[%s10768_s18 + $0x398] sm:$0xf] }
 0x349   : > { %5645 = vmatpush.bf16.msrb.mxu0 %v8423_v34  ;;  %5657 = vmatpush.bf16.msrb.mxu1 %v8639_v12  ;;  %v9725_v12 = vld [vmem:[%s10768_s18 + $0x58c] sm:$0xf0]  ;;  %v8403_v29 = vor.u32 %v9671_v48, %v8402_v16  ;;  %vm12344_vm10 = vmor %vm3749_vm9, %vm3750_vm8  ;;  %v8540_v16 = vld [vmem:[%s10768_s18 + $0x4f8] sm:$0xf0] }
 0x34a   : > { %v3746_v35 = vsub.f32 1.0, %v3745_v53  ;;  %v9665_v53 = vld [vmem:[%s10768_s18 + $0x3ac] sm:$0xf0]  ;;  %v3407_v18 = vadd.f32 %v12210_v21, %v3379_v26  ;;  %v8619_v4 = vor.u32 %v9725_v12, %v8618_v8  ;;  %v9659_v26 = vld [vmem:[%s10768_s18 + $0x37c] sm:$0xf0] }
 0x34c   : > { %5722 = vmatpush.bf16.msra.mxu2 %v8451_v33  ;;  %v12320_v58 = vpop.f32.mrf.mxu2  ;;  %5689 = vmatpush.bf16.msrb.mxu3 %v8879_v20  ;;  %v3747_v31 = vmul.f32 %v12301_v44, %v3746_v35  ;;  %v3351_v33 = vadd.f32 %v12184_v32, %v3323_v19  ;;  %v9709_v20 = vld [vmem:[%s10768_s18 + $0x514] sm:$0xf]  ;;  %v3381_v32 = vadd.f32 %v12243_v62, %v12303_v52  ;;  %v8594_v19 = vld [vmem:[%s10768_s18 + $0x548] sm:$0xf] }
 0x34d   : > { %5646 = vmatpush.bf16.msrb.mxu0 %v8399_v14  ;;  %v12327_v6 = vpop.f32.mrf.mxu3  ;;  %v3332_v34 = vpop.f32.mrf.mxu0  ;;  %5658 = vmatpush.bf16.msrb.mxu1 %v8615_v45  ;;  %v3328_v14 = vadd.f32 %v12250_v28, %v12297_v36  ;;  %v9649_v62 = vld [vmem:[%s10768_s18 + $0x334] sm:$0xf]  ;;  %v8324_v28 = vld [vmem:[%s10768_s18 + $0x348] sm:$0xf0]  ;;  %v3353_v45 = vadd.f32 %v12219_v63, %v3325_v38  ;;  %v3330_v35 = vadd.f32 %v12286_v0, %v12297_v36  ;;  %v9703_v0 = vld [vmem:[%s10768_s18 + $0x4e4] sm:$0xf] }
 0x34e   : > { %v12333_v24 = vpop.f32.mrf.mxu1  ;;  %v3748_v11 = vadd.f32 %v12301_v44, %v3747_v31  ;;  %v8567_v60 = vor.u32 %v9709_v20, %v8564_v54  ;;  %v8379_v63 = vor.u32 %v9665_v53, %v8378_v23  ;;  %v3409_v48 = vadd.f32 %v12248_v10, %v3381_v32  ;;  %v8516_v32 = vld [vmem:[%s10768_s18 + $0x4c8] sm:$0xf0]  ;;  %v8330_v23 = vld [vmem:[%s10768_s18 + $0x338] sm:$0xf]  ;;  %v9653_v53 = vld [vmem:[%s10768_s18 + $0x34c] sm:$0xf0] }
 0x34f   : > { %v3384_v38 = vadd.f32 %v12279_v5, %v12303_v52  ;;  %v3358_v8 = vadd.f32 %v12291_v42, %v3330_v35 }
 0x350   : > { %5734 = vmatpush.bf16.msra.mxu3 %v8667_v43  ;;  %5723 = vmatpush.bf16.msra.mxu2 %v8427_v30  ;;  %v8351_v43 = vor.u32 %v9655_v56, %v8348_v39  ;;  %v3752_v40 = vsel %vm12344_vm10, %v12301_v44, %v3748_v11  ;;  %v9719_v44 = vld [vmem:[%s10768_s18 + $0x55c] sm:$0xf0]  ;;  %v8354_v30 = vld [vmem:[%s10768_s18 + $0x368] sm:$0xf]  ;;  %v8543_v11 = vor.u32 %v9703_v0, %v8540_v16 }
 0x351   : > { %5647 = vmatpush.bf16.msrb.mxu0 %v8375_v2  ;;  %v12360_v51 = vsel %vm3754_vm11, %v3756_v55, %v3752_v40  ;;  %5659 = vmatpush.bf16.msrb.mxu1 %v8591_v7  ;;  %v3356_v2 = vadd.f32 %v12256_v9, %v3328_v14  ;;  %v8595_v10 = vor.u32 %v9719_v44, %v8594_v19  ;;  %v9643_v9 = vld [vmem:[%s10768_s18 + $0x304] sm:$0xf]  ;;  %v9697_v55 = vld [vmem:[%s10768_s18 + $0x4b4] sm:$0xf]  ;;  %v9647_v0 = vld [vmem:[%s10768_s18 + $0x31c] sm:$0xf0] }
 0x352   : > { %v3758_v21 = vmul.f32 %v12202_v17, %v12360_v51  ;;  %v3759_v1 = vmul.f32 %v12208_v37, %v12360_v51  ;;  %v12374_v61 = vmul.f32 %v12221_v41, %v12360_v51  ;;  %v3333_v17 = vadd.f32 %v3332_v34, %v12297_v36  ;;  %v8300_v34 = vld [vmem:[%s10768_s18 + $0x318] sm:$0xf0] }
 0x353   : > { %v8327_v37 = vor.u32 %v9649_v62, %v8324_v28  ;;  %v8355_v7 = vor.u32 %v9659_v26, %v8354_v30  ;;  %v12401_v42 = vmul.f32 %v12238_v3, %v12360_v51  ;;  %v3386_v62 = vadd.f32 %v12320_v58, %v12303_v52  ;;  %v8546_v28 = vld [vmem:[%s10768_s18 + $0x4e8] sm:$0xf] }
 0x354   : > { %5735 = vmatpush.bf16.msra.mxu3 %v8643_v27  ;;  %5724 = vmatpush.bf16.msra.mxu2 %v8403_v29  ;;  %v3388_v31 = vpop.f32.mrf.mxu2  ;;  %v3765_v41 = vmul.f32 %v3758_v21, %v3351_v33  ;;  %v3767_v22 = vmul.f32 %v3759_v1, %v3353_v45  ;;  %v12384_v27 = vmul.f32 %v12229_v46, %v12360_v51  ;;  %v8570_v46 = vld [vmem:[%s10768_s18 + $0x518] sm:$0xf]  ;;  %v9713_v33 = vld [vmem:[%s10768_s18 + $0x52c] sm:$0xf0]  ;;  %v9707_v45 = vld [vmem:[%s10768_s18 + $0x4fc] sm:$0xf0] }
 0x355   : > { %5648 = vmatpush.bf16.msrb.mxu0 %v8351_v43  ;;  %v12386_v56 = vpop.f32.mrf.mxu3  ;;  %v3334_v39 = vpop.f32.mrf.mxu0  ;;  %5660 = vmatpush.bf16.msrb.mxu1 %v8567_v60  ;;  %v3766_v29 = vmul.f32 %v3758_v21, %v3407_v18  ;;  %v3768_v54 = vmul.f32 %v3759_v1, %v3409_v48  ;;  %v3769_v25 = vmul.f32 %v12374_v61, %v3356_v2  ;;  %v9691_v21 = vld [vmem:[%s10768_s18 + $0x484] sm:$0xf]  ;;  %v8492_v1 = vld [vmem:[%s10768_s18 + $0x498] sm:$0xf0]  ;;  %v8306_v26 = vld [vmem:[%s10768_s18 + $0x308] sm:$0xf] }
 0x356   : > { %v3362_v12 = vpop.f32.mrf.mxu1  ;;  %v3779_v20 = vadd.f32 %v3767_v22, %v3765_v41  ;;  %v3361_v5 = vadd.f32 %v12333_v24, %v3333_v17  ;;  %v3335_v14 = vadd.f32 %v3334_v39, %v12297_v36  ;;  %v8303_v43 = vor.u32 %v9643_v9, %v8300_v34  ;;  %v8522_v39 = vld [vmem:[%s10768_s18 + $0x4b8] sm:$0xf] }
 0x357   : > { %v3771_v18 = vmul.f32 %v12384_v27, %v3358_v8  ;;  %v3412_v24 = vadd.f32 %v12284_v57, %v3384_v38  ;;  %v8519_v35 = vor.u32 %v9697_v55, %v8516_v32  ;;  %v3785_v19 = vadd.f32 %v3768_v54, %v3766_v29  ;;  %v9593_v54 = vld [vmem:[%s10768_s18 + $0x16c] sm:$0xf0] }
 0x358   : > { %5736 = vmatpush.bf16.msra.mxu3 %v8619_v4  ;;  %5725 = vmatpush.bf16.msra.mxu2 %v8379_v63  ;;  %v3780_v40 = vadd.f32 %v3779_v20, %v3769_v25  ;;  %v8571_v4 = vor.u32 %v9713_v33, %v8570_v46  ;;  %v3363_v3 = vadd.f32 %v3362_v12, %v3335_v14  ;;  %v8090_v33 = vld [vmem:[%s10768_s18 + $0x158] sm:$0xf]  ;;  %v8092_v25 = vld [vmem:[%s10768_s18 + $0x170] sm:$0xf0] }
 0x359   : > { %5649 = vmatpush.bf16.msrb.mxu0 %v8327_v37  ;;  %5661 = vmatpush.bf16.msrb.mxu1 %v8543_v11  ;;  %v3389_v30 = vadd.f32 %v3388_v31, %v12303_v52  ;;  %v8331_v60 = vor.u32 %v9653_v53, %v8330_v23  ;;  %v3773_v57 = vmul.f32 %v12401_v42, %v3361_v5 }
 0x35a   : > { %v3781_v44 = vadd.f32 %v3780_v40, %v3771_v18  ;;  %v3763_v58 = vmul.f32 %v12246_v49, %v12360_v51  ;;  %v3770_v16 = vmul.f32 %v12374_v61, %v3412_v24  ;;  %v8547_v31 = vor.u32 %v9707_v45, %v8546_v28  ;;  %v8066_v18 = vld [vmem:[%s10768_s18 + $0x128] sm:$0xf] }
 0x35b   : > { %v8495_v9 = vor.u32 %v9691_v21, %v8492_v1  ;;  %v3414_v61 = vadd.f32 %v12327_v6, %v3386_v62  ;;  %v3417_v38 = vadd.f32 %v12386_v56, %v3389_v30  ;;  %v8307_v8 = vor.u32 %v9647_v0, %v8306_v26  ;;  %v9590_v6 = vld [vmem:[%s10768_s18 + $0x15c] sm:$0xf]  ;;  %v9584_v62 = vld [vmem:[%s10768_s18 + $0x12c] sm:$0xf]  ;;  %v8044_v0 = vld [vmem:[%s10768_s18 + $0x110] sm:$0xf0] }
 0x35c   : > { %5737 = vmatpush.bf16.msra.mxu3 %v8595_v10  ;;  %5726 = vmatpush.bf16.msra.mxu2 %v8355_v7  ;;  %v3390_v63 = vpop.f32.mrf.mxu2  ;;  %v3782_v37 = vadd.f32 %v3781_v44, %v3773_v57  ;;  %v3775_v41 = vmul.f32 %v3763_v58, %v3363_v3  ;;  %v9701_v10 = vld [vmem:[%s10768_s18 + $0x4cc] sm:$0xf0]  ;;  %v3786_v34 = vadd.f32 %v3785_v19, %v3770_v16  ;;  %v8068_v3 = vld [vmem:[%s10768_s18 + $0x140] sm:$0xf0]  ;;  %v8282_v19 = vld [vmem:[%s10768_s18 + $0x2d8] sm:$0xf] }
 0x35d   : > { %5650 = vmatpush.bf16.msrb.mxu0 %v8303_v43  ;;  %v3391_v48 = vadd.f32 %v3390_v63, %v12303_v52  ;;  %v3418_v2 = vpop.f32.mrf.mxu3  ;;  %v3337_v17 = vpop.f32.mrf.mxu0  ;;  %5662 = vmatpush.bf16.msrb.mxu1 %v8519_v35  ;;  %v3772_v7 = vmul.f32 %v12384_v27, %v3414_v61  ;;  %v8523_v11 = vor.u32 %v9701_v10, %v8522_v39  ;;  %v9641_v44 = vld [vmem:[%s10768_s18 + $0x2ec] sm:$0xf0]  ;;  %v9638_v1 = vld [vmem:[%s10768_s18 + $0x2dc] sm:$0xf]  ;;  %v8284_v57 = vld [vmem:[%s10768_s18 + $0x2f0] sm:$0xf0] }
 0x35e   : > { %v3338_v22 = vadd.f32 %v3337_v17, %v12297_v36  ;;  %v3365_v49 = vpop.f32.mrf.mxu1  ;;  %v3764_v36 = vmul.f32 %v12261_v47, %v12360_v51  ;;  %v3783_v29 = vadd.f32 %v3782_v37, %v3775_v41  ;;  %v3774_v55 = vmul.f32 %v12401_v42, %v3417_v38  ;;  %v8498_v47 = vld [vmem:[%s10768_s18 + $0x488] sm:$0xf]  ;;  %v9695_v51 = vld [vmem:[%s10768_s18 + $0x49c] sm:$0xf0]  ;;  %v9581_v63 = vld [vmem:[%s10768_s18 + $0x10c] sm:$0xf0] }
 0x35f   : > { %v3419_v46 = vadd.f32 %v3418_v2, %v3391_v48  ;;  %v3787_v56 = vadd.f32 %v3786_v34, %v3772_v7  ;;  %v8091_v43 = vor.u32 %v9593_v54, %v8090_v33  ;;  %v8095_v40 = vor.u32 %v9590_v6, %v8092_v25  ;;  %v9578_v26 = vld [vmem:[%s10768_s18 + $0xfc] sm:$0xf]  ;;  %v9635_v37 = vld [vmem:[%s10768_s18 + $0x2bc] sm:$0xf0]  ;;  %v9632_v10 = vld [vmem:[%s10768_s18 + $0x2ac] sm:$0xf] }
 0x360   : > { %5738 = vmatpush.bf16.msra.mxu3 %v8571_v4  ;;  %5727 = vmatpush.bf16.msra.mxu2 %v8331_v60  ;;  %v3366_v12 = vadd.f32 %v3365_v49, %v3338_v22  ;;  %v9587_v4 = vld [vmem:[%s10768_s18 + $0x13c] sm:$0xf0]  ;;  %v8499_v28 = vor.u32 %v9695_v51, %v8498_v47  ;;  %v8071_v21 = vor.u32 %v9584_v62, %v8068_v3  ;;  %v8018_v34 = vld [vmem:[%s10768_s18 + $0xc8] sm:$0xf]  ;;  %v9572_v38 = vld [vmem:[%s10768_s18 + $0xcc] sm:$0xf] }
 0x361   : > { %5663 = vmatpush.bf16.msrb.mxu1 %v8495_v9  ;;  %v3776_v5 = vmul.f32 %v3763_v58, %v3419_v46  ;;  %v3788_v45 = vadd.f32 %v3787_v56, %v3774_v55  ;;  %v8067_v35 = vor.u32 %v9587_v4, %v8066_v18  ;;  %v8042_v58 = vld [vmem:[%s10768_s18 + $0xf8] sm:$0xf]  ;;  %v8283_v2 = vor.u32 %v9641_v44, %v8282_v19  ;;  %v8260_v9 = vld [vmem:[%s10768_s18 + $0x2c0] sm:$0xf0]  ;;  %v9575_v61 = vld [vmem:[%s10768_s18 + $0xdc] sm:$0xf0] }
 0x362   : > { %v3777_v20 = vmul.f32 %v3764_v36, %v3366_v12  ;;  %v8287_v17 = vor.u32 %v9638_v1, %v8284_v57  ;;  %v8043_v49 = vor.u32 %v9581_v63, %v8042_v58  ;;  %v8047_v39 = vor.u32 %v9578_v26, %v8044_v0  ;;  %v8234_v7 = vld [vmem:[%s10768_s18 + $0x278] sm:$0xf]  ;;  %v9569_v6 = vld [vmem:[%s10768_s18 + $0xac] sm:$0xf0]  ;;  %v9566_v25 = vld [vmem:[%s10768_s18 + $0x9c] sm:$0xf] }
 0x363   : > { %v3789_v30 = vadd.f32 %v3788_v45, %v3776_v5  ;;  %v8019_v46 = vor.u32 %v9575_v61, %v8018_v34  ;;  %v7994_v54 = vld [vmem:[%s10768_s18 + $0x98] sm:$0xf]  ;;  %v7996_v56 = vld [vmem:[%s10768_s18 + $0xb0] sm:$0xf0]  ;;  %v8210_v51 = vld [vmem:[%s10768_s18 + $0x248] sm:$0xf] }
 0x364   : > { %5739 = vmatpush.bf16.msra.mxu3 %v8547_v31  ;;  %5728 = vmatpush.bf16.msra.mxu2 %v8307_v8  ;;  %v3784_v27 = vadd.f32 %v3783_v29, %v3777_v20  ;;  %v3393_v32 = vpop.f32.mrf.mxu2  ;;  %v8258_v31 = vld [vmem:[%s10768_s18 + $0x2a8] sm:$0xf]  ;;  %v8020_v8 = vld [vmem:[%s10768_s18 + $0xe0] sm:$0xf0]  ;;  %v9626_v29 = vld [vmem:[%s10768_s18 + $0x27c] sm:$0xf] }
 0x365   : > { %v3394_v14 = vadd.f32 %v3393_v32, %v12303_v52  ;;  %v3421_v23 = vpop.f32.mrf.mxu3  ;;  %v3339_v53 = vpop.f32.mrf.mxu0  ;;  %v8259_v12 = vor.u32 %v9635_v37, %v8258_v31  ;;  %v8023_v33 = vor.u32 %v9572_v38, %v8020_v8  ;;  %v8236_v20 = vld [vmem:[%s10768_s18 + $0x290] sm:$0xf0]  ;;  %v9620_v32 = vld [vmem:[%s10768_s18 + $0x24c] sm:$0xf]  ;;  %v8212_v5 = vld [vmem:[%s10768_s18 + $0x260] sm:$0xf0] }
 0x366   : > { %v12440_v42 = vpack.c.bf16 %v3784_v27, %v3784_v27  ;;  %v3367_v24 = vpop.f32.mrf.mxu1  ;;  %v8239_v47 = vor.u32 %v9626_v29, %v8236_v20  ;;  %v9623_v27 = vld [vmem:[%s10768_s18 + $0x25c] sm:$0xf0]  ;;  %v7970_v53 = vld [vmem:[%s10768_s18 + $0x68] sm:$0xf]  ;;  %v7972_v18 = vld [vmem:[%s10768_s18 + $0x80] sm:$0xf0] }
 0x367   : > { %v3422_v52 = vadd.f32 %v3421_v23, %v3394_v14  ;;  %v7995_v14 = vor.u32 %v9569_v6, %v7994_v54  ;;  %v7999_v23 = vor.u32 %v9566_v25, %v7996_v56  ;;  %v8211_v4 = vor.u32 %v9623_v27, %v8210_v51  ;;  %v8186_v62 = vld [vmem:[%s10768_s18 + $0x218] sm:$0xf]  ;;  %v9617_v3 = vld [vmem:[%s10768_s18 + $0x22c] sm:$0xf0]  ;;  %v8188_v45 = vld [vmem:[%s10768_s18 + $0x230] sm:$0xf0] }
 0x368   : > { %5740 = vmatpush.bf16.msra.mxu3 %v8523_v11  ;;  %5599 = vmatmul.bf16.vlgmr.msra.gmra.mxu0 %v12440_v42  ;;  %v9629_v11 = vld [vmem:[%s10768_s18 + $0x28c] sm:$0xf0]  ;;  %v8215_v24 = vor.u32 %v9620_v32, %v8212_v5  ;;  %v7946_v19 = vld [vmem:[%s10768_s18 + $0x38] sm:$0xf]  ;;  %v8162_v57 = vld [vmem:[%s10768_s18 + $0x1e8] sm:$0xf] }
 0x369   : > { %5677 = vmatmul.bf16.vlgmr.msrb.gmra.mxu2 %v12440_v42  ;;  %v3778_v60 = vmul.f32 %v3764_v36, %v3422_v52  ;;  %5695 = vmatpush.bf16.msra.mxu0 %v8091_v43  ;;  %v8263_v36 = vor.u32 %v9632_v10, %v8260_v9  ;;  %v8235_v55 = vor.u32 %v9629_v11, %v8234_v7  ;;  %v9563_v43 = vld [vmem:[%s10768_s18 + $0x7c] sm:$0xf0]  ;;  %v9557_v44 = vld [vmem:[%s10768_s18 + $0x4c] sm:$0xf0]  ;;  %v9608_v63 = vld [vmem:[%s10768_s18 + $0x1ec] sm:$0xf] }
 0x36a   : > { %5773 = vmatpush.bf16.msrb.mxu2 %v8095_v40  ;;  %v9560_v40 = vld [vmem:[%s10768_s18 + $0x6c] sm:$0xf]  ;;  %v7971_v52 = vor.u32 %v9563_v43, %v7970_v53  ;;  %v9611_v58 = vld [vmem:[%s10768_s18 + $0x1fc] sm:$0xf0]  ;;  %v8164_v26 = vld [vmem:[%s10768_s18 + $0x200] sm:$0xf0]  ;;  %v7947_v0 = vor.u32 %v9557_v44, %v7946_v19 }
 0x36b   : > { %v3790_v16 = vadd.f32 %v3789_v30, %v3778_v60  ;;  %v9554_v30 = vld [vmem:[%s10768_s18 + $0x3c] sm:$0xf]  ;;  %v7948_v60 = vld [vmem:[%s10768_s18 + $0x50] sm:$0xf0]  ;;  %v7924_v31 = vld [vmem:[%s10768_s18 + $0x20] sm:$0xf0] }
 0x36c   : > { %5741 = vmatpush.bf16.msra.mxu3 %v8499_v28  ;;  %v3395_v48 = vpop.f32.mrf.mxu2  ;;  %v9614_v28 = vld [vmem:[%s10768_s18 + $0x21c] sm:$0xf]  ;;  %v8858_v37 = vld [vmem:[%s10768_s18 + $0x758] sm:$0xf]  ;;  %v8860_v9 = vld [vmem:[%s10768_s18 + $0x770] sm:$0xf0] }
 0x36d   : > { %v12456_v41 = vpack.c.bf16 %v3790_v16, %v3790_v16  ;;  %v3423_v22 = vpop.f32.mrf.mxu3  ;;  %5696 = vmatpush.bf16.msra.mxu0 %v8067_v35  ;;  %v7975_v35 = vor.u32 %v9560_v40, %v7972_v18  ;;  %v8191_v1 = vor.u32 %v9614_v28, %v8188_v45  ;;  %v7951_v16 = vor.u32 %v9554_v30, %v7948_v60  ;;  %v7922_v48 = vld [vmem:[%s10768_s18 + $0x8] sm:$0xf]  ;;  %v9782_v10 = vld [vmem:[%s10768_s18 + $0x75c] sm:$0xf]  ;;  %v8138_v34 = vld [vmem:[%s10768_s18 + $0x1b8] sm:$0xf] }
 0x36e   : > { %5774 = vmatpush.bf16.msrb.mxu2 %v8071_v21  ;;  %v8187_v21 = vor.u32 %v9617_v3, %v8186_v62  ;;  %v9785_v22 = vld [vmem:[%s10768_s18 + $0x76c] sm:$0xf0]  ;;  %v9602_v38 = vld [vmem:[%s10768_s18 + $0x1bc] sm:$0xf]  ;;  %v8140_v8 = vld [vmem:[%s10768_s18 + $0x1d0] sm:$0xf0] }
 0x36f   : > { %5612 = vmatmul.bf16.vlgmr.msra.gmra.mxu1 %v12456_v41  ;;  %5690 = vmatmul.bf16.vlgmr.msrb.gmra.mxu3 %v12456_v41  ;;  %v9605_v61 = vld [vmem:[%s10768_s18 + $0x1cc] sm:$0xf0]  ;;  %v8859_v7 = vor.u32 %v9785_v22, %v8858_v37  ;;  %v9779_v11 = vld [vmem:[%s10768_s18 + $0x73c] sm:$0xf0]  ;;  %v9776_v29 = vld [vmem:[%s10768_s18 + $0x72c] sm:$0xf]  ;;  %v8143_v54 = vor.u32 %v9602_v38, %v8140_v8 }
 0x370   : > { %5708 = vmatpush.bf16.msra.mxu1 %v8283_v2  ;;  %5786 = vmatpush.bf16.msrb.mxu3 %v8287_v17  ;;  %v9551_v2 = vld [vmem:[%s10768_s18 + $0x1c] sm:$0xf0]  ;;  %v9548_v17 = vld [vmem:[%s10768_s18 + $0xc] sm:$0xf]  ;;  %v8139_v20 = vor.u32 %v9605_v61, %v8138_v34  ;;  %v8836_v6 = vld [vmem:[%s10768_s18 + $0x740] sm:$0xf0] }
 0x371   : > { %5697 = vmatpush.bf16.msra.mxu0 %v8043_v49  ;;  %v8163_v49 = vor.u32 %v9611_v58, %v8162_v57  ;;  %v8114_v25 = vld [vmem:[%s10768_s18 + $0x188] sm:$0xf]  ;;  %v9599_v56 = vld [vmem:[%s10768_s18 + $0x19c] sm:$0xf0]  ;;  %v9050_v51 = vld [vmem:[%s10768_s18 + $0x8d8] sm:$0xf] }
 0x372   : > { %5775 = vmatpush.bf16.msrb.mxu2 %v8047_v39  ;;  %v8167_v39 = vor.u32 %v9608_v63, %v8164_v26  ;;  %v9833_v27 = vld [vmem:[%s10768_s18 + $0x8ec] sm:$0xf0]  ;;  %v9830_v32 = vld [vmem:[%s10768_s18 + $0x8dc] sm:$0xf]  ;;  %v9052_v5 = vld [vmem:[%s10768_s18 + $0x8f0] sm:$0xf0]  ;;  %v8115_v43 = vor.u32 %v9599_v56, %v8114_v25 }
 0x373   : > { %v8810_v53 = vld [vmem:[%s10768_s18 + $0x6f8] sm:$0xf]  ;;  %v9773_v18 = vld [vmem:[%s10768_s18 + $0x70c] sm:$0xf0]  ;;  %v9051_v62 = vor.u32 %v9833_v27, %v9050_v51  ;;  %v9055_v3 = vor.u32 %v9830_v32, %v9052_v5  ;;  %v9026_v28 = vld [vmem:[%s10768_s18 + $0x8a8] sm:$0xf] }
 0x374   : > { %5709 = vmatpush.bf16.msra.mxu1 %v8259_v12  ;;  %5787 = vmatpush.bf16.msrb.mxu3 %v8263_v36  ;;  %v7923_v12 = vor.u32 %v9551_v2, %v7922_v48  ;;  %v7927_v36 = vor.u32 %v9548_v17, %v7924_v31  ;;  %v9827_v45 = vld [vmem:[%s10768_s18 + $0x8bc] sm:$0xf0]  ;;  %v8811_v19 = vor.u32 %v9773_v18, %v8810_v53  ;;  %v8786_v30 = vld [vmem:[%s10768_s18 + $0x6c8] sm:$0xf]  ;;  %v9002_v63 = vld [vmem:[%s10768_s18 + $0x878] sm:$0xf] }
 0x375   : > { %5698 = vmatpush.bf16.msra.mxu0 %v8019_v46  ;;  %v8863_v46 = vor.u32 %v9782_v10, %v8860_v9  ;;  %v9767_v60 = vld [vmem:[%s10768_s18 + $0x6dc] sm:$0xf0]  ;;  %v9027_v57 = vor.u32 %v9827_v45, %v9026_v28  ;;  %v9821_v26 = vld [vmem:[%s10768_s18 + $0x88c] sm:$0xf0]  ;;  %v8762_v17 = vld [vmem:[%s10768_s18 + $0x698] sm:$0xf] }
 0x376   : > { %5776 = vmatpush.bf16.msrb.mxu2 %v8023_v33  ;;  %v8834_v33 = vld [vmem:[%s10768_s18 + $0x728] sm:$0xf]  ;;  %v8787_v48 = vor.u32 %v9767_v60, %v8786_v30  ;;  %v9761_v31 = vld [vmem:[%s10768_s18 + $0x6ac] sm:$0xf0]  ;;  %v9758_v37 = vld [vmem:[%s10768_s18 + $0x69c] sm:$0xf] }
 0x377   : > { %v8764_v22 = vld [vmem:[%s10768_s18 + $0x6b0] sm:$0xf0]  ;;  %v12548_v10 = vld [vmem:[%s683_s23] sm:$0x3f]  ;;  %v9812_v61 = vld [vmem:[%s10768_s18 + $0x84c] sm:$0xf]  ;;  %v8763_v8 = vor.u32 %v9761_v31, %v8762_v17 }
 0x378   : > { %5710 = vmatpush.bf16.msra.mxu1 %v8235_v55  ;;  %5788 = vmatpush.bf16.msrb.mxu3 %v8239_v47  ;;  %v9596_v55 = vld [vmem:[%s10768_s18 + $0x18c] sm:$0xf]  ;;  %v8116_v47 = vld [vmem:[%s10768_s18 + $0x1a0] sm:$0xf0]  ;;  %v8978_v9 = vld [vmem:[%s10768_s18 + $0x848] sm:$0xf] }
 0x379   : > { %5651 = vmatmul.bf16.vlgmr.msrb.gmra.mxu0 %v12149_v59  ;;  %5729 = vmatmul.bf16.vlgmr.msra.gmra.mxu2 %v12149_v59  ;;  %v8119_v40 = vor.u32 %v9596_v55, %v8116_v47  ;;  %v9815_v34 = vld [vmem:[%s10768_s18 + $0x85c] sm:$0xf0]  ;;  %v8980_v38 = vld [vmem:[%s10768_s18 + $0x860] sm:$0xf0]  ;;  %v9806_v25 = vld [vmem:[%s10768_s18 + $0x81c] sm:$0xf] }
 0x37a   : > { %5699 = vmatpush.bf16.msra.mxu0 %v7995_v14  ;;  %5777 = vmatpush.bf16.msrb.mxu2 %v7999_v23  ;;  %v8835_v14 = vor.u32 %v9779_v11, %v8834_v33  ;;  %v8839_v23 = vor.u32 %v9776_v29, %v8836_v6  ;;  %v8740_v33 = vld [vmem:[%s10768_s18 + $0x680] sm:$0xf0]  ;;  %v4087_v11 = vperm.slane %v12548_v10, 0  ;;  %v8979_v29 = vor.u32 %v9815_v34, %v8978_v9  ;;  %v9809_v6 = vld [vmem:[%s10768_s18 + $0x82c] sm:$0xf0] }
 0x37b   : > { %v8956_v56 = vld [vmem:[%s10768_s18 + $0x830] sm:$0xf0]  ;;  %v8714_v27 = vld [vmem:[%s10768_s18 + $0x638] sm:$0xf]  ;;  %v9749_v32 = vld [vmem:[%s10768_s18 + $0x64c] sm:$0xf0] }
 0x37c   : > { %5711 = vmatpush.bf16.msra.mxu1 %v8211_v4  ;;  %5789 = vmatpush.bf16.msrb.mxu3 %v8215_v24  ;;  %v9770_v4 = vld [vmem:[%s10768_s18 + $0x6fc] sm:$0xf]  ;;  %v8812_v24 = vld [vmem:[%s10768_s18 + $0x710] sm:$0xf0]  ;;  %v8690_v45 = vld [vmem:[%s10768_s18 + $0x608] sm:$0xf] }
 0x37d   : > { %v8815_v44 = vor.u32 %v9770_v4, %v8812_v24  ;;  %v9746_v5 = vld [vmem:[%s10768_s18 + $0x63c] sm:$0xf]  ;;  %v9803_v4 = vld [vmem:[%s10768_s18 + $0x7fc] sm:$0xf0]  ;;  %v9800_v24 = vld [vmem:[%s10768_s18 + $0x7ec] sm:$0xf] }
 0x37e   : > { %5700 = vmatpush.bf16.msra.mxu0 %v7971_v52  ;;  %5778 = vmatpush.bf16.msrb.mxu2 %v7975_v35  ;;  %v9824_v52 = vld [vmem:[%s10768_s18 + $0x8ac] sm:$0xf]  ;;  %v9028_v35 = vld [vmem:[%s10768_s18 + $0x8c0] sm:$0xf0]  ;;  %v9686_v30 = vld [vmem:[%s10768_s18 + $0x45c] sm:$0xf] }
 0x37f   : > { %5664 = vmatmul.bf16.vlgmr.msrb.gmra.mxu1 %v12178_v50  ;;  %5742 = vmatmul.bf16.vlgmr.msra.gmra.mxu3 %v12178_v50  ;;  %v9031_v58 = vor.u32 %v9824_v52, %v9028_v35  ;;  %v9743_v52 = vld [vmem:[%s10768_s18 + $0x61c] sm:$0xf0]  ;;  %v9740_v35 = vld [vmem:[%s10768_s18 + $0x60c] sm:$0xf]  ;;  %v8476_v60 = vld [vmem:[%s10768_s18 + $0x470] sm:$0xf0] }
 0x380   : > { %5712 = vmatpush.bf16.msra.mxu1 %v8187_v21  ;;  %5790 = vmatpush.bf16.msrb.mxu3 %v8191_v1  ;;  %v9764_v21 = vld [vmem:[%s10768_s18 + $0x6cc] sm:$0xf]  ;;  %v8788_v1 = vld [vmem:[%s10768_s18 + $0x6e0] sm:$0xf0]  ;;  %v8479_v31 = vor.u32 %v9686_v30, %v8476_v60 }
 0x381   : > { %v8791_v2 = vor.u32 %v9764_v21, %v8788_v1 }
 0x382   : > { %5701 = vmatpush.bf16.msra.mxu0 %v7947_v0  ;;  %5779 = vmatpush.bf16.msrb.mxu2 %v7951_v16  ;;  %v9818_v0 = vld [vmem:[%s10768_s18 + $0x87c] sm:$0xf]  ;;  %v9004_v16 = vld [vmem:[%s10768_s18 + $0x890] sm:$0xf0] }
 0x384   : > { %5713 = vmatpush.bf16.msra.mxu1 %v8163_v49  ;;  %5791 = vmatpush.bf16.msrb.mxu3 %v8167_v39  ;;  %v9003_v49 = vor.u32 %v9821_v26, %v9002_v63  ;;  %v9007_v39 = vor.u32 %v9818_v0, %v9004_v16  ;;  %v8906_v63 = vld [vmem:[%s10768_s18 + $0x7b8] sm:$0xf]  ;;  %v9797_v26 = vld [vmem:[%s10768_s18 + $0x7cc] sm:$0xf0]  ;;  %v9794_v0 = vld [vmem:[%s10768_s18 + $0x7bc] sm:$0xf] }
 0x385   : > { %v8908_v16 = vld [vmem:[%s10768_s18 + $0x7d0] sm:$0xf0]  ;;  %v8907_v34 = vor.u32 %v9797_v26, %v8906_v63 }
 0x386   : > { %5702 = vmatpush.bf16.msra.mxu0 %v7923_v12  ;;  %5780 = vmatpush.bf16.msrb.mxu2 %v7927_v36  ;;  %v8767_v12 = vor.u32 %v9758_v37, %v8764_v22  ;;  %v8738_v36 = vld [vmem:[%s10768_s18 + $0x668] sm:$0xf]  ;;  %v9680_v22 = vld [vmem:[%s10768_s18 + $0x42c] sm:$0xf] }
 0x388   : > { %5714 = vmatpush.bf16.msra.mxu1 %v8139_v20  ;;  %5792 = vmatpush.bf16.msrb.mxu3 %v8143_v54  ;;  %v8983_v20 = vor.u32 %v9812_v61, %v8980_v38  ;;  %v8954_v54 = vld [vmem:[%s10768_s18 + $0x818] sm:$0xf]  ;;  %v8911_v61 = vor.u32 %v9794_v0, %v8908_v16  ;;  %v9684_v38 = vld [vmem:[%s10768_s18 + $0x444] sm:$0xf0]  ;;  %v8386_v0 = vld [vmem:[%s10768_s18 + $0x3a0] sm:$0xf] }
 0x389   : > { %5703 = vmatmul.bf16.vlgmr.msra.gmra.mxu0 %v12098_v15  ;;  %5781 = vmatmul.bf16.vlgmr.msrb.gmra.mxu2 %v12098_v15  ;;  %v8955_v53 = vor.u32 %v9809_v6, %v8954_v54  ;;  %v9666_v16 = vld [vmem:[%s10768_s18 + $0x3b4] sm:$0xf0] }
 0x38a   : > { %5747 = vmatpush.bf16.msrb.mxu0 %v8859_v7  ;;  %5825 = vmatpush.bf16.msra.mxu2 %v8863_v46  ;;  %v9755_v7 = vld [vmem:[%s10768_s18 + $0x67c] sm:$0xf0]  ;;  %v9752_v46 = vld [vmem:[%s10768_s18 + $0x66c] sm:$0xf] }
 0x38b   : > { %v8739_v47 = vor.u32 %v9755_v7, %v8738_v36  ;;  %v8743_v51 = vor.u32 %v9752_v46, %v8740_v33  ;;  %v9788_v36 = vld [vmem:[%s10768_s18 + $0x78c] sm:$0xf]  ;;  %v8884_v7 = vld [vmem:[%s10768_s18 + $0x7a0] sm:$0xf0]  ;;  %v9734_v46 = vld [vmem:[%s10768_s18 + $0x5dc] sm:$0xf] }
 0x38c   : > { %5715 = vmatpush.bf16.msra.mxu1 %v8115_v43  ;;  %5793 = vmatpush.bf16.msrb.mxu3 %v8119_v40  ;;  %v8959_v43 = vor.u32 %v9806_v25, %v8956_v56  ;;  %v8930_v40 = vld [vmem:[%s10768_s18 + $0x7e8] sm:$0xf]  ;;  %v8668_v33 = vld [vmem:[%s10768_s18 + $0x5f0] sm:$0xf0]  ;;  %v8887_v25 = vor.u32 %v9788_v36, %v8884_v7  ;;  %v9674_v56 = vld [vmem:[%s10768_s18 + $0x3fc] sm:$0xf] }
 0x38d   : > { %v8931_v21 = vor.u32 %v9803_v4, %v8930_v40  ;;  %v8404_v4 = vld [vmem:[%s10768_s18 + $0x3e0] sm:$0xf0]  ;;  %v8572_v36 = vld [vmem:[%s10768_s18 + $0x530] sm:$0xf0]  ;;  %v8578_v7 = vld [vmem:[%s10768_s18 + $0x520] sm:$0xf] }
 0x38e   : > { %5748 = vmatpush.bf16.msrb.mxu0 %v8835_v14  ;;  %5826 = vmatpush.bf16.msra.mxu2 %v8839_v23  ;;  %v8716_v14 = vld [vmem:[%s10768_s18 + $0x650] sm:$0xf0] }
 0x38f   : > { %5716 = vmatmul.bf16.vlgmr.msra.gmra.mxu1 %v12090_v13  ;;  %5794 = vmatmul.bf16.vlgmr.msrb.gmra.mxu3 %v12090_v13  ;;  %v8719_v28 = vor.u32 %v9746_v5, %v8716_v14  ;;  %v9728_v5 = vld [vmem:[%s10768_s18 + $0x5ac] sm:$0xf]  ;;  %v8644_v14 = vld [vmem:[%s10768_s18 + $0x5c0] sm:$0xf0] }
 0x390   : > { %5760 = vmatpush.bf16.msrb.mxu1 %v9051_v62  ;;  %5838 = vmatpush.bf16.msra.mxu3 %v9055_v3  ;;  %v8932_v62 = vld [vmem:[%s10768_s18 + $0x800] sm:$0xf0]  ;;  %v8715_v3 = vor.u32 %v9749_v32, %v8714_v27  ;;  %v8434_v27 = vld [vmem:[%s10768_s18 + $0x400] sm:$0xf]  ;;  %v9678_v32 = vld [vmem:[%s10768_s18 + $0x414] sm:$0xf0] }
 0x391   : > { %v8935_v1 = vor.u32 %v9800_v24, %v8932_v62  ;;  %v8435_v40 = vor.u32 %v9678_v32, %v8434_v27  ;;  %v8647_v24 = vor.u32 %v9728_v5, %v8644_v14  ;;  %v8554_v27 = vld [vmem:[%s10768_s18 + $0x4f0] sm:$0xf]  ;;  %v9708_v32 = vld [vmem:[%s10768_s18 + $0x504] sm:$0xf0]  ;;  %v9644_v14 = vld [vmem:[%s10768_s18 + $0x30c] sm:$0xf] }
 0x392   : > { %5749 = vmatpush.bf16.msrb.mxu0 %v8811_v19  ;;  %5827 = vmatpush.bf16.msra.mxu2 %v8815_v44  ;;  %v8692_v44 = vld [vmem:[%s10768_s18 + $0x620] sm:$0xf0] }
 0x393   : > { %v8695_v17 = vor.u32 %v9740_v35, %v8692_v44  ;;  %v8626_v35 = vld [vmem:[%s10768_s18 + $0x580] sm:$0xf]  ;;  %v9726_v44 = vld [vmem:[%s10768_s18 + $0x594] sm:$0xf0] }
 0x394   : > { %5761 = vmatpush.bf16.msrb.mxu1 %v9027_v57  ;;  %5839 = vmatpush.bf16.msra.mxu3 %v9031_v58  ;;  %v8482_v57 = vld [vmem:[%s10768_s18 + $0x460] sm:$0xf]  ;;  %v9690_v58 = vld [vmem:[%s10768_s18 + $0x474] sm:$0xf0]  ;;  %v8627_v26 = vor.u32 %v9726_v44, %v8626_v35  ;;  %v8524_v35 = vld [vmem:[%s10768_s18 + $0x4d0] sm:$0xf0] }
 0x395   : > { %v8483_v37 = vor.u32 %v9690_v58, %v8482_v57  ;;  %v9662_v57 = vld [vmem:[%s10768_s18 + $0x39c] sm:$0xf]  ;;  %v8380_v58 = vld [vmem:[%s10768_s18 + $0x3b0] sm:$0xf0] }
 0x396   : > { %5750 = vmatpush.bf16.msrb.mxu0 %v8787_v48  ;;  %5828 = vmatpush.bf16.msra.mxu2 %v8791_v2  ;;  %v8691_v2 = vor.u32 %v9743_v52, %v8690_v45  ;;  %v9722_v45 = vld [vmem:[%s10768_s18 + $0x57c] sm:$0xf]  ;;  %v8620_v52 = vld [vmem:[%s10768_s18 + $0x590] sm:$0xf0] }
 0x397   : > { %v5561_v55 = vpop.f32.mrf.mxu1  ;;  %v8623_v63 = vor.u32 %v9722_v45, %v8620_v52  ;;  %v8100_v45 = vld [vmem:[%s10768_s18 + $0x178] sm:$0xf0] }
 0x398   : > { %5762 = vmatpush.bf16.msrb.mxu1 %v9003_v49  ;;  %5840 = vmatpush.bf16.msra.mxu3 %v9007_v39  ;;  %v5548_v23 = vpop.f32.mrf.mxu0  ;;  %v8452_v49 = vld [vmem:[%s10768_s18 + $0x440] sm:$0xf0]  ;;  %v8458_v39 = vld [vmem:[%s10768_s18 + $0x430] sm:$0xf]  ;;  %v9698_v52 = vld [vmem:[%s10768_s18 + $0x4bc] sm:$0xf] }
 0x399   : > { %v5549_v18 = vadd.f32 %v5548_v23, %v4087_v11  ;;  %v8674_v11 = vld [vmem:[%s10768_s18 + $0x5e0] sm:$0xf]  ;;  %v8459_v54 = vor.u32 %v9684_v38, %v8458_v39  ;;  %v8650_v23 = vld [vmem:[%s10768_s18 + $0x5b0] sm:$0xf]  ;;  %v9660_v38 = vld [vmem:[%s10768_s18 + $0x384] sm:$0xf0] }
 0x39a   : > { %5751 = vmatpush.bf16.msrb.mxu0 %v8763_v8  ;;  %5829 = vmatpush.bf16.msra.mxu2 %v8767_v12  ;;  %v8882_v8 = vld [vmem:[%s10768_s18 + $0x788] sm:$0xf]  ;;  %v9791_v12 = vld [vmem:[%s10768_s18 + $0x79c] sm:$0xf0] }
 0x39b   : > { %v12574_v19 = vadd.f32 %v5561_v55, %v5549_v18  ;;  %v8883_v6 = vor.u32 %v9791_v12, %v8882_v8  ;;  %v8428_v55 = vld [vmem:[%s10768_s18 + $0x410] sm:$0xf0]  ;;  %v9668_v18 = vld [vmem:[%s10768_s18 + $0x3cc] sm:$0xf]  ;;  %v9710_v8 = vld [vmem:[%s10768_s18 + $0x51c] sm:$0xf] }
 0x39c   : > { %5763 = vmatpush.bf16.msrb.mxu1 %v8979_v29  ;;  %5841 = vmatpush.bf16.msra.mxu3 %v8983_v20  ;;  %v9738_v29 = vld [vmem:[%s10768_s18 + $0x5f4] sm:$0xf0]  ;;  %v8455_v20 = vor.u32 %v9680_v22, %v8452_v49  ;;  %v8407_v60 = vor.u32 %v9668_v18, %v8404_v4  ;;  %v9656_v22 = vld [vmem:[%s10768_s18 + $0x36c] sm:$0xf]  ;;  %v8356_v49 = vld [vmem:[%s10768_s18 + $0x380] sm:$0xf0] }
 0x39e   : > { %5752 = vmatpush.bf16.msrb.mxu0 %v8739_v47  ;;  %5830 = vmatpush.bf16.msra.mxu2 %v8743_v51  ;;  %v8671_v47 = vor.u32 %v9734_v46, %v8668_v33  ;;  %v8675_v51 = vor.u32 %v9738_v29, %v8674_v11  ;;  %v9714_v46 = vld [vmem:[%s10768_s18 + $0x534] sm:$0xf0]  ;;  %v8359_v11 = vor.u32 %v9656_v22, %v8356_v49  ;;  %v8290_v22 = vld [vmem:[%s10768_s18 + $0x2e0] sm:$0xf] }
 0x39f   : > { %v5563_v48 = vpop.f32.mrf.mxu1  ;;  %v9642_v49 = vld [vmem:[%s10768_s18 + $0x2f4] sm:$0xf0] }
 0x3a0   : > { %5764 = vmatpush.bf16.msrb.mxu1 %v8955_v53  ;;  %5842 = vmatpush.bf16.msra.mxu3 %v8959_v43  ;;  %v5550_v9 = vpop.f32.mrf.mxu0  ;;  %v9732_v53 = vld [vmem:[%s10768_s18 + $0x5c4] sm:$0xf0]  ;;  %v8431_v43 = vor.u32 %v9674_v56, %v8428_v55  ;;  %v9716_v48 = vld [vmem:[%s10768_s18 + $0x54c] sm:$0xf]  ;;  %v8338_v56 = vld [vmem:[%s10768_s18 + $0x340] sm:$0xf] }
 0x3a1   : > { %v8651_v62 = vor.u32 %v9732_v53, %v8650_v23  ;;  %v9654_v55 = vld [vmem:[%s10768_s18 + $0x354] sm:$0xf0]  ;;  %v8308_v53 = vld [vmem:[%s10768_s18 + $0x320] sm:$0xf0] }
 0x3a2   : > { %5753 = vmatpush.bf16.msrb.mxu0 %v8715_v3  ;;  %5831 = vmatpush.bf16.msra.mxu2 %v8719_v28  ;;  %v8410_v3 = vld [vmem:[%s10768_s18 + $0x3d0] sm:$0xf]  ;;  %v9672_v28 = vld [vmem:[%s10768_s18 + $0x3e4] sm:$0xf0]  ;;  %v8339_v23 = vor.u32 %v9654_v55, %v8338_v56 }
 0x3a3   : > { %v8266_v56 = vld [vmem:[%s10768_s18 + $0x2b0] sm:$0xf]  ;;  %v9636_v55 = vld [vmem:[%s10768_s18 + $0x2c4] sm:$0xf0] }
 0x3a4   : > { %5765 = vmatpush.bf16.msrb.mxu1 %v8931_v21  ;;  %5843 = vmatpush.bf16.msra.mxu3 %v8935_v1  ;;  %v8411_v1 = vor.u32 %v9672_v28, %v8410_v3  ;;  %v9594_v3 = vld [vmem:[%s10768_s18 + $0x174] sm:$0xf0]  ;;  %v9591_v28 = vld [vmem:[%s10768_s18 + $0x164] sm:$0xf] }
 0x3a6   : > { %5754 = vmatpush.bf16.msrb.mxu0 %v8691_v2  ;;  %5832 = vmatpush.bf16.msra.mxu2 %v8695_v17  ;;  %v8596_v2 = vld [vmem:[%s10768_s18 + $0x560] sm:$0xf0]  ;;  %v8602_v17 = vld [vmem:[%s10768_s18 + $0x550] sm:$0xf] }
 0x3a7   : > { %v8599_v9 = vor.u32 %v9716_v48, %v8596_v2  ;;  %v9585_v48 = vld [vmem:[%s10768_s18 + $0x134] sm:$0xf]  ;;  %v8076_v2 = vld [vmem:[%s10768_s18 + $0x148] sm:$0xf0] }
 0x3a8   : > { %5766 = vmatpush.bf16.msrb.mxu1 %v8907_v34  ;;  %5844 = vmatpush.bf16.msra.mxu3 %v8911_v61  ;;  %v8362_v61 = vld [vmem:[%s10768_s18 + $0x370] sm:$0xf] }
 0x3a9   : > { %5755 = vmatmul.bf16.vlgmr.msrb.gmra.mxu0 %v12440_v42  ;;  %5833 = vmatmul.bf16.vlgmr.msra.gmra.mxu2 %v12440_v42  ;;  %v8363_v29 = vor.u32 %v9660_v38, %v8362_v61  ;;  %v8292_v61 = vld [vmem:[%s10768_s18 + $0x2f8] sm:$0xf0] }
 0x3aa   : > { %5799 = vmatpush.bf16.msra.mxu0 %v8479_v31  ;;  %5877 = vmatpush.bf16.msrb.mxu2 %v8483_v37  ;;  %v5574_v30 = vpop.f32.mrf.mxu2  ;;  %v9720_v31 = vld [vmem:[%s10768_s18 + $0x564] sm:$0xf0]  ;;  %v8387_v37 = vor.u32 %v9666_v16, %v8386_v0  ;;  %v8527_v0 = vor.u32 %v9698_v52, %v8524_v35  ;;  %v8002_v52 = vld [vmem:[%s10768_s18 + $0xa0] sm:$0xf]  ;;  %v9570_v35 = vld [vmem:[%s10768_s18 + $0xb4] sm:$0xf0] }
 0x3ab   : > { %v5575_v21 = vadd.f32 %v5574_v30, %v12574_v19  ;;  %v8383_v19 = vor.u32 %v9662_v57, %v8380_v58  ;;  %v8603_v34 = vor.u32 %v9720_v31, %v8602_v17  ;;  %v8311_v30 = vor.u32 %v9644_v14, %v8308_v53  ;;  %v9588_v16 = vld [vmem:[%s10768_s18 + $0x144] sm:$0xf0]  ;;  %v9692_v31 = vld [vmem:[%s10768_s18 + $0x48c] sm:$0xf]  ;;  %v9573_v53 = vld [vmem:[%s10768_s18 + $0xd4] sm:$0xf] }
 0x3ac   : > { %5767 = vmatpush.bf16.msrb.mxu1 %v8883_v6  ;;  %5845 = vmatpush.bf16.msra.mxu3 %v8887_v25  ;;  %v8575_v6 = vor.u32 %v9710_v8, %v8572_v36  ;;  %v8579_v25 = vor.u32 %v9714_v46, %v8578_v7  ;;  %v8079_v8 = vor.u32 %v9585_v48, %v8076_v2  ;;  %v8050_v7 = vld [vmem:[%s10768_s18 + $0x100] sm:$0xf]  ;;  %v9582_v46 = vld [vmem:[%s10768_s18 + $0x114] sm:$0xf0]  ;;  %v9576_v14 = vld [vmem:[%s10768_s18 + $0xe4] sm:$0xf0] }
 0x3ad   : > { %v9564_v48 = vld [vmem:[%s10768_s18 + $0x84] sm:$0xf0] }
 0x3ae   : > { %5800 = vmatpush.bf16.msra.mxu0 %v8455_v20  ;;  %5878 = vmatpush.bf16.msrb.mxu2 %v8459_v54  ;;  %v9650_v20 = vld [vmem:[%s10768_s18 + $0x33c] sm:$0xf]  ;;  %v8332_v54 = vld [vmem:[%s10768_s18 + $0x350] sm:$0xf0] }
 0x3af   : > { %5768 = vmatmul.bf16.vlgmr.msrb.gmra.mxu1 %v12456_v41  ;;  %5846 = vmatmul.bf16.vlgmr.msra.gmra.mxu3 %v12456_v41  ;;  %v8335_v5 = vor.u32 %v9650_v20, %v8332_v54  ;;  %v9579_v20 = vld [vmem:[%s10768_s18 + $0x104] sm:$0xf]  ;;  %v8052_v54 = vld [vmem:[%s10768_s18 + $0x118] sm:$0xf0] }
 0x3b0   : > { %5812 = vmatpush.bf16.msra.mxu1 %v8671_v47  ;;  %5890 = vmatpush.bf16.msrb.mxu3 %v8675_v51  ;;  %v9704_v47 = vld [vmem:[%s10768_s18 + $0x4ec] sm:$0xf]  ;;  %v8548_v51 = vld [vmem:[%s10768_s18 + $0x500] sm:$0xf0] }
 0x3b1   : > { %v8551_v4 = vor.u32 %v9704_v47, %v8548_v51  ;;  %v8051_v47 = vor.u32 %v9582_v46, %v8050_v7  ;;  %v9633_v51 = vld [vmem:[%s10768_s18 + $0x2b4] sm:$0xf]  ;;  %v8170_v46 = vld [vmem:[%s10768_s18 + $0x1f0] sm:$0xf] }
 0x3b2   : > { %5801 = vmatpush.bf16.msra.mxu0 %v8431_v43  ;;  %5879 = vmatpush.bf16.msrb.mxu2 %v8435_v40  ;;  %v5587_v39 = vpop.f32.mrf.mxu3  ;;  %v5576_v33 = vpop.f32.mrf.mxu2  ;;  %v8314_v43 = vld [vmem:[%s10768_s18 + $0x310] sm:$0xf]  ;;  %v9648_v40 = vld [vmem:[%s10768_s18 + $0x324] sm:$0xf0] }
 0x3b3   : > { %v12631_v12 = vadd.f32 %v5587_v39, %v5575_v21  ;;  %v9702_v21 = vld [vmem:[%s10768_s18 + $0x4d4] sm:$0xf0]  ;;  %v8315_v57 = vor.u32 %v9648_v40, %v8314_v43  ;;  %v8028_v43 = vld [vmem:[%s10768_s18 + $0xe8] sm:$0xf0] }
 0x3b4   : > { %5813 = vmatpush.bf16.msra.mxu1 %v8647_v24  ;;  %5891 = vmatpush.bf16.msrb.mxu3 %v8651_v62  ;;  %v8555_v24 = vor.u32 %v9708_v32, %v8554_v27  ;;  %v8098_v62 = vld [vmem:[%s10768_s18 + $0x160] sm:$0xf]  ;;  %v8268_v27 = vld [vmem:[%s10768_s18 + $0x2c8] sm:$0xf0]  ;;  %v8055_v32 = vor.u32 %v9579_v20, %v8052_v54  ;;  %v9609_v20 = vld [vmem:[%s10768_s18 + $0x1f4] sm:$0xf] }
 0x3b5   : > { %v8099_v58 = vor.u32 %v9594_v3, %v8098_v62  ;;  %v8271_v40 = vor.u32 %v9633_v51, %v8268_v27  ;;  %v9627_v62 = vld [vmem:[%s10768_s18 + $0x284] sm:$0xf]  ;;  %v8244_v3 = vld [vmem:[%s10768_s18 + $0x298] sm:$0xf0]  ;;  %v8172_v54 = vld [vmem:[%s10768_s18 + $0x208] sm:$0xf0] }
 0x3b6   : > { %5802 = vmatpush.bf16.msra.mxu0 %v8407_v60  ;;  %5880 = vmatpush.bf16.msrb.mxu2 %v8411_v1  ;;  %v8530_v60 = vld [vmem:[%s10768_s18 + $0x4c0] sm:$0xf]  ;;  %v4088_v1 = vperm.slane %v12548_v10, 1  ;;  %v9696_v10 = vld [vmem:[%s10768_s18 + $0x4a4] sm:$0xf0] }
 0x3b7   : > { %v8531_v17 = vor.u32 %v9702_v21, %v8530_v60  ;;  %v8004_v60 = vld [vmem:[%s10768_s18 + $0xb8] sm:$0xf0]  ;;  %v8247_v21 = vor.u32 %v9627_v62, %v8244_v3  ;;  %v8866_v27 = vld [vmem:[%s10768_s18 + $0x760] sm:$0xf]  ;;  %v8842_v3 = vld [vmem:[%s10768_s18 + $0x730] sm:$0xf] }
 0x3b8   : > { %5814 = vmatpush.bf16.msra.mxu1 %v8623_v63  ;;  %5892 = vmatpush.bf16.msrb.mxu3 %v8627_v26  ;;  %v8074_v63 = vld [vmem:[%s10768_s18 + $0x130] sm:$0xf]  ;;  %v8103_v26 = vor.u32 %v9591_v28, %v8100_v45  ;;  %v8031_v45 = vor.u32 %v9573_v53, %v8028_v43  ;;  %v8146_v53 = vld [vmem:[%s10768_s18 + $0x1c0] sm:$0xf]  ;;  %v9606_v43 = vld [vmem:[%s10768_s18 + $0x1d4] sm:$0xf0] }
 0x3ba   : > { %5803 = vmatpush.bf16.msra.mxu0 %v8383_v19  ;;  %5881 = vmatpush.bf16.msrb.mxu2 %v8387_v37  ;;  %v5589_v18 = vpop.f32.mrf.mxu3  ;;  %v5626_v44 = vpop.f32.mrf.mxu2  ;;  %v8500_v19 = vld [vmem:[%s10768_s18 + $0x4a0] sm:$0xf0]  ;;  %v8506_v37 = vld [vmem:[%s10768_s18 + $0x490] sm:$0xf] }
 0x3bb   : > { %v5627_v39 = vadd.f32 %v5626_v44, %v4088_v1  ;;  %v8503_v36 = vor.u32 %v9692_v31, %v8500_v19  ;;  %v8242_v18 = vld [vmem:[%s10768_s18 + $0x280] sm:$0xf]  ;;  %v8218_v1 = vld [vmem:[%s10768_s18 + $0x250] sm:$0xf]  ;;  %v7980_v31 = vld [vmem:[%s10768_s18 + $0x88] sm:$0xf0] }
 0x3bc   : > { %5815 = vmatpush.bf16.msra.mxu1 %v8599_v9  ;;  %5893 = vmatpush.bf16.msrb.mxu3 %v8603_v34  ;;  %v8075_v9 = vor.u32 %v9588_v16, %v8074_v63  ;;  %v9639_v34 = vld [vmem:[%s10768_s18 + $0x2e4] sm:$0xf]  ;;  %v9621_v63 = vld [vmem:[%s10768_s18 + $0x254] sm:$0xf]  ;;  %v7978_v16 = vld [vmem:[%s10768_s18 + $0x70] sm:$0xf] }
 0x3be   : > { %5804 = vmatpush.bf16.msra.mxu0 %v8359_v11  ;;  %5882 = vmatpush.bf16.msrb.mxu2 %v8363_v29  ;;  %v8507_v11 = vor.u32 %v9696_v10, %v8506_v37  ;;  %v8291_v29 = vor.u32 %v9642_v49, %v8290_v22  ;;  %v8194_v37 = vld [vmem:[%s10768_s18 + $0x220] sm:$0xf]  ;;  %v9618_v10 = vld [vmem:[%s10768_s18 + $0x234] sm:$0xf0]  ;;  %v7979_v22 = vor.u32 %v9564_v48, %v7978_v16  ;;  %v9615_v49 = vld [vmem:[%s10768_s18 + $0x224] sm:$0xf] }
 0x3bf   : > { %v9060_v16 = vld [vmem:[%s10768_s18 + $0x8f8] sm:$0xf0] }
 0x3c0   : > { %5816 = vmatpush.bf16.msra.mxu1 %v8575_v6  ;;  %5894 = vmatpush.bf16.msrb.mxu3 %v8579_v25  ;;  %v8295_v25 = vor.u32 %v9639_v34, %v8292_v61  ;;  %v7954_v34 = vld [vmem:[%s10768_s18 + $0x40] sm:$0xf]  ;;  %v9558_v61 = vld [vmem:[%s10768_s18 + $0x54] sm:$0xf0] }
 0x3c2   : > { %5805 = vmatpush.bf16.msra.mxu0 %v8335_v5  ;;  %5883 = vmatpush.bf16.msrb.mxu2 %v8339_v23  ;;  %v5639_v38 = vpop.f32.mrf.mxu3  ;;  %v5628_v6 = vpop.f32.mrf.mxu2  ;;  %v8026_v5 = vld [vmem:[%s10768_s18 + $0xd0] sm:$0xf]  ;;  %v8267_v23 = vor.u32 %v9636_v55, %v8266_v56  ;;  %v9552_v56 = vld [vmem:[%s10768_s18 + $0x24] sm:$0xf0]  ;;  %v9549_v55 = vld [vmem:[%s10768_s18 + $0x14] sm:$0xf] }
 0x3c3   : > { %v12671_v33 = vadd.f32 %v5639_v38, %v5627_v39  ;;  %v8196_v39 = vld [vmem:[%s10768_s18 + $0x238] sm:$0xf0]  ;;  %v8195_v38 = vor.u32 %v9618_v10, %v8194_v37  ;;  %v7930_v6 = vld [vmem:[%s10768_s18 + $0x10] sm:$0xf]  ;;  %v9771_v10 = vld [vmem:[%s10768_s18 + $0x704] sm:$0xf] }
 0x3c4   : > { %5817 = vmatpush.bf16.msra.mxu1 %v8551_v4  ;;  %5895 = vmatpush.bf16.msrb.mxu3 %v8555_v24  ;;  %v9630_v4 = vld [vmem:[%s10768_s18 + $0x294] sm:$0xf0]  ;;  %v8027_v24 = vor.u32 %v9576_v14, %v8026_v5  ;;  %v8199_v7 = vor.u32 %v9615_v49, %v8196_v39  ;;  %v9783_v5 = vld [vmem:[%s10768_s18 + $0x764] sm:$0xf]  ;;  %v8175_v14 = vor.u32 %v9609_v20, %v8172_v54  ;;  %v9034_v39 = vld [vmem:[%s10768_s18 + $0x8b0] sm:$0xf] }
 0x3c5   : > { %v8243_v44 = vor.u32 %v9630_v4, %v8242_v18  ;;  %v9603_v18 = vld [vmem:[%s10768_s18 + $0x1c4] sm:$0xf]  ;;  %v8148_v4 = vld [vmem:[%s10768_s18 + $0x1d8] sm:$0xf0]  ;;  %v9010_v54 = vld [vmem:[%s10768_s18 + $0x880] sm:$0xf] }
 0x3c6   : > { %5806 = vmatpush.bf16.msra.mxu0 %v8311_v30  ;;  %5884 = vmatpush.bf16.msrb.mxu2 %v8315_v57  ;;  %v9567_v30 = vld [vmem:[%s10768_s18 + $0xa4] sm:$0xf]  ;;  %v9624_v57 = vld [vmem:[%s10768_s18 + $0x264] sm:$0xf0] }
 0x3c7   : > { %v8219_v2 = vor.u32 %v9624_v57, %v8218_v1  ;;  %v9597_v1 = vld [vmem:[%s10768_s18 + $0x194] sm:$0xf]  ;;  %v8124_v57 = vld [vmem:[%s10768_s18 + $0x1a8] sm:$0xf0] }
 0x3c8   : > { %5818 = vmatpush.bf16.msra.mxu1 %v8527_v0  ;;  %5896 = vmatpush.bf16.msrb.mxu3 %v8531_v17  ;;  %v8007_v0 = vor.u32 %v9567_v30, %v8004_v60  ;;  %v9561_v17 = vld [vmem:[%s10768_s18 + $0x74] sm:$0xf]  ;;  %v8151_v30 = vor.u32 %v9603_v18, %v8148_v4  ;;  %v8122_v60 = vld [vmem:[%s10768_s18 + $0x190] sm:$0xf]  ;;  %v8988_v18 = vld [vmem:[%s10768_s18 + $0x868] sm:$0xf0] }
 0x3c9   : > { %5807 = vmatmul.bf16.vlgmr.msra.gmra.mxu0 %v12149_v59  ;;  %5885 = vmatmul.bf16.vlgmr.msrb.gmra.mxu2 %v12149_v59 }
 0x3ca   : > { %5851 = vmatpush.bf16.msrb.mxu0 %v8099_v58  ;;  %5929 = vmatpush.bf16.msra.mxu2 %v8103_v26  ;;  %v5641_v28 = vpop.f32.mrf.mxu3  ;;  %v8003_v58 = vor.u32 %v9570_v35, %v8002_v52  ;;  %v8220_v26 = vld [vmem:[%s10768_s18 + $0x268] sm:$0xf0]  ;;  %v9780_v52 = vld [vmem:[%s10768_s18 + $0x744] sm:$0xf0]  ;;  %v9777_v35 = vld [vmem:[%s10768_s18 + $0x734] sm:$0xf] }
 0x3cb   : > { %v8223_v19 = vor.u32 %v9621_v63, %v8220_v26  ;;  %v9834_v63 = vld [vmem:[%s10768_s18 + $0x8f4] sm:$0xf0]  ;;  %v8843_v26 = vor.u32 %v9780_v52, %v8842_v3  ;;  %v9756_v3 = vld [vmem:[%s10768_s18 + $0x684] sm:$0xf0]  ;;  %v9753_v52 = vld [vmem:[%s10768_s18 + $0x674] sm:$0xf] }
 0x3cc   : > { %5819 = vmatpush.bf16.msra.mxu1 %v8503_v36  ;;  %5897 = vmatpush.bf16.msrb.mxu3 %v8507_v11  ;;  %v7956_v36 = vld [vmem:[%s10768_s18 + $0x58] sm:$0xf0]  ;;  %v9612_v11 = vld [vmem:[%s10768_s18 + $0x204] sm:$0xf0] }
 0x3cd   : > { %v8171_v51 = vor.u32 %v9612_v11, %v8170_v46  ;;  %v9765_v46 = vld [vmem:[%s10768_s18 + $0x6d4] sm:$0xf]  ;;  %v8796_v11 = vld [vmem:[%s10768_s18 + $0x6e8] sm:$0xf0] }
 0x3ce   : > { %5852 = vmatpush.bf16.msrb.mxu0 %v8075_v9  ;;  %5930 = vmatpush.bf16.msra.mxu2 %v8079_v8  ;;  %v7983_v9 = vor.u32 %v9561_v17, %v7980_v31  ;;  %v9555_v8 = vld [vmem:[%s10768_s18 + $0x44] sm:$0xf]  ;;  %v8818_v17 = vld [vmem:[%s10768_s18 + $0x700] sm:$0xf]  ;;  %v9774_v31 = vld [vmem:[%s10768_s18 + $0x714] sm:$0xf0] }
 0x3cf   : > { %5820 = vmatmul.bf16.vlgmr.msra.gmra.mxu1 %v12178_v50  ;;  %5898 = vmatmul.bf16.vlgmr.msrb.gmra.mxu3 %v12178_v50 }
 0x3d0   : > { %5864 = vmatpush.bf16.msrb.mxu1 %v8291_v29  ;;  %5942 = vmatpush.bf16.msra.mxu3 %v8295_v25  ;;  %v7955_v29 = vor.u32 %v9558_v61, %v7954_v34  ;;  %v7959_v25 = vor.u32 %v9555_v8, %v7956_v36  ;;  %v8819_v34 = vor.u32 %v9774_v31, %v8818_v17  ;;  %v9825_v61 = vld [vmem:[%s10768_s18 + $0x8b4] sm:$0xf]  ;;  %v8794_v36 = vld [vmem:[%s10768_s18 + $0x6d0] sm:$0xf]  ;;  %v8724_v17 = vld [vmem:[%s10768_s18 + $0x658] sm:$0xf0] }
 0x3d2   : > { %5853 = vmatpush.bf16.msrb.mxu0 %v8051_v47  ;;  %5931 = vmatpush.bf16.msra.mxu2 %v8055_v32  ;;  %v7932_v47 = vld [vmem:[%s10768_s18 + $0x28] sm:$0xf0]  ;;  %v9786_v32 = vld [vmem:[%s10768_s18 + $0x774] sm:$0xf0] }
 0x3d3   : > { %v8867_v62 = vor.u32 %v9786_v32, %v8866_v27  ;;  %v8770_v27 = vld [vmem:[%s10768_s18 + $0x6a0] sm:$0xf]  ;;  %v9762_v32 = vld [vmem:[%s10768_s18 + $0x6b4] sm:$0xf0] }
 0x3d4   : > { %5865 = vmatpush.bf16.msrb.mxu1 %v8267_v23  ;;  %5943 = vmatpush.bf16.msra.mxu3 %v8271_v40  ;;  %v8868_v23 = vld [vmem:[%s10768_s18 + $0x778] sm:$0xf0]  ;;  %v7931_v40 = vor.u32 %v9552_v56, %v7930_v6  ;;  %v9822_v6 = vld [vmem:[%s10768_s18 + $0x894] sm:$0xf0] }
 0x3d5   : > { %v8871_v28 = vor.u32 %v9783_v5, %v8868_v23  ;;  %v9011_v5 = vor.u32 %v9822_v6, %v9010_v54  ;;  %v8772_v23 = vld [vmem:[%s10768_s18 + $0x6b8] sm:$0xf0]  ;;  %v9798_v54 = vld [vmem:[%s10768_s18 + $0x7d4] sm:$0xf0] }
 0x3d6   : > { %5854 = vmatpush.bf16.msrb.mxu0 %v8027_v24  ;;  %5932 = vmatpush.bf16.msra.mxu2 %v8031_v45  ;;  %v7935_v24 = vor.u32 %v9549_v55, %v7932_v47  ;;  %v8147_v45 = vor.u32 %v9606_v43, %v8146_v53  ;;  %v9819_v55 = vld [vmem:[%s10768_s18 + $0x884] sm:$0xf]  ;;  %v9012_v47 = vld [vmem:[%s10768_s18 + $0x898] sm:$0xf0]  ;;  %v8986_v53 = vld [vmem:[%s10768_s18 + $0x850] sm:$0xf] }
 0x3d7   : > { %v9816_v43 = vld [vmem:[%s10768_s18 + $0x864] sm:$0xf0] }
 0x3d8   : > { %5866 = vmatpush.bf16.msrb.mxu1 %v8243_v44  ;;  %5944 = vmatpush.bf16.msra.mxu3 %v8247_v21  ;;  %v8844_v44 = vld [vmem:[%s10768_s18 + $0x748] sm:$0xf0]  ;;  %v9600_v21 = vld [vmem:[%s10768_s18 + $0x1a4] sm:$0xf0] }
 0x3d9   : > { %v8847_v48 = vor.u32 %v9777_v35, %v8844_v44  ;;  %v8748_v35 = vld [vmem:[%s10768_s18 + $0x688] sm:$0xf0] }
 0x3da   : > { %5855 = vmatpush.bf16.msrb.mxu0 %v8003_v58  ;;  %5933 = vmatpush.bf16.msra.mxu2 %v8007_v0  ;;  %v9058_v58 = vld [vmem:[%s10768_s18 + $0x8e0] sm:$0xf]  ;;  %v9831_v0 = vld [vmem:[%s10768_s18 + $0x8e4] sm:$0xf] }
 0x3db   : > { %v9059_v37 = vor.u32 %v9834_v63, %v9058_v58  ;;  %v9063_v49 = vor.u32 %v9831_v0, %v9060_v16  ;;  %v9807_v58 = vld [vmem:[%s10768_s18 + $0x824] sm:$0xf]  ;;  %v8964_v63 = vld [vmem:[%s10768_s18 + $0x838] sm:$0xf0]  ;;  %v8722_v0 = vld [vmem:[%s10768_s18 + $0x640] sm:$0xf] }
 0x3dc   : > { %5867 = vmatpush.bf16.msrb.mxu1 %v8219_v2  ;;  %5945 = vmatpush.bf16.msra.mxu3 %v8223_v19  ;;  %v8123_v2 = vor.u32 %v9600_v21, %v8122_v60  ;;  %v8127_v19 = vor.u32 %v9597_v1, %v8124_v57  ;;  %v8962_v21 = vld [vmem:[%s10768_s18 + $0x820] sm:$0xf]  ;;  %v9810_v1 = vld [vmem:[%s10768_s18 + $0x834] sm:$0xf0]  ;;  %v8967_v31 = vor.u32 %v9807_v58, %v8964_v63  ;;  %v9729_v58 = vld [vmem:[%s10768_s18 + $0x5b4] sm:$0xf] }
 0x3dd   : > { %v9750_v16 = vld [vmem:[%s10768_s18 + $0x654] sm:$0xf0]  ;;  %v8652_v63 = vld [vmem:[%s10768_s18 + $0x5c8] sm:$0xf0] }
 0x3de   : > { %5856 = vmatpush.bf16.msrb.mxu0 %v7979_v22  ;;  %5934 = vmatpush.bf16.msra.mxu2 %v7983_v9  ;;  %v8820_v22 = vld [vmem:[%s10768_s18 + $0x718] sm:$0xf0]  ;;  %v9828_v9 = vld [vmem:[%s10768_s18 + $0x8c4] sm:$0xf0] }
 0x3df   : > { %v8823_v8 = vor.u32 %v9771_v10, %v8820_v22  ;;  %v8723_v22 = vor.u32 %v9750_v16, %v8722_v0  ;;  %v9669_v16 = vld [vmem:[%s10768_s18 + $0x3d4] sm:$0xf] }
 0x3e0   : > { %5868 = vmatpush.bf16.msrb.mxu1 %v8195_v38  ;;  %5946 = vmatpush.bf16.msra.mxu3 %v8199_v7  ;;  %v9036_v38 = vld [vmem:[%s10768_s18 + $0x8c8] sm:$0xf0]  ;;  %v9768_v7 = vld [vmem:[%s10768_s18 + $0x6e4] sm:$0xf0] }
 0x3e1   : > { %v9039_v20 = vor.u32 %v9825_v61, %v9036_v38  ;;  %v8795_v56 = vor.u32 %v9768_v7, %v8794_v36  ;;  %v8698_v61 = vld [vmem:[%s10768_s18 + $0x610] sm:$0xf]  ;;  %v9744_v38 = vld [vmem:[%s10768_s18 + $0x624] sm:$0xf0] }
 0x3e2   : > { %5857 = vmatpush.bf16.msrb.mxu0 %v7955_v29  ;;  %5935 = vmatpush.bf16.msra.mxu2 %v7959_v25 }
 0x3e4   : > { %5869 = vmatpush.bf16.msrb.mxu1 %v8171_v51  ;;  %5947 = vmatpush.bf16.msra.mxu3 %v8175_v14  ;;  %v8799_v51 = vor.u32 %v9765_v46, %v8796_v11  ;;  %v9759_v14 = vld [vmem:[%s10768_s18 + $0x6a4] sm:$0xf]  ;;  %v8484_v11 = vld [vmem:[%s10768_s18 + $0x478] sm:$0xf0] }
 0x3e5   : > { %v5600_v29 = vpop.f32.mrf.mxu0  ;;  %v9687_v46 = vld [vmem:[%s10768_s18 + $0x464] sm:$0xf] }
 0x3e6   : > { %5858 = vmatpush.bf16.msrb.mxu0 %v7931_v40  ;;  %5936 = vmatpush.bf16.msra.mxu2 %v7935_v24  ;;  %v5601_v25 = vadd.f32 %v5600_v29, %v12631_v12  ;;  %v9015_v12 = vor.u32 %v9819_v55, %v9012_v47  ;;  %v8771_v40 = vor.u32 %v9762_v32, %v8770_v27  ;;  %v8916_v55 = vld [vmem:[%s10768_s18 + $0x7d8] sm:$0xf0]  ;;  %v9681_v32 = vld [vmem:[%s10768_s18 + $0x434] sm:$0xf] }
 0x3e7   : > { %v8775_v24 = vor.u32 %v9759_v14, %v8772_v23  ;;  %v9858_v14 = vld [vmem:[%s10776_s30 + $0xb8] sm:$0xff] }
 0x3e8   : > { %5870 = vmatpush.bf16.msrb.mxu1 %v8147_v45  ;;  %5948 = vmatpush.bf16.msra.mxu3 %v8151_v30  ;;  %v8987_v45 = vor.u32 %v9816_v43, %v8986_v53  ;;  %v9792_v53 = vld [vmem:[%s10768_s18 + $0x7a4] sm:$0xf0]  ;;  %v9789_v43 = vld [vmem:[%s10768_s18 + $0x794] sm:$0xf] }
 0x3e9   : > { %5859 = vmatmul.bf16.vlgmr.msrb.gmra.mxu0 %v12098_v15  ;;  %5937 = vmatmul.bf16.vlgmr.msra.gmra.mxu2 %v12098_v15  ;;  %v9035_v15 = vor.u32 %v9828_v9, %v9034_v39  ;;  %v8940_v39 = vld [vmem:[%s10768_s18 + $0x808] sm:$0xf0] }
 0x3ea   : > { %5903 = vmatpush.bf16.msra.mxu0 %v8867_v62  ;;  %5981 = vmatpush.bf16.msrb.mxu2 %v8871_v28  ;;  %v8746_v62 = vld [vmem:[%s10768_s18 + $0x670] sm:$0xf] }
 0x3eb   : > { %v8747_v57 = vor.u32 %v9756_v3, %v8746_v62 }
 0x3ec   : > { %5871 = vmatpush.bf16.msrb.mxu1 %v8123_v2  ;;  %5949 = vmatpush.bf16.msra.mxu3 %v8127_v19  ;;  %v12768_v4 = vpop.f32.mrf.mxu2  ;;  %v5613_v28 = vpop.f32.mrf.mxu1  ;;  %v9747_v2 = vld [vmem:[%s10768_s18 + $0x644] sm:$0xf]  ;;  %v8938_v19 = vld [vmem:[%s10768_s18 + $0x7f0] sm:$0xf] }
 0x3ed   : > { %v12774_v44 = vadd.f32 %v5613_v28, %v5601_v25  ;;  %v5602_v30 = vpop.f32.mrf.mxu0  ;;  %v8699_v25 = vor.u32 %v9744_v38, %v8698_v61  ;;  %v9717_v38 = vld [vmem:[%s10768_s18 + $0x554] sm:$0xf] }
 0x3ee   : > { %5904 = vmatpush.bf16.msra.mxu0 %v8843_v26  ;;  %5982 = vmatpush.bf16.msrb.mxu2 %v8847_v48  ;;  %v8751_v26 = vor.u32 %v9753_v52, %v8748_v35  ;;  %v8963_v48 = vor.u32 %v9810_v1, %v8962_v21  ;;  %v9675_v35 = vld [vmem:[%s10768_s18 + $0x404] sm:$0xf]  ;;  %v8436_v30 = vld [vmem:[%s10768_s18 + $0x418] sm:$0xf0] }
 0x3ef   : > { %5872 = vmatmul.bf16.vlgmr.msrb.gmra.mxu1 %v12090_v13  ;;  %5950 = vmatmul.bf16.vlgmr.msra.gmra.mxu3 %v12090_v13  ;;  %v9813_v13 = vld [vmem:[%s10768_s18 + $0x854] sm:$0xf]  ;;  %v8439_v0 = vor.u32 %v9675_v35, %v8436_v30  ;;  %v9865_v35 = vld [vmem:[%s10776_s30 + $0xf0] sm:$0xff] }
 0x3f0   : > { %5916 = vmatpush.bf16.msra.mxu1 %v9059_v37  ;;  %5994 = vmatpush.bf16.msrb.mxu3 %v9063_v49  ;;  %v8991_v60 = vor.u32 %v9813_v13, %v8988_v18  ;;  %v9804_v37 = vld [vmem:[%s10768_s18 + $0x804] sm:$0xf0]  ;;  %v9801_v49 = vld [vmem:[%s10768_s18 + $0x7f4] sm:$0xf]  ;;  %v8892_v13 = vld [vmem:[%s10768_s18 + $0x7a8] sm:$0xf0] }
 0x3f1   : > { %v8939_v7 = vor.u32 %v9804_v37, %v8938_v19  ;;  %v8943_v29 = vor.u32 %v9801_v49, %v8940_v39  ;;  %v9735_v18 = vld [vmem:[%s10768_s18 + $0x5e4] sm:$0xf]  ;;  %v8628_v19 = vld [vmem:[%s10768_s18 + $0x598] sm:$0xf0] }
 0x3f2   : > { %5905 = vmatpush.bf16.msra.mxu0 %v8819_v34  ;;  %5983 = vmatpush.bf16.msrb.mxu2 %v8823_v8  ;;  %v12786_v10 = vpop.f32.mrf.mxu3  ;;  %v8727_v34 = vor.u32 %v9747_v2, %v8724_v17  ;;  %v9741_v8 = vld [vmem:[%s10768_s18 + $0x614] sm:$0xf]  ;;  %v9663_v49 = vld [vmem:[%s10768_s18 + $0x3a4] sm:$0xf]  ;;  %v8388_v39 = vld [vmem:[%s10768_s18 + $0x3b8] sm:$0xf0] }
 0x3f3   : > { %v9856_v2 = vld [vmem:[%s10776_s30 + $0xa8] sm:$0xff] }
 0x3f4   : > { %5917 = vmatpush.bf16.msra.mxu1 %v9035_v15  ;;  %5995 = vmatpush.bf16.msrb.mxu3 %v9039_v20  ;;  %v5680_v9 = vpop.f32.mrf.mxu2  ;;  %v5615_v36 = vpop.f32.mrf.mxu1  ;;  %v8700_v15 = vld [vmem:[%s10768_s18 + $0x628] sm:$0xf0]  ;;  %v8914_v20 = vld [vmem:[%s10768_s18 + $0x7c0] sm:$0xf] }
 0x3f5   : > { %v8703_v47 = vor.u32 %v9741_v8, %v8700_v15  ;;  %v8915_v27 = vor.u32 %v9798_v54, %v8914_v20  ;;  %v9855_v9 = vld [vmem:[%s10776_s30 + $0xa0] sm:$0xff]  ;;  %v8391_v36 = vor.u32 %v9663_v49, %v8388_v39  ;;  %v9854_v15 = vld [vmem:[%s10776_s30 + $0x98] sm:$0xff]  ;;  %v8580_v20 = vld [vmem:[%s10768_s18 + $0x538] sm:$0xf0] }
 0x3f6   : > { %5906 = vmatpush.bf16.msra.mxu0 %v8795_v56  ;;  %5984 = vmatpush.bf16.msrb.mxu2 %v8799_v51  ;;  %v5652_v6 = vpop.f32.mrf.mxu0  ;;  %v9795_v56 = vld [vmem:[%s10768_s18 + $0x7c4] sm:$0xf]  ;;  %v8487_v51 = vor.u32 %v9687_v46, %v8484_v11  ;;  %v8604_v8 = vld [vmem:[%s10768_s18 + $0x568] sm:$0xf0]  ;;  %v9861_v39 = vld [vmem:[%s10776_s30 + $0xd0] sm:$0xff] }
 0x3f7   : > { %v8919_v23 = vor.u32 %v9795_v56, %v8916_v55  ;;  %v5653_v62 = vadd.f32 %v5652_v6, %v12671_v33  ;;  %v8895_v33 = vor.u32 %v9789_v43, %v8892_v13  ;;  %v8607_v46 = vor.u32 %v9717_v38, %v8604_v8  ;;  %v8340_v56 = vld [vmem:[%s10768_s18 + $0x358] sm:$0xf0]  ;;  %v9866_v43 = vld [vmem:[%s10776_s30 + $0xf8] sm:$0xff] }
 0x3f8   : > { %5918 = vmatpush.bf16.msra.mxu1 %v9011_v5  ;;  %5996 = vmatpush.bf16.msrb.mxu3 %v9015_v12  ;;  %v8460_v5 = vld [vmem:[%s10768_s18 + $0x448] sm:$0xf0]  ;;  %v8890_v12 = vld [vmem:[%s10768_s18 + $0x790] sm:$0xf]  ;;  %v9853_v55 = vld [vmem:[%s10776_s30 + $0x90] sm:$0xff] }
 0x3f9   : > { %v8463_v3 = vor.u32 %v9681_v32, %v8460_v5  ;;  %v8891_v52 = vor.u32 %v9792_v53, %v8890_v12  ;;  %v9705_v32 = vld [vmem:[%s10768_s18 + $0x4f4] sm:$0xf]  ;;  %v8556_v5 = vld [vmem:[%s10768_s18 + $0x508] sm:$0xf0]  ;;  %v9699_v13 = vld [vmem:[%s10768_s18 + $0x4c4] sm:$0xf] }
 0x3fa   : > { %5907 = vmatpush.bf16.msra.mxu0 %v8771_v40  ;;  %5985 = vmatpush.bf16.msrb.mxu2 %v8775_v24  ;;  %v5693_v40 = vpop.f32.mrf.mxu3  ;;  %v8676_v24 = vld [vmem:[%s10768_s18 + $0x5f8] sm:$0xf0]  ;;  %v8316_v12 = vld [vmem:[%s10768_s18 + $0x328] sm:$0xf0]  ;;  %v9852_v53 = vld [vmem:[%s10776_s30 + $0x88] sm:$0xff] }
 0x3fb   : > { %v8679_v1 = vor.u32 %v9735_v18, %v8676_v24  ;;  %v8559_v40 = vor.u32 %v9705_v32, %v8556_v5  ;;  %v8532_v18 = vld [vmem:[%s10768_s18 + $0x4d8] sm:$0xf0] }
 0x3fc   : > { %5919 = vmatpush.bf16.msra.mxu1 %v8987_v45  ;;  %5997 = vmatpush.bf16.msrb.mxu3 %v8991_v60  ;;  %v5665_v28 = vpop.f32.mrf.mxu1  ;;  %v12810_v45 = vpop.f32.mrf.mxu2  ;;  %v9857_v60 = vld [vmem:[%s10776_s30 + $0xb0] sm:$0xff] }
 0x3fd   : > { %v5666_v21 = vadd.f32 %v5665_v28, %v5653_v62  ;;  %v9842_v28 = vld [vmem:[%s10776_s30 + $0x38] sm:$0xff] }
 0x3fe   : > { %5908 = vmatpush.bf16.msra.mxu0 %v8747_v57  ;;  %5986 = vmatpush.bf16.msrb.mxu2 %v8751_v26  ;;  %v5654_v57 = vpop.f32.mrf.mxu0 }
 0x3ff   : > { %v5679_v26 = vadd.f32 %v12768_v4, %v5666_v21  ;;  %v9723_v4 = vld [vmem:[%s10768_s18 + $0x584] sm:$0xf]  ;;  %v9693_v21 = vld [vmem:[%s10768_s18 + $0x494] sm:$0xf] }
 0x400   : > { %5920 = vmatpush.bf16.msra.mxu1 %v8963_v48  ;;  %5998 = vmatpush.bf16.msrb.mxu3 %v8967_v31  ;;  %v8412_v48 = vld [vmem:[%s10768_s18 + $0x3e8] sm:$0xf0] }
 0x401   : > { %v12824_v17 = vadd.f32 %v12786_v10, %v5679_v26  ;;  %v8415_v37 = vor.u32 %v9669_v16, %v8412_v48  ;;  %v9863_v16 = vld [vmem:[%s10776_s30 + $0xe0] sm:$0xff] }
 0x402   : > { %5909 = vmatpush.bf16.msra.mxu0 %v8723_v22  ;;  %5987 = vmatpush.bf16.msrb.mxu2 %v8727_v34  ;;  %v12826_v31 = vpop.f32.mrf.mxu3  ;;  %v8631_v34 = vor.u32 %v9723_v4, %v8628_v19  ;;  %v9849_v19 = vld [vmem:[%s10776_s30 + $0x70] sm:$0xff] }
 0x403   : > { %v6008_v32 = vpack.c.bf16 %v12824_v17, %v12824_v17 }
 0x404   : > { %5921 = vmatpush.bf16.msra.mxu1 %v8939_v7  ;;  %5999 = vmatpush.bf16.msrb.mxu3 %v8943_v29  ;;  %v5667_v10 = vpop.f32.mrf.mxu1  ;;  %v5732_v22 = vpop.f32.mrf.mxu2  ;;  %v8364_v7 = vld [vmem:[%s10768_s18 + $0x388] sm:$0xf0]  ;;  %v9711_v29 = vld [vmem:[%s10768_s18 + $0x524] sm:$0xf] }
 0x405   : > { %v9848_v22 = vld [vmem:[%s10776_s30 + $0x68] sm:$0xff] }
 0x406   : > { %5910 = vmatpush.bf16.msra.mxu0 %v8699_v25  ;;  %5988 = vmatpush.bf16.msrb.mxu2 %v8703_v47  ;;  %v12835_v61 = vpop.f32.mrf.mxu0  ;;  %v9651_v25 = vld [vmem:[%s10768_s18 + $0x344] sm:$0xf] }
 0x408   : > { %5922 = vmatpush.bf16.msra.mxu1 %v8915_v27  ;;  %6000 = vmatpush.bf16.msrb.mxu3 %v8919_v23  ;;  %v9645_v23 = vld [vmem:[%s10768_s18 + $0x314] sm:$0xf] }
 0x409   : > { %5911 = vmatmul.bf16.vlgmr.msra.gmra.mxu0 %v12440_v42  ;;  %5989 = vmatmul.bf16.vlgmr.msrb.gmra.mxu2 %v12440_v42  ;;  %v8655_v42 = vor.u32 %v9729_v58, %v8652_v63  ;;  %v8319_v62 = vor.u32 %v9645_v23, %v8316_v12  ;;  %v9841_v58 = vld [vmem:[%s10776_s30 + $0x30] sm:$0xff]  ;;  %v9864_v63 = vld [vmem:[%s10776_s30 + $0xe8] sm:$0xff] }
 0x40a   : > { %5955 = vmatpush.bf16.msrb.mxu0 %v8487_v51  ;;  %6427 = vmatpush.bf16.msra.mxu2 %v9858_v14  ;;  %v5745_v11 = vpop.f32.mrf.mxu3  ;;  %v8583_v51 = vor.u32 %v9711_v29, %v8580_v20  ;;  %v8343_v14 = vor.u32 %v9651_v25, %v8340_v56  ;;  %v9859_v29 = vld [vmem:[%s10776_s30 + $0xc0] sm:$0xff] }
 0x40b   : > { %v9845_v11 = vld [vmem:[%s10776_s30 + $0x50] sm:$0xff] }
 0x40c   : > { %5923 = vmatpush.bf16.msra.mxu1 %v8891_v52  ;;  %6001 = vmatpush.bf16.msrb.mxu3 %v8895_v33  ;;  %v12844_v6 = vpop.f32.mrf.mxu2  ;;  %v5717_v47 = vpop.f32.mrf.mxu1  ;;  %v9851_v52 = vld [vmem:[%s10776_s30 + $0x80] sm:$0xff] }
 0x40d   : > { %v8508_v33 = vld [vmem:[%s10768_s18 + $0x4a8] sm:$0xf0] }
 0x40e   : > { %5956 = vmatpush.bf16.msrb.mxu0 %v8463_v3  ;;  %6428 = vmatpush.bf16.msra.mxu2 %v9857_v60  ;;  %v5706_v27 = vpop.f32.mrf.mxu0  ;;  %v8535_v60 = vor.u32 %v9699_v13, %v8532_v18  ;;  %v8511_v26 = vor.u32 %v9693_v21, %v8508_v33  ;;  %v9870_v21 = vld [vmem:[%s10776_s30 + $0x118] sm:$0xff]  ;;  %v9869_v33 = vld [vmem:[%s10776_s30 + $0x110] sm:$0xff] }
 0x40f   : > { %5924 = vmatmul.bf16.vlgmr.msra.gmra.mxu1 %v12456_v41  ;;  %6002 = vmatmul.bf16.vlgmr.msrb.gmra.mxu3 %v12456_v41  ;;  %v9657_v41 = vld [vmem:[%s10768_s18 + $0x374] sm:$0xf] }
 0x410   : > { %5968 = vmatpush.bf16.msrb.mxu1 %v8679_v1  ;;  %v8367_v54 = vor.u32 %v9657_v41, %v8364_v7  ;;  %6440 = vmatpush.bf16.msra.mxu3 %v9866_v43  ;;  %v12866_v1 = vld [vmem:[%s683_s23] sm:$0x3f] }
 0x411   : > { %v4089_v57 = vperm.slane %v12866_v1, 2  ;;  %v9846_v41 = vld [vmem:[%s10776_s30 + $0x58] sm:$0xff]  ;;  %v4090_v5 = vperm.slane %v12866_v1, 3 }
 0x412   : > { %5957 = vmatpush.bf16.msrb.mxu0 %v8439_v0  ;;  %6429 = vmatpush.bf16.msra.mxu2 %v9856_v2  ;;  %v12857_v24 = vpop.f32.mrf.mxu3  ;;  %v9850_v0 = vld [vmem:[%s10776_s30 + $0x78] sm:$0xff] }
 0x413   : > { %v5705_v2 = vadd.f32 %v12835_v61, %v4089_v57  ;;  %v5783_v23 = vadd.f32 %v12844_v6, %v4090_v5  ;;  %v9874_v43 = vld [vmem:[%s10776_s30 + $0x138] sm:$0xff]  ;;  %v9872_v6 = vld [vmem:[%s10776_s30 + $0x128] sm:$0xff] }
 0x414   : > { %5969 = vmatpush.bf16.msrb.mxu1 %v8655_v42  ;;  %v5784_v3 = vpop.f32.mrf.mxu2  ;;  %v5719_v30 = vpop.f32.mrf.mxu1  ;;  %6441 = vmatpush.bf16.msra.mxu3 %v9865_v35  ;;  %v9840_v42 = vld [vmem:[%s10776_s30 + $0x28] sm:$0xff] }
 0x415   : > { %v5718_v4 = vadd.f32 %v5717_v47, %v5705_v2  ;;  %v6007_v47 = vpack.c.bf16 %v12774_v44, %v12774_v44  ;;  %v5796_v12 = vadd.f32 %v12857_v24, %v5783_v23  ;;  %v9873_v3 = vld [vmem:[%s10776_s30 + $0x130] sm:$0xff]  ;;  %v9871_v30 = vld [vmem:[%s10776_s30 + $0x120] sm:$0xff] }
 0x416   : > { %5958 = vmatpush.bf16.msrb.mxu0 %v8415_v37  ;;  %6430 = vmatpush.bf16.msra.mxu2 %v9855_v9  ;;  %v9862_v37 = vld [vmem:[%s10776_s30 + $0xd8] sm:$0xff]  ;;  %v9881_v2 = vld [vmem:[%s10776_s30 + $0x170] sm:$0xff] }
 0x417   : > { %v5731_v10 = vadd.f32 %v12810_v45, %v5718_v4  ;;  %v9838_v9 = vld [vmem:[%s10776_s30 + $0x18] sm:$0xff]  ;;  %v9837_v45 = vld [vmem:[%s10776_s30 + $0x10] sm:$0xff] }
 0x418   : > { %5970 = vmatpush.bf16.msrb.mxu1 %v8631_v34  ;;  %6442 = vmatpush.bf16.msra.mxu3 %v9864_v63 }
 0x419   : > { %v5744_v34 = vadd.f32 %v12826_v31, %v5731_v10  ;;  %v9836_v31 = vld [vmem:[%s10776_s30 + $0x8] sm:$0xff]  ;;  %v9879_v10 = vld [vmem:[%s10776_s30 + $0x160] sm:$0xff] }
 0x41a   : > { %5959 = vmatpush.bf16.msrb.mxu0 %v8391_v36  ;;  %6431 = vmatpush.bf16.msra.mxu2 %v9854_v15  ;;  %v5797_v48 = vpop.f32.mrf.mxu3 }
 0x41b   : > { %v9882_v48 = vld [vmem:[%s10776_s30 + $0x178] sm:$0xff] }
 0x41c   : > { %5971 = vmatpush.bf16.msrb.mxu1 %v8607_v46  ;;  %6443 = vmatpush.bf16.msra.mxu3 %v9863_v16  ;;  %v9860_v46 = vld [vmem:[%s10776_s30 + $0xc8] sm:$0xff] }
 0x41e   : > { %5960 = vmatpush.bf16.msrb.mxu0 %v8367_v54  ;;  %6432 = vmatpush.bf16.msra.mxu2 %v9853_v55  ;;  %v9835_v54 = vld [vmem:[%s10776_s30] sm:$0xff]  ;;  %v9844_v55 = vld [vmem:[%s10776_s30 + $0x48] sm:$0xff] }
 0x420   : > { %5972 = vmatpush.bf16.msrb.mxu1 %v8583_v51  ;;  %6444 = vmatpush.bf16.msra.mxu3 %v9862_v37  ;;  %v9843_v51 = vld [vmem:[%s10776_s30 + $0x40] sm:$0xff]  ;;  %v9880_v37 = vld [vmem:[%s10776_s30 + $0x168] sm:$0xff] }
 0x422   : > { %5961 = vmatpush.bf16.msrb.mxu0 %v8343_v14  ;;  %6433 = vmatpush.bf16.msra.mxu2 %v9852_v53 }
 0x424   : > { %5973 = vmatpush.bf16.msrb.mxu1 %v8559_v40  ;;  %6445 = vmatpush.bf16.msra.mxu3 %v9861_v39 }
 0x426   : > { %5962 = vmatpush.bf16.msrb.mxu0 %v8319_v62  ;;  %6434 = vmatpush.bf16.msra.mxu2 %v9851_v52  ;;  %v5756_v49 = vpop.f32.mrf.mxu0 }
 0x427   : > { %v5757_v61 = vadd.f32 %v5756_v49, %v5744_v34 }
 0x428   : > { %5974 = vmatpush.bf16.msrb.mxu1 %v8535_v60  ;;  %6446 = vmatpush.bf16.msra.mxu3 %v9860_v46  ;;  %v9875_v46 = vld [vmem:[%s10776_s30 + $0x140] sm:$0xff] }
 0x429   : > { %5963 = vmatmul.bf16.vlgmr.msrb.gmra.mxu0 %v12149_v59  ;;  %v9839_v59 = vld [vmem:[%s10776_s30 + $0x20] sm:$0xff] }
 0x42a   : > { %6401 = vmatpush.bf16.msra.mxu0 %v9842_v28 }
 0x42c   : > { %5975 = vmatpush.bf16.msrb.mxu1 %v8511_v26  ;;  %v5769_v38 = vpop.f32.mrf.mxu1  ;;  %v5834_v8 = vpop.f32.mrf.mxu2  ;;  %6447 = vmatpush.bf16.msra.mxu3 %v9859_v29  ;;  %v9867_v26 = vld [vmem:[%s10776_s30 + $0x100] sm:$0xff] }
 0x42d   : > { %v5770_v36 = vadd.f32 %v5769_v38, %v5757_v61  ;;  %v9877_v61 = vld [vmem:[%s10776_s30 + $0x150] sm:$0xff] }
 0x42e   : > { %6402 = vmatpush.bf16.msra.mxu0 %v9841_v58  ;;  %v5758_v7 = vpop.f32.mrf.mxu0  ;;  %v9868_v58 = vld [vmem:[%s10776_s30 + $0x108] sm:$0xff] }
 0x42f   : > { %5976 = vmatmul.bf16.vlgmr.msrb.gmra.mxu1 %v12178_v50  ;;  %v9847_v50 = vld [vmem:[%s10776_s30 + $0x60] sm:$0xff]  ;;  %v6009_v15 = vpack.c.bf16 %v5770_v36, %v5770_v36 }
 0x430   : > { %6414 = vmatpush.bf16.msra.mxu1 %v9850_v0 }
 0x431   : > { %6435 = vmatmul.bf16.vlgmr.msra.gmra.mxu2 %v6009_v15 }
 0x432   : > { %6403 = vmatpush.bf16.msra.mxu0 %v9840_v42  ;;  %v5847_v20 = vpop.f32.mrf.mxu3 }
 0x434   : > { %6415 = vmatpush.bf16.msra.mxu1 %v9849_v19  ;;  %v5771_v25 = vpop.f32.mrf.mxu1  ;;  %v5836_v56 = vpop.f32.mrf.mxu2 }
 0x435   : > { %v4092_v25 = vperm.slane %v12866_v1, 5 }
 0x436   : > { %6404 = vmatpush.bf16.msra.mxu0 %v9839_v59  ;;  %v4091_v59 = vperm.slane %v12866_v1, 4 }
 0x438   : > { %6416 = vmatpush.bf16.msra.mxu1 %v9848_v22 }
 0x43a   : > { %6405 = vmatpush.bf16.msra.mxu0 %v9838_v9  ;;  %v5849_v27 = vpop.f32.mrf.mxu3  ;;  %v9878_v9 = vld [vmem:[%s10776_s30 + $0x158] sm:$0xff] }
 0x43c   : > { %6417 = vmatpush.bf16.msra.mxu1 %v9847_v50 }
 0x43e   : > { %6406 = vmatpush.bf16.msra.mxu0 %v9837_v45 }
 0x440   : > { %6418 = vmatpush.bf16.msra.mxu1 %v9846_v41 }
 0x442   : > { %6407 = vmatpush.bf16.msra.mxu0 %v9836_v31  ;;  %v9876_v31 = vld [vmem:[%s10776_s30 + $0x148] sm:$0xff] }
 0x444   : > { %6419 = vmatpush.bf16.msra.mxu1 %v9845_v11 }
 0x446   : > { %6408 = vmatpush.bf16.msra.mxu0 %v9835_v54  ;;  %v5808_v14 = vpop.f32.mrf.mxu0 }
 0x447   : > { %v5809_v53 = vadd.f32 %v5808_v14, %v5796_v12 }
 0x448   : > { %6420 = vmatpush.bf16.msra.mxu1 %v9844_v55 }
 0x449   : > { %6409 = vmatmul.bf16.vlgmr.msra.gmra.mxu0 %v6007_v47 }
 0x44a   : > { %6453 = vmatpush.bf16.msrb.mxu0 %v9874_v43 }
 0x44c   : > { %6421 = vmatpush.bf16.msra.mxu1 %v9843_v51  ;;  %v5821_v44 = vpop.f32.mrf.mxu1  ;;  %v5886_v13 = vpop.f32.mrf.mxu2 }
 0x44d   : > { %v5822_v40 = vadd.f32 %v5821_v44, %v5809_v53 }
 0x44e   : > { %v5810_v18 = vpop.f32.mrf.mxu0  ;;  %6454 = vmatpush.bf16.msrb.mxu0 %v9873_v3 }
 0x44f   : > { %6422 = vmatmul.bf16.vlgmr.msra.gmra.mxu1 %v6008_v32  ;;  %v5835_v62 = vadd.f32 %v5834_v8, %v5822_v40  ;;  %v9993_v40 = vld [vmem:[%s702_s5] ss:$0 sm:$0xff] }
 0x450   : > { %6466 = vmatpush.bf16.msrb.mxu1 %v9882_v48 }
 0x451   : > { %v5848_v17 = vadd.f32 %v5847_v20, %v5835_v62 }
 0x452   : > { %v5899_v52 = vpop.f32.mrf.mxu3  ;;  %6455 = vmatpush.bf16.msrb.mxu0 %v9872_v6 }
 0x453   : > { %v6010_v28 = vpack.c.bf16 %v5848_v17, %v5848_v17 }
 0x454   : > { %v5823_v24 = vpop.f32.mrf.mxu1  ;;  %v5888_v35 = vpop.f32.mrf.mxu2  ;;  %6467 = vmatpush.bf16.msrb.mxu1 %v9881_v2 }
 0x455   : > { %6448 = vmatmul.bf16.vlgmr.msra.gmra.mxu3 %v6010_v28 }
 0x456   : > { %6456 = vmatpush.bf16.msrb.mxu0 %v9871_v30 }
 0x458   : > { %6468 = vmatpush.bf16.msrb.mxu1 %v9880_v37 }
 0x45a   : > { %v5901_v60 = vpop.f32.mrf.mxu3  ;;  %6457 = vmatpush.bf16.msrb.mxu0 %v9870_v21 }
 0x45c   : > { %6469 = vmatpush.bf16.msrb.mxu1 %v9879_v10 }
 0x45e   : > { %6458 = vmatpush.bf16.msrb.mxu0 %v9869_v33 }
 0x460   : > { %6470 = vmatpush.bf16.msrb.mxu1 %v9878_v9 }
 0x462   : > { %6459 = vmatpush.bf16.msrb.mxu0 %v9868_v58 }
 0x464   : > { %6471 = vmatpush.bf16.msrb.mxu1 %v9877_v61 }
 0x466   : > { %v5860_v57 = vpop.f32.mrf.mxu0  ;;  %6460 = vmatpush.bf16.msrb.mxu0 %v9867_v26 }
 0x467   : > { %v5861_v49 = vadd.f32 %v5860_v57, %v4091_v59 }
 0x468   : > { %6472 = vmatpush.bf16.msrb.mxu1 %v9876_v31 }
 0x46c   : > { %v5873_v63 = vpop.f32.mrf.mxu1  ;;  %v5938_v0 = vpop.f32.mrf.mxu2  ;;  %6473 = vmatpush.bf16.msrb.mxu1 %v9875_v46 }
 0x46d   : > { %v5874_v39 = vadd.f32 %v5873_v63, %v5861_v49  ;;  %v5939_v55 = vadd.f32 %v5938_v0, %v4092_v25 }
 0x46e   : > { %v5862_v16 = vpop.f32.mrf.mxu0 }
 0x46f   : > { %v5887_v34 = vadd.f32 %v5886_v13, %v5874_v39 }
 0x471   : > { %v5900_v45 = vadd.f32 %v5899_v52, %v5887_v34 }
 0x472   : > { %v5951_v42 = vpop.f32.mrf.mxu3 }
 0x473   : > { %v5952_v47 = vadd.f32 %v5951_v42, %v5939_v55 }
 0x474   : > { %v5875_v4 = vpop.f32.mrf.mxu1  ;;  %v5940_v19 = vpop.f32.mrf.mxu2 }
 0x47a   : > { %v5953_v22 = vpop.f32.mrf.mxu3 }
 0x486   : > { %v5912_v50 = vpop.f32.mrf.mxu0 }
 0x487   : > { %v5913_v38 = vadd.f32 %v5912_v50, %v5900_v45 }
 0x48c   : > { %v5925_v8 = vpop.f32.mrf.mxu1  ;;  %v5990_v41 = vpop.f32.mrf.mxu2 }
 0x48d   : > { %v5926_v36 = vadd.f32 %v5925_v8, %v5913_v38 }
 0x48e   : > { %v5914_v7 = vpop.f32.mrf.mxu0 }
 0x48f   : > { %v6011_v15 = vpack.c.bf16 %v5926_v36, %v5926_v36 }
 0x491   : > { %6461 = vmatmul.bf16.vlgmr.msrb.gmra.mxu0 %v6011_v15 }
 0x492   : > { %v6003_v11 = vpop.f32.mrf.mxu3 }
 0x494   : > { %v5927_v29 = vpop.f32.mrf.mxu1  ;;  %v5992_v20 = vpop.f32.mrf.mxu2 }
 0x49a   : > { %v6005_v54 = vpop.f32.mrf.mxu3 }
 0x4a6   : > { %v5964_v56 = vpop.f32.mrf.mxu0 }
 0x4a7   : > { %v5965_v51 = vadd.f32 %v5964_v56, %v5952_v47 }
 0x4ac   : > { %v5977_v27 = vpop.f32.mrf.mxu1 }
 0x4ad   : > { %v5978_v32 = vadd.f32 %v5977_v27, %v5965_v51 }
 0x4ae   : > { %v5966_v5 = vpop.f32.mrf.mxu0 }
 0x4af   : > { %v5991_v14 = vadd.f32 %v5990_v41, %v5978_v32 }
 0x4b1   : > { %v6004_v23 = vadd.f32 %v6003_v11, %v5991_v14 }
 0x4b3   : > { %v6012_v12 = vpack.c.bf16 %v6004_v23, %v6004_v23 }
 0x4b4   : > { %v5979_v53 = vpop.f32.mrf.mxu1  ;;  %v6436_v44 = vpop.f32.mrf.mxu2 }
 0x4b5   : > { %6474 = vmatmul.bf16.vlgmr.msrb.gmra.mxu1 %v6012_v12 }
 0x4bc   : > { %v6438_v18 = vpop.f32.mrf.mxu2 }
 0x4c6   : > { %v6410_v43 = vpop.f32.mrf.mxu0 }
 0x4c7   : > { %v6411_v13 = vadd.f32 %v9993_v40, %v6410_v43 }
 0x4cc   : > { %v6423_v1 = vpop.f32.mrf.mxu1 }
 0x4cd   : > { %v6424_v62 = vadd.f32 %v6423_v1, %v6411_v13 }
 0x4ce   : > { %v6412_v17 = vpop.f32.mrf.mxu0 }
 0x4cf   : > { %v6437_v3 = vadd.f32 %v6436_v44, %v6424_v62 }
 0x4d4   : > { %v6425_v28 = vpop.f32.mrf.mxu1 }
 0x4d8   : > { %v6449_v52 = vpop.f32.mrf.mxu3 }
 0x4d9   : > { %v6450_v6 = vadd.f32 %v6449_v52, %v6437_v3 }
 0x4e0   : > { %v6451_v24 = vpop.f32.mrf.mxu3 }
 0x50e   : > { %v6462_v35 = vpop.f32.mrf.mxu0 }
 0x50f   : > { %v6463_v60 = vadd.f32 %v6462_v35, %v6450_v6 }
 0x516   : > { %v6464_v30 = vpop.f32.mrf.mxu0 }
 0x532   : > { %v6475_v21 = vpop.f32.mrf.mxu1 }
 0x533   : > { %v6476_v33 = vadd.f32 %v6475_v21, %v6463_v60 }
 0x535   : > { %6479 = vst [vmem:[%s800_s27] sm:$0xff] %v6476_v33 }
 0x53a   : > { %v6477_v57 = vpop.f32.mrf.mxu1 }
 0x53b PF: > { %s13005_s24 = sld [smem:[#allocation26_spill]]  ;;  %s13008_s21 = smov %s10390_s22 }
 0x53c   : > { %s13006_s19 = sld [smem:[#allocation24_spill]] }
 0x53d   : > { %s13007_s23 = sld [smem:[#allocation27_spill]] }
 0x541   : > { %p37_p8 = scmp.ge.s32.totalorder %s13005_s24, 9  }
 0x542   : > { %s13009_s22 = smov %s13006_s19 }
 0x543   :  { %39 = sbr.rel (!%p37_p8) target bundleno = 21 (0x15), region = 220 }
 0x548   :  { %6499 = vsyncpa [#allocation3], 1 }
 0x549   :  { %6501 = vsyncpa [#allocation3 + $0x1], 1 }
 0x54a   :  { %6502 = vsyncpa [#allocation5], 1 }
 0x54b   :  { %6504 = vsyncpa [#allocation5 + $0x1], 1 }
 0x54c   :  { %6505 = vsyncpa [#allocation8], 1 }
 0x54d   :  { %6507 = vsyncpa [#allocation8 + $0x1], 1 }
 0x54e   :  { %6508 = vsyncpa [#allocation11], 1 }
 0x54f   :  { %6510 = vsyncpa [#allocation11 + $0x1], 1 }
 0x550   :  { %6511 = vsyncpa [#allocation14], 1 }
 0x551   :  { %6513 = vsyncpa [#allocation14 + $0x1], 1 }
 0x552   :  { %6514 = vsyncpa [#allocation17], 1 }
 0x553   :  { %6516 = vsyncpa [#allocation17 + $0x1], 1 }

</bundles_post_ra>
